<compile_context>
chip_gen: v6e
topology: v6e:2x2x1
jax: 0.10.0
libtpu: 0.0.40
codegen_flags: <defaults>
</compile_context>

<pallas_src>
import functools

import jax
import jax.numpy as jnp
import numpy as np
from jax.experimental import pallas as pl
from jax.experimental.pallas import tpu as pltpu


# Geometry implied by fc1(288, 12):
#   (68,116) -conv5-> (64,112) -pool4-> (16,28) -conv5-> (12,24) -pool4-> (3,6)
#   16 channels * 3 * 6 = 288.
_H, _W = 68, 116
_KH = _KW = 5
_C1, _C2 = 6, 16
_H1C, _W1C = 64, 112          # conv1 output
_H1, _W1 = 16, 28             # pool1 output
_H2C, _W2C = 12, 24           # conv2 output
_H2, _W2 = 3, 6               # pool2 output
_O = 12                       # fc1 outputs

_KSTRIDE1 = 72                # sublane-aligned row stride of the conv1 K-stack (>= 68)
_SEG1 = 128                   # per-image lane segment, conv1 stage  (>= 112, lane aligned)
_SEG2 = 32                    # per-image lane segment, pool1/conv2 stage (>= 28)
_SEG3 = 8                     # per-image lane segment, pool2/fc1 stage  (>= 6)


# ------------------------------- fused kernel --------------------------------

def _fused_kernel(x_ref, w1b_ref, b1_ref, selw1_ref, selh1_ref,
                  w2b_ref, b2_ref, selw2_ref, selh2_ref,
                  w6_ref, msk_ref, r12_ref, o_ref):
    f32 = jnp.float32
    B = x_ref.shape[0]                                        # images per grid step

    # ---- stage 0: K-stacked conv1 operand (360, B*128); explicit zero pads --
    zrow = jnp.zeros((_KSTRIDE1 - _H, _W1C), f32)             # (4, 112)
    zlane = jnp.zeros((_KW * _KSTRIDE1, _SEG1 - _W1C), f32)   # (360, 16)
    cols = []
    for b in range(B):
        xb = x_ref[b]                                         # (68, 116)
        pieces = []
        for kw in range(_KW):
            pieces.append(xb[:, kw:kw + _W1C])                # (68, 112), lane shift
            pieces.append(zrow)
        img = jnp.concatenate(pieces, axis=0)                 # (360, 112)
        cols.append(jnp.concatenate([img, zlane], axis=1))    # (360, 128)
    xs = jnp.concatenate(cols, axis=1)                        # (360, B*128)

    # ---- conv1: ONE MXU matmul for all 6 channels and all B images ----------
    c1 = jnp.dot(w1b_ref[...], xs, preferred_element_type=f32)    # (384, B*128)
    c1 = jnp.maximum(c1 + b1_ref[...], 0.0)                       # bias + ReLU

    # ---- pool1 (4,4): windowed max (VPU/XLU) + stride-4 selection (MXU) -----
    lw = B * _SEG1 - 3
    mw = c1[:, 0:lw]
    for d in range(1, 4):
        mw = jnp.maximum(mw, c1[:, d:lw + d])
    a1 = jnp.dot(mw, selw1_ref[...], preferred_element_type=f32)  # (384, B*32)
    hh = _C1 * _H1C - 3                                           # 381
    mh = a1[0:hh, :]
    for d in range(1, 4):
        mh = jnp.maximum(mh, a1[d:hh + d, :])
    p1 = jnp.dot(selh1_ref[...], mh, preferred_element_type=f32)  # (96, B*32)
    # rows = ci*16 + h1, lanes = b*32 + w1 (w1 < 28; 28..31 are exact zeros)

    # ---- conv2: K-stack 5 kw-shifted pooled maps -> ONE bf16 MXU matmul -----
    zc = jnp.zeros((_C1 * _H1, _SEG2 - _W2C), f32)                # (96, 8)
    blocks = []
    for kw in range(_KW):
        row = []
        for b in range(B):
            row.append(p1[:, b * _SEG2 + kw: b * _SEG2 + kw + _W2C])
            row.append(zc)
        blocks.append(jnp.concatenate(row, axis=1))               # (96, B*32)
    p1s = jnp.concatenate(blocks, axis=0)                         # (480, B*32)
    c2 = jnp.dot(w2b_ref[...], p1s.astype(jnp.bfloat16),
                 preferred_element_type=f32)                      # (192, B*32)
    c2 = jnp.maximum(c2 + b2_ref[...], 0.0)                       # bias + ReLU

    # ---- pool2 (4,4) ---------------------------------------------------------
    lw2 = B * _SEG2 - 3
    mw2 = c2[:, 0:lw2]
    for d in range(1, 4):
        mw2 = jnp.maximum(mw2, c2[:, d:lw2 + d])
    a2 = jnp.dot(mw2, selw2_ref[...], preferred_element_type=f32)  # (192, B*8)
    hh2 = _C2 * _H2C - 3                                           # 189
    mh2 = a2[0:hh2, :]
    for d in range(1, 4):
        mh2 = jnp.maximum(mh2, a2[d:hh2 + d, :])
    p2 = jnp.dot(selh2_ref[...], mh2, preferred_element_type=f32)  # (48, B*8)

    # ---- Threshold(0,0) == ReLU (a mathematical no-op after max-pool of ReLU)
    p2 = jnp.maximum(p2, 0.0)

    # ---- fc1, batched over the B lane segments -------------------------------
    # z[o*6+w, b*8+w'] = sum_r fc1_w[o, r*6+w] * p2[r, b*8+w']; the mask keeps
    # only w == w'.  The final per-segment lane sum + bias is a tiny XLA
    # epilogue in the wrapper.
    z = jnp.dot(w6_ref[...], p2, preferred_element_type=f32) * msk_ref[...]
    o_ref[0] = jnp.dot(r12_ref[...], z, preferred_element_type=f32)  # (12, B*8)


# --------------------------- host-side constants ------------------------------

def _host_constants(B):
    """Weight-independent 0/1 selection matrices (numpy, built once per B)."""
    f32 = np.float32
    selw1 = np.zeros((B * _SEG1 - 3, B * _SEG2), f32)
    for b in range(B):
        for w in range(_W1):
            selw1[b * _SEG1 + 4 * w, b * _SEG2 + w] = 1.0
    selh1 = np.zeros((_C1 * _H1, _C1 * _H1C - 3), f32)
    for c in range(_C1):
        for p in range(_H1):
            selh1[c * _H1 + p, c * _H1C + 4 * p] = 1.0
    selw2 = np.zeros((B * _SEG2 - 3, B * _SEG3), f32)
    for b in range(B):
        for w in range(_W2):
            selw2[b * _SEG2 + 4 * w, b * _SEG3 + w] = 1.0
    selh2 = np.zeros((_C2 * _H2, _C2 * _H2C - 3), f32)
    for c in range(_C2):
        for p in range(_H2):
            selh2[c * _H2 + p, c * _H2C + 4 * p] = 1.0
    msk = (np.arange(_O * _W2)[:, None] % _W2 ==
           np.arange(B * _SEG3)[None, :] % _SEG3).astype(f32)      # (72, B*8)
    r12 = np.zeros((_O, _O * _W2), f32)
    for o in range(_O):
        r12[o, o * _W2:(o + 1) * _W2] = 1.0
    return selw1, selh1, selw2, selh2, msk, r12


def _banded_weights(params):
    """Weight-dependent matmul operands (jnp ops so this traces under jit)."""
    w1 = params["conv1_w"].astype(jnp.float32)                    # (6,1,5,5)
    w2 = params["conv2_w"].astype(jnp.float32)                    # (16,6,5,5)

    # conv1 band: W1B[co*64 + h0, kw*72 + h0 + kh] = w1[co, 0, kh, kw]
    d1 = np.zeros((_KH, _H1C, _KSTRIDE1), np.float32)
    for kh in range(_KH):
        d1[kh, np.arange(_H1C), np.arange(_H1C) + kh] = 1.0
    w1b = jnp.einsum('caw,ahj->chwj', w1[:, 0], d1).reshape(
        _C1 * _H1C, _KW * _KSTRIDE1)                              # (384, 360)

    # conv2 band: W2B[c2*12 + h2, kw*96 + ci*16 + h2 + kh] = w2[c2, ci, kh, kw]
    d2 = np.zeros((_KH, _H2C, _H1), np.float32)
    for kh in range(_KH):
        d2[kh, np.arange(_H2C), np.arange(_H2C) + kh] = 1.0
    w2b = jnp.einsum('ciaw,ahj->chwij', w2, d2).reshape(
        _C2 * _H2C, _KW * _C1 * _H1).astype(jnp.bfloat16)         # (192, 480) bf16

    b1 = jnp.repeat(params["conv1_b"].astype(jnp.float32), _H1C)[:, None]  # (384,1)
    b2 = jnp.repeat(params["conv2_b"].astype(jnp.float32), _H2C)[:, None]  # (192,1)

    # fc1: row o*6 + w holds fc1_w[o, r*6 + w] over r (channel-major flatten).
    w6 = params["fc1_w"].astype(jnp.float32).reshape(_O, _C2 * _H2, _W2)
    w6 = jnp.transpose(w6, (0, 2, 1)).reshape(_O * _W2, _C2 * _H2)         # (72, 48)
    return w1b, b1, w2b, b2, w6


# ------------------------------ model wrapper ---------------------------------

def rtp_debug_net_forward(params, x_nchw, threshold=0.0, stats=None,
                          images_per_step=2):
    """Forward pass of RTPDebugNet (NCHW input, same math as the PyTorch module)."""
    # TODO(synk): rtp.DebugLinear's `threshold`/`stats` debug bookkeeping is a
    # side effect only and is not replicated; the compute matches a plain Linear.
    N, Cin, H, W = x_nchw.shape
    assert Cin == 1 and (H, W) == (_H, _W)
    B = images_per_step
    assert N % B == 0, "batch must be a multiple of images_per_step"
    # NOTE(v7x): keep N // B >= 2 so the 'parallel' grid axis can shard across
    # both TensorCores.  VMEM per step is only a few MB, so B can be raised to
    # ~8-16 on larger batches (selection matrices grow with B).

    x3 = x_nchw[:, 0, :, :].astype(jnp.float32)                    # (N, 68, 116)
    w1b, b1, w2b, b2, w6 = _banded_weights(params)
    selw1, selh1, selw2, selh2, msk, r12 = _host_constants(B)

    operands = (x3, w1b, b1, jnp.asarray(selw1), jnp.asarray(selh1),
                w2b, b2, jnp.asarray(selw2), jnp.asarray(selh2),
                w6, jnp.asarray(msk), jnp.asarray(r12))

    in_specs = [pl.BlockSpec((B, _H, _W), lambda i: (i, 0, 0))]
    for op in operands[1:]:
        in_specs.append(pl.BlockSpec(op.shape, lambda i: (0, 0)))

    out = pl.pallas_call(
        _fused_kernel,
        out_shape=jax.ShapeDtypeStruct((N // B, _O, B * _SEG3), jnp.float32),
        grid=(N // B,),
        in_specs=in_specs,
        out_specs=pl.BlockSpec((1, _O, B * _SEG3), lambda i: (i, 0, 0)),
        compiler_params=pltpu.CompilerParams(
            dimension_semantics=("parallel",),
            vmem_limit_bytes=32 * 1024 * 1024),
    )(*operands)

    # Tiny epilogue: sum each image's 8-lane segment (lanes 6,7 are exact
    # zeros) and add the fc1 bias.
    y = out.reshape(N // B, _O, B, _SEG3).sum(axis=3)              # (G, 12, B)
    y = y.transpose(0, 2, 1).reshape(N, _O)
    return y + params["fc1_b"].astype(jnp.float32)[None, :]


# --------------------------- pure-JAX reference ------------------------------

def reference_forward(params, x_nchw):
    hp = jax.lax.Precision.HIGHEST
    y = jax.lax.conv_general_dilated(
        x_nchw, params["conv1_w"], (1, 1), "VALID",
        dimension_numbers=("NCHW", "OIHW", "NCHW"), precision=hp)
    y = jnp.maximum(y + params["conv1_b"][None, :, None, None], 0.0)
    y = jax.lax.reduce_window(y, -jnp.inf, jax.lax.max,
                              (1, 1, 4, 4), (1, 1, 4, 4), "VALID")
    y = jax.lax.conv_general_dilated(
        y, params["conv2_w"], (1, 1), "VALID",
        dimension_numbers=("NCHW", "OIHW", "NCHW"), precision=hp)
    y = jnp.maximum(y + params["conv2_b"][None, :, None, None], 0.0)
    y = jax.lax.reduce_window(y, -jnp.inf, jax.lax.max,
                              (1, 1, 4, 4), (1, 1, 4, 4), "VALID")
    y = y.reshape(y.shape[0], -1)
    y = jnp.maximum(y, 0.0)
    y = jnp.matmul(y, params["fc1_w"].T, precision=hp) + params["fc1_b"]
    return y


# ----------------------------------- main ------------------------------------

if __name__ == "__main__":
    key = jax.random.PRNGKey(0)
    k1, k2, k3, k4, k5, k6, kx = jax.random.split(key, 7)
    # Parameter shapes from __init__: NPConv2d(1,6,5), NPConv2d(6,16,5),
    # DebugLinear(288, 12). Deterministic synthetic init.
    params = {
        "conv1_w": 0.1 * jax.random.normal(k1, (6, 1, 5, 5), jnp.float32),
        "conv1_b": 0.1 * jax.random.normal(k2, (6,), jnp.float32),
        "conv2_w": 0.1 * jax.random.normal(k3, (16, 6, 5, 5), jnp.float32),
        "conv2_b": 0.1 * jax.random.normal(k4, (16,), jnp.float32),
        "fc1_w": 0.1 * jax.random.normal(k5, (12, 288), jnp.float32),
        "fc1_b": 0.1 * jax.random.normal(k6, (12,), jnp.float32),
    }
    # N=4 images, 2 per grid step -> 2 'parallel' steps (keeps both v7x TCs busy).
    x = jax.random.normal(kx, (4, 1, 68, 116), jnp.float32)

    fwd = jax.jit(functools.partial(rtp_debug_net_forward, images_per_step=2))
    y = jax.block_until_ready(fwd(params, x))
    assert y.shape == (4, 12), y.shape

    y_ref = jax.block_until_ready(reference_forward(params, x))
    # conv2 runs with bf16 MXU operands (f32 accumulation) per the perf review;
    # tolerance sized accordingly (reference runs at f32 HIGHEST precision).
    np.testing.assert_allclose(np.asarray(y), np.asarray(y_ref),
                               rtol=2e-2, atol=2e-2)

    print("KERNEL_OK")
</pallas_src>

<mosaic_0001>
module attributes {stable_mosaic.version = 11 : i64} {
  func.func @_fused_kernel(%arg0: i32, %arg1: memref<2x68x116xf32, #tpu.memory_space<vmem>>, %arg2: memref<384x360xf32, #tpu.memory_space<vmem>>, %arg3: memref<384x1xf32, #tpu.memory_space<vmem>>, %arg4: memref<253x64xf32, #tpu.memory_space<vmem>>, %arg5: memref<96x381xf32, #tpu.memory_space<vmem>>, %arg6: memref<192x480xbf16, #tpu.memory_space<vmem>>, %arg7: memref<192x1xf32, #tpu.memory_space<vmem>>, %arg8: memref<61x16xf32, #tpu.memory_space<vmem>>, %arg9: memref<48x189xf32, #tpu.memory_space<vmem>>, %arg10: memref<72x48xf32, #tpu.memory_space<vmem>>, %arg11: memref<72x16xf32, #tpu.memory_space<vmem>>, %arg12: memref<12x72xf32, #tpu.memory_space<vmem>>, %arg13: memref<1x12x16xf32, #tpu.memory_space<vmem>>) attributes {dimension_semantics = [#tpu.dimension_semantics<parallel>], iteration_bounds = array<i64: 2>, scalar_prefetch = 0 : i64, scratch_operands = 0 : i64, tpu.core_type = #tpu.core_type<tc>, window_params = [{transform_indices = @transform_0, window_bounds = array<i64: 2, 68, 116>}, {pipeline_mode = #tpu.pipeline_mode<synchronous>, transform_indices = @transform_1, window_bounds = array<i64: 384, 360>}, {pipeline_mode = #tpu.pipeline_mode<synchronous>, transform_indices = @transform_2, window_bounds = array<i64: 384, 1>}, {pipeline_mode = #tpu.pipeline_mode<synchronous>, transform_indices = @transform_3, window_bounds = array<i64: 253, 64>}, {pipeline_mode = #tpu.pipeline_mode<synchronous>, transform_indices = @transform_4, window_bounds = array<i64: 96, 381>}, {pipeline_mode = #tpu.pipeline_mode<synchronous>, transform_indices = @transform_5, window_bounds = array<i64: 192, 480>}, {pipeline_mode = #tpu.pipeline_mode<synchronous>, transform_indices = @transform_6, window_bounds = array<i64: 192, 1>}, {pipeline_mode = #tpu.pipeline_mode<synchronous>, transform_indices = @transform_7, window_bounds = array<i64: 61, 16>}, {pipeline_mode = #tpu.pipeline_mode<synchronous>, transform_indices = @transform_8, window_bounds = array<i64: 48, 189>}, {pipeline_mode = #tpu.pipeline_mode<synchronous>, transform_indices = @transform_9, window_bounds = array<i64: 72, 48>}, {pipeline_mode = #tpu.pipeline_mode<synchronous>, transform_indices = @transform_10, window_bounds = array<i64: 72, 16>}, {pipeline_mode = #tpu.pipeline_mode<synchronous>, transform_indices = @transform_11, window_bounds = array<i64: 12, 72>}, {transform_indices = @transform_12, window_bounds = array<i64: 1, 12, 16>}]} {
    %cst = arith.constant 0.000000e+00 : f32
    %0 = vector.broadcast %cst : f32 to vector<4x112xf32>
    %cst_0 = arith.constant 0.000000e+00 : f32
    %1 = vector.broadcast %cst_0 : f32 to vector<360x16xf32>
    %c0 = arith.constant 0 : index
    %c0_1 = arith.constant 0 : index
    %c0_2 = arith.constant 0 : index
    %2 = vector.load %arg1[%c0, %c0_1, %c0_2] : memref<2x68x116xf32, #tpu.memory_space<vmem>>, vector<1x68x116xf32>
    %3 = vector.shape_cast %2 : vector<1x68x116xf32> to vector<68x116xf32>
    %4 = vector.extract_strided_slice %3 {offsets = [0, 0], sizes = [68, 112], strides = [1, 1]} : vector<68x116xf32> to vector<68x112xf32>
    %5 = vector.extract_strided_slice %3 {offsets = [0, 1], sizes = [68, 112], strides = [1, 1]} : vector<68x116xf32> to vector<68x112xf32>
    %6 = vector.extract_strided_slice %3 {offsets = [0, 2], sizes = [68, 112], strides = [1, 1]} : vector<68x116xf32> to vector<68x112xf32>
    %7 = vector.extract_strided_slice %3 {offsets = [0, 3], sizes = [68, 112], strides = [1, 1]} : vector<68x116xf32> to vector<68x112xf32>
    %8 = vector.extract_strided_slice %3 {offsets = [0, 4], sizes = [68, 112], strides = [1, 1]} : vector<68x116xf32> to vector<68x112xf32>
    %9 = tpu.concatenate %4, %0, %5, %0, %6, %0, %7, %0, %8, %0 in 0 : vector<68x112xf32>, vector<4x112xf32>, vector<68x112xf32>, vector<4x112xf32>, vector<68x112xf32>, vector<4x112xf32>, vector<68x112xf32>, vector<4x112xf32>, vector<68x112xf32>, vector<4x112xf32> -> vector<360x112xf32>
    %10 = tpu.concatenate %9, %1 in 1 : vector<360x112xf32>, vector<360x16xf32> -> vector<360x128xf32>
    %c1 = arith.constant 1 : index
    %c0_3 = arith.constant 0 : index
    %c0_4 = arith.constant 0 : index
    %11 = vector.load %arg1[%c1, %c0_3, %c0_4] : memref<2x68x116xf32, #tpu.memory_space<vmem>>, vector<1x68x116xf32>
    %12 = vector.shape_cast %11 : vector<1x68x116xf32> to vector<68x116xf32>
    %13 = vector.extract_strided_slice %12 {offsets = [0, 0], sizes = [68, 112], strides = [1, 1]} : vector<68x116xf32> to vector<68x112xf32>
    %14 = vector.extract_strided_slice %12 {offsets = [0, 1], sizes = [68, 112], strides = [1, 1]} : vector<68x116xf32> to vector<68x112xf32>
    %15 = vector.extract_strided_slice %12 {offsets = [0, 2], sizes = [68, 112], strides = [1, 1]} : vector<68x116xf32> to vector<68x112xf32>
    %16 = vector.extract_strided_slice %12 {offsets = [0, 3], sizes = [68, 112], strides = [1, 1]} : vector<68x116xf32> to vector<68x112xf32>
    %17 = vector.extract_strided_slice %12 {offsets = [0, 4], sizes = [68, 112], strides = [1, 1]} : vector<68x116xf32> to vector<68x112xf32>
    %18 = tpu.concatenate %13, %0, %14, %0, %15, %0, %16, %0, %17, %0 in 0 : vector<68x112xf32>, vector<4x112xf32>, vector<68x112xf32>, vector<4x112xf32>, vector<68x112xf32>, vector<4x112xf32>, vector<68x112xf32>, vector<4x112xf32>, vector<68x112xf32>, vector<4x112xf32> -> vector<360x112xf32>
    %19 = tpu.concatenate %18, %1 in 1 : vector<360x112xf32>, vector<360x16xf32> -> vector<360x128xf32>
    %20 = tpu.concatenate %10, %19 in 1 : vector<360x128xf32>, vector<360x128xf32> -> vector<360x256xf32>
    %c0_5 = arith.constant 0 : index
    %c0_6 = arith.constant 0 : index
    %21 = vector.load %arg2[%c0_5, %c0_6] : memref<384x360xf32, #tpu.memory_space<vmem>>, vector<384x360xf32>
    %cst_7 = arith.constant dense<0.000000e+00> : vector<384x256xf32>
    %22 = tpu.matmul %21, %20, %cst_7 {dimension_numbers = #tpu.dot_dimension_numbers<[1], [0], [0], [1], [0, 0, 1, 1], [], []>} : vector<384x360xf32>, vector<360x256xf32>, vector<384x256xf32> -> vector<384x256xf32>
    %c0_8 = arith.constant 0 : index
    %c0_9 = arith.constant 0 : index
    %23 = vector.load %arg3[%c0_8, %c0_9] : memref<384x1xf32, #tpu.memory_space<vmem>>, vector<384x1xf32>
    %24 = vector.broadcast %23 : vector<384x1xf32> to vector<384x256xf32>
    %25 = arith.addf %22, %24 : vector<384x256xf32>
    %cst_10 = arith.constant 0.000000e+00 : f32
    %26 = vector.broadcast %cst_10 : f32 to vector<384x256xf32>
    %27 = arith.maximumf %25, %26 : vector<384x256xf32>
    %28 = vector.extract_strided_slice %27 {offsets = [0, 0], sizes = [384, 253], strides = [1, 1]} : vector<384x256xf32> to vector<384x253xf32>
    %29 = vector.extract_strided_slice %27 {offsets = [0, 1], sizes = [384, 253], strides = [1, 1]} : vector<384x256xf32> to vector<384x253xf32>
    %30 = arith.maximumf %28, %29 : vector<384x253xf32>
    %31 = vector.extract_strided_slice %27 {offsets = [0, 2], sizes = [384, 253], strides = [1, 1]} : vector<384x256xf32> to vector<384x253xf32>
    %32 = arith.maximumf %30, %31 : vector<384x253xf32>
    %33 = vector.extract_strided_slice %27 {offsets = [0, 3], sizes = [384, 253], strides = [1, 1]} : vector<384x256xf32> to vector<384x253xf32>
    %34 = arith.maximumf %32, %33 : vector<384x253xf32>
    %c0_11 = arith.constant 0 : index
    %c0_12 = arith.constant 0 : index
    %35 = vector.load %arg4[%c0_11, %c0_12] : memref<253x64xf32, #tpu.memory_space<vmem>>, vector<253x64xf32>
    %cst_13 = arith.constant dense<0.000000e+00> : vector<384x64xf32>
    %36 = tpu.matmul %34, %35, %cst_13 {dimension_numbers = #tpu.dot_dimension_numbers<[1], [0], [0], [1], [0, 0, 1, 1], [], []>} : vector<384x253xf32>, vector<253x64xf32>, vector<384x64xf32> -> vector<384x64xf32>
    %37 = vector.extract_strided_slice %36 {offsets = [0, 0], sizes = [381, 64], strides = [1, 1]} : vector<384x64xf32> to vector<381x64xf32>
    %38 = vector.extract_strided_slice %36 {offsets = [1, 0], sizes = [381, 64], strides = [1, 1]} : vector<384x64xf32> to vector<381x64xf32>
    %39 = arith.maximumf %37, %38 : vector<381x64xf32>
    %40 = vector.extract_strided_slice %36 {offsets = [2, 0], sizes = [381, 64], strides = [1, 1]} : vector<384x64xf32> to vector<381x64xf32>
    %41 = arith.maximumf %39, %40 : vector<381x64xf32>
    %42 = vector.extract_strided_slice %36 {offsets = [3, 0], sizes = [381, 64], strides = [1, 1]} : vector<384x64xf32> to vector<381x64xf32>
    %43 = arith.maximumf %41, %42 : vector<381x64xf32>
    %c0_14 = arith.constant 0 : index
    %c0_15 = arith.constant 0 : index
    %44 = vector.load %arg5[%c0_14, %c0_15] : memref<96x381xf32, #tpu.memory_space<vmem>>, vector<96x381xf32>
    %cst_16 = arith.constant dense<0.000000e+00> : vector<96x64xf32>
    %45 = tpu.matmul %44, %43, %cst_16 {dimension_numbers = #tpu.dot_dimension_numbers<[1], [0], [0], [1], [0, 0, 1, 1], [], []>} : vector<96x381xf32>, vector<381x64xf32>, vector<96x64xf32> -> vector<96x64xf32>
    %cst_17 = arith.constant 0.000000e+00 : f32
    %46 = vector.broadcast %cst_17 : f32 to vector<96x8xf32>
    %47 = vector.extract_strided_slice %45 {offsets = [0, 0], sizes = [96, 24], strides = [1, 1]} : vector<96x64xf32> to vector<96x24xf32>
    %48 = vector.extract_strided_slice %45 {offsets = [0, 32], sizes = [96, 24], strides = [1, 1]} : vector<96x64xf32> to vector<96x24xf32>
    %49 = tpu.concatenate %47, %46, %48, %46 in 1 : vector<96x24xf32>, vector<96x8xf32>, vector<96x24xf32>, vector<96x8xf32> -> vector<96x64xf32>
    %50 = vector.extract_strided_slice %45 {offsets = [0, 1], sizes = [96, 24], strides = [1, 1]} : vector<96x64xf32> to vector<96x24xf32>
    %51 = vector.extract_strided_slice %45 {offsets = [0, 33], sizes = [96, 24], strides = [1, 1]} : vector<96x64xf32> to vector<96x24xf32>
    %52 = tpu.concatenate %50, %46, %51, %46 in 1 : vector<96x24xf32>, vector<96x8xf32>, vector<96x24xf32>, vector<96x8xf32> -> vector<96x64xf32>
    %53 = vector.extract_strided_slice %45 {offsets = [0, 2], sizes = [96, 24], strides = [1, 1]} : vector<96x64xf32> to vector<96x24xf32>
    %54 = vector.extract_strided_slice %45 {offsets = [0, 34], sizes = [96, 24], strides = [1, 1]} : vector<96x64xf32> to vector<96x24xf32>
    %55 = tpu.concatenate %53, %46, %54, %46 in 1 : vector<96x24xf32>, vector<96x8xf32>, vector<96x24xf32>, vector<96x8xf32> -> vector<96x64xf32>
    %56 = vector.extract_strided_slice %45 {offsets = [0, 3], sizes = [96, 24], strides = [1, 1]} : vector<96x64xf32> to vector<96x24xf32>
    %57 = vector.extract_strided_slice %45 {offsets = [0, 35], sizes = [96, 24], strides = [1, 1]} : vector<96x64xf32> to vector<96x24xf32>
    %58 = tpu.concatenate %56, %46, %57, %46 in 1 : vector<96x24xf32>, vector<96x8xf32>, vector<96x24xf32>, vector<96x8xf32> -> vector<96x64xf32>
    %59 = vector.extract_strided_slice %45 {offsets = [0, 4], sizes = [96, 24], strides = [1, 1]} : vector<96x64xf32> to vector<96x24xf32>
    %60 = vector.extract_strided_slice %45 {offsets = [0, 36], sizes = [96, 24], strides = [1, 1]} : vector<96x64xf32> to vector<96x24xf32>
    %61 = tpu.concatenate %59, %46, %60, %46 in 1 : vector<96x24xf32>, vector<96x8xf32>, vector<96x24xf32>, vector<96x8xf32> -> vector<96x64xf32>
    %62 = tpu.concatenate %49, %52, %55, %58, %61 in 0 : vector<96x64xf32>, vector<96x64xf32>, vector<96x64xf32>, vector<96x64xf32>, vector<96x64xf32> -> vector<480x64xf32>
    %c0_18 = arith.constant 0 : index
    %c0_19 = arith.constant 0 : index
    %63 = vector.load %arg6[%c0_18, %c0_19] : memref<192x480xbf16, #tpu.memory_space<vmem>>, vector<192x480xbf16>
    %64 = arith.truncf %62 : vector<480x64xf32> to vector<480x64xbf16>
    %cst_20 = arith.constant dense<0.000000e+00> : vector<192x64xf32>
    %65 = tpu.matmul %63, %64, %cst_20 {dimension_numbers = #tpu.dot_dimension_numbers<[1], [0], [0], [1], [0, 0, 1, 1], [], []>} : vector<192x480xbf16>, vector<480x64xbf16>, vector<192x64xf32> -> vector<192x64xf32>
    %c0_21 = arith.constant 0 : index
    %c0_22 = arith.constant 0 : index
    %66 = vector.load %arg7[%c0_21, %c0_22] : memref<192x1xf32, #tpu.memory_space<vmem>>, vector<192x1xf32>
    %67 = vector.broadcast %66 : vector<192x1xf32> to vector<192x64xf32>
    %68 = arith.addf %65, %67 : vector<192x64xf32>
    %cst_23 = arith.constant 0.000000e+00 : f32
    %69 = vector.broadcast %cst_23 : f32 to vector<192x64xf32>
    %70 = arith.maximumf %68, %69 : vector<192x64xf32>
    %71 = vector.extract_strided_slice %70 {offsets = [0, 0], sizes = [192, 61], strides = [1, 1]} : vector<192x64xf32> to vector<192x61xf32>
    %72 = vector.extract_strided_slice %70 {offsets = [0, 1], sizes = [192, 61], strides = [1, 1]} : vector<192x64xf32> to vector<192x61xf32>
    %73 = arith.maximumf %71, %72 : vector<192x61xf32>
    %74 = vector.extract_strided_slice %70 {offsets = [0, 2], sizes = [192, 61], strides = [1, 1]} : vector<192x64xf32> to vector<192x61xf32>
    %75 = arith.maximumf %73, %74 : vector<192x61xf32>
    %76 = vector.extract_strided_slice %70 {offsets = [0, 3], sizes = [192, 61], strides = [1, 1]} : vector<192x64xf32> to vector<192x61xf32>
    %77 = arith.maximumf %75, %76 : vector<192x61xf32>
    %c0_24 = arith.constant 0 : index
    %c0_25 = arith.constant 0 : index
    %78 = vector.load %arg8[%c0_24, %c0_25] : memref<61x16xf32, #tpu.memory_space<vmem>>, vector<61x16xf32>
    %cst_26 = arith.constant dense<0.000000e+00> : vector<192x16xf32>
    %79 = tpu.matmul %77, %78, %cst_26 {dimension_numbers = #tpu.dot_dimension_numbers<[1], [0], [0], [1], [0, 0, 1, 1], [], []>} : vector<192x61xf32>, vector<61x16xf32>, vector<192x16xf32> -> vector<192x16xf32>
    %80 = vector.extract_strided_slice %79 {offsets = [0, 0], sizes = [189, 16], strides = [1, 1]} : vector<192x16xf32> to vector<189x16xf32>
    %81 = vector.extract_strided_slice %79 {offsets = [1, 0], sizes = [189, 16], strides = [1, 1]} : vector<192x16xf32> to vector<189x16xf32>
    %82 = arith.maximumf %80, %81 : vector<189x16xf32>
    %83 = vector.extract_strided_slice %79 {offsets = [2, 0], sizes = [189, 16], strides = [1, 1]} : vector<192x16xf32> to vector<189x16xf32>
    %84 = arith.maximumf %82, %83 : vector<189x16xf32>
    %85 = vector.extract_strided_slice %79 {offsets = [3, 0], sizes = [189, 16], strides = [1, 1]} : vector<192x16xf32> to vector<189x16xf32>
    %86 = arith.maximumf %84, %85 : vector<189x16xf32>
    %c0_27 = arith.constant 0 : index
    %c0_28 = arith.constant 0 : index
    %87 = vector.load %arg9[%c0_27, %c0_28] : memref<48x189xf32, #tpu.memory_space<vmem>>, vector<48x189xf32>
    %cst_29 = arith.constant dense<0.000000e+00> : vector<48x16xf32>
    %88 = tpu.matmul %87, %86, %cst_29 {dimension_numbers = #tpu.dot_dimension_numbers<[1], [0], [0], [1], [0, 0, 1, 1], [], []>} : vector<48x189xf32>, vector<189x16xf32>, vector<48x16xf32> -> vector<48x16xf32>
    %cst_30 = arith.constant 0.000000e+00 : f32
    %89 = vector.broadcast %cst_30 : f32 to vector<48x16xf32>
    %90 = arith.maximumf %88, %89 : vector<48x16xf32>
    %c0_31 = arith.constant 0 : index
    %c0_32 = arith.constant 0 : index
    %91 = vector.load %arg10[%c0_31, %c0_32] : memref<72x48xf32, #tpu.memory_space<vmem>>, vector<72x48xf32>
    %cst_33 = arith.constant dense<0.000000e+00> : vector<72x16xf32>
    %92 = tpu.matmul %91, %90, %cst_33 {dimension_numbers = #tpu.dot_dimension_numbers<[1], [0], [0], [1], [0, 0, 1, 1], [], []>} : vector<72x48xf32>, vector<48x16xf32>, vector<72x16xf32> -> vector<72x16xf32>
    %c0_34 = arith.constant 0 : index
    %c0_35 = arith.constant 0 : index
    %93 = vector.load %arg11[%c0_34, %c0_35] : memref<72x16xf32, #tpu.memory_space<vmem>>, vector<72x16xf32>
    %94 = arith.mulf %92, %93 : vector<72x16xf32>
    %c0_36 = arith.constant 0 : index
    %c0_37 = arith.constant 0 : index
    %95 = vector.load %arg12[%c0_36, %c0_37] : memref<12x72xf32, #tpu.memory_space<vmem>>, vector<12x72xf32>
    %cst_38 = arith.constant dense<0.000000e+00> : vector<12x16xf32>
    %96 = tpu.matmul %95, %94, %cst_38 {dimension_numbers = #tpu.dot_dimension_numbers<[1], [0], [0], [1], [0, 0, 1, 1], [], []>} : vector<12x72xf32>, vector<72x16xf32>, vector<12x16xf32> -> vector<12x16xf32>
    %c0_39 = arith.constant 0 : index
    %c0_40 = arith.constant 0 : index
    %c0_41 = arith.constant 0 : index
    %97 = vector.load %arg13[%c0_39, %c0_40, %c0_41] : memref<1x12x16xf32, #tpu.memory_space<vmem>>, vector<1x12x16xf32>
    %98 = vector.shape_cast %97 : vector<1x12x16xf32> to vector<12x16xf32>
    %99 = vector.shape_cast %96 : vector<12x16xf32> to vector<1x12x16xf32>
    tpu.vector_store %arg13[%c0_39, %c0_40, %c0_41], %99 {strides = array<i32>} : memref<1x12x16xf32, #tpu.memory_space<vmem>>, vector<1x12x16xf32>,
    return
  }
  func.func @transform_0(%arg0: i32) -> (i32, i32, i32) {
    %c0_i32 = arith.constant 0 : i32
    %c0_i32_0 = arith.constant 0 : i32
    %c0_i32_1 = arith.constant 0 : i32
    return %arg0, %c0_i32, %c0_i32_0 : i32, i32, i32
  }
  func.func @transform_1(%arg0: i32) -> (i32, i32) {
    %c0_i32 = arith.constant 0 : i32
    %c0_i32_0 = arith.constant 0 : i32
    %c0_i32_1 = arith.constant 0 : i32
    return %c0_i32, %c0_i32_0 : i32, i32
  }
  func.func @transform_2(%arg0: i32) -> (i32, i32) {
    %c0_i32 = arith.constant 0 : i32
    %c0_i32_0 = arith.constant 0 : i32
    %c0_i32_1 = arith.constant 0 : i32
    return %c0_i32, %c0_i32_0 : i32, i32
  }
  func.func @transform_3(%arg0: i32) -> (i32, i32) {
    %c0_i32 = arith.constant 0 : i32
    %c0_i32_0 = arith.constant 0 : i32
    %c0_i32_1 = arith.constant 0 : i32
    return %c0_i32, %c0_i32_0 : i32, i32
  }
  func.func @transform_4(%arg0: i32) -> (i32, i32) {
    %c0_i32 = arith.constant 0 : i32
    %c0_i32_0 = arith.constant 0 : i32
    %c0_i32_1 = arith.constant 0 : i32
    return %c0_i32, %c0_i32_0 : i32, i32
  }
  func.func @transform_5(%arg0: i32) -> (i32, i32) {
    %c0_i32 = arith.constant 0 : i32
    %c0_i32_0 = arith.constant 0 : i32
    %c0_i32_1 = arith.constant 0 : i32
    return %c0_i32, %c0_i32_0 : i32, i32
  }
  func.func @transform_6(%arg0: i32) -> (i32, i32) {
    %c0_i32 = arith.constant 0 : i32
    %c0_i32_0 = arith.constant 0 : i32
    %c0_i32_1 = arith.constant 0 : i32
    return %c0_i32, %c0_i32_0 : i32, i32
  }
  func.func @transform_7(%arg0: i32) -> (i32, i32) {
    %c0_i32 = arith.constant 0 : i32
    %c0_i32_0 = arith.constant 0 : i32
    %c0_i32_1 = arith.constant 0 : i32
    return %c0_i32, %c0_i32_0 : i32, i32
  }
  func.func @transform_8(%arg0: i32) -> (i32, i32) {
    %c0_i32 = arith.constant 0 : i32
    %c0_i32_0 = arith.constant 0 : i32
    %c0_i32_1 = arith.constant 0 : i32
    return %c0_i32, %c0_i32_0 : i32, i32
  }
  func.func @transform_9(%arg0: i32) -> (i32, i32) {
    %c0_i32 = arith.constant 0 : i32
    %c0_i32_0 = arith.constant 0 : i32
    %c0_i32_1 = arith.constant 0 : i32
    return %c0_i32, %c0_i32_0 : i32, i32
  }
  func.func @transform_10(%arg0: i32) -> (i32, i32) {
    %c0_i32 = arith.constant 0 : i32
    %c0_i32_0 = arith.constant 0 : i32
    %c0_i32_1 = arith.constant 0 : i32
    return %c0_i32, %c0_i32_0 : i32, i32
  }
  func.func @transform_11(%arg0: i32) -> (i32, i32) {
    %c0_i32 = arith.constant 0 : i32
    %c0_i32_0 = arith.constant 0 : i32
    %c0_i32_1 = arith.constant 0 : i32
    return %c0_i32, %c0_i32_0 : i32, i32
  }
  func.func @transform_12(%arg0: i32) -> (i32, i32, i32) {
    %c0_i32 = arith.constant 0 : i32
    %c0_i32_0 = arith.constant 0 : i32
    %c0_i32_1 = arith.constant 0 : i32
    return %arg0, %c0_i32, %c0_i32_0 : i32, i32, i32
  }
}

</mosaic_0001>

<bundles_post_ra>
// kernel: rtp_debug_net_forward.1
= control target key start
LH: loop header
LB: loop body
LE: loop exit
PB: predicated region body
PF: predicated region fallthrough
CT: control target
= control target key end

     0   :  { %s8933_s21 = smov 0   ;;  %s13635_s0 = inlined_call_operand.vmem [shape: f32[4,68,116], index: 0, kind: input, shape index: {}]   ;;  %s13636_s1 = inlined_call_operand.vmem [shape: f32[384,360], index: 1, kind: input, shape index: {}]   ;;  %s13637_s2 = inlined_call_operand.vmem [shape: f32[384,1], index: 2, kind: input, shape index: {}]   ;;  %s13638_s3 = inlined_call_operand.vmem [shape: f32[253,64], index: 3, kind: input, shape index: {}]   ;;  %s13639_s4 = inlined_call_operand.vmem [shape: f32[96,381], index: 4, kind: input, shape index: {}]   ;;  %s13640_s5 = inlined_call_operand.vmem [shape: bf16[192,480], index: 5, kind: input, shape index: {}]   ;;  %s13641_s6 = inlined_call_operand.vmem [shape: f32[192,1], index: 6, kind: input, shape index: {}]   ;;  %s13642_s7 = inlined_call_operand.vmem [shape: f32[61,16], index: 7, kind: input, shape index: {}]   ;;  %s13643_s8 = inlined_call_operand.vmem [shape: f32[48,189], index: 8, kind: input, shape index: {}]   ;;  %s13644_s9 = inlined_call_operand.vmem [shape: f32[72,48], index: 9, kind: input, shape index: {}]   ;;  %s13645_s10 = inlined_call_operand.vmem [shape: f32[72,16], index: 10, kind: input, shape index: {}]   ;;  %s13646_s11 = inlined_call_operand.vmem [shape: f32[12,72], index: 11, kind: input, shape index: {}]   ;;  %s13647_s12 = inlined_call_operand.vmem [shape: f32[2,12,16], index: 12, kind: output, shape index: {}]  }
   0x1 LB: > { %s8939_s22 = sadd.s32 4294967295, %s8859_s21   ;;  %p7426_p0 = scmp.ge.s32.totalorder %s8859_s21, 1  ;;  %s8859_s21 = sphi %s8933_s21, %s22_s21  }
   0x2   : > { %p364_p1 = scmp.lt.s32.totalorder %s8859_s21, 3 }
   0x4   : > { %p365_p2 = pnand %p7426_p0, %p364_p1 }
   0x6   : > { %368 = sbr.rel (%p365_p2) target bundleno = 2990 (0xbae), region = 68 }
   0xb   : > { %s7427_s23 = sshll.u32 %s8939_s22, 1  ;;  %s8861_s28 = smov 127   ;;  %v13650_v18 = vmov 0   ;;  %vm552_vm0 = vcmask 916480   ;;  %v776_v25 = vld [vmem:[%s13636_s1 + $0x8] sm:$0xff]  ;;  %v13648_v28 = vmov 0.0  }
   0xc   : > { %p408_p3 = scmp.lt.s32.totalorder %s7427_s23, 3  ;;  %s8862_s29 = smov 125   ;;  %8304 = vset.pattern.permute.xlu0 %v13650_v18  ;;  %8305 = vset.pattern.permute.xlu1 %v13650_v18  ;;  %vm546_vm1 = vcmask 1043456   ;;  %v919_v37 = vld [vmem:[%s13637_s2] sm:$0xff]  ;;  %v920_v40 = vld [vmem:[%s13637_s2 + $0x8] sm:$0xff]  ;;  %v922_v41 = vld [vmem:[%s13637_s2 + $0x18] sm:$0xff] }
   0xd   : > { %s8863_s30 = smov 124   ;;  %s8864_s13 = smov 126   ;;  %1416 = vmatprep.mubr.f32.mxu0 %v776_v25  ;;  %1769 = vmatprep.mubr.f32.mxu1 %v13648_v28  ;;  %v921_v44 = vld [vmem:[%s13637_s2 + $0x10] sm:$0xff]  ;;  %v924_v45 = vld [vmem:[%s13637_s2 + $0x28] sm:$0xff]  ;;  %v923_v48 = vld [vmem:[%s13637_s2 + $0x20] sm:$0xff]  ;;  %vm1207_vm2 = vcmask 850944  }
   0xe   : > { %s14061_s23 = smov (!%p408_p3, %s7427_s23), 3  ;;  %v926_v49 = vld [vmem:[%s13637_s2 + $0x38] sm:$0xff]  ;;  %v925_v52 = vld [vmem:[%s13637_s2 + $0x30] sm:$0xff]  ;;  %v928_v57 = vld [vmem:[%s13637_s2 + $0x48] sm:$0xff]  ;;  %vm3725_vm3 = vcmask 1044480   ;;  %vm2442_vm4 = vcmask 1039360  }
   0xf   : > { %s8288_s24 = smul.u32 72, %s14061_s23  ;;  %v927_v58 = vld [vmem:[%s13637_s2 + $0x40] sm:$0xff]  ;;  %v930_v61 = vld [vmem:[%s13637_s2 + $0x58] sm:$0xff]  ;;  %v929_v62 = vld [vmem:[%s13637_s2 + $0x50] sm:$0xff]  ;;  %vm3308_vm5 = vcmask 1022976   ;;  %vm2875_vm6 = vcmask 1031168  }
  0x10   : > { %v941_v25 = vld [vmem:[%s13637_s2 + $0xb0] sm:$0xff]  ;;  %vm4082_vm7 = vcmask 1046528   ;;  %vm4274_vm8 = vcmask 1045504   ;;  %vm4982_vm9 = vcmask 195584   ;;  %vm4995_vm10 = vcmask 261120   ;;  %p414_p4 = scmp.lt.s32.totalorder %s8939_s22, 1 }
  0x11   : > { %s8947_s27 = scalar_lea.vmem %s13635_s0, %s8288_s24  ;;  %vm5771_vm11 = vcmask 785408   ;;  %vm5008_vm12 = vcmask 457728   ;;  %vm6410_vm14 = vcmask 498688   ;;  %vm8867_vm15 = vmmov 0  }
  0x12   : > { %v8950_v0 = vld [vmem:[%s8947_s27 + $0x78] sm:$0xff]  ;;  %v8953_v1 = vld [vmem:[%s8947_s27 + $0x70] sm:$0xff]  ;;  %v8963_v3 = vld [vmem:[%s8947_s27 + $0x28] sm:$0xff]  ;;  %s14063_s22 = smov (!%p414_p4, %s8939_s22), 1 }
  0x13   : > { %629 = vrot.lane.b32.xlu0 %v8950_v0, %s8861_s28  ;;  %627 = vrot.lane.b32.xlu1 %v8953_v1, %s8861_s28  ;;  %v8960_v2 = vld [vmem:[%s8947_s27 + $0x30] sm:$0xff]  ;;  %v8970_v4 = vld [vmem:[%s8947_s27 + $0x68] sm:$0xff]  ;;  %vm12579_vm13 = vmpackc.low %vm5008_vm12, %vm5008_vm12 }
  0x14   : > { %v8973_v5 = vld [vmem:[%s8947_s27 + $0x20] sm:$0xff]  ;;  %v8979_v7 = vld [vmem:[%s8947_s27 + $0x18] sm:$0xff]  ;;  %v8989_v9 = vld [vmem:[%s8947_s27 + $0x10] sm:$0xff] }
  0x15   : > { %v8976_v6 = vld [vmem:[%s8947_s27 + $0x60] sm:$0xff]  ;;  %v8986_v8 = vld [vmem:[%s8947_s27 + $0x58] sm:$0xff]  ;;  %v9000_v10 = vld [vmem:[%s8947_s27 + $0x50] sm:$0xff] }
  0x16   : > { %v9003_v11 = vld [vmem:[%s8947_s27 + $0x8] sm:$0xff]  ;;  %v9013_v13 = vld [vmem:[%s8947_s27] sm:$0xff]  ;;  %v9057_v17 = vld [vmem:[%s8947_s27 + $0x38] sm:$0xff] }
  0x17   : > { %450 = vrot.lane.b32.xlu0 %v8960_v2, %s8861_s28  ;;  %448 = vrot.lane.b32.xlu1 %v8963_v3, %s8861_s28  ;;  %v9010_v12 = vld [vmem:[%s8947_s27 + $0x48] sm:$0xff]  ;;  %v9039_v15 = vld [vmem:[%s8947_s27 + $0x40] sm:$0xf] }
  0x18   : > { %v9036_v14 = vld [vmem:[%s8947_s27 + $0x88] sm:$0xf]  ;;  %v9054_v16 = vld [vmem:[%s8947_s27 + $0x80] sm:$0xff]  ;;  %v547_v36 = vsel %vm546_vm1, %v9039_v15, 0.0 }
  0x19   : > { %v725_v35 = vsel %vm546_vm1, %v9036_v14, 0.0 }
  0x1b   : > { %625 = vrot.lane.b32.xlu0 %v8970_v4, %s8861_s28  ;;  %446 = vrot.lane.b32.xlu1 %v8973_v5, %s8861_s28 }
  0x1f   : > { %623 = vrot.lane.b32.xlu0 %v8976_v6, %s8861_s28  ;;  %444 = vrot.lane.b32.xlu1 %v8979_v7, %s8861_s28 }
  0x23   : > { %621 = vrot.lane.b32.xlu0 %v8986_v8, %s8861_s28  ;;  %442 = vrot.lane.b32.xlu1 %v8989_v9, %s8861_s28 }
  0x27   : > { %619 = vrot.lane.b32.xlu0 %v9000_v10, %s8861_s28  ;;  %440 = vrot.lane.b32.xlu1 %v9003_v11, %s8861_s28 }
  0x2b   : > { %617 = vrot.lane.b32.xlu0 %v9010_v12, %s8861_s28  ;;  %438 = vrot.lane.b32.xlu1 %v9013_v13, %s8861_s28 }
  0x2f   : > { %679 = vrot.lane.b32.xlu0 %v8970_v4, %s8862_s29  ;;  %500 = vrot.lane.b32.xlu1 %v8973_v5, %s8862_s29 }
  0x33   : > { %677 = vrot.lane.b32.xlu0 %v8976_v6, %s8862_s29  ;;  %498 = vrot.lane.b32.xlu1 %v8979_v7, %s8862_s29 }
  0x37   : > { %675 = vrot.lane.b32.xlu0 %v8986_v8, %s8862_s29  ;;  %496 = vrot.lane.b32.xlu1 %v8989_v9, %s8862_s29 }
  0x3b   : > { %673 = vrot.lane.b32.xlu0 %v9000_v10, %s8862_s29  ;;  %494 = vrot.lane.b32.xlu1 %v9003_v11, %s8862_s29 }
  0x3f   : > { %714 = vrot.lane.b32.xlu0 %v9036_v14, %s8863_s30  ;;  %535 = vrot.lane.b32.xlu1 %v9039_v15, %s8863_s30 }
  0x43   : > { %671 = vrot.lane.b32.xlu0 %v9010_v12, %s8862_s29  ;;  %492 = vrot.lane.b32.xlu1 %v9013_v13, %s8862_s29 }
  0x47   : > { %660 = vrot.lane.b32.xlu0 %v9036_v14, %s8864_s13  ;;  %481 = vrot.lane.b32.xlu1 %v9039_v15, %s8864_s13 }
  0x4b   : > { %712 = vrot.lane.b32.xlu0 %v9054_v16, %s8863_s30  ;;  %533 = vrot.lane.b32.xlu1 %v9057_v17, %s8863_s30 }
  0x4f   : > { %658 = vrot.lane.b32.xlu0 %v9054_v16, %s8864_s13  ;;  %710 = vrot.lane.b32.xlu1 %v8950_v0, %s8863_s30 }
  0x53   : > { %479 = vrot.lane.b32.xlu0 %v9057_v17, %s8864_s13  ;;  %531 = vrot.lane.b32.xlu1 %v8960_v2, %s8863_s30 }
  0x57   : > { %656 = vrot.lane.b32.xlu0 %v8950_v0, %s8864_s13  ;;  %708 = vrot.lane.b32.xlu1 %v8953_v1, %s8863_s30 }
  0x5b   : > { %477 = vrot.lane.b32.xlu0 %v8960_v2, %s8864_s13  ;;  %529 = vrot.lane.b32.xlu1 %v8963_v3, %s8863_s30 }
  0x5f   : > { %654 = vrot.lane.b32.xlu0 %v8953_v1, %s8864_s13  ;;  %706 = vrot.lane.b32.xlu1 %v8970_v4, %s8863_s30 }
  0x63   : > { %475 = vrot.lane.b32.xlu0 %v8963_v3, %s8864_s13  ;;  %527 = vrot.lane.b32.xlu1 %v8973_v5, %s8863_s30 }
  0x67   : > { %652 = vrot.lane.b32.xlu0 %v8970_v4, %s8864_s13  ;;  %704 = vrot.lane.b32.xlu1 %v8976_v6, %s8863_s30 }
  0x6b   : > { %473 = vrot.lane.b32.xlu0 %v8973_v5, %s8864_s13  ;;  %525 = vrot.lane.b32.xlu1 %v8979_v7, %s8863_s30 }
  0x6f   : > { %650 = vrot.lane.b32.xlu0 %v8976_v6, %s8864_s13  ;;  %702 = vrot.lane.b32.xlu1 %v8986_v8, %s8863_s30 }
  0x73   : > { %471 = vrot.lane.b32.xlu0 %v8979_v7, %s8864_s13  ;;  %523 = vrot.lane.b32.xlu1 %v8989_v9, %s8863_s30 }
  0x77   : > { %648 = vrot.lane.b32.xlu0 %v8986_v8, %s8864_s13  ;;  %700 = vrot.lane.b32.xlu1 %v9000_v10, %s8863_s30 }
  0x7b   : > { %469 = vrot.lane.b32.xlu0 %v8989_v9, %s8864_s13  ;;  %521 = vrot.lane.b32.xlu1 %v9003_v11, %s8863_s30 }
  0x7f   : > { %646 = vrot.lane.b32.xlu0 %v9000_v10, %s8864_s13  ;;  %698 = vrot.lane.b32.xlu1 %v9010_v12, %s8863_s30 }
  0x83   : > { %467 = vrot.lane.b32.xlu0 %v9003_v11, %s8864_s13  ;;  %519 = vrot.lane.b32.xlu1 %v9013_v13, %s8863_s30 }
  0x85   : > { %v630_v19 = vpop.permute.xlu0 %629  ;;  %v628_v20 = vpop.permute.xlu1 %627 }
  0x86   : > { %7440 = vmatprep.subr.msk.mxu0 %vm552_vm0, %v630_v19 }
  0x87   : > { %687 = vrot.lane.b32.xlu0 %v9036_v14, %s8862_s29  ;;  %508 = vrot.lane.b32.xlu1 %v9039_v15, %s8862_s29 }
  0x89   : > { %v451_v21 = vpop.permute.xlu0 %450  ;;  %v449_v22 = vpop.permute.xlu1 %448 }
  0x8a   : > { %7441 = vmatpush1.msk.msra.mxu0 %vm552_vm0, %v451_v21  ;;  %v940_v21 = vld [vmem:[%s13637_s2 + $0xa8] sm:$0xff] }
  0x8b   : > { %7442 = vmatprep.subr.msk.mxu0 %vm552_vm0, %v628_v20  ;;  %644 = vrot.lane.b32.xlu0 %v9010_v12, %s8864_s13  ;;  %v939_v20 = vld [vmem:[%s13637_s2 + $0xa0] sm:$0xff] }
  0x8c   : > { %7443 = vmatpush1.msk.msra.mxu0 %vm552_vm0, %v449_v22  ;;  %465 = vrot.lane.b32.xlu1 %v9013_v13, %s8864_s13 }
  0x8d   : > { %v626_v23 = vpop.permute.xlu0 %625  ;;  %v447_v24 = vpop.permute.xlu1 %446 }
  0x8e   : > { %7444 = vmatprep.subr.msk.mxu0 %vm552_vm0, %v626_v23 }
  0x8f   : > { %7445 = vmatpush1.msk.msra.mxu0 %vm552_vm0, %v447_v24  ;;  %633 = vrot.lane.b32.xlu0 %v9036_v14, %s8861_s28  ;;  %v942_v24 = vld [vmem:[%s13637_s2 + $0xb8] sm:$0xff] }
  0x90   : > { %454 = vrot.lane.b32.xlu1 %v9039_v15, %s8861_s28  ;;  %v938_v15 = vld [vmem:[%s13637_s2 + $0x98] sm:$0xff] }
  0x91   : > { %v624_v26 = vpop.permute.xlu0 %623  ;;  %v445_v27 = vpop.permute.xlu1 %444 }
  0x92   : > { %7446 = vmatprep.subr.msk.mxu0 %vm552_vm0, %v624_v26 }
  0x93   : > { %7447 = vmatpush1.msk.msra.mxu0 %vm552_vm0, %v445_v27  ;;  %685 = vrot.lane.b32.xlu0 %v9054_v16, %s8862_s29 }
  0x94   : > { %506 = vrot.lane.b32.xlu1 %v9057_v17, %s8862_s29 }
  0x95   : > { %v622_v29 = vpop.permute.xlu0 %621  ;;  %v443_v30 = vpop.permute.xlu1 %442 }
  0x96   : > { %7448 = vmatprep.subr.msk.mxu0 %vm552_vm0, %v622_v29  ;;  %v943_v29 = vld [vmem:[%s13637_s2 + $0xc0] sm:$0xff] }
  0x97   : > { %7449 = vmatpush1.msk.msra.mxu0 %vm552_vm0, %v443_v30  ;;  %631 = vrot.lane.b32.xlu0 %v9054_v16, %s8861_s28  ;;  %v944_v30 = vld [vmem:[%s13637_s2 + $0xc8] sm:$0xff] }
  0x98   : > { %683 = vrot.lane.b32.xlu1 %v8950_v0, %s8862_s29 }
  0x99   : > { %v620_v31 = vpop.permute.xlu0 %619  ;;  %v441_v32 = vpop.permute.xlu1 %440 }
  0x9a   : > { %7450 = vmatprep.subr.msk.mxu0 %vm552_vm0, %v620_v31 }
  0x9b   : > { %452 = vrot.lane.b32.xlu0 %v9057_v17, %s8861_s28  ;;  %7451 = vmatpush1.msk.msra.mxu0 %vm552_vm0, %v441_v32 }
  0x9c   : > { %504 = vrot.lane.b32.xlu1 %v8960_v2, %s8862_s29 }
  0x9d   : > { %v618_v33 = vpop.permute.xlu0 %617  ;;  %v439_v34 = vpop.permute.xlu1 %438 }
  0x9e   : > { %7452 = vmatprep.subr.msk.mxu0 %vm552_vm0, %v618_v33  ;;  %v946_v33 = vld [vmem:[%s13637_s2 + $0xd8] sm:$0xff] }
  0x9f   : > { %681 = vrot.lane.b32.xlu0 %v8953_v1, %s8862_s29  ;;  %7453 = vmatpush1.msk.msra.mxu0 %vm552_vm0, %v439_v34  ;;  %v945_v34 = vld [vmem:[%s13637_s2 + $0xd0] sm:$0xff] }
  0xa0   : > { %502 = vrot.lane.b32.xlu1 %v8963_v3, %s8862_s29  ;;  %7454 = vmatprep.subr.msk.mxu0 %vm552_vm0, %v725_v35 }
  0xa1   : > { %v680_v38 = vpop.permute.xlu0 %679  ;;  %7455 = vmatpush1.msk.msra.mxu0 %vm552_vm0, %v547_v36  ;;  %v501_v39 = vpop.permute.xlu1 %500 }
  0xa2   : > { %7456 = vmatprep.subr.msk.mxu0 %vm552_vm0, %v9054_v16  ;;  %v937_v16 = vld [vmem:[%s13637_s2 + $0x90] sm:$0xff] }
  0xa3   : > { %7457 = vmatpush1.msk.msra.mxu0 %vm552_vm0, %v9057_v17  ;;  %969 = vperm.xlu0 %8304, %v919_v37   ;;  %v947_v37 = vld [vmem:[%s13637_s2 + $0xe0] sm:$0xff] }
  0xa4   : > { %7458 = vmatprep.subr.msk.mxu0 %vm552_vm0, %v8950_v0  ;;  %974 = vperm.xlu1 %8305, %v920_v40  }
  0xa5   : > { %v678_v42 = vpop.permute.xlu0 %677  ;;  %7459 = vmatpush1.msk.msra.mxu0 %vm552_vm0, %v8960_v2  ;;  %v499_v43 = vpop.permute.xlu1 %498 }
  0xa6   : > { %7460 = vmatprep.subr.msk.mxu0 %vm552_vm0, %v8953_v1 }
  0xa7   : > { %7461 = vmatpush1.msk.msra.mxu0 %vm552_vm0, %v8963_v3  ;;  %984 = vperm.xlu0 %8304, %v922_v41   ;;  %v932_v3 = vld [vmem:[%s13637_s2 + $0x68] sm:$0xff]  ;;  %v950_v41 = vld [vmem:[%s13637_s2 + $0xf8] sm:$0xff] }
  0xa8   : > { %7462 = vmatprep.subr.msk.mxu0 %vm552_vm0, %v8970_v4  ;;  %979 = vperm.xlu1 %8305, %v921_v44   ;;  %v931_v4 = vld [vmem:[%s13637_s2 + $0x60] sm:$0xff] }
  0xa9   : > { %v676_v46 = vpop.permute.xlu0 %675  ;;  %7463 = vmatpush1.msk.msra.mxu0 %vm552_vm0, %v8973_v5  ;;  %v497_v47 = vpop.permute.xlu1 %496 }
  0xaa   : > { %7464 = vmatprep.subr.msk.mxu0 %vm552_vm0, %v8976_v6 }
  0xab   : > { %7465 = vmatpush1.msk.msra.mxu0 %vm552_vm0, %v8979_v7  ;;  %994 = vperm.xlu0 %8304, %v924_v45   ;;  %v934_v7 = vld [vmem:[%s13637_s2 + $0x78] sm:$0xff]  ;;  %v951_v45 = vld [vmem:[%s13637_s2 + $0x100] sm:$0xff] }
  0xac   : > { %7466 = vmatprep.subr.msk.mxu0 %vm552_vm0, %v8986_v8  ;;  %989 = vperm.xlu1 %8305, %v923_v48   ;;  %v933_v8 = vld [vmem:[%s13637_s2 + $0x70] sm:$0xff] }
  0xad   : > { %v674_v50 = vpop.permute.xlu0 %673  ;;  %7467 = vmatpush1.msk.msra.mxu0 %vm552_vm0, %v8989_v9  ;;  %v495_v51 = vpop.permute.xlu1 %494 }
  0xae   : > { %7468 = vmatprep.subr.msk.mxu0 %vm552_vm0, %v9000_v10 }
  0xaf   : > { %7469 = vmatpush1.msk.msra.mxu0 %vm552_vm0, %v9003_v11  ;;  %1004 = vperm.xlu0 %8304, %v926_v49   ;;  %v936_v11 = vld [vmem:[%s13637_s2 + $0x88] sm:$0xff]  ;;  %v954_v49 = vld [vmem:[%s13637_s2 + $0x118] sm:$0xff] }
  0xb0   : > { %7470 = vmatprep.subr.msk.mxu0 %vm552_vm0, %v9010_v12  ;;  %999 = vperm.xlu1 %8305, %v925_v52   ;;  %v935_v12 = vld [vmem:[%s13637_s2 + $0x80] sm:$0xff] }
  0xb1   : > { %v715_v53 = vpop.permute.xlu0 %714  ;;  %7471 = vmatpush1.msk.msra.mxu0 %vm552_vm0, %v9013_v13  ;;  %v536_v54 = vpop.permute.xlu1 %535 }
  0xb2   : > { %7472 = vmatprep.subr.msk.mxu0 %vm552_vm0, %v680_v38  ;;  %v729_v55 = vsel %vm546_vm1, %v715_v53, 0.0  ;;  %v551_v56 = vsel %vm546_vm1, %v536_v54, 0.0  ;;  %v948_v38 = vld [vmem:[%s13637_s2 + $0xe8] sm:$0xff]  ;;  %v955_v53 = vld [vmem:[%s13637_s2 + $0x120] sm:$0xff] }
  0xb3   : > { %7473 = vmatpush2.msk.msra.mxu0 %vm552_vm0, %v501_v39  ;;  %7504 = vmatprep.subr.msk.mxu1 %vm552_vm0, %v729_v55  ;;  %v956_v54 = vld [vmem:[%s13637_s2 + $0x128] sm:$0xff] }
  0xb4   : > { %7474 = vmatprep.subr.msk.mxu0 %vm552_vm0, %v678_v42  ;;  %7505 = vmatpush1.msk.msra.mxu1 %vm552_vm0, %v551_v56  ;;  %v949_v42 = vld [vmem:[%s13637_s2 + $0xf0] sm:$0xff] }
  0xb5   : > { %v672_v59 = vpop.permute.xlu0 %671  ;;  %7475 = vmatpush2.msk.msra.mxu0 %vm552_vm0, %v499_v43  ;;  %v493_v60 = vpop.permute.xlu1 %492  ;;  %1014 = vperm.xlu0 %8304, %v928_v57   ;;  %v958_v57 = vld [vmem:[%s13637_s2 + $0x138] sm:$0xff] }
  0xb6   : > { %7476 = vmatprep.subr.msk.mxu0 %vm552_vm0, %v676_v46  ;;  %1009 = vperm.xlu1 %8305, %v927_v58   ;;  %v952_v46 = vld [vmem:[%s13637_s2 + $0x108] sm:$0xff]  ;;  %v957_v58 = vld [vmem:[%s13637_s2 + $0x130] sm:$0xff] }
  0xb7   : > { %7477 = vmatpush2.msk.msra.mxu0 %vm552_vm0, %v497_v47 }
  0xb8   : > { %7478 = vmatprep.subr.msk.mxu0 %vm552_vm0, %v674_v50  ;;  %v953_v50 = vld [vmem:[%s13637_s2 + $0x110] sm:$0xff] }
  0xb9   : > { %v661_v63 = vpop.permute.xlu0 %660  ;;  %7479 = vmatpush2.msk.msra.mxu0 %vm552_vm0, %v495_v51  ;;  %v482_v0 = vpop.permute.xlu1 %481  ;;  %1024 = vperm.xlu0 %8304, %v930_v61   ;;  %v959_v61 = vld [vmem:[%s13637_s2 + $0x140] sm:$0xff] }
  0xba   : > { %v727_v1 = vsel %vm546_vm1, %v661_v63, 0.0  ;;  %7480 = vmatprep.subr.msk.mxu0 %vm552_vm0, %v672_v59  ;;  %v549_v2 = vsel %vm546_vm1, %v482_v0, 0.0  ;;  %1019 = vperm.xlu1 %8305, %v929_v62   ;;  %v960_v62 = vld [vmem:[%s13637_s2 + $0x148] sm:$0xff] }
  0xbb   : > { %7481 = vmatpush2.msk.msra.mxu0 %vm552_vm0, %v493_v60 }
  0xbc   : > { %7482 = vmatprep.subr.msk.mxu0 %vm552_vm0, %v727_v1  ;;  %v962_v1 = vld [vmem:[%s13637_s2 + $0x158] sm:$0xff] }
  0xbd   : > { %v713_v5 = vpop.permute.xlu0 %712  ;;  %7483 = vmatpush2.msk.msra.mxu0 %vm552_vm0, %v549_v2  ;;  %v534_v6 = vpop.permute.xlu1 %533  ;;  %1034 = vperm.xlu0 %8304, %v932_v3   ;;  %v961_v2 = vld [vmem:[%s13637_s2 + $0x150] sm:$0xff] }
  0xbe   : > { %7506 = vmatprep.subr.msk.mxu1 %vm552_vm0, %v713_v5  ;;  %1029 = vperm.xlu1 %8305, %v931_v4  }
  0xbf   : > { %7507 = vmatpush1.msk.msra.mxu1 %vm552_vm0, %v534_v6 }
  0xc1   : > { %v659_v9 = vpop.permute.xlu0 %658  ;;  %v711_v10 = vpop.permute.xlu1 %710  ;;  %1044 = vperm.xlu0 %8304, %v934_v7   ;;  %v963_v7 = vld [vmem:[%s13637_s2 + $0x160] sm:$0xff] }
  0xc2   : > { %7484 = vmatprep.subr.msk.mxu0 %vm552_vm0, %v659_v9  ;;  %7508 = vmatprep.subr.msk.mxu1 %vm552_vm0, %v711_v10 }
  0xc3   : > { %1039 = vperm.xlu1 %8305, %v933_v8   ;;  %v964_v8 = vld [vmem:[%s13637_s2 + $0x168] sm:$0xff] }
  0xc5   : > { %v480_v13 = vpop.permute.xlu0 %479  ;;  %v532_v14 = vpop.permute.xlu1 %531  ;;  %1054 = vperm.xlu0 %8304, %v936_v11   ;;  %v965_v11 = vld [vmem:[%s13637_s2 + $0x170] sm:$0xff] }
  0xc6   : > { %7485 = vmatpush2.msk.msra.mxu0 %vm552_vm0, %v480_v13  ;;  %7509 = vmatpush1.msk.msra.mxu1 %vm552_vm0, %v532_v14 }
  0xc7   : > { %1049 = vperm.xlu1 %8305, %v935_v12  }
  0xc9   : > { %v657_v17 = vpop.permute.xlu0 %656  ;;  %v709_v19 = vpop.permute.xlu1 %708  ;;  %1064 = vperm.xlu0 %8304, %v938_v15  }
  0xca   : > { %7486 = vmatprep.subr.msk.mxu0 %vm552_vm0, %v657_v17  ;;  %7510 = vmatprep.subr.msk.mxu1 %vm552_vm0, %v709_v19 }
  0xcb   : > { %1059 = vperm.xlu1 %8305, %v937_v16  }
  0xcd   : > { %v478_v22 = vpop.permute.xlu0 %477  ;;  %v530_v23 = vpop.permute.xlu1 %529  ;;  %1069 = vperm.xlu0 %8304, %v939_v20  }
  0xce   : > { %7487 = vmatpush2.msk.msra.mxu0 %vm552_vm0, %v478_v22  ;;  %7511 = vmatpush1.msk.msra.mxu1 %vm552_vm0, %v530_v23  ;;  %v779_v23 = vld [vmem:[%s13636_s1 + $0x20] sm:$0xff] }
  0xcf   : > { %1074 = vperm.xlu1 %8305, %v940_v21   ;;  %v775_v21 = vld [vmem:[%s13636_s1] sm:$0xff] }
  0xd1   : > { %v655_v26 = vpop.permute.xlu0 %654  ;;  %v707_v27 = vpop.permute.xlu1 %706  ;;  %1084 = vperm.xlu0 %8304, %v942_v24  }
  0xd2   : > { %7488 = vmatprep.subr.msk.mxu0 %vm552_vm0, %v655_v26  ;;  %7512 = vmatprep.subr.msk.mxu1 %vm552_vm0, %v707_v27  ;;  %v777_v27 = vld [vmem:[%s13636_s1 + $0x10] sm:$0xff] }
  0xd3   : > { %1079 = vperm.xlu1 %8305, %v941_v25   ;;  %v778_v25 = vld [vmem:[%s13636_s1 + $0x18] sm:$0xff] }
  0xd5   : > { %v476_v31 = vpop.permute.xlu0 %475  ;;  %v528_v32 = vpop.permute.xlu1 %527  ;;  %1089 = vperm.xlu0 %8304, %v943_v29   ;;  %v782_v29 = vld [vmem:[%s13636_s1 + $0x38] sm:$0xff] }
  0xd6   : > { %7489 = vmatpush2.msk.msra.mxu0 %vm552_vm0, %v476_v31  ;;  %7513 = vmatpush1.msk.msra.mxu1 %vm552_vm0, %v528_v32  ;;  %v781_v31 = vld [vmem:[%s13636_s1 + $0x30] sm:$0xff]  ;;  %v780_v32 = vld [vmem:[%s13636_s1 + $0x28] sm:$0xff] }
  0xd7   : > { %1094 = vperm.xlu1 %8305, %v944_v30  }
  0xd9   : > { %v653_v35 = vpop.permute.xlu0 %652  ;;  %v705_v36 = vpop.permute.xlu1 %704  ;;  %1104 = vperm.xlu0 %8304, %v946_v33   ;;  %v785_v33 = vld [vmem:[%s13636_s1 + $0x50] sm:$0xff] }
  0xda   : > { %7490 = vmatprep.subr.msk.mxu0 %vm552_vm0, %v653_v35  ;;  %7514 = vmatprep.subr.msk.mxu1 %vm552_vm0, %v705_v36  ;;  %v783_v35 = vld [vmem:[%s13636_s1 + $0x40] sm:$0xff]  ;;  %v788_v36 = vld [vmem:[%s13636_s1 + $0x68] sm:$0xff] }
  0xdb   : > { %1099 = vperm.xlu1 %8305, %v945_v34   ;;  %v784_v34 = vld [vmem:[%s13636_s1 + $0x48] sm:$0xff] }
  0xdd   : > { %v474_v39 = vpop.permute.xlu0 %473  ;;  %v526_v40 = vpop.permute.xlu1 %525  ;;  %1109 = vperm.xlu0 %8304, %v947_v37   ;;  %v787_v37 = vld [vmem:[%s13636_s1 + $0x60] sm:$0xff] }
  0xde   : > { %7491 = vmatpush2.msk.msra.mxu0 %vm552_vm0, %v474_v39  ;;  %7515 = vmatpush1.msk.msra.mxu1 %vm552_vm0, %v526_v40  ;;  %v791_v39 = vld [vmem:[%s13636_s1 + $0x80] sm:$0xff]  ;;  %v790_v40 = vld [vmem:[%s13636_s1 + $0x78] sm:$0xff] }
  0xdf   : > { %1114 = vperm.xlu1 %8305, %v948_v38   ;;  %v786_v38 = vld [vmem:[%s13636_s1 + $0x58] sm:$0xff] }
  0xe1   : > { %v651_v43 = vpop.permute.xlu0 %650  ;;  %v703_v44 = vpop.permute.xlu1 %702  ;;  %1124 = vperm.xlu0 %8304, %v950_v41   ;;  %v789_v41 = vld [vmem:[%s13636_s1 + $0x70] sm:$0xff] }
  0xe2   : > { %7492 = vmatprep.subr.msk.mxu0 %vm552_vm0, %v651_v43  ;;  %7516 = vmatprep.subr.msk.mxu1 %vm552_vm0, %v703_v44  ;;  %v793_v43 = vld [vmem:[%s13636_s1 + $0x90] sm:$0xff]  ;;  %v792_v44 = vld [vmem:[%s13636_s1 + $0x88] sm:$0xff] }
  0xe3   : > { %1119 = vperm.xlu1 %8305, %v949_v42   ;;  %v794_v42 = vld [vmem:[%s13636_s1 + $0x98] sm:$0xff] }
  0xe5   : > { %v472_v47 = vpop.permute.xlu0 %471  ;;  %v524_v48 = vpop.permute.xlu1 %523  ;;  %1129 = vperm.xlu0 %8304, %v951_v45   ;;  %v797_v45 = vld [vmem:[%s13636_s1 + $0xb0] sm:$0xff] }
  0xe6   : > { %7493 = vmatpush2.msk.msra.mxu0 %vm552_vm0, %v472_v47  ;;  %7517 = vmatpush1.msk.msra.mxu1 %vm552_vm0, %v524_v48  ;;  %v795_v47 = vld [vmem:[%s13636_s1 + $0xa0] sm:$0xff]  ;;  %v800_v48 = vld [vmem:[%s13636_s1 + $0xc8] sm:$0xff] }
  0xe7   : > { %1134 = vperm.xlu1 %8305, %v952_v46   ;;  %v796_v46 = vld [vmem:[%s13636_s1 + $0xa8] sm:$0xff] }
  0xe9   : > { %v649_v51 = vpop.permute.xlu0 %648  ;;  %v701_v52 = vpop.permute.xlu1 %700  ;;  %1144 = vperm.xlu0 %8304, %v954_v49   ;;  %v799_v49 = vld [vmem:[%s13636_s1 + $0xc0] sm:$0xff] }
  0xea   : > { %7494 = vmatprep.subr.msk.mxu0 %vm552_vm0, %v649_v51  ;;  %7518 = vmatprep.subr.msk.mxu1 %vm552_vm0, %v701_v52  ;;  %v803_v51 = vld [vmem:[%s13636_s1 + $0xe0] sm:$0xff]  ;;  %v802_v52 = vld [vmem:[%s13636_s1 + $0xd8] sm:$0xff] }
  0xeb   : > { %1139 = vperm.xlu1 %8305, %v953_v50   ;;  %v798_v50 = vld [vmem:[%s13636_s1 + $0xb8] sm:$0xff] }
  0xed   : > { %v470_v55 = vpop.permute.xlu0 %469  ;;  %v522_v56 = vpop.permute.xlu1 %521  ;;  %1149 = vperm.xlu0 %8304, %v955_v53   ;;  %v801_v53 = vld [vmem:[%s13636_s1 + $0xd0] sm:$0xff] }
  0xee   : > { %7495 = vmatpush2.msk.msra.mxu0 %vm552_vm0, %v470_v55  ;;  %7519 = vmatpush1.msk.msra.mxu1 %vm552_vm0, %v522_v56  ;;  %v805_v55 = vld [vmem:[%s13636_s1 + $0xf0] sm:$0xff]  ;;  %v804_v56 = vld [vmem:[%s13636_s1 + $0xe8] sm:$0xff] }
  0xef   : > { %1154 = vperm.xlu1 %8305, %v956_v54   ;;  %v806_v54 = vld [vmem:[%s13636_s1 + $0xf8] sm:$0xff] }
  0xf1   : > { %v647_v59 = vpop.permute.xlu0 %646  ;;  %v699_v60 = vpop.permute.xlu1 %698  ;;  %1164 = vperm.xlu0 %8304, %v958_v57   ;;  %v809_v57 = vld [vmem:[%s13636_s1 + $0x110] sm:$0xff] }
  0xf2   : > { %7496 = vmatprep.subr.msk.mxu0 %vm552_vm0, %v647_v59  ;;  %7520 = vmatprep.subr.msk.mxu1 %vm552_vm0, %v699_v60  ;;  %v807_v59 = vld [vmem:[%s13636_s1 + $0x100] sm:$0xff]  ;;  %v812_v60 = vld [vmem:[%s13636_s1 + $0x128] sm:$0xff] }
  0xf3   : > { %1159 = vperm.xlu1 %8305, %v957_v58   ;;  %v808_v58 = vld [vmem:[%s13636_s1 + $0x108] sm:$0xff] }
  0xf5   : > { %v468_v63 = vpop.permute.xlu0 %467  ;;  %v520_v0 = vpop.permute.xlu1 %519  ;;  %1169 = vperm.xlu0 %8304, %v959_v61   ;;  %v811_v61 = vld [vmem:[%s13636_s1 + $0x120] sm:$0xff] }
  0xf6   : > { %7497 = vmatpush2.msk.msra.mxu0 %vm552_vm0, %v468_v63  ;;  %7521 = vmatpush1.msk.msra.mxu1 %vm552_vm0, %v520_v0  ;;  %v815_v63 = vld [vmem:[%s13636_s1 + $0x140] sm:$0xff]  ;;  %v814_v0 = vld [vmem:[%s13636_s1 + $0x138] sm:$0xff] }
  0xf7   : > { %1174 = vperm.xlu1 %8305, %v960_v62   ;;  %v810_v62 = vld [vmem:[%s13636_s1 + $0x118] sm:$0xff] }
  0xf9   : > { %v688_v3 = vpop.permute.xlu0 %687  ;;  %v509_v4 = vpop.permute.xlu1 %508  ;;  %1184 = vperm.xlu0 %8304, %v962_v1   ;;  %v813_v1 = vld [vmem:[%s13636_s1 + $0x130] sm:$0xff] }
  0xfa   : > { %v728_v5 = vsel %vm546_vm1, %v688_v3, 0.0  ;;  %v550_v6 = vsel %vm546_vm1, %v509_v4, 0.0  ;;  %v817_v3 = vld [vmem:[%s13636_s1 + $0x150] sm:$0xff]  ;;  %v816_v4 = vld [vmem:[%s13636_s1 + $0x148] sm:$0xff] }
  0xfb   : > { %7522 = vmatprep.subr.msk.mxu1 %vm552_vm0, %v728_v5  ;;  %1179 = vperm.xlu1 %8305, %v961_v2   ;;  %v818_v2 = vld [vmem:[%s13636_s1 + $0x158] sm:$0xff]  ;;  %v821_v5 = vld [vmem:[%s13636_s1 + $0x170] sm:$0xff] }
  0xfc   : > { %7523 = vmatpush1.msk.msra.mxu1 %vm552_vm0, %v550_v6  ;;  %v820_v6 = vld [vmem:[%s13636_s1 + $0x168] sm:$0xff] }
  0xfd   : > { %v645_v9 = vpop.permute.xlu0 %644  ;;  %1189 = vperm.xlu0 %8304, %v963_v7   ;;  %v819_v7 = vld [vmem:[%s13636_s1 + $0x160] sm:$0xff] }
  0xfe   : > { %7498 = vmatprep.subr.msk.mxu0 %vm552_vm0, %v645_v9  ;;  %v466_v10 = vpop.permute.xlu1 %465  ;;  %v823_v9 = vld [vmem:[%s13636_s1 + $0x180] sm:$0xff] }
  0xff   : > { %7499 = vmatpush2.msk.msra.mxu0 %vm552_vm0, %v466_v10  ;;  %1194 = vperm.xlu1 %8305, %v964_v8   ;;  %v824_v8 = vld [vmem:[%s13636_s1 + $0x188] sm:$0xff]  ;;  %v822_v10 = vld [vmem:[%s13636_s1 + $0x178] sm:$0xff] }
 0x101   : > { %v634_v12 = vpop.permute.xlu0 %633 }
 0x102   : > { %v726_v13 = vsel %vm546_vm1, %v634_v12, 0.0  ;;  %v455_v14 = vpop.permute.xlu1 %454  ;;  %v826_v12 = vld [vmem:[%s13636_s1 + $0x198] sm:$0xff] }
 0x103   : > { %v548_v15 = vsel %vm546_vm1, %v455_v14, 0.0  ;;  %7500 = vmatprep.subr.msk.mxu0 %vm552_vm0, %v726_v13  ;;  %1199 = vperm.xlu1 %8305, %v965_v11   ;;  %v827_v11 = vld [vmem:[%s13636_s1 + $0x1a0] sm:$0xff]  ;;  %v825_v13 = vld [vmem:[%s13636_s1 + $0x190] sm:$0xff]  ;;  %v830_v14 = vld [vmem:[%s13636_s1 + $0x1b8] sm:$0xff]  ;;  %vm7281_vm1 = vcmask 588800  }
 0x104   : > { %7501 = vmatpush2.msk.msra.mxu0 %vm552_vm0, %v548_v15  ;;  %v829_v15 = vld [vmem:[%s13636_s1 + $0x1b0] sm:$0xff] }
 0x105   : > { %v686_v16 = vpop.permute.xlu0 %685 }
 0x106   : > { %7524 = vmatprep.subr.msk.mxu1 %vm552_vm0, %v686_v16  ;;  %v507_v17 = vpop.permute.xlu1 %506  ;;  %v828_v16 = vld [vmem:[%s13636_s1 + $0x1a8] sm:$0xff] }
 0x107   : > { %7525 = vmatpush1.msk.msra.mxu1 %vm552_vm0, %v507_v17  ;;  %v833_v17 = vld [vmem:[%s13636_s1 + $0x1d0] sm:$0xff] }
 0x109   : > { %v632_v19 = vpop.permute.xlu0 %631 }
 0x10a   : > { %7502 = vmatprep.subr.msk.mxu0 %vm552_vm0, %v632_v19  ;;  %v684_v20 = vpop.permute.xlu1 %683  ;;  %v832_v19 = vld [vmem:[%s13636_s1 + $0x1c8] sm:$0xff] }
 0x10b   : > { %7526 = vmatprep.subr.msk.mxu1 %vm552_vm0, %v684_v20  ;;  %v831_v20 = vld [vmem:[%s13636_s1 + $0x1c0] sm:$0xff] }
 0x10d   : > { %v453_v22 = vpop.permute.xlu0 %452 }
 0x10e   : > { %7503 = vmatpush2.msk.msra.mxu0 %vm552_vm0, %v453_v22  ;;  %v505_v24 = vpop.permute.xlu1 %504  ;;  %v835_v22 = vld [vmem:[%s13636_s1 + $0x1e0] sm:$0xff] }
 0x10f   : > { %1417 = vmatmul.mubr.f32.vlgmr.msra.gmra.mxu0 %v775_v21  ;;  %7527 = vmatpush1.msk.msra.mxu1 %vm552_vm0, %v505_v24  ;;  %v836_v21 = vld [vmem:[%s13636_s1 + $0x1e8] sm:$0xff]  ;;  %v839_v24 = vld [vmem:[%s13636_s1 + $0x200] sm:$0xff] }
 0x110   : > { %1422 = vmatprep.mubr.f32.mxu0 %v779_v23  ;;  %v834_v23 = vld [vmem:[%s13636_s1 + $0x1d8] sm:$0xff] }
 0x111   : > { %v682_v26 = vpop.permute.xlu0 %681 }
 0x112   : > { %7528 = vmatprep.subr.msk.mxu1 %vm552_vm0, %v682_v26  ;;  %v503_v30 = vpop.permute.xlu1 %502  ;;  %v837_v26 = vld [vmem:[%s13636_s1 + $0x1f0] sm:$0xff] }
 0x113   : > { %1423 = vmatmul.mubr.f32.gmra.mxu0 %v778_v25  ;;  %7529 = vmatpush1.msk.msra.mxu1 %vm552_vm0, %v503_v30  ;;  %v838_v25 = vld [vmem:[%s13636_s1 + $0x1f8] sm:$0xff]  ;;  %v840_v30 = vld [vmem:[%s13636_s1 + $0x208] sm:$0xff]  ;;  %vm7123_vm0 = vcmask 392192  }
 0x114   : > { %7530 = vmatmul.mubr.msk.f32.vlgmr.msra.gmra.mxu1 %vm1207_vm2, %v777_v27  ;;  %1428 = vmatprep.mubr.f32.mxu0 %v782_v29  ;;  %v842_v27 = vld [vmem:[%s13636_s1 + $0x218] sm:$0xff]  ;;  %v841_v29 = vld [vmem:[%s13636_s1 + $0x210] sm:$0xff] }
 0x115   : > { %1775 = vmatprep.mubr.f32.mxu1 %v13648_v28  ;;  %3729 = vmatprep.subr.mxu1 %v13648_v28 }
 0x117   : > { %1429 = vmatmul.mubr.f32.gmra.mxu0 %v781_v31  ;;  %v845_v31 = vld [vmem:[%s13636_s1 + $0x230] sm:$0xff] }
 0x118   : > { %7531 = vmatmul.mubr.msk.f32.gmra.mxu1 %vm1207_vm2, %v780_v32  ;;  %1434 = vmatprep.mubr.f32.mxu0 %v785_v33  ;;  %v844_v32 = vld [vmem:[%s13636_s1 + $0x228] sm:$0xff]  ;;  %v843_v33 = vld [vmem:[%s13636_s1 + $0x220] sm:$0xff] }
 0x119   : > { %1781 = vmatprep.mubr.f32.mxu1 %v13648_v28 }
 0x11b   : > { %1435 = vmatmul.mubr.f32.gmra.mxu0 %v784_v34  ;;  %v848_v34 = vld [vmem:[%s13636_s1 + $0x248] sm:$0xff] }
 0x11c   : > { %7532 = vmatmul.mubr.msk.f32.gmra.mxu1 %vm1207_vm2, %v783_v35  ;;  %1440 = vmatprep.mubr.f32.mxu0 %v788_v36  ;;  %v847_v35 = vld [vmem:[%s13636_s1 + $0x240] sm:$0xff]  ;;  %v846_v36 = vld [vmem:[%s13636_s1 + $0x238] sm:$0xff] }
 0x11d   : > { %1787 = vmatprep.mubr.f32.mxu1 %v13648_v28 }
 0x11f   : > { %1441 = vmatmul.mubr.f32.gmra.mxu0 %v787_v37  ;;  %v851_v37 = vld [vmem:[%s13636_s1 + $0x260] sm:$0xff] }
 0x120   : > { %7533 = vmatmul.mubr.msk.f32.gmra.mxu1 %vm1207_vm2, %v786_v38  ;;  %1446 = vmatprep.mubr.f32.mxu0 %v791_v39  ;;  %v850_v38 = vld [vmem:[%s13636_s1 + $0x258] sm:$0xff]  ;;  %v849_v39 = vld [vmem:[%s13636_s1 + $0x250] sm:$0xff] }
 0x121   : > { %1793 = vmatprep.mubr.f32.mxu1 %v13648_v28 }
 0x123   : > { %1447 = vmatmul.mubr.f32.gmra.mxu0 %v790_v40  ;;  %v854_v40 = vld [vmem:[%s13636_s1 + $0x278] sm:$0xff] }
 0x124   : > { %7534 = vmatmul.mubr.msk.f32.gmra.mxu1 %vm1207_vm2, %v789_v41  ;;  %1452 = vmatprep.mubr.f32.mxu0 %v794_v42  ;;  %v853_v41 = vld [vmem:[%s13636_s1 + $0x270] sm:$0xff]  ;;  %v852_v42 = vld [vmem:[%s13636_s1 + $0x268] sm:$0xff] }
 0x125   : > { %1799 = vmatprep.mubr.f32.mxu1 %v13648_v28 }
 0x127   : > { %1453 = vmatmul.mubr.f32.gmra.mxu0 %v793_v43  ;;  %v857_v43 = vld [vmem:[%s13636_s1 + $0x290] sm:$0xff] }
 0x128   : > { %7535 = vmatmul.mubr.msk.f32.gmra.mxu1 %vm1207_vm2, %v792_v44  ;;  %1458 = vmatprep.mubr.f32.mxu0 %v797_v45  ;;  %v856_v44 = vld [vmem:[%s13636_s1 + $0x288] sm:$0xff]  ;;  %v855_v45 = vld [vmem:[%s13636_s1 + $0x280] sm:$0xff] }
 0x129   : > { %1805 = vmatprep.mubr.f32.mxu1 %v13648_v28 }
 0x12b   : > { %1459 = vmatmul.mubr.f32.gmra.mxu0 %v796_v46  ;;  %v860_v46 = vld [vmem:[%s13636_s1 + $0x2a8] sm:$0xff] }
 0x12c   : > { %7536 = vmatmul.mubr.msk.f32.gmra.mxu1 %vm1207_vm2, %v795_v47  ;;  %1464 = vmatprep.mubr.f32.mxu0 %v800_v48  ;;  %v859_v47 = vld [vmem:[%s13636_s1 + $0x2a0] sm:$0xff]  ;;  %v858_v48 = vld [vmem:[%s13636_s1 + $0x298] sm:$0xff] }
 0x12d   : > { %1811 = vmatprep.mubr.f32.mxu1 %v13648_v28 }
 0x12f   : > { %1465 = vmatmul.mubr.f32.gmra.mxu0 %v799_v49  ;;  %v863_v49 = vld [vmem:[%s13636_s1 + $0x2c0] sm:$0xff] }
 0x130   : > { %7537 = vmatmul.mubr.msk.f32.gmra.mxu1 %vm1207_vm2, %v798_v50  ;;  %1470 = vmatprep.mubr.f32.mxu0 %v803_v51  ;;  %v862_v50 = vld [vmem:[%s13636_s1 + $0x2b8] sm:$0xff]  ;;  %v861_v51 = vld [vmem:[%s13636_s1 + $0x2b0] sm:$0xff] }
 0x131   : > { %1817 = vmatprep.mubr.f32.mxu1 %v13648_v28 }
 0x133   : > { %1471 = vmatmul.mubr.f32.gmra.mxu0 %v802_v52  ;;  %v866_v52 = vld [vmem:[%s13636_s1 + $0x2d8] sm:$0xff] }
 0x134   : > { %7538 = vmatmul.mubr.msk.f32.gmra.mxu1 %vm1207_vm2, %v801_v53  ;;  %1476 = vmatprep.mubr.f32.mxu0 %v806_v54  ;;  %v865_v53 = vld [vmem:[%s13636_s1 + $0x2d0] sm:$0xff]  ;;  %v864_v54 = vld [vmem:[%s13636_s1 + $0x2c8] sm:$0xff] }
 0x135   : > { %1823 = vmatprep.mubr.f32.mxu1 %v13648_v28 }
 0x137   : > { %1477 = vmatmul.mubr.f32.gmra.mxu0 %v805_v55  ;;  %v869_v55 = vld [vmem:[%s13636_s1 + $0x2f0] sm:$0xff] }
 0x138   : > { %7539 = vmatmul.mubr.msk.f32.gmra.mxu1 %vm1207_vm2, %v804_v56  ;;  %1482 = vmatprep.mubr.f32.mxu0 %v809_v57  ;;  %v868_v56 = vld [vmem:[%s13636_s1 + $0x2e8] sm:$0xff]  ;;  %v867_v57 = vld [vmem:[%s13636_s1 + $0x2e0] sm:$0xff] }
 0x139   : > { %1829 = vmatprep.mubr.f32.mxu1 %v13648_v28 }
 0x13b   : > { %1483 = vmatmul.mubr.f32.gmra.mxu0 %v808_v58  ;;  %v872_v58 = vld [vmem:[%s13636_s1 + $0x308] sm:$0xff] }
 0x13c   : > { %7540 = vmatmul.mubr.msk.f32.gmra.mxu1 %vm1207_vm2, %v807_v59  ;;  %1488 = vmatprep.mubr.f32.mxu0 %v812_v60  ;;  %v871_v59 = vld [vmem:[%s13636_s1 + $0x300] sm:$0xff]  ;;  %v870_v60 = vld [vmem:[%s13636_s1 + $0x2f8] sm:$0xff] }
 0x13d   : > { %1835 = vmatprep.mubr.f32.mxu1 %v13648_v28 }
 0x13f   : > { %1489 = vmatmul.mubr.f32.gmra.mxu0 %v811_v61  ;;  %v875_v61 = vld [vmem:[%s13636_s1 + $0x320] sm:$0xff] }
 0x140   : > { %7541 = vmatmul.mubr.msk.f32.gmra.mxu1 %vm1207_vm2, %v810_v62  ;;  %1494 = vmatprep.mubr.f32.mxu0 %v815_v63  ;;  %v874_v62 = vld [vmem:[%s13636_s1 + $0x318] sm:$0xff]  ;;  %v873_v63 = vld [vmem:[%s13636_s1 + $0x310] sm:$0xff] }
 0x141   : > { %1841 = vmatprep.mubr.f32.mxu1 %v13648_v28 }
 0x143   : > { %1495 = vmatmul.mubr.f32.gmra.mxu0 %v814_v0  ;;  %v878_v0 = vld [vmem:[%s13636_s1 + $0x338] sm:$0xff] }
 0x144   : > { %7542 = vmatmul.mubr.msk.f32.gmra.mxu1 %vm1207_vm2, %v813_v1  ;;  %1500 = vmatprep.mubr.f32.mxu0 %v818_v2  ;;  %v877_v1 = vld [vmem:[%s13636_s1 + $0x330] sm:$0xff]  ;;  %v876_v2 = vld [vmem:[%s13636_s1 + $0x328] sm:$0xff] }
 0x145   : > { %1847 = vmatprep.mubr.f32.mxu1 %v13648_v28 }
 0x147   : > { %1501 = vmatmul.mubr.f32.gmra.mxu0 %v817_v3  ;;  %v881_v3 = vld [vmem:[%s13636_s1 + $0x350] sm:$0xff] }
 0x148   : > { %7543 = vmatmul.mubr.msk.f32.gmra.mxu1 %vm1207_vm2, %v816_v4  ;;  %1506 = vmatprep.mubr.f32.mxu0 %v821_v5  ;;  %v880_v4 = vld [vmem:[%s13636_s1 + $0x348] sm:$0xff]  ;;  %v879_v5 = vld [vmem:[%s13636_s1 + $0x340] sm:$0xff] }
 0x149   : > { %1853 = vmatprep.mubr.f32.mxu1 %v13648_v28 }
 0x14b   : > { %1507 = vmatmul.mubr.f32.gmra.mxu0 %v820_v6  ;;  %v884_v6 = vld [vmem:[%s13636_s1 + $0x368] sm:$0xff] }
 0x14c   : > { %7544 = vmatmul.mubr.msk.f32.gmra.mxu1 %vm1207_vm2, %v819_v7  ;;  %1512 = vmatprep.mubr.f32.mxu0 %v824_v8  ;;  %v883_v7 = vld [vmem:[%s13636_s1 + $0x360] sm:$0xff]  ;;  %v882_v8 = vld [vmem:[%s13636_s1 + $0x358] sm:$0xff] }
 0x14d   : > { %1859 = vmatprep.mubr.f32.mxu1 %v13648_v28 }
 0x14f   : > { %1513 = vmatmul.mubr.f32.gmra.mxu0 %v823_v9  ;;  %v887_v9 = vld [vmem:[%s13636_s1 + $0x380] sm:$0xff] }
 0x150   : > { %7545 = vmatmul.mubr.msk.f32.gmra.mxu1 %vm1207_vm2, %v822_v10  ;;  %1518 = vmatprep.mubr.f32.mxu0 %v827_v11  ;;  %v886_v10 = vld [vmem:[%s13636_s1 + $0x378] sm:$0xff] }
 0x151   : > { %1865 = vmatprep.mubr.f32.mxu1 %v13648_v28  ;;  %v3564_v11 = vld [vmem:[%s13638_s3 + $0x78] sm:$0xff] }
 0x152   : > { %3730 = vmatpush1.msra.mxu1 %v3564_v11  ;;  %v3574_v11 = vld [vmem:[%s13638_s3 + $0xc8] sm:$0xff] }
 0x153   : > { %1519 = vmatmul.mubr.f32.gmra.mxu0 %v826_v12  ;;  %v885_v12 = vld [vmem:[%s13636_s1 + $0x370] sm:$0xff]  ;;  %3731 = vmatprep.subr.mxu1 %v13648_v28 }
 0x154   : > { %7546 = vmatmul.mubr.msk.f32.gmra.mxu1 %vm1207_vm2, %v825_v13  ;;  %1524 = vmatprep.mubr.f32.mxu0 %v830_v14  ;;  %v890_v13 = vld [vmem:[%s13636_s1 + $0x398] sm:$0xff]  ;;  %v3563_v14 = vld [vmem:[%s13638_s3 + $0x70] sm:$0xff] }
 0x155   : > { %1871 = vmatprep.mubr.f32.mxu1 %v13648_v28  ;;  %3732 = vmatpush1.msra.mxu1 %v3563_v14 }
 0x156   : > { %3733 = vmatprep.subr.mxu1 %v13648_v28 }
 0x157   : > { %1525 = vmatmul.mubr.f32.gmra.mxu0 %v829_v15  ;;  %v889_v15 = vld [vmem:[%s13636_s1 + $0x390] sm:$0xff] }
 0x158   : > { %7547 = vmatmul.mubr.msk.f32.gmra.mxu1 %vm1207_vm2, %v828_v16  ;;  %1530 = vmatprep.mubr.f32.mxu0 %v833_v17  ;;  %v3562_v16 = vld [vmem:[%s13638_s3 + $0x68] sm:$0xff] }
 0x159   : > { %1877 = vmatprep.mubr.f32.mxu1 %v13648_v28  ;;  %v888_v17 = vld [vmem:[%s13636_s1 + $0x388] sm:$0xff]  ;;  %3734 = vmatpush1.msra.mxu1 %v3562_v16 }
 0x15a   : > { %3735 = vmatprep.subr.mxu1 %v13648_v28 }
 0x15b   : > { %1531 = vmatmul.mubr.f32.gmra.mxu0 %v832_v19  ;;  %v893_v19 = vld [vmem:[%s13636_s1 + $0x3b0] sm:$0xff] }
 0x15c   : > { %7548 = vmatmul.mubr.msk.f32.gmra.mxu1 %vm1207_vm2, %v831_v20  ;;  %1536 = vmatprep.mubr.f32.mxu0 %v836_v21  ;;  %v3561_v20 = vld [vmem:[%s13638_s3 + $0x60] sm:$0xff]  ;;  %v892_v21 = vld [vmem:[%s13636_s1 + $0x3a8] sm:$0xff] }
 0x15d   : > { %1883 = vmatprep.mubr.f32.mxu1 %v13648_v28  ;;  %3736 = vmatpush1.msra.mxu1 %v3561_v20 }
 0x15e   : > { %3737 = vmatprep.subr.mxu1 %v13648_v28 }
 0x15f   : > { %1537 = vmatmul.mubr.f32.gmra.mxu0 %v835_v22  ;;  %v3560_v22 = vld [vmem:[%s13638_s3 + $0x58] sm:$0xff] }
 0x160   : > { %7549 = vmatmul.mubr.msk.f32.gmra.mxu1 %vm1207_vm2, %v834_v23  ;;  %1542 = vmatprep.mubr.f32.mxu0 %v839_v24  ;;  %v891_v23 = vld [vmem:[%s13636_s1 + $0x3a0] sm:$0xff]  ;;  %v896_v24 = vld [vmem:[%s13636_s1 + $0x3c8] sm:$0xff] }
 0x161   : > { %1889 = vmatprep.mubr.f32.mxu1 %v13648_v28  ;;  %3738 = vmatpush1.msra.mxu1 %v3560_v22  ;;  %v918_v22 = vld [vmem:[%s13636_s1 + $0x478] sm:$0xff] }
 0x162   : > { %3739 = vmatprep.subr.mxu1 %v13648_v28 }
 0x163   : > { %1543 = vmatmul.mubr.f32.gmra.mxu0 %v838_v25  ;;  %v3559_v25 = vld [vmem:[%s13638_s3 + $0x50] sm:$0xff] }
 0x164   : > { %7550 = vmatmul.mubr.msk.f32.gmra.mxu1 %vm1207_vm2, %v837_v26  ;;  %1548 = vmatprep.mubr.f32.mxu0 %v842_v27  ;;  %v895_v26 = vld [vmem:[%s13636_s1 + $0x3c0] sm:$0xff]  ;;  %v894_v27 = vld [vmem:[%s13636_s1 + $0x3b8] sm:$0xff] }
 0x165   : > { %1895 = vmatprep.mubr.f32.mxu1 %v13648_v28  ;;  %3740 = vmatpush1.msra.mxu1 %v3559_v25  ;;  %v3572_v25 = vld [vmem:[%s13638_s3 + $0xb8] sm:$0xff] }
 0x166   : > { %3741 = vmatprep.subr.mxu1 %v13648_v28 }
 0x167   : > { %1549 = vmatmul.mubr.f32.gmra.mxu0 %v841_v29  ;;  %v899_v29 = vld [vmem:[%s13636_s1 + $0x3e0] sm:$0xff] }
 0x168   : > { %7551 = vmatmul.mubr.msk.f32.gmra.mxu1 %vm1207_vm2, %v840_v30  ;;  %1554 = vmatprep.mubr.f32.mxu0 %v845_v31  ;;  %v3558_v30 = vld [vmem:[%s13638_s3 + $0x48] sm:$0xff]  ;;  %v898_v31 = vld [vmem:[%s13636_s1 + $0x3d8] sm:$0xff] }
 0x169   : > { %1901 = vmatprep.mubr.f32.mxu1 %v13648_v28  ;;  %3742 = vmatpush1.msra.mxu1 %v3558_v30  ;;  %v3571_v30 = vld [vmem:[%s13638_s3 + $0xb0] sm:$0xff] }
 0x16a   : > { %3743 = vmatprep.subr.mxu1 %v13648_v28 }
 0x16b   : > { %1555 = vmatmul.mubr.f32.gmra.mxu0 %v844_v32  ;;  %v3557_v32 = vld [vmem:[%s13638_s3 + $0x40] sm:$0xff] }
 0x16c   : > { %7552 = vmatmul.mubr.msk.f32.gmra.mxu1 %vm1207_vm2, %v843_v33  ;;  %1560 = vmatprep.mubr.f32.mxu0 %v848_v34  ;;  %v897_v33 = vld [vmem:[%s13636_s1 + $0x3d0] sm:$0xff]  ;;  %v902_v34 = vld [vmem:[%s13636_s1 + $0x3f8] sm:$0xff] }
 0x16d   : > { %1907 = vmatprep.mubr.f32.mxu1 %v13648_v28  ;;  %3744 = vmatpush1.msra.mxu1 %v3557_v32 }
 0x16e   : > { %3745 = vmatprep.subr.mxu1 %v13648_v28 }
 0x16f   : > { %1561 = vmatmul.mubr.f32.gmra.mxu0 %v847_v35  ;;  %v3556_v35 = vld [vmem:[%s13638_s3 + $0x38] sm:$0xff] }
 0x170   : > { %7553 = vmatmul.mubr.msk.f32.gmra.mxu1 %vm1207_vm2, %v846_v36  ;;  %1566 = vmatprep.mubr.f32.mxu0 %v851_v37  ;;  %v901_v36 = vld [vmem:[%s13636_s1 + $0x3f0] sm:$0xff]  ;;  %v900_v37 = vld [vmem:[%s13636_s1 + $0x3e8] sm:$0xff] }
 0x171   : > { %1913 = vmatprep.mubr.f32.mxu1 %v13648_v28  ;;  %3746 = vmatpush1.msra.mxu1 %v3556_v35 }
 0x172   : > { %3747 = vmatprep.subr.mxu1 %v13648_v28 }
 0x173   : > { %1567 = vmatmul.mubr.f32.gmra.mxu0 %v850_v38  ;;  %v905_v38 = vld [vmem:[%s13636_s1 + $0x410] sm:$0xff] }
 0x174   : > { %7554 = vmatmul.mubr.msk.f32.gmra.mxu1 %vm1207_vm2, %v849_v39  ;;  %1572 = vmatprep.mubr.f32.mxu0 %v854_v40  ;;  %v3555_v39 = vld [vmem:[%s13638_s3 + $0x30] sm:$0xff]  ;;  %v904_v40 = vld [vmem:[%s13636_s1 + $0x408] sm:$0xff] }
 0x175   : > { %1919 = vmatprep.mubr.f32.mxu1 %v13648_v28  ;;  %3748 = vmatpush1.msra.mxu1 %v3555_v39  ;;  %v3570_v39 = vld [vmem:[%s13638_s3 + $0xa8] sm:$0xff] }
 0x176   : > { %3749 = vmatprep.subr.mxu1 %v13648_v28 }
 0x177   : > { %1573 = vmatmul.mubr.f32.gmra.mxu0 %v853_v41  ;;  %v3554_v41 = vld [vmem:[%s13638_s3 + $0x28] sm:$0xff] }
 0x178   : > { %7555 = vmatmul.mubr.msk.f32.gmra.mxu1 %vm1207_vm2, %v852_v42  ;;  %1578 = vmatprep.mubr.f32.mxu0 %v857_v43  ;;  %v903_v42 = vld [vmem:[%s13636_s1 + $0x400] sm:$0xff]  ;;  %v908_v43 = vld [vmem:[%s13636_s1 + $0x428] sm:$0xff] }
 0x179   : > { %1925 = vmatprep.mubr.f32.mxu1 %v13648_v28  ;;  %3750 = vmatpush1.msra.mxu1 %v3554_v41  ;;  %v3569_v41 = vld [vmem:[%s13638_s3 + $0xa0] sm:$0xff] }
 0x17a   : > { %3751 = vmatprep.subr.mxu1 %v13648_v28 }
 0x17b   : > { %1579 = vmatmul.mubr.f32.gmra.mxu0 %v856_v44  ;;  %v3553_v44 = vld [vmem:[%s13638_s3 + $0x20] sm:$0xff] }
 0x17c   : > { %7556 = vmatmul.mubr.msk.f32.gmra.mxu1 %vm1207_vm2, %v855_v45  ;;  %1584 = vmatprep.mubr.f32.mxu0 %v860_v46  ;;  %v907_v45 = vld [vmem:[%s13636_s1 + $0x420] sm:$0xff]  ;;  %v906_v46 = vld [vmem:[%s13636_s1 + $0x418] sm:$0xff] }
 0x17d   : > { %1931 = vmatprep.mubr.f32.mxu1 %v13648_v28  ;;  %3752 = vmatpush1.msra.mxu1 %v3553_v44 }
 0x17e   : > { %3753 = vmatprep.subr.mxu1 %v13648_v28 }
 0x17f   : > { %1585 = vmatmul.mubr.f32.gmra.mxu0 %v859_v47  ;;  %v911_v47 = vld [vmem:[%s13636_s1 + $0x440] sm:$0xff] }
 0x180   : > { %7557 = vmatmul.mubr.msk.f32.gmra.mxu1 %vm1207_vm2, %v858_v48  ;;  %1590 = vmatprep.mubr.f32.mxu0 %v863_v49  ;;  %v3552_v48 = vld [vmem:[%s13638_s3 + $0x18] sm:$0xff] }
 0x181   : > { %1937 = vmatprep.mubr.f32.mxu1 %v13648_v28  ;;  %v910_v49 = vld [vmem:[%s13636_s1 + $0x438] sm:$0xff]  ;;  %3754 = vmatpush1.msra.mxu1 %v3552_v48 }
 0x182   : > { %3755 = vmatprep.subr.mxu1 %v13648_v28  ;;  %v3568_v48 = vld [vmem:[%s13638_s3 + $0x98] sm:$0xff] }
 0x183   : > { %1591 = vmatmul.mubr.f32.gmra.mxu0 %v862_v50  ;;  %v3551_v50 = vld [vmem:[%s13638_s3 + $0x10] sm:$0xff] }
 0x184   : > { %7558 = vmatmul.mubr.msk.f32.gmra.mxu1 %vm1207_vm2, %v861_v51  ;;  %1596 = vmatprep.mubr.f32.mxu0 %v866_v52  ;;  %v909_v51 = vld [vmem:[%s13636_s1 + $0x430] sm:$0xff]  ;;  %v914_v52 = vld [vmem:[%s13636_s1 + $0x458] sm:$0xff] }
 0x185   : > { %1943 = vmatprep.mubr.f32.mxu1 %v13648_v28  ;;  %3756 = vmatpush1.msra.mxu1 %v3551_v50 }
 0x186   : > { %3757 = vmatprep.subr.mxu1 %v13648_v28 }
 0x187   : > { %1597 = vmatmul.mubr.f32.gmra.mxu0 %v865_v53  ;;  %v9967_v53 = vpop.permute.xlu1 %974 }
 0x188   : > { %7559 = vmatmul.mubr.msk.f32.gmra.mxu1 %vm1207_vm2, %v864_v54  ;;  %1602 = vmatprep.mubr.f32.mxu0 %v869_v55  ;;  %v3550_v54 = vld [vmem:[%s13638_s3 + $0x8] sm:$0xff]  ;;  %v913_v55 = vld [vmem:[%s13636_s1 + $0x450] sm:$0xff] }
 0x189   : > { %1949 = vmatprep.mubr.f32.mxu1 %v13648_v28  ;;  %3758 = vmatpush1.msra.mxu1 %v3550_v54 }
 0x18a   : > { %3759 = vmatprep.subr.mxu1 %v13648_v28 }
 0x18b   : > { %1603 = vmatmul.mubr.f32.gmra.mxu0 %v868_v56  ;;  %v970_v56 = vpop.permute.xlu0 %969 }
 0x18c   : > { %7560 = vmatmul.mubr.msk.f32.gmra.mxu1 %vm1207_vm2, %v867_v57  ;;  %1608 = vmatprep.mubr.f32.mxu0 %v872_v58  ;;  %v912_v57 = vld [vmem:[%s13636_s1 + $0x448] sm:$0xff]  ;;  %v3549_v58 = vld [vmem:[%s13638_s3] sm:$0xff] }
 0x18d   : > { %1955 = vmatprep.mubr.f32.mxu1 %v13648_v28  ;;  %3760 = vmatpush1.msra.mxu1 %v3549_v58 }
 0x18e   : > { %3761 = vmatprep.subr.mxu1 %v13648_v28 }
 0x18f   : > { %1609 = vmatmul.mubr.f32.gmra.mxu0 %v871_v59  ;;  %v3580_v59 = vld [vmem:[%s13638_s3 + $0xf8] sm:$0x1f] }
 0x190   : > { %7561 = vmatmul.mubr.msk.f32.gmra.mxu1 %vm1207_vm2, %v870_v60  ;;  %1614 = vmatprep.mubr.f32.mxu0 %v875_v61  ;;  %v9989_v60 = vpop.permute.xlu1 %979  ;;  %v915_v61 = vld [vmem:[%s13636_s1 + $0x460] sm:$0xff] }
 0x191   : > { %1961 = vmatprep.mubr.f32.mxu1 %v13648_v28  ;;  %7578 = vmatpush2.msk.msra.mxu1 %vm3725_vm3, %v3580_v59 }
 0x192   : > { %3763 = vmatprep.subr.mxu1 %v13648_v28 }
 0x193   : > { %1615 = vmatmul.mubr.f32.gmra.mxu0 %v874_v62  ;;  %v3579_v62 = vld [vmem:[%s13638_s3 + $0xf0] sm:$0xff] }
 0x194   : > { %7562 = vmatmul.mubr.msk.f32.gmra.mxu1 %vm1207_vm2, %v873_v63  ;;  %1620 = vmatprep.mubr.f32.mxu0 %v878_v0  ;;  %v9999_v63 = vpop.permute.xlu0 %984  ;;  %v3578_v0 = vld [vmem:[%s13638_s3 + $0xe8] sm:$0xff] }
 0x195   : > { %1967 = vmatprep.mubr.f32.mxu1 %v13648_v28  ;;  %3764 = vmatpush2.msra.mxu1 %v3579_v62 }
 0x196   : > { %3765 = vmatprep.subr.mxu1 %v13648_v28 }
 0x197   : > { %1621 = vmatmul.mubr.f32.gmra.mxu0 %v877_v1  ;;  %v3577_v1 = vld [vmem:[%s13638_s3 + $0xe0] sm:$0xff]  ;;  %3766 = vmatpush2.msra.mxu1 %v3578_v0 }
 0x198   : > { %7563 = vmatmul.mubr.msk.f32.gmra.mxu1 %vm1207_vm2, %v876_v2  ;;  %1626 = vmatprep.mubr.f32.mxu0 %v881_v3  ;;  %v10012_v2 = vpop.permute.xlu1 %989 }
 0x199   : > { %1973 = vmatprep.mubr.f32.mxu1 %v13648_v28  ;;  %3767 = vmatprep.subr.mxu1 %v13648_v28 }
 0x19a   : > { %3768 = vmatpush2.msra.mxu1 %v3577_v1 }
 0x19b   : > { %1627 = vmatmul.mubr.f32.gmra.mxu0 %v880_v4  ;;  %v3576_v4 = vld [vmem:[%s13638_s3 + $0xd8] sm:$0xff]  ;;  %3769 = vmatprep.subr.mxu1 %v13648_v28 }
 0x19c   : > { %7564 = vmatmul.mubr.msk.f32.gmra.mxu1 %vm1207_vm2, %v879_v5  ;;  %1632 = vmatprep.mubr.f32.mxu0 %v884_v6  ;;  %v10018_v5 = vpop.permute.xlu0 %994 }
 0x19d   : > { %1979 = vmatprep.mubr.f32.mxu1 %v13648_v28  ;;  %3770 = vmatpush2.msra.mxu1 %v3576_v4 }
 0x19e   : > { %3771 = vmatprep.subr.mxu1 %v13648_v28 }
 0x19f   : > { %1633 = vmatmul.mubr.f32.gmra.mxu0 %v883_v7  ;;  %v3575_v7 = vld [vmem:[%s13638_s3 + $0xd0] sm:$0xff] }
 0x1a0   : > { %7565 = vmatmul.mubr.msk.f32.gmra.mxu1 %vm1207_vm2, %v882_v8  ;;  %1638 = vmatprep.mubr.f32.mxu0 %v887_v9 }
 0x1a1   : > { %1985 = vmatprep.mubr.f32.mxu1 %v13648_v28  ;;  %3772 = vmatpush2.msra.mxu1 %v3575_v7 }
 0x1a2   : > { %3773 = vmatprep.subr.mxu1 %v13648_v28 }
 0x1a3   : > { %1639 = vmatmul.mubr.f32.gmra.mxu0 %v886_v10  ;;  %3774 = vmatpush2.msra.mxu1 %v3574_v11 }
 0x1a4   : > { %7566 = vmatmul.mubr.msk.f32.gmra.mxu1 %vm1207_vm2, %v885_v12  ;;  %1644 = vmatprep.mubr.f32.mxu0 %v890_v13  ;;  %v10028_v12 = vpop.permute.xlu1 %999 }
 0x1a5   : > { %1991 = vmatprep.mubr.f32.mxu1 %v13648_v28  ;;  %3775 = vmatprep.subr.mxu1 %v13648_v28 }
 0x1a7   : > { %1645 = vmatmul.mubr.f32.gmra.mxu0 %v889_v15 }
 0x1a8   : > { %7567 = vmatmul.mubr.msk.f32.gmra.mxu1 %vm1207_vm2, %v888_v17  ;;  %1650 = vmatprep.mubr.f32.mxu0 %v893_v19  ;;  %v3573_v17 = vld [vmem:[%s13638_s3 + $0xc0] sm:$0xff]  ;;  %v10035_v19 = vpop.permute.xlu0 %1004 }
 0x1a9   : > { %1997 = vmatprep.mubr.f32.mxu1 %v13648_v28  ;;  %3776 = vmatpush2.msra.mxu1 %v3573_v17 }
 0x1aa   : > { %3777 = vmatprep.subr.mxu1 %v13648_v28 }
 0x1ab   : > { %1651 = vmatmul.mubr.f32.gmra.mxu0 %v892_v21  ;;  %3778 = vmatpush2.msra.mxu1 %v3572_v25 }
 0x1ac   : > { %7568 = vmatmul.mubr.msk.f32.gmra.mxu1 %vm1207_vm2, %v891_v23  ;;  %1656 = vmatprep.mubr.f32.mxu0 %v896_v24 }
 0x1ad   : > { %2003 = vmatprep.mubr.f32.mxu1 %v13648_v28  ;;  %3779 = vmatprep.subr.mxu1 %v13648_v28 }
 0x1ae   : > { %3780 = vmatpush2.msra.mxu1 %v3571_v30 }
 0x1af   : > { %1657 = vmatmul.mubr.f32.gmra.mxu0 %v895_v26  ;;  %3781 = vmatprep.subr.mxu1 %v13648_v28 }
 0x1b0   : > { %7569 = vmatmul.mubr.msk.f32.gmra.mxu1 %vm1207_vm2, %v894_v27  ;;  %1662 = vmatprep.mubr.f32.mxu0 %v899_v29 }
 0x1b1   : > { %2009 = vmatprep.mubr.f32.mxu1 %v13648_v28  ;;  %3782 = vmatpush2.msra.mxu1 %v3570_v39 }
 0x1b2   : > { %3783 = vmatprep.subr.mxu1 %v13648_v28 }
 0x1b3   : > { %1663 = vmatmul.mubr.f32.gmra.mxu0 %v898_v31  ;;  %v10055_v31 = vpop.permute.xlu1 %1009  ;;  %3784 = vmatpush2.msra.mxu1 %v3569_v41 }
 0x1b4   : > { %7570 = vmatmul.mubr.msk.f32.gmra.mxu1 %vm1207_vm2, %v897_v33  ;;  %1668 = vmatprep.mubr.f32.mxu0 %v902_v34 }
 0x1b5   : > { %2015 = vmatprep.mubr.f32.mxu1 %v13648_v28  ;;  %3785 = vmatprep.subr.mxu1 %v13648_v28 }
 0x1b6   : > { %3786 = vmatpush2.msra.mxu1 %v3568_v48 }
 0x1b7   : > { %1669 = vmatmul.mubr.f32.gmra.mxu0 %v901_v36  ;;  %v10062_v36 = vpop.permute.xlu0 %1014  ;;  %v10079_v44 = vpop.permute.xlu1 %1019  ;;  %3787 = vmatprep.subr.mxu1 %v13648_v28 }
 0x1b8   : > { %7571 = vmatmul.mubr.msk.f32.gmra.mxu1 %vm1207_vm2, %v900_v37  ;;  %1674 = vmatprep.mubr.f32.mxu0 %v905_v38 }
 0x1b9   : > { %2021 = vmatprep.mubr.f32.mxu1 %v13648_v28 }
 0x1bb   : > { %1675 = vmatmul.mubr.f32.gmra.mxu0 %v904_v40  ;;  %v10104_v58 = vpop.permute.xlu1 %1029 }
 0x1bc   : > { %7572 = vmatmul.mubr.msk.f32.gmra.mxu1 %vm1207_vm2, %v903_v42  ;;  %1680 = vmatprep.mubr.f32.mxu0 %v908_v43 }
 0x1bd   : > { %2027 = vmatprep.mubr.f32.mxu1 %v13648_v28 }
 0x1bf   : > { %1681 = vmatmul.mubr.f32.gmra.mxu0 %v907_v45 }
 0x1c0   : > { %7573 = vmatmul.mubr.msk.f32.gmra.mxu1 %vm1207_vm2, %v906_v46  ;;  %1686 = vmatprep.mubr.f32.mxu0 %v911_v47 }
 0x1c1   : > { %2033 = vmatprep.mubr.f32.mxu1 %v13648_v28 }
 0x1c3   : > { %1687 = vmatmul.mubr.f32.gmra.mxu0 %v910_v49  ;;  %v10086_v49 = vpop.permute.xlu0 %1024 }
 0x1c4   : > { %7574 = vmatmul.mubr.msk.f32.gmra.mxu1 %vm1207_vm2, %v909_v51  ;;  %1692 = vmatprep.mubr.f32.mxu0 %v914_v52 }
 0x1c5   : > { %2039 = vmatprep.mubr.f32.mxu1 %v13648_v28 }
 0x1c7   : > { %1693 = vmatmul.mubr.f32.gmra.mxu0 %v913_v55  ;;  %v10114_v0 = vpop.permute.xlu0 %1034 }
 0x1c8   : > { %7575 = vmatmul.mubr.msk.f32.gmra.mxu1 %vm1207_vm2, %v912_v57 }
 0x1c9   : > { %2045 = vmatprep.mubr.f32.mxu1 %v13648_v28 }
 0x1cc   : > { %7576 = vmatmul.mubr.msk.f32.gmra.mxu1 %vm1207_vm2, %v915_v61 }
 0x1cd   : > { %2051 = vmatprep.mubr.f32.mxu1 %v13648_v28 }
 0x1cf   : > { %v1418_v3 = vpop.f32.mrf.mxu0 }
 0x1d0   : > { %v1419_v8 = vadd.f32 %v1418_v3, %v970_v56  ;;  %7577 = vmatmul.mubr.msk.f32.gmra.mxu1 %vm1207_vm2, %v918_v22  ;;  %vm7365_vm2 = vcmask 125952  }
 0x1d1   : > { %v1420_v6 = vpop.f32.mrf.mxu0 }
 0x1d2   : > { %v1421_v13 = vadd.f32 %v1420_v6, %v970_v56  ;;  %v3567_v56 = vld [vmem:[%s13638_s3 + $0x90] sm:$0xff]  ;;  %v3565_v6 = vld [vmem:[%s13638_s3 + $0x80] sm:$0xff] }
 0x1d3   : > { %v1424_v9 = vpop.f32.mrf.mxu0  ;;  %3788 = vmatpush2.msra.mxu1 %v3567_v56 }
 0x1d4   : > { %v1771_v10 = vpop.f32.mrf.mxu1  ;;  %v1425_v14 = vadd.f32 %v1424_v9, %v9967_v53  ;;  %3789 = vmatprep.subr.mxu1 %v13648_v28 }
 0x1d5   : > { %v1426_v15 = vpop.f32.mrf.mxu0  ;;  %v10037_v20 = vadd.f32 %v1771_v10, %v1419_v8  ;;  %v10133_v10 = vpop.permute.xlu1 %1039 }
 0x1d6   : > { %v1773_v16 = vpop.f32.mrf.mxu1  ;;  %v1427_v37 = vadd.f32 %v1426_v15, %v9967_v53 }
 0x1d7   : > { %v1774_v21 = vadd.f32 %v1773_v16, %v1421_v13  ;;  %v1430_v23 = vpop.f32.mrf.mxu0  ;;  %v13659_v32 = vmax.f32 %v10037_v20, 0.0 }
 0x1d8   : > { %v1777_v24 = vpop.f32.mrf.mxu1  ;;  %v1431_v50 = vadd.f32 %v1430_v23, %v9989_v60 }
 0x1d9   : > { %v10047_v26 = vmax.f32 %v1774_v21, 0.0  ;;  %v10049_v27 = vadd.f32 %v1777_v24, %v1425_v14  ;;  %v1432_v34 = vpop.f32.mrf.mxu0  ;;  %v10140_v14 = vpop.permute.xlu0 %1044 }
 0x1da   : > { %v1779_v29 = vpop.f32.mrf.mxu1  ;;  %v1433_v45 = vadd.f32 %v1432_v34, %v9989_v60  ;;  %v3566_v60 = vld [vmem:[%s13638_s3 + $0x88] sm:$0xff]  ;;  %v10148_v23 = vpop.permute.xlu1 %1049 }
 0x1db   : > { %v13658_v33 = vmax.f32 %v10049_v27, 0.0  ;;  %2252 = vrot.lane.b32.xlu0 %v10047_v26, %s8861_s28  ;;  %v1436_v42 = vpop.f32.mrf.mxu0  ;;  %v1780_v46 = vadd.f32 %v1779_v29, %v1427_v37  ;;  %3790 = vmatpush2.msra.mxu1 %v3566_v60 }
 0x1dc   : > { %v1783_v35 = vpop.f32.mrf.mxu1  ;;  %v1437_v51 = vadd.f32 %v1436_v42, %v9999_v63  ;;  %3791 = vmatprep.subr.mxu1 %v13648_v28 }
 0x1dd   : > { %v8306_v38 = vpack.i.bf16 %v13658_v33, %v13659_v32  ;;  %v10096_v53 = vmax.f32 %v1780_v46, 0.0  ;;  %v10106_v59 = vadd.f32 %v1783_v35, %v1431_v50  ;;  %v1438_v61 = vpop.f32.mrf.mxu0  ;;  %3792 = vmatpush2.msra.mxu1 %v3565_v6 }
 0x1de   : > { %v1785_v40 = vpop.f32.mrf.mxu1  ;;  %5937 = vmatprep.subr.bf16.mxu1 %v13650_v18  ;;  %v1439_v15 = vadd.f32 %v1438_v61, %v9999_v63  ;;  %v10155_v63 = vpop.permute.xlu0 %1054 }
 0x1df   : > { %2685 = vrot.lane.b32.xlu0 %v10047_v26, %s8864_s13  ;;  %8307 = vrot.lane.b32.xlu1 %v8306_v38, %s8861_s28  ;;  %v1786_v54 = vadd.f32 %v1785_v40, %v1433_v45  ;;  %v13657_v7 = vmax.f32 %v10106_v59, 0.0  ;;  %v1442_v8 = vpop.f32.mrf.mxu0 }
 0x1e0   : > { %v1789_v43 = vpop.f32.mrf.mxu1  ;;  %v1443_v46 = vadd.f32 %v1442_v8, %v10012_v2 }
 0x1e1   : > { %v10098_v55 = vadd.f32 %v1789_v43, %v1437_v51  ;;  %v10116_v1 = vmax.f32 %v1786_v54, 0.0  ;;  %v1444_v16 = vpop.f32.mrf.mxu0 }
 0x1e2   : > { %v1791_v47 = vpop.f32.mrf.mxu1  ;;  %v1445_v34 = vadd.f32 %v1444_v16, %v10012_v2  ;;  %v10172_v41 = vpop.permute.xlu0 %1064 }
 0x1e3   : > { %3118 = vrot.lane.b32.xlu0 %v10047_v26, %s8862_s29  ;;  %8312 = vrot.lane.b32.xlu1 %v8306_v38, %s8864_s13  ;;  %v13656_v3 = vmax.f32 %v10098_v55, 0.0  ;;  %v1792_v21 = vadd.f32 %v1791_v47, %v1439_v15  ;;  %v1448_v24 = vpop.f32.mrf.mxu0 }
 0x1e4   : > { %v10093_v52 = vpop.f32.mrf.mxu1  ;;  %v1449_v42 = vadd.f32 %v1448_v24, %v10018_v5 }
 0x1e5   : > { %v8326_v11 = vpack.i.bf16 %v13656_v3, %v13657_v7  ;;  %v10157_v29 = vmax.f32 %v1792_v21, 0.0  ;;  %v1450_v35 = vpop.f32.mrf.mxu0  ;;  %v10190_v54 = vadd.f32 %v10093_v52, %v1443_v46 }
 0x1e6   : > { %v1797_v57 = vpop.f32.mrf.mxu1  ;;  %v10198_v2 = vpop.permute.xlu0 %1069  ;;  %v1451_v52 = vadd.f32 %v1450_v35, %v10018_v5 }
 0x1e7   : > { %2256 = vrot.lane.b32.xlu0 %v10096_v53, %s8861_s28  ;;  %8317 = vrot.lane.b32.xlu1 %v8306_v38, %s8862_s29  ;;  %v10168_v38 = vpop.permute.xlu1 %1059  ;;  %v1798_v39 = vadd.f32 %v1797_v57, %v1445_v34  ;;  %v1454_v43 = vpop.f32.mrf.mxu0 }
 0x1e8   : > { %v1801_v62 = vpop.f32.mrf.mxu1 }
 0x1e9   : > { %v10181_v47 = vmax.f32 %v1798_v39, 0.0  ;;  %v10183_v48 = vadd.f32 %v1801_v62, %v1449_v42  ;;  %v1456_v56 = vpop.f32.mrf.mxu0  ;;  %v13655_v62 = vmax.f32 %v10190_v54, 0.0 }
 0x1ea   : > { %v10120_v4 = vpop.f32.mrf.mxu1  ;;  %v10220_v5 = vpop.permute.xlu0 %1084  ;;  %v1457_v24 = vadd.f32 %v1456_v56, %v10028_v12 }
 0x1eb   : > { %2689 = vrot.lane.b32.xlu1 %v10096_v53, %s8864_s13  ;;  %2260 = vrot.lane.b32.xlu0 %v10116_v1, %s8861_s28  ;;  %v10187_v51 = vpop.permute.xlu1 %1074  ;;  %v13652_v60 = vmax.f32 %v10183_v48, 0.0  ;;  %v1460_v6 = vpop.f32.mrf.mxu0 }
 0x1ec   : > { %v10130_v9 = vpop.f32.mrf.mxu1  ;;  %v1461_v34 = vadd.f32 %v1460_v6, %v10035_v19 }
 0x1ed   : > { %v8341_v15 = vpack.i.bf16 %v13652_v60, %v13655_v62  ;;  %v1462_v6 = vpop.f32.mrf.mxu0 }
 0x1ee   : > { %v1809_v13 = vpop.f32.mrf.mxu1  ;;  %v10241_v28 = vpop.permute.xlu0 %1089 }
 0x1ef   : > { %3122 = vrot.lane.b32.xlu1 %v10096_v53, %s8862_s29  ;;  %8327 = vrot.lane.b32.xlu0 %v8326_v11, %s8864_s13  ;;  %v10216_v16 = vpop.permute.xlu1 %1079  ;;  %v1810_v39 = vadd.f32 %v1809_v13, %v1457_v24  ;;  %13795 = vst [vmem:[#allocation3_spill] sm:$0xff] %v10241_v28 }
 0x1f0   : > { %v1813_v17 = vpop.f32.mrf.mxu1 }
 0x1f1   : > { %v10229_v42 = vadd.f32 %v1813_v17, %v1461_v34 }
 0x1f2   : > { %v10146_v22 = vpop.f32.mrf.mxu1  ;;  %v10261_v34 = vpop.permute.xlu0 %1104 }
 0x1f3   : > { %2693 = vrot.lane.b32.xlu1 %v10116_v1, %s8864_s13  ;;  %8332 = vrot.lane.b32.xlu0 %v8326_v11, %s8862_s29  ;;  %v10239_v56 = vpop.permute.xlu1 %1094  ;;  %v13653_v13 = vmax.f32 %v10229_v42, 0.0  ;;  %13797 = vst [vmem:[#allocation5_spill] sm:$0xff] %v10261_v34 }
 0x1f4   : > { %v10153_v25 = vpop.f32.mrf.mxu1  ;;  %13794 = vst [vmem:[#allocation2_spill] sm:$0xff] %v10239_v56 }
 0x1f6   : > { %v10159_v30 = vpop.f32.mrf.mxu1  ;;  %v10275_v62 = vpop.permute.xlu0 %1109 }
 0x1f7   : > { %3126 = vrot.lane.b32.xlu1 %v10116_v1, %s8862_s29  ;;  %2697 = vrot.lane.b32.xlu0 %v10157_v29, %s8864_s13  ;;  %13799 = vst [vmem:[#allocation7_spill] sm:$0xff] %v10275_v62 }
 0x1f8   : > { %v10166_v37 = vpop.f32.mrf.mxu1 }
 0x1fa   : > { %v10170_v40 = vpop.f32.mrf.mxu1  ;;  %v10291_v32 = vpop.permute.xlu0 %1124 }
 0x1fb   : > { %3130 = vrot.lane.b32.xlu0 %v10157_v29, %s8862_s29  ;;  %8322 = vrot.lane.b32.xlu1 %v8326_v11, %s8861_s28  ;;  %v1804_v11 = vadd.f32 %v10120_v4, %v1451_v52  ;;  %v1455_v4 = vadd.f32 %v1454_v43, %v10028_v12  ;;  %v10243_v12 = vmax.f32 %v1810_v39, 0.0  ;;  %13801 = vst [vmem:[#allocation9_spill] sm:$0xff] %v10291_v32 }
 0x1fc   : > { %v10178_v45 = vpop.f32.mrf.mxu1 }
 0x1fd   : > { %v10227_v35 = vmax.f32 %v1804_v11, 0.0  ;;  %v10234_v52 = vadd.f32 %v10130_v9, %v1455_v4  ;;  %v1466_v9 = vpop.f32.mrf.mxu0  ;;  %v1463_v4 = vadd.f32 %v1462_v6, %v10035_v19 }
 0x1fe   : > { %v10185_v50 = vpop.f32.mrf.mxu1 }
 0x1ff   : > { %2264 = vrot.lane.b32.xlu1 %v10157_v29, %s8861_s28  ;;  %2701 = vrot.lane.b32.xlu0 %v10181_v47, %s8864_s13  ;;  %v13654_v43 = vmax.f32 %v10234_v52, 0.0  ;;  %v1468_v39 = vpop.f32.mrf.mxu0  ;;  %v1816_v18 = vadd.f32 %v10146_v22, %v1463_v4 }
 0x200   : > { %v10196_v57 = vpop.f32.mrf.mxu1  ;;  %v1469_v3 = vadd.f32 %v1468_v39, %v10055_v31 }
 0x201   : > { %v8356_v11 = vpack.i.bf16 %v13653_v13, %v13654_v43  ;;  %v1472_v43 = vpop.f32.mrf.mxu0  ;;  %v10277_v19 = vmax.f32 %v1816_v18, 0.0 }
 0x202   : > { %v10201_v61 = vpop.f32.mrf.mxu1  ;;  %v1822_v4 = vadd.f32 %v10159_v30, %v1469_v3  ;;  %v1473_v18 = vadd.f32 %v1472_v43, %v10062_v36  ;;  %v1467_v3 = vadd.f32 %v1466_v9, %v10055_v31  ;;  %v916_v43 = vld [vmem:[%s13636_s1 + $0x468] sm:$0xff] }
 0x203   : > { %3134 = vrot.lane.b32.xlu0 %v10181_v47, %s8862_s29  ;;  %2268 = vrot.lane.b32.xlu1 %v10181_v47, %s8861_s28  ;;  %v1474_v22 = vpop.f32.mrf.mxu0 }
 0x204   : > { %v10209_v8 = vpop.f32.mrf.mxu1  ;;  %v10301_v30 = vmax.f32 %v1822_v4, 0.0 }
 0x205   : > { %v1478_v39 = vpop.f32.mrf.mxu0 }
 0x206   : > { %v10218_v21 = vpop.f32.mrf.mxu1  ;;  %13802 = vst [vmem:[#allocation10_spill] sm:$0xff] %v10301_v30 }
 0x207   : > { %8342 = vrot.lane.b32.xlu1 %v8341_v15, %s8864_s13  ;;  %8337 = vrot.lane.b32.xlu0 %v8341_v15, %s8861_s28 }
 0x208   : > { %v10231_v46 = vpop.f32.mrf.mxu1 }
 0x20a   : > { %v10246_v17 = vpop.f32.mrf.mxu1 }
 0x20b   : > { %8347 = vrot.lane.b32.xlu1 %v8341_v15, %s8862_s29  ;;  %2272 = vrot.lane.b32.xlu0 %v10227_v35, %s8861_s28  ;;  %v10257_v15 = vpop.permute.xlu1 %1099 }
 0x20c   : > { %13796 = vst [vmem:[#allocation4_spill] sm:$0xff] %v10257_v15  ;;  %v10259_v24 = vpop.f32.mrf.mxu1 }
 0x20e   : > { %v10268_v60 = vpop.f32.mrf.mxu1 }
 0x20f   : > { %2705 = vrot.lane.b32.xlu1 %v10227_v35, %s8864_s13  ;;  %2276 = vrot.lane.b32.xlu0 %v10243_v12, %s8861_s28  ;;  %v10273_v13 = vpop.permute.xlu1 %1114 }
 0x210   : > { %13798 = vst [vmem:[#allocation6_spill] sm:$0xff] %v10273_v13  ;;  %v10279_v6 = vpop.f32.mrf.mxu1  ;;  %v917_v13 = vld [vmem:[%s13636_s1 + $0x470] sm:$0xff] }
 0x211   : > { %1698 = vmatprep.mubr.f32.mxu0 %v917_v13  ;;  %v10320_v13 = vpop.permute.xlu0 %1129 }
 0x212   : > { %v10289_v33 = vpop.f32.mrf.mxu1  ;;  %1699 = vmatmul.mubr.f32.gmra.mxu0 %v916_v43  ;;  %13806 = vst [vmem:[#allocation14_spill] sm:$0xff] %v10320_v13 }
 0x213   : > { %3138 = vrot.lane.b32.xlu1 %v10227_v35, %s8862_s29  ;;  %8357 = vrot.lane.b32.xlu0 %v8356_v11, %s8864_s13  ;;  %v10287_v7 = vpop.permute.xlu1 %1119 }
 0x214   : > { %13800 = vst [vmem:[#allocation8_spill] sm:$0xff] %v10287_v7  ;;  %v10304_v7 = vadd.f32 %v10166_v37, %v1473_v18  ;;  %v10309_v32 = vpop.f32.mrf.mxu1  ;;  %v1480_v37 = vpop.f32.mrf.mxu0 }
 0x215   : > { %v10340_v34 = vpop.permute.xlu0 %1144 }
 0x216   : > { %13803 = vst [vmem:[#allocation11_spill] sm:$0xff] %v10304_v7  ;;  %v13667_v9 = vmax.f32 %v10304_v7, 0.0  ;;  %v10323_v4 = vpop.f32.mrf.mxu1  ;;  %13808 = vst [vmem:[#allocation16_spill] sm:$0xff] %v10340_v34 }
 0x217   : > { %2709 = vrot.lane.b32.xlu1 %v10243_v12, %s8864_s13  ;;  %8362 = vrot.lane.b32.xlu0 %v8356_v11, %s8862_s29  ;;  %v10318_v31 = vpop.permute.xlu1 %1134 }
 0x218   : > { %13805 = vst [vmem:[#allocation13_spill] sm:$0xff] %v10318_v31  ;;  %v10338_v62 = vpop.f32.mrf.mxu1 }
 0x21b   : > { %3142 = vrot.lane.b32.xlu1 %v10243_v12, %s8862_s29  ;;  %2713 = vrot.lane.b32.xlu0 %v10277_v19, %s8864_s13  ;;  %v10336_v31 = vpop.permute.xlu1 %1139 }
 0x21c   : > { %13807 = vst [vmem:[#allocation15_spill] sm:$0xff] %v10336_v31  ;;  %v10353_v31 = vpop.f32.mrf.mxu1 }
 0x21f   : > { %3146 = vrot.lane.b32.xlu0 %v10277_v19, %s8862_s29  ;;  %8352 = vrot.lane.b32.xlu1 %v8356_v11, %s8861_s28  ;;  %v10312_v11 = vadd.f32 %v10153_v25, %v1467_v3  ;;  %v1475_v25 = vadd.f32 %v1474_v22, %v10062_v36  ;;  %v1484_v3 = vpop.f32.mrf.mxu0  ;;  %v1481_v36 = vadd.f32 %v1480_v37, %v10079_v44  ;;  %v10361_v37 = vpop.permute.xlu1 %1154 }
 0x220   : > { %v1485_v22 = vadd.f32 %v1484_v3, %v10086_v49  ;;  %13812 = vst [vmem:[#allocation20_spill] sm:$0xff] %v10361_v37 }
 0x221   : > { %13804 = vst [vmem:[#allocation12_spill] sm:$0xff] %v10312_v11  ;;  %v13668_v18 = vmax.f32 %v10312_v11, 0.0  ;;  %v1828_v43 = vadd.f32 %v10170_v40, %v1475_v25  ;;  %v1479_v40 = vadd.f32 %v1478_v39, %v10079_v44  ;;  %v1486_v44 = vpop.f32.mrf.mxu0  ;;  %v10363_v39 = vpop.permute.xlu0 %1149 }
 0x222   : > { %13813 = vst [vmem:[#allocation21_spill] sm:$0xff] %v10363_v39 }
 0x223   : > { %2280 = vrot.lane.b32.xlu1 %v10277_v19, %s8861_s28  ;;  %2717 = vrot.lane.b32.xlu0 %v10301_v30, %s8864_s13  ;;  %v8371_v13 = vpack.i.bf16 %v13667_v9, %v13668_v18  ;;  %v10347_v25 = vmax.f32 %v1828_v43, 0.0  ;;  %v1834_v9 = vadd.f32 %v10185_v50, %v1481_v36  ;;  %v10351_v18 = vadd.f32 %v10196_v57, %v1485_v22  ;;  %v10368_v57 = vpop.f32.mrf.mxu1 }
 0x224   : > { %v10356_v34 = vadd.f32 %v10178_v45, %v1479_v40  ;;  %v1490_v45 = vpop.f32.mrf.mxu0  ;;  %v1487_v40 = vadd.f32 %v1486_v44, %v10086_v49 }
 0x225   : > { %13809 = vst [vmem:[#allocation17_spill] sm:$0xff] %v10347_v25  ;;  %13810 = vst [vmem:[#allocation18_spill] sm:$0xff] %v10351_v18  ;;  %v10365_v3 = vmax.f32 %v1834_v9, 0.0  ;;  %v13674_v50 = vmax.f32 %v10351_v18, 0.0  ;;  %v10379_v9 = vpop.permute.xlu1 %1159  ;;  %v10381_v36 = vpop.f32.mrf.mxu1  ;;  %v1491_v15 = vadd.f32 %v1490_v45, %v10104_v58 }
 0x226   : > { %13811 = vst [vmem:[#allocation19_spill] sm:$0xff] %v10356_v34  ;;  %v13675_v43 = vmax.f32 %v10356_v34, 0.0  ;;  %13815 = vst [vmem:[#allocation23_spill] sm:$0xff] %v10379_v9  ;;  %v10383_v22 = vpop.permute.xlu0 %1164  ;;  %v1492_v39 = vpop.f32.mrf.mxu0  ;;  %v1840_v37 = vadd.f32 %v10201_v61, %v1487_v40 }
 0x227   : > { %3150 = vrot.lane.b32.xlu0 %v10301_v30, %s8862_s29  ;;  %2284 = vrot.lane.b32.xlu1 %v10301_v30, %s8861_s28  ;;  %13814 = vst [vmem:[#allocation22_spill] sm:$0xff] %v10365_v3  ;;  %13816 = vst [vmem:[#allocation24_spill] sm:$0xff] %v10383_v22  ;;  %v10390_v34 = vpop.f32.mrf.mxu1  ;;  %v1493_v9 = vadd.f32 %v1492_v39, %v10104_v58 }
 0x228   : > { %v10399_v49 = vmax.f32 %v1840_v37, 0.0 }
 0x229   : > { %v10401_v44 = vpop.f32.mrf.mxu1  ;;  %v1846_v40 = vadd.f32 %v10218_v21, %v1493_v9 }
 0x22a   : > { %v10397_v22 = vpop.permute.xlu0 %1169  ;;  %13819 = vst [vmem:[#allocation27_spill] sm:$0xff] %v10399_v49 }
 0x22b   : > { %8372 = vrot.lane.b32.xlu1 %v8371_v13, %s8864_s13  ;;  %8367 = vrot.lane.b32.xlu0 %v8371_v13, %s8861_s28  ;;  %13818 = vst [vmem:[#allocation26_spill] sm:$0xff] %v10397_v22 }
 0x22e   : > { %v10413_v22 = vpop.permute.xlu0 %1184 }
 0x22f   : > { %8377 = vrot.lane.b32.xlu1 %v8371_v13, %s8862_s29  ;;  %2288 = vrot.lane.b32.xlu0 %v10347_v25, %s8861_s28  ;;  %v8386_v13 = vpack.i.bf16 %v13674_v50, %v13675_v43  ;;  %v10395_v50 = vpop.permute.xlu1 %1174  ;;  %v1496_v43 = vpop.f32.mrf.mxu0  ;;  %13821 = vst [vmem:[#allocation29_spill] sm:$0xff] %v10413_v22 }
 0x230   : > { %13817 = vst [vmem:[#allocation25_spill] sm:$0xff] %v10395_v50  ;;  %v10411_v50 = vpop.f32.mrf.mxu1  ;;  %v1497_v37 = vadd.f32 %v1496_v43, %v10114_v0 }
 0x231   : > { %v1498_v61 = vpop.f32.mrf.mxu0 }
 0x232   : > { %v10423_v21 = vadd.f32 %v10231_v46, %v1497_v37  ;;  %v10425_v9 = vpop.f32.mrf.mxu1  ;;  %v10436_v58 = vpop.permute.xlu0 %1189 }
 0x233   : > { %2721 = vrot.lane.b32.xlu1 %v10347_v25, %s8864_s13  ;;  %2292 = vrot.lane.b32.xlu0 %v10365_v3, %s8861_s28  ;;  %v10409_v18 = vpop.permute.xlu1 %1179  ;;  %v1502_v39 = vpop.f32.mrf.mxu0  ;;  %13826 = vst [vmem:[#allocation34_spill] sm:$0xff] %v10436_v58 }
 0x234   : > { %13820 = vst [vmem:[#allocation28_spill] sm:$0xff] %v10409_v18  ;;  %13823 = vst [vmem:[#allocation31_spill] sm:$0xff] %v10423_v21  ;;  %v10428_v18 = vadd.f32 %v10209_v8, %v1491_v15  ;;  %v13689_v45 = vmax.f32 %v10423_v21, 0.0  ;;  %v10439_v46 = vpop.f32.mrf.mxu1  ;;  %v1499_v8 = vadd.f32 %v1498_v61, %v10114_v0 }
 0x236   : > { %13824 = vst [vmem:[#allocation32_spill] sm:$0xff] %v10428_v18  ;;  %v1852_v37 = vadd.f32 %v10246_v17, %v1499_v8  ;;  %v1503_v17 = vadd.f32 %v1502_v39, %v10133_v10 }
 0x237   : > { %3154 = vrot.lane.b32.xlu1 %v10347_v25, %s8862_s29  ;;  %8387 = vrot.lane.b32.xlu0 %v8386_v13, %s8864_s13  ;;  %v10434_v43 = vpop.permute.xlu1 %1194 }
 0x238   : > { %13825 = vst [vmem:[#allocation33_spill] sm:$0xff] %v10434_v43  ;;  %v10461_v8 = vmax.f32 %v1852_v37, 0.0 }
 0x23b   : > { %2725 = vrot.lane.b32.xlu1 %v10365_v3, %s8864_s13  ;;  %8392 = vrot.lane.b32.xlu0 %v8386_v13, %s8862_s29  ;;  %v10452_v22 = vpop.permute.xlu1 %1199 }
 0x23c   : > { %13827 = vst [vmem:[#allocation35_spill] sm:$0xff] %v10452_v22 }
 0x23f   : > { %3158 = vrot.lane.b32.xlu1 %v10365_v3, %s8862_s29  ;;  %2729 = vrot.lane.b32.xlu0 %v10399_v49, %s8864_s13  ;;  %v10420_v3 = vmax.f32 %v1846_v40, 0.0  ;;  %v13690_v40 = vmax.f32 %v10428_v18, 0.0 }
 0x241   : > { %13822 = vst [vmem:[#allocation30_spill] sm:$0xff] %v10420_v3  ;;  %v8401_v58 = vpack.i.bf16 %v13689_v45, %v13690_v40 }
 0x243   : > { %3162 = vrot.lane.b32.xlu0 %v10399_v49, %s8862_s29  ;;  %8382 = vrot.lane.b32.xlu1 %v8386_v13, %s8861_s28  ;;  %v1504_v13 = vpop.f32.mrf.mxu0 }
 0x244   : > { %v1505_v0 = vadd.f32 %v1504_v13, %v10133_v10 }
 0x245   : > { %v1508_v15 = vpop.f32.mrf.mxu0 }
 0x246   : > { %v1509_v61 = vadd.f32 %v1508_v15, %v10140_v14  ;;  %v1858_v18 = vadd.f32 %v10268_v60, %v1505_v0  ;;  %v10471_v15 = vadd.f32 %v10259_v24, %v1503_v17 }
 0x247   : > { %2296 = vrot.lane.b32.xlu1 %v10399_v49, %s8861_s28  ;;  %2733 = vrot.lane.b32.xlu0 %v10420_v3, %s8864_s13  ;;  %v10454_v49 = vpop.f32.mrf.mxu1 }
 0x248   : > { %v10465_v45 = vadd.f32 %v10279_v6, %v1509_v61  ;;  %v10476_v60 = vmax.f32 %v1858_v18, 0.0  ;;  %v13701_v0 = vmax.f32 %v10471_v15, 0.0 }
 0x249   : > { %v10467_v22 = vpop.f32.mrf.mxu1 }
 0x24a   : > { %13828 = vst [vmem:[#allocation36_spill] sm:$0xff] %v10465_v45  ;;  %13829 = vst [vmem:[#allocation37_spill] sm:$0xff] %v10467_v22  ;;  %v13700_v6 = vmax.f32 %v10465_v45, 0.0 }
 0x24b   : > { %3166 = vrot.lane.b32.xlu0 %v10420_v3, %s8862_s29  ;;  %2300 = vrot.lane.b32.xlu1 %v10420_v3, %s8861_s28  ;;  %v1510_v3 = vpop.f32.mrf.mxu0 }
 0x24c   : > { %v1511_v28 = vadd.f32 %v1510_v3, %v10140_v14 }
 0x24d   : > { %v2253_v43 = vpop.permute.xlu0 %2252  ;;  %v1514_v61 = vpop.f32.mrf.mxu0 }
 0x24e   : > { %v2588_v13 = vmax.f32 %v10047_v26, %v2253_v43  ;;  %v10479_v26 = vpop.f32.mrf.mxu1 }
 0x24f   : > { %8402 = vrot.lane.b32.xlu1 %v8401_v58, %s8864_s13  ;;  %8397 = vrot.lane.b32.xlu0 %v8401_v58, %s8861_s28  ;;  %v1516_v11 = vpop.f32.mrf.mxu0 }
 0x251   : > { %v2686_v40 = vpop.permute.xlu0 %2685  ;;  %v8308_v21 = vpop.permute.xlu1 %8307 }
 0x252   : > { %v8309_v56 = vunpack.i.l.bf16 %v8308_v21  ;;  %v3021_v10 = vmax.f32 %v2588_v13, %v2686_v40  ;;  %v8310_v30 = vunpack.i.h.bf16 %v8308_v21 }
 0x253   : > { %8407 = vrot.lane.b32.xlu1 %v8401_v58, %s8862_s29  ;;  %2304 = vrot.lane.b32.xlu0 %v10461_v8, %s8861_s28 }
 0x254   : > { %v2443_v58 = vsel %vm2442_vm4, %v8309_v56, %v2253_v43  ;;  %v10494_v56 = vpop.f32.mrf.mxu1  ;;  %v13830_v43 = vmax.f32 %v10037_v20, 0.0 }
 0x255   : > { %v3119_v39 = vpop.permute.xlu0 %3118  ;;  %v8313_v24 = vpop.permute.xlu1 %8312 }
 0x256   : > { %v3454_v37 = vmax.f32 %v3021_v10, %v3119_v39  ;;  %v8314_v17 = vunpack.i.l.bf16 %v8313_v24  ;;  %v8416_v10 = vpack.i.bf16 %v13700_v6, %v13701_v0  ;;  %v2587_v7 = vmax.f32 %v13830_v43, %v2443_v58  ;;  %v10506_v20 = vpop.f32.mrf.mxu1  ;;  %v1520_v43 = vpop.f32.mrf.mxu0 }
 0x257   : > { %2737 = vrot.lane.b32.xlu1 %v10461_v8, %s8864_s13  ;;  %2308 = vrot.lane.b32.xlu0 %v10476_v60, %s8861_s28 }
 0x258   : > { %7579 = vmatprep.mubr.msk.f32.mxu1 %vm3308_vm5, %v3454_v37  ;;  %v2876_v18 = vsel %vm2875_vm6, %v8314_v17, %v2686_v40  ;;  %v1864_v40 = vadd.f32 %v10289_v33, %v1511_v28  ;;  %v8315_v17 = vunpack.i.h.bf16 %v8313_v24  ;;  %v13831_v28 = vmax.f32 %v10049_v27, 0.0  ;;  %v10519_v24 = vpop.f32.mrf.mxu1 }
 0x259   : > { %v2257_v13 = vpop.permute.xlu0 %2256  ;;  %v8318_v25 = vpop.permute.xlu1 %8317  ;;  %v3020_v37 = vmax.f32 %v2587_v7, %v2876_v18 }
 0x25a   : > { %v8319_v22 = vunpack.i.l.bf16 %v8318_v25  ;;  %v2444_v14 = vsel %vm2442_vm4, %v8310_v30, %v2257_v13  ;;  %v2590_v0 = vmax.f32 %v10096_v53, %v2257_v13  ;;  %v10515_v7 = vmax.f32 %v1864_v40, 0.0 }
 0x25b   : > { %3170 = vrot.lane.b32.xlu1 %v10461_v8, %s8862_s29  ;;  %8417 = vrot.lane.b32.xlu0 %v8416_v10, %s8864_s13  ;;  %v2589_v33 = vmax.f32 %v13831_v28, %v2444_v14  ;;  %v8320_v30 = vunpack.i.h.bf16 %v8318_v25  ;;  %v1517_v13 = vadd.f32 %v1516_v11, %v10148_v23  ;;  %v10532_v11 = vpop.f32.mrf.mxu1 }
 0x25c   : > { %v3309_v3 = vsel %vm3308_vm5, %v8319_v22, %v3119_v39 }
 0x25d   : > { %v10504_v6 = vpop.permute.xlu0 %2260  ;;  %v3453_v58 = vmax.f32 %v3020_v37, %v3309_v3  ;;  %v2690_v21 = vpop.permute.xlu1 %2689  ;;  %v1870_v25 = vadd.f32 %v10323_v4, %v1517_v13  ;;  %v1515_v4 = vadd.f32 %v1514_v61, %v10148_v23 }
 0x25e   : > { %v2877_v45 = vsel %vm2875_vm6, %v8315_v17, %v2690_v21  ;;  %v3023_v22 = vmax.f32 %v2590_v0, %v2690_v21  ;;  %v1522_v37 = vpop.f32.mrf.mxu0 }
 0x25f   : > { %2741 = vrot.lane.b32.xlu1 %v10476_v60, %s8864_s13  ;;  %8422 = vrot.lane.b32.xlu0 %v8416_v10, %s8862_s29  ;;  %v3022_v53 = vmax.f32 %v2589_v33, %v2877_v45  ;;  %v1521_v45 = vadd.f32 %v1520_v43, %v10155_v63  ;;  %v10543_v28 = vmax.f32 %v1870_v25, 0.0  ;;  %v1523_v23 = vadd.f32 %v1522_v37, %v10155_v63 }
 0x260   : > { %3794 = vmatmul.mubr.f32.vlgmr.msra.gmra.mxu1 %v3453_v58  ;;  %v1526_v14 = vpop.f32.mrf.mxu0  ;;  %v2592_v58 = vmax.f32 %v10116_v1, %v10504_v6 }
 0x261   : > { %v10517_v39 = vpop.permute.xlu0 %8327  ;;  %v3123_v18 = vpop.permute.xlu1 %3122  ;;  %v10541_v21 = vadd.f32 %v10338_v62, %v1521_v45  ;;  %v1527_v63 = vadd.f32 %v1526_v14, %v10168_v38 }
 0x262   : > { %v3310_v17 = vsel %vm3308_vm5, %v8320_v30, %v3123_v18  ;;  %v3456_v3 = vmax.f32 %v3023_v22, %v3123_v18  ;;  %v10546_v30 = vadd.f32 %v10309_v32, %v1515_v4  ;;  %v10548_v22 = vpop.f32.mrf.mxu1  ;;  %v8329_v25 = vunpack.i.l.bf16 %v10517_v39 }
 0x263   : > { %2745 = vrot.lane.b32.xlu0 %v10515_v7, %s8864_s13  ;;  %3174 = vrot.lane.b32.xlu1 %v10476_v60, %s8862_s29  ;;  %v3455_v27 = vmax.f32 %v3022_v53, %v3310_v17  ;;  %13832 = vst [vmem:[#allocation38_spill] sm:$0xff] %v10541_v21  ;;  %v1528_v53 = vpop.f32.mrf.mxu0  ;;  %v13703_v62 = vmax.f32 %v10541_v21, 0.0 }
 0x264   : > { %7580 = vmatprep.mubr.msk.f32.mxu1 %vm3308_vm5, %v3456_v3  ;;  %13833 = vst [vmem:[#allocation39_spill] sm:$0xff] %v10546_v30  ;;  %v13704_v32 = vmax.f32 %v10546_v30, 0.0  ;;  %v10559_v13 = vpop.f32.mrf.mxu1  ;;  %v1529_v37 = vadd.f32 %v1528_v53, %v10168_v38  ;;  %v8330_v38 = vunpack.i.h.bf16 %v10517_v39  ;;  %v13835_v39 = vmax.f32 %v10098_v55, 0.0 }
 0x265   : > { %v10529_v0 = vpop.permute.xlu0 %8332  ;;  %v2694_v40 = vpop.permute.xlu1 %2693  ;;  %3799 = vmatmul.mubr.f32.gmra.mxu1 %v3455_v27 }
 0x266   : > { %v3025_v43 = vmax.f32 %v2592_v58, %v2694_v40  ;;  %v1532_v3 = vpop.f32.mrf.mxu0  ;;  %v10579_v14 = vpop.f32.mrf.mxu1 }
 0x267   : > { %3178 = vrot.lane.b32.xlu0 %v10515_v7, %s8862_s29  ;;  %8412 = vrot.lane.b32.xlu1 %v8416_v10, %s8861_s28  ;;  %v1876_v10 = vadd.f32 %v10353_v31, %v1523_v23  ;;  %v8426_v31 = vpack.i.bf16 %v13703_v62, %v13704_v32  ;;  %v13834_v23 = vmax.f32 %v10106_v59, 0.0  ;;  %v8334_v32 = vunpack.i.l.bf16 %v10529_v0 }
 0x268   : > { %v1534_v55 = vpop.f32.mrf.mxu0 }
 0x269   : > { %v2698_v33 = vpop.permute.xlu0 %2697  ;;  %v3127_v1 = vpop.permute.xlu1 %3126 }
 0x26a   : > { %v3458_v18 = vmax.f32 %v3025_v43, %v3127_v1  ;;  %v10576_v43 = vmax.f32 %v1876_v10, 0.0  ;;  %v1882_v10 = vadd.f32 %v10381_v36, %v1529_v37  ;;  %v10601_v36 = vadd.f32 %v10368_v57, %v1527_v63 }
 0x26b   : > { %2749 = vrot.lane.b32.xlu0 %v10543_v28, %s8864_s13  ;;  %2312 = vrot.lane.b32.xlu1 %v10515_v7, %s8861_s28 }
 0x26c   : > { %7581 = vmatprep.mubr.msk.f32.mxu1 %vm3308_vm5, %v3458_v18  ;;  %v1533_v18 = vadd.f32 %v1532_v3, %v10172_v41 }
 0x26d   : > { %v3131_v61 = vpop.permute.xlu0 %3130  ;;  %v8323_v17 = vpop.permute.xlu1 %8322 }
 0x26e   : > { %v8324_v27 = vunpack.i.l.bf16 %v8323_v17  ;;  %v8325_v45 = vunpack.i.h.bf16 %v8323_v17  ;;  %v2878_v17 = vsel %vm2875_vm6, %v8329_v25, %v2694_v40  ;;  %v10594_v59 = vadd.f32 %v10390_v34, %v1533_v18 }
 0x26f   : > { %3182 = vrot.lane.b32.xlu0 %v10543_v28, %s8862_s29  ;;  %2316 = vrot.lane.b32.xlu1 %v10543_v28, %s8861_s28  ;;  %v3311_v40 = vsel %vm3308_vm5, %v8334_v32, %v3127_v1  ;;  %v10608_v1 = vmax.f32 %v1882_v10, 0.0  ;;  %v13836_v10 = vmax.f32 %v10190_v54, 0.0 }
 0x270   : > { %v2445_v58 = vsel %vm2442_vm4, %v8324_v27, %v10504_v6 }
 0x271   : > { %v10574_v4 = vpop.permute.xlu0 %2701  ;;  %v2265_v53 = vpop.permute.xlu1 %2264  ;;  %v2591_v62 = vmax.f32 %v13834_v23, %v2445_v58  ;;  %v2879_v58 = vsel %vm2875_vm6, %v8330_v38, %v2698_v33 }
 0x272   : > { %v2446_v6 = vsel %vm2442_vm4, %v8325_v45, %v2265_v53  ;;  %v2594_v27 = vmax.f32 %v10157_v29, %v2265_v53  ;;  %v10598_v29 = vpop.f32.mrf.mxu1  ;;  %v1538_v38 = vpop.f32.mrf.mxu0 }
 0x273   : > { %8427 = vrot.lane.b32.xlu0 %v8426_v31, %s8861_s28  ;;  %8432 = vrot.lane.b32.xlu1 %v8426_v31, %s8864_s13  ;;  %v2593_v3 = vmax.f32 %v13835_v39, %v2446_v6  ;;  %v3024_v21 = vmax.f32 %v2591_v62, %v2878_v17  ;;  %v8335_v62 = vunpack.i.h.bf16 %v10529_v0 }
 0x274   : > { %v3027_v25 = vmax.f32 %v2594_v27, %v2698_v33  ;;  %v10614_v63 = vpop.f32.mrf.mxu1 }
 0x275   : > { %v3135_v45 = vpop.permute.xlu0 %3134  ;;  %v2269_v53 = vpop.permute.xlu1 %2268  ;;  %v3457_v23 = vmax.f32 %v3024_v21, %v3311_v40  ;;  %v3026_v30 = vmax.f32 %v2593_v3, %v2879_v58  ;;  %v13711_v21 = vmax.f32 %v10594_v59, 0.0  ;;  %v3312_v32 = vsel %vm3308_vm5, %v8335_v62, %v3131_v61 }
 0x276   : > { %v2596_v34 = vmax.f32 %v10181_v47, %v2269_v53  ;;  %v3460_v33 = vmax.f32 %v3027_v25, %v3131_v61  ;;  %v1535_v3 = vadd.f32 %v1534_v55, %v10172_v41  ;;  %v10629_v58 = vpop.f32.mrf.mxu1  ;;  %v1540_v25 = vpop.f32.mrf.mxu0 }
 0x277   : > { %2320 = vrot.lane.b32.xlu0 %v10576_v43, %s8861_s28  ;;  %8437 = vrot.lane.b32.xlu1 %v8426_v31, %s8862_s29  ;;  %v3459_v18 = vmax.f32 %v3026_v30, %v3312_v32  ;;  %v13712_v31 = vmax.f32 %v10601_v36, 0.0 }
 0x278   : > { %3804 = vmatmul.mubr.f32.gmra.mxu1 %v3457_v23  ;;  %v3029_v57 = vmax.f32 %v2596_v34, %v10574_v4  ;;  %v1888_v54 = vadd.f32 %v10401_v44, %v1535_v3  ;;  %v13837_v44 = vmax.f32 %v10183_v48, 0.0  ;;  %v1541_v3 = vadd.f32 %v1540_v25, %v10198_v2 }
 0x279   : > { %7582 = vmatprep.mubr.msk.f32.mxu1 %vm3308_vm5, %v3460_v33  ;;  %v8338_v0 = vpop.permute.xlu0 %8337  ;;  %v8343_v37 = vpop.permute.xlu1 %8342  ;;  %v8446_v30 = vpack.i.bf16 %v13711_v21, %v13712_v31  ;;  %v13858_v31 = vld [vmem:[#allocation5_spill] sm:$0xff] }
 0x27a   : > { %v8339_v47 = vunpack.i.l.bf16 %v8338_v0  ;;  %v8344_v17 = vunpack.i.l.bf16 %v8343_v37  ;;  %v3462_v6 = vmax.f32 %v3029_v57, %v3135_v45  ;;  %v8345_v41 = vunpack.i.h.bf16 %v8343_v37  ;;  %v10642_v57 = vpop.f32.mrf.mxu1 }
 0x27b   : > { %2324 = vrot.lane.b32.xlu0 %v10608_v1, %s8861_s28  ;;  %2753 = vrot.lane.b32.xlu1 %v10576_v43, %s8864_s13  ;;  %v10651_v37 = vmax.f32 %v1888_v54, 0.0 }
 0x27c   : > { %v2447_v61 = vsel %vm2442_vm4, %v8339_v47, %v2269_v53  ;;  %3809 = vmatmul.mubr.f32.gmra.mxu1 %v3459_v18  ;;  %v8340_v53 = vunpack.i.h.bf16 %v8338_v0  ;;  %v2880_v62 = vsel %vm2875_vm6, %v8344_v17, %v10574_v4  ;;  %v1544_v18 = vpop.f32.mrf.mxu0 }
 0x27d   : > { %v2273_v27 = vpop.permute.xlu0 %2272  ;;  %v2595_v39 = vmax.f32 %v13836_v10, %v2447_v61  ;;  %7583 = vmatprep.mubr.msk.f32.mxu1 %vm3308_vm5, %v3462_v6  ;;  %v8348_v40 = vpop.permute.xlu1 %8347 }
 0x27e   : > { %v8349_v23 = vunpack.i.l.bf16 %v8348_v40  ;;  %v2448_v55 = vsel %vm2442_vm4, %v8340_v53, %v2273_v27  ;;  %v2598_v61 = vmax.f32 %v10227_v35, %v2273_v27  ;;  %v1546_v53 = vpop.f32.mrf.mxu0 }
 0x27f   : > { %8447 = vrot.lane.b32.xlu0 %v8446_v30, %s8864_s13  ;;  %3186 = vrot.lane.b32.xlu1 %v10576_v43, %s8862_s29  ;;  %v3028_v34 = vmax.f32 %v2595_v39, %v2880_v62  ;;  %v2597_v4 = vmax.f32 %v13837_v44, %v2448_v55  ;;  %v10655_v39 = vpop.f32.mrf.mxu1 }
 0x280   : > { %v3313_v32 = vsel %vm3308_vm5, %v8349_v23, %v3135_v45  ;;  %v8350_v45 = vunpack.i.h.bf16 %v8348_v40  ;;  %v1894_v40 = vadd.f32 %v10425_v9, %v1541_v3  ;;  %v1550_v55 = vpop.f32.mrf.mxu0  ;;  %v1539_v9 = vadd.f32 %v1538_v38, %v10198_v2 }
 0x281   : > { %v10639_v33 = vpop.permute.xlu0 %2276  ;;  %v2706_v0 = vpop.permute.xlu1 %2705  ;;  %v3461_v47 = vmax.f32 %v3028_v34, %v3313_v32  ;;  %v1545_v34 = vadd.f32 %v1544_v18, %v10187_v51  ;;  %v1547_v2 = vadd.f32 %v1546_v53, %v10187_v51  ;;  %v1551_v51 = vadd.f32 %v1550_v55, %v10216_v16 }
 0x282   : > { %v2881_v6 = vsel %vm2875_vm6, %v8345_v41, %v2706_v0  ;;  %v3031_v17 = vmax.f32 %v2598_v61, %v2706_v0  ;;  %v10668_v25 = vpop.f32.mrf.mxu1  ;;  %v2600_v32 = vmax.f32 %v10243_v12, %v10639_v33 }
 0x283   : > { %8452 = vrot.lane.b32.xlu0 %v8446_v30, %s8862_s29  ;;  %2757 = vrot.lane.b32.xlu1 %v10608_v1, %s8864_s13  ;;  %v3030_v35 = vmax.f32 %v2597_v4, %v2881_v6  ;;  %v10677_v0 = vadd.f32 %v10439_v46, %v1545_v34  ;;  %v10682_v6 = vadd.f32 %v10411_v50, %v1539_v9  ;;  %v1552_v4 = vpop.f32.mrf.mxu0 }
 0x284   : > { %3814 = vmatmul.mubr.f32.gmra.mxu1 %v3461_v47  ;;  %v10679_v47 = vmax.f32 %v1894_v40, 0.0  ;;  %v10684_v44 = vpop.f32.mrf.mxu1  ;;  %v1553_v53 = vadd.f32 %v1552_v4, %v10216_v16 }
 0x285   : > { %v10653_v10 = vpop.permute.xlu0 %8357  ;;  %v3139_v27 = vpop.permute.xlu1 %3138  ;;  %v13707_v46 = vmax.f32 %v10677_v0, 0.0  ;;  %v13708_v50 = vmax.f32 %v10682_v6, 0.0 }
 0x286   : > { %v3314_v23 = vsel %vm3308_vm5, %v8350_v45, %v3139_v27  ;;  %v3464_v62 = vmax.f32 %v3031_v17, %v3139_v27  ;;  %v10695_v17 = vpop.f32.mrf.mxu1  ;;  %v1556_v27 = vpop.f32.mrf.mxu0  ;;  %v8360_v16 = vunpack.i.h.bf16 %v10653_v10 }
 0x287   : > { %2761 = vrot.lane.b32.xlu0 %v10651_v37, %s8864_s13  ;;  %3190 = vrot.lane.b32.xlu1 %v10608_v1, %s8862_s29  ;;  %v3463_v48 = vmax.f32 %v3030_v35, %v3314_v23  ;;  %v8359_v23 = vunpack.i.l.bf16 %v10653_v10  ;;  %v13839_v10 = vmax.f32 %v10229_v42, 0.0 }
 0x288   : > { %7584 = vmatprep.mubr.msk.f32.mxu1 %vm3308_vm5, %v3464_v62  ;;  %v10713_v9 = vpop.f32.mrf.mxu1  ;;  %v1558_v42 = vpop.f32.mrf.mxu0 }
 0x289   : > { %v10665_v54 = vpop.permute.xlu0 %8362  ;;  %v2710_v41 = vpop.permute.xlu1 %2709  ;;  %3819 = vmatmul.mubr.f32.gmra.mxu1 %v3463_v48 }
 0x28a   : > { %v3033_v18 = vmax.f32 %v2600_v32, %v2710_v41  ;;  %v1557_v32 = vadd.f32 %v1556_v27, %v10220_v5 }
 0x28b   : > { %3194 = vrot.lane.b32.xlu0 %v10651_v37, %s8862_s29  ;;  %8442 = vrot.lane.b32.xlu1 %v8446_v30, %s8861_s28  ;;  %v1900_v30 = vadd.f32 %v10454_v49, %v1547_v2  ;;  %v8456_v49 = vpack.i.bf16 %v13707_v46, %v13708_v50  ;;  %v2882_v2 = vsel %vm2875_vm6, %v8359_v23, %v2710_v41  ;;  %v13841_v50 = vld [vmem:[#allocation37_spill] sm:$0xff] }
 0x28d   : > { %v2714_v61 = vpop.permute.xlu0 %2713  ;;  %v3143_v12 = vpop.permute.xlu1 %3142  ;;  %v10710_v34 = vmax.f32 %v1900_v30, 0.0  ;;  %v1906_v30 = vadd.f32 %v10479_v26, %v1553_v53  ;;  %v10735_v26 = vadd.f32 %v13841_v50, %v1551_v51  ;;  %v8365_v53 = vunpack.i.h.bf16 %v10665_v54 }
 0x28e   : > { %v3466_v45 = vmax.f32 %v3033_v18, %v3143_v12  ;;  %v13838_v18 = vmax.f32 %v10234_v52, 0.0  ;;  %v10728_v52 = vadd.f32 %v10494_v56, %v1557_v32 }
 0x28f   : > { %2765 = vrot.lane.b32.xlu0 %v10679_v47, %s8864_s13  ;;  %2328 = vrot.lane.b32.xlu1 %v10651_v37, %s8861_s28  ;;  %13842 = vst [vmem:[#allocation37_spill] sm:$0xff] %v10735_v26 }
 0x290   : > { %7585 = vmatprep.mubr.msk.f32.mxu1 %vm3308_vm5, %v3466_v45  ;;  %v8364_v45 = vunpack.i.l.bf16 %v10665_v54  ;;  %13840 = vst [vmem:[#allocation40_spill] sm:$0xff] %v10728_v52  ;;  %v13709_v32 = vmax.f32 %v10728_v52, 0.0 }
 0x291   : > { %v3147_v38 = vpop.permute.xlu0 %3146  ;;  %v8353_v35 = vpop.permute.xlu1 %8352 }
 0x292   : > { %v8354_v3 = vunpack.i.l.bf16 %v8353_v35  ;;  %v8355_v62 = vunpack.i.h.bf16 %v8353_v35  ;;  %v3315_v41 = vsel %vm3308_vm5, %v8364_v45, %v3143_v12  ;;  %v10742_v12 = vmax.f32 %v1906_v30, 0.0 }
 0x293   : > { %3198 = vrot.lane.b32.xlu0 %v10679_v47, %s8862_s29  ;;  %2332 = vrot.lane.b32.xlu1 %v10679_v47, %s8861_s28 }
 0x294   : > { %v2449_v48 = vsel %vm2442_vm4, %v8354_v3, %v10639_v33 }
 0x295   : > { %v2718_v40 = vpop.permute.xlu0 %2717  ;;  %v2281_v55 = vpop.permute.xlu1 %2280  ;;  %v2599_v4 = vmax.f32 %v13838_v18, %v2449_v48  ;;  %v2883_v48 = vsel %vm2875_vm6, %v8360_v16, %v2714_v61  ;;  %v3316_v16 = vsel %vm3308_vm5, %v8365_v53, %v3147_v38 }
 0x296   : > { %v2450_v35 = vsel %vm2442_vm4, %v8355_v62, %v2281_v55  ;;  %v2602_v33 = vmax.f32 %v10277_v19, %v2281_v55  ;;  %v10732_v19 = vpop.f32.mrf.mxu1 }
 0x297   : > { %8457 = vrot.lane.b32.xlu0 %v8456_v49, %s8861_s28  ;;  %8462 = vrot.lane.b32.xlu1 %v8456_v49, %s8864_s13  ;;  %v2601_v27 = vmax.f32 %v13839_v10, %v2450_v35  ;;  %v3032_v3 = vmax.f32 %v2599_v4, %v2882_v2  ;;  %v13843_v4 = vld [vmem:[#allocation10_spill] sm:$0xff] }
 0x298   : > { %v3035_v23 = vmax.f32 %v2602_v33, %v2714_v61  ;;  %13844 = vst [vmem:[#allocation10_spill] sm:$0xff] %v10742_v12  ;;  %v10747_v54 = vpop.f32.mrf.mxu1  ;;  %v13710_v33 = vmax.f32 %v10735_v26, 0.0 }
 0x299   : > { %v3151_v62 = vpop.permute.xlu0 %3150  ;;  %v2285_v55 = vpop.permute.xlu1 %2284  ;;  %v3465_v18 = vmax.f32 %v3032_v3, %v3315_v41  ;;  %v3034_v46 = vmax.f32 %v2601_v27, %v2883_v48  ;;  %v13845_v27 = vld [vmem:[#allocation12_spill] sm:$0xff] }
 0x29a   : > { %v2604_v56 = vmax.f32 %v13843_v4, %v2285_v55  ;;  %v3468_v61 = vmax.f32 %v3035_v23, %v3147_v38  ;;  %v13846_v3 = vmax.f32 %v13845_v27, 0.0  ;;  %v8476_v41 = vpack.i.bf16 %v13709_v32, %v13710_v33 }
 0x29b   : > { %2336 = vrot.lane.b32.xlu0 %v10710_v34, %s8861_s28  ;;  %8467 = vrot.lane.b32.xlu1 %v8456_v49, %s8862_s29  ;;  %v3467_v35 = vmax.f32 %v3034_v46, %v3316_v16  ;;  %v1562_v49 = vpop.f32.mrf.mxu0  ;;  %v1559_v23 = vadd.f32 %v1558_v42, %v10220_v5 }
 0x29c   : > { %3824 = vmatmul.mubr.f32.gmra.mxu1 %v3465_v18  ;;  %v3037_v50 = vmax.f32 %v2604_v56, %v2718_v40  ;;  %v10763_v18 = vpop.f32.mrf.mxu1 }
 0x29d   : > { %7586 = vmatprep.mubr.msk.f32.mxu1 %vm3308_vm5, %v3468_v61  ;;  %v8368_v51 = vpop.permute.xlu0 %8367  ;;  %v8373_v2 = vpop.permute.xlu1 %8372 }
 0x29e   : > { %v8369_v45 = vunpack.i.l.bf16 %v8368_v51  ;;  %v8374_v10 = vunpack.i.l.bf16 %v8373_v2  ;;  %v3470_v38 = vmax.f32 %v3037_v50, %v3151_v62  ;;  %v8370_v56 = vunpack.i.h.bf16 %v8368_v51 }
 0x29f   : > { %2340 = vrot.lane.b32.xlu0 %v10742_v12, %s8861_s28  ;;  %2769 = vrot.lane.b32.xlu1 %v10710_v34, %s8864_s13  ;;  %v1912_v50 = vadd.f32 %v10506_v20, %v1559_v23  ;;  %v13848_v20 = vld [vmem:[#allocation11_spill] sm:$0xff] }
 0x2a0   : > { %v2451_v30 = vsel %vm2442_vm4, %v8369_v45, %v2285_v55  ;;  %3829 = vmatmul.mubr.f32.gmra.mxu1 %v3467_v35  ;;  %v2884_v53 = vsel %vm2875_vm6, %v8374_v10, %v2718_v40  ;;  %v1564_v55 = vpop.f32.mrf.mxu0  ;;  %v8375_v45 = vunpack.i.h.bf16 %v8373_v2  ;;  %v10774_v40 = vpop.f32.mrf.mxu1  ;;  %v13849_v2 = vmax.f32 %v13848_v20, 0.0  ;;  %v13853_v20 = vld [vmem:[#allocation22_spill] sm:$0xff] }
 0x2a1   : > { %v2603_v48 = vmax.f32 %v13846_v3, %v2451_v30  ;;  %7587 = vmatprep.mubr.msk.f32.mxu1 %vm3308_vm5, %v3470_v38  ;;  %v2289_v46 = vpop.permute.xlu0 %2288  ;;  %v8378_v4 = vpop.permute.xlu1 %8377  ;;  %v13847_v30 = vld [vmem:[#allocation17_spill] sm:$0xff] }
 0x2a2   : > { %v8379_v16 = vunpack.i.l.bf16 %v8378_v4  ;;  %v2452_v35 = vsel %vm2442_vm4, %v8370_v56, %v2289_v46  ;;  %v1568_v38 = vpop.f32.mrf.mxu0  ;;  %v2606_v27 = vmax.f32 %v13847_v30, %v2289_v46  ;;  %v8380_v23 = vunpack.i.h.bf16 %v8378_v4 }
 0x2a3   : > { %v3036_v61 = vmax.f32 %v2603_v48, %v2884_v53  ;;  %8477 = vrot.lane.b32.xlu0 %v8476_v41, %s8864_s13  ;;  %3202 = vrot.lane.b32.xlu1 %v10710_v34, %s8862_s29  ;;  %v2605_v48 = vmax.f32 %v13849_v2, %v2452_v35 }
 0x2a4   : > { %v3317_v5 = vsel %vm3308_vm5, %v8379_v16, %v3151_v62  ;;  %v10783_v62 = vmax.f32 %v1912_v50, 0.0  ;;  %v1570_v30 = vpop.f32.mrf.mxu0 }
 0x2a5   : > { %v10772_v42 = vpop.permute.xlu0 %2292  ;;  %v2722_v10 = vpop.permute.xlu1 %2721  ;;  %v3469_v51 = vmax.f32 %v3036_v61, %v3317_v5 }
 0x2a6   : > { %v2885_v3 = vsel %vm2875_vm6, %v8375_v45, %v2722_v10  ;;  %13850 = vst [vmem:[#allocation12_spill] sm:$0xff] %v10783_v62  ;;  %v3039_v53 = vmax.f32 %v2606_v27, %v2722_v10  ;;  %v10787_v61 = vpop.f32.mrf.mxu1  ;;  %v13851_v45 = vld [vmem:[#allocation3_spill] sm:$0xff]  ;;  %v13852_v10 = vld [vmem:[#allocation2_spill] sm:$0xff]  ;;  %v2608_v2 = vmax.f32 %v13853_v20, %v10772_v42 }
 0x2a7   : > { %8482 = vrot.lane.b32.xlu0 %v8476_v41, %s8862_s29  ;;  %2773 = vrot.lane.b32.xlu1 %v10742_v12, %s8864_s13  ;;  %v3038_v46 = vmax.f32 %v2605_v48, %v2885_v3  ;;  %v1565_v5 = vadd.f32 %v1564_v55, %v13851_v45  ;;  %v1574_v3 = vpop.f32.mrf.mxu0 }
 0x2a8   : > { %3834 = vmatmul.mubr.f32.gmra.mxu1 %v3469_v51  ;;  %v1569_v51 = vadd.f32 %v1568_v38, %v13852_v10  ;;  %v10800_v55 = vpop.f32.mrf.mxu1 }
 0x2a9   : > { %v10785_v56 = vpop.permute.xlu0 %8387  ;;  %v3155_v16 = vpop.permute.xlu1 %3154  ;;  %v1918_v50 = vadd.f32 %v10532_v11, %v1565_v5  ;;  %v1563_v11 = vadd.f32 %v1562_v49, %v13851_v45 }
 0x2aa   : > { %v3318_v32 = vsel %vm3308_vm5, %v8380_v23, %v3155_v16  ;;  %v3472_v33 = vmax.f32 %v3039_v53, %v3155_v16  ;;  %v10816_v53 = vpop.f32.mrf.mxu1  ;;  %v1576_v16 = vpop.f32.mrf.mxu0 }
 0x2ab   : > { %2777 = vrot.lane.b32.xlu0 %v10783_v62, %s8864_s13  ;;  %3206 = vrot.lane.b32.xlu1 %v10742_v12, %s8862_s29  ;;  %v3471_v4 = vmax.f32 %v3038_v46, %v3318_v32  ;;  %v10809_v32 = vadd.f32 %v10548_v22, %v1569_v51  ;;  %v10814_v23 = vadd.f32 %v10519_v24, %v1563_v11  ;;  %v8389_v11 = vunpack.i.l.bf16 %v10785_v56 }
 0x2ac   : > { %7588 = vmatprep.mubr.msk.f32.mxu1 %vm3308_vm5, %v3472_v33  ;;  %v10811_v33 = vmax.f32 %v1918_v50, 0.0  ;;  %v1571_v22 = vadd.f32 %v1570_v30, %v13852_v10  ;;  %v1580_v51 = vpop.f32.mrf.mxu0  ;;  %v13857_v30 = vld [vmem:[#allocation4_spill] sm:$0xff] }
 0x2ad   : > { %v10797_v35 = vpop.permute.xlu0 %8392  ;;  %v2726_v27 = vpop.permute.xlu1 %2725  ;;  %3839 = vmatmul.mubr.f32.gmra.mxu1 %v3471_v4  ;;  %13854 = vst [vmem:[#allocation17_spill] sm:$0xff] %v10809_v32  ;;  %13856 = vst [vmem:[#allocation3_spill] sm:$0xff] %v10814_v23  ;;  %v13717_v49 = vmax.f32 %v10809_v32, 0.0  ;;  %v13718_v24 = vmax.f32 %v10814_v23, 0.0  ;;  %v1575_v10 = vadd.f32 %v1574_v3, %v13857_v30  ;;  %v8390_v3 = vunpack.i.h.bf16 %v10785_v56 }
 0x2ae   : > { %13855 = vst [vmem:[#allocation11_spill] sm:$0xff] %v10811_v33  ;;  %v3041_v38 = vmax.f32 %v2608_v2, %v2726_v27  ;;  %v1924_v45 = vadd.f32 %v10559_v13, %v1571_v22  ;;  %v10827_v4 = vpop.f32.mrf.mxu1  ;;  %v1577_v2 = vadd.f32 %v1576_v16, %v13857_v30  ;;  %v13859_v16 = vld [vmem:[#allocation19_spill] sm:$0xff] }
 0x2af   : > { %3210 = vrot.lane.b32.xlu0 %v10783_v62, %s8862_s29  ;;  %8472 = vrot.lane.b32.xlu1 %v8476_v41, %s8861_s28  ;;  %v8486_v13 = vpack.i.bf16 %v13717_v49, %v13718_v24  ;;  %v13860_v30 = vmax.f32 %v13859_v16, 0.0  ;;  %v8394_v49 = vunpack.i.l.bf16 %v10797_v35 }
 0x2b0   : > { %v10842_v21 = vmax.f32 %v1924_v45, 0.0  ;;  %v10845_v52 = vpop.f32.mrf.mxu1  ;;  %v1930_v45 = vadd.f32 %v10598_v29, %v1577_v2  ;;  %v10867_v29 = vadd.f32 %v10579_v14, %v1575_v10  ;;  %v1582_v2 = vpop.f32.mrf.mxu0 }
 0x2b1   : > { %v2730_v48 = vpop.permute.xlu0 %2729  ;;  %v3159_v46 = vpop.permute.xlu1 %3158 }
 0x2b2   : > { %v3474_v5 = vmax.f32 %v3041_v38, %v3159_v46  ;;  %13865 = vst [vmem:[#allocation22_spill] sm:$0xff] %v10867_v29 }
 0x2b3   : > { %2781 = vrot.lane.b32.xlu0 %v10811_v33, %s8864_s13  ;;  %2344 = vrot.lane.b32.xlu1 %v10783_v62, %s8861_s28 }
 0x2b4   : > { %7589 = vmatprep.mubr.msk.f32.mxu1 %vm3308_vm5, %v3474_v5 }
 0x2b5   : > { %v3163_v41 = vpop.permute.xlu0 %3162  ;;  %v8383_v50 = vpop.permute.xlu1 %8382 }
 0x2b6   : > { %v8384_v20 = vunpack.i.l.bf16 %v8383_v50  ;;  %v8385_v38 = vunpack.i.h.bf16 %v8383_v50  ;;  %v2886_v50 = vsel %vm2875_vm6, %v8389_v11, %v2726_v27  ;;  %v3319_v27 = vsel %vm3308_vm5, %v8394_v49, %v3159_v46 }
 0x2b7   : > { %3214 = vrot.lane.b32.xlu0 %v10811_v33, %s8862_s29  ;;  %2348 = vrot.lane.b32.xlu1 %v10811_v33, %s8861_s28  ;;  %v1581_v33 = vadd.f32 %v1580_v51, %v13858_v31  ;;  %v13862_v51 = vld [vmem:[#allocation18_spill] sm:$0xff] }
 0x2b8   : > { %v2453_v5 = vsel %vm2442_vm4, %v8384_v20, %v10772_v42  ;;  %v13861_v42 = vld [vmem:[#allocation27_spill] sm:$0xff]  ;;  %v13863_v56 = vmax.f32 %v13862_v51, 0.0 }
 0x2b9   : > { %v2734_v22 = vpop.permute.xlu0 %2733  ;;  %v2607_v23 = vmax.f32 %v13860_v30, %v2453_v5  ;;  %v2297_v32 = vpop.permute.xlu1 %2296  ;;  %v10860_v5 = vadd.f32 %v10614_v63, %v1581_v33  ;;  %v2887_v30 = vsel %vm2875_vm6, %v8390_v3, %v2730_v48 }
 0x2ba   : > { %v2454_v24 = vsel %vm2442_vm4, %v8385_v38, %v2297_v32  ;;  %v2610_v20 = vmax.f32 %v13861_v42, %v2297_v32  ;;  %v10864_v32 = vpop.f32.mrf.mxu1 }
 0x2bb   : > { %8487 = vrot.lane.b32.xlu0 %v8486_v13, %s8861_s28  ;;  %8492 = vrot.lane.b32.xlu1 %v8486_v13, %s8864_s13  ;;  %v2609_v62 = vmax.f32 %v13863_v56, %v2454_v24  ;;  %v3040_v16 = vmax.f32 %v2607_v23, %v2886_v50  ;;  %13864 = vst [vmem:[#allocation2_spill] sm:$0xff] %v10860_v5  ;;  %v8395_v23 = vunpack.i.h.bf16 %v10797_v35  ;;  %v13866_v24 = vld [vmem:[#allocation30_spill] sm:$0xff] }
 0x2bc   : > { %v3043_v11 = vmax.f32 %v2610_v20, %v2730_v48  ;;  %v10874_v48 = vmax.f32 %v1930_v45, 0.0  ;;  %v10879_v35 = vpop.f32.mrf.mxu1  ;;  %v13723_v20 = vmax.f32 %v10867_v29, 0.0  ;;  %v13868_v45 = vld [vmem:[#allocation32_spill] sm:$0xff] }
 0x2bd   : > { %v3167_v38 = vpop.permute.xlu0 %3166  ;;  %v3042_v42 = vmax.f32 %v2609_v62, %v2887_v30  ;;  %v2301_v26 = vpop.permute.xlu1 %2300  ;;  %v3473_v12 = vmax.f32 %v3040_v16, %v3319_v27  ;;  %v13722_v62 = vmax.f32 %v10860_v5, 0.0  ;;  %v3320_v46 = vsel %vm3308_vm5, %v8395_v23, %v3163_v41 }
 0x2be   : > { %v2612_v63 = vmax.f32 %v13866_v24, %v2301_v26  ;;  %v3476_v33 = vmax.f32 %v3043_v11, %v3163_v41  ;;  %13867 = vst [vmem:[#allocation4_spill] sm:$0xff] %v10874_v48  ;;  %v13869_v56 = vmax.f32 %v13868_v45, 0.0  ;;  %v1583_v11 = vadd.f32 %v1582_v2, %v13858_v31 }
 0x2bf   : > { %2352 = vrot.lane.b32.xlu0 %v10842_v21, %s8861_s28  ;;  %8497 = vrot.lane.b32.xlu1 %v8486_v13, %s8862_s29  ;;  %v3475_v50 = vmax.f32 %v3042_v42, %v3320_v46  ;;  %v1586_v13 = vpop.f32.mrf.mxu0  ;;  %v8506_v27 = vpack.i.bf16 %v13722_v62, %v13723_v20  ;;  %v10895_v42 = vpop.f32.mrf.mxu1  ;;  %v13879_v20 = vld [vmem:[#allocation9_spill] sm:$0xff] }
 0x2c0   : > { %3844 = vmatmul.mubr.f32.gmra.mxu1 %v3473_v12  ;;  %v3045_v14 = vmax.f32 %v2612_v63, %v2734_v22 }
 0x2c1   : > { %7590 = vmatprep.mubr.msk.f32.mxu1 %vm3308_vm5, %v3476_v33  ;;  %v8398_v49 = vpop.permute.xlu0 %8397  ;;  %v8403_v3 = vpop.permute.xlu1 %8402 }
 0x2c2   : > { %v8399_v10 = vunpack.i.l.bf16 %v8398_v49  ;;  %v8404_v51 = vunpack.i.l.bf16 %v8403_v3  ;;  %v3478_v12 = vmax.f32 %v3045_v14, %v3167_v38  ;;  %v8400_v63 = vunpack.i.h.bf16 %v8398_v49 }
 0x2c3   : > { %2356 = vrot.lane.b32.xlu0 %v10874_v48, %s8861_s28  ;;  %2785 = vrot.lane.b32.xlu1 %v10842_v21, %s8864_s13  ;;  %v1936_v14 = vadd.f32 %v10629_v58, %v1583_v11  ;;  %v13870_v58 = vld [vmem:[#allocation31_spill] sm:$0xff] }
 0x2c4   : > { %v2455_v41 = vsel %vm2442_vm4, %v8399_v10, %v2301_v26  ;;  %3849 = vmatmul.mubr.f32.gmra.mxu1 %v3475_v50  ;;  %v2888_v23 = vsel %vm2875_vm6, %v8404_v51, %v2734_v22  ;;  %v1588_v26 = vpop.f32.mrf.mxu0  ;;  %v8405_v10 = vunpack.i.h.bf16 %v8403_v3  ;;  %v10906_v22 = vpop.f32.mrf.mxu1  ;;  %v13871_v3 = vmax.f32 %v13870_v58, 0.0 }
 0x2c5   : > { %v2611_v16 = vmax.f32 %v13869_v56, %v2455_v41  ;;  %7591 = vmatprep.mubr.msk.f32.mxu1 %vm3308_vm5, %v3478_v12  ;;  %v2305_v30 = vpop.permute.xlu0 %2304  ;;  %v8408_v24 = vpop.permute.xlu1 %8407 }
 0x2c6   : > { %v8409_v46 = vunpack.i.l.bf16 %v8408_v24  ;;  %v2456_v50 = vsel %vm2442_vm4, %v8400_v63, %v2305_v30  ;;  %v1592_v12 = vpop.f32.mrf.mxu0  ;;  %v2614_v41 = vmax.f32 %v10461_v8, %v2305_v30  ;;  %v10919_v63 = vpop.f32.mrf.mxu1 }
 0x2c7   : > { %v3044_v33 = vmax.f32 %v2611_v16, %v2888_v23  ;;  %8507 = vrot.lane.b32.xlu0 %v8506_v27, %s8864_s13  ;;  %3218 = vrot.lane.b32.xlu1 %v10842_v21, %s8862_s29  ;;  %v2613_v56 = vmax.f32 %v13871_v3, %v2456_v50  ;;  %v8410_v16 = vunpack.i.h.bf16 %v8408_v24 }
 0x2c8   : > { %v3321_v31 = vsel %vm3308_vm5, %v8409_v46, %v3167_v38  ;;  %v10915_v38 = vmax.f32 %v1936_v14, 0.0 }
 0x2c9   : > { %v10904_v2 = vpop.permute.xlu0 %2308  ;;  %v2738_v51 = vpop.permute.xlu1 %2737  ;;  %v3477_v49 = vmax.f32 %v3044_v33, %v3321_v31  ;;  %v13873_v33 = vld [vmem:[#allocation7_spill] sm:$0xff] }
 0x2ca   : > { %v2889_v45 = vsel %vm2875_vm6, %v8405_v10, %v2738_v51  ;;  %13872 = vst [vmem:[#allocation5_spill] sm:$0xff] %v10915_v38  ;;  %v3047_v11 = vmax.f32 %v2614_v41, %v2738_v51  ;;  %v1589_v46 = vadd.f32 %v1588_v26, %v13873_v33  ;;  %v1594_v10 = vpop.f32.mrf.mxu0  ;;  %v13874_v51 = vld [vmem:[#allocation6_spill] sm:$0xff]  ;;  %v10932_v26 = vpop.f32.mrf.mxu1  ;;  %v2616_v58 = vmax.f32 %v10476_v60, %v10904_v2 }
 0x2cb   : > { %8512 = vrot.lane.b32.xlu0 %v8506_v27, %s8862_s29  ;;  %2789 = vrot.lane.b32.xlu1 %v10874_v48, %s8864_s13  ;;  %v3046_v8 = vmax.f32 %v2613_v56, %v2889_v45 }
 0x2cc   : > { %3854 = vmatmul.mubr.f32.gmra.mxu1 %v3477_v49  ;;  %v1942_v14 = vadd.f32 %v10655_v39, %v1589_v46  ;;  %v1593_v49 = vadd.f32 %v1592_v12, %v13874_v51  ;;  %v1598_v45 = vpop.f32.mrf.mxu0  ;;  %v1587_v39 = vadd.f32 %v1586_v13, %v13873_v33 }
 0x2cd   : > { %v10917_v23 = vpop.permute.xlu0 %8417  ;;  %v3171_v30 = vpop.permute.xlu1 %3170 }
 0x2ce   : > { %v3322_v31 = vsel %vm3308_vm5, %v8410_v16, %v3171_v30  ;;  %v3480_v62 = vmax.f32 %v3047_v11, %v3171_v30  ;;  %v10943_v3 = vmax.f32 %v1942_v14, 0.0  ;;  %v10946_v16 = vadd.f32 %v10642_v57, %v1587_v39  ;;  %v10948_v11 = vpop.f32.mrf.mxu1 }
 0x2cf   : > { %2793 = vrot.lane.b32.xlu0 %v10915_v38, %s8864_s13  ;;  %3222 = vrot.lane.b32.xlu1 %v10874_v48, %s8862_s29  ;;  %v3479_v24 = vmax.f32 %v3046_v8, %v3322_v31  ;;  %v1600_v8 = vpop.f32.mrf.mxu0  ;;  %v1595_v57 = vadd.f32 %v1594_v10, %v13874_v51  ;;  %v8419_v10 = vunpack.i.l.bf16 %v10917_v23 }
 0x2d0   : > { %7592 = vmatprep.mubr.msk.f32.mxu1 %vm3308_vm5, %v3480_v62  ;;  %v10941_v62 = vadd.f32 %v10668_v25, %v1593_v49  ;;  %13876 = vst [vmem:[#allocation27_spill] sm:$0xff] %v10943_v3  ;;  %13877 = vst [vmem:[#allocation18_spill] sm:$0xff] %v10946_v16  ;;  %v10958_v33 = vpop.f32.mrf.mxu1 }
 0x2d1   : > { %v10929_v50 = vpop.permute.xlu0 %8422  ;;  %v2742_v41 = vpop.permute.xlu1 %2741  ;;  %3859 = vmatmul.mubr.f32.gmra.mxu1 %v3479_v24  ;;  %v1948_v14 = vadd.f32 %v10684_v44, %v1595_v57  ;;  %v8420_v44 = vunpack.i.h.bf16 %v10917_v23  ;;  %v13880_v57 = vmax.f32 %v10471_v15, 0.0  ;;  %v13881_v23 = vld [vmem:[#allocation36_spill] sm:$0xff] }
 0x2d2   : > { %13875 = vst [vmem:[#allocation19_spill] sm:$0xff] %v10941_v62  ;;  %v3049_v12 = vmax.f32 %v2616_v58, %v2742_v41  ;;  %v13728_v25 = vmax.f32 %v10941_v62, 0.0  ;;  %v1604_v31 = vpop.f32.mrf.mxu0 }
 0x2d3   : > { %3226 = vrot.lane.b32.xlu0 %v10915_v38, %s8862_s29  ;;  %8502 = vrot.lane.b32.xlu1 %v8506_v27, %s8861_s28  ;;  %v13729_v27 = vmax.f32 %v10946_v16, 0.0  ;;  %v1605_v5 = vadd.f32 %v1604_v31, %v13879_v20 }
 0x2d4   : > { %v1606_v31 = vpop.f32.mrf.mxu0 }
 0x2d5   : > { %v2746_v56 = vpop.permute.xlu0 %2745  ;;  %v3175_v60 = vpop.permute.xlu1 %3174  ;;  %v8516_v49 = vpack.i.bf16 %v13728_v25, %v13729_v27  ;;  %v8424_v25 = vunpack.i.l.bf16 %v10929_v50 }
 0x2d6   : > { %v3482_v30 = vmax.f32 %v3049_v12, %v3175_v60  ;;  %v13878_v12 = vld [vmem:[#allocation8_spill] sm:$0xff] }
 0x2d7   : > { %2797 = vrot.lane.b32.xlu0 %v10943_v3, %s8864_s13  ;;  %2360 = vrot.lane.b32.xlu1 %v10915_v38, %s8861_s28  ;;  %v10974_v38 = vpop.f32.mrf.mxu1 }
 0x2d8   : > { %7593 = vmatprep.mubr.msk.f32.mxu1 %vm3308_vm5, %v3482_v30  ;;  %v1599_v30 = vadd.f32 %v1598_v45, %v13878_v12  ;;  %v10985_v45 = vmax.f32 %v1948_v14, 0.0 }
 0x2d9   : > { %v3179_v13 = vpop.permute.xlu0 %3178  ;;  %v8413_v46 = vpop.permute.xlu1 %8412 }
 0x2da   : > { %v8414_v24 = vunpack.i.l.bf16 %v8413_v46  ;;  %v8415_v51 = vunpack.i.h.bf16 %v8413_v46  ;;  %v2890_v46 = vsel %vm2875_vm6, %v8419_v10, %v2742_v41  ;;  %v2891_v41 = vsel %vm2875_vm6, %v8420_v44, %v2746_v56 }
 0x2db   : > { %3230 = vrot.lane.b32.xlu0 %v10943_v3, %s8862_s29  ;;  %2364 = vrot.lane.b32.xlu1 %v10943_v3, %s8861_s28  ;;  %v3323_v10 = vsel %vm3308_vm5, %v8424_v25, %v3175_v60  ;;  %v10995_v3 = vpop.f32.mrf.mxu1  ;;  %v966_v60 = vld [vmem:[%s13637_s2 + $0x178] sm:$0xff] }
 0x2dc   : > { %v2457_v58 = vsel %vm2442_vm4, %v8414_v24, %v10904_v2  ;;  %v13882_v24 = vmax.f32 %v13881_v23, 0.0  ;;  %v10998_v23 = vadd.f32 %v10695_v17, %v1599_v30 }
 0x2dd   : > { %v2750_v39 = vpop.permute.xlu0 %2749  ;;  %v2615_v16 = vmax.f32 %v13880_v57, %v2457_v58  ;;  %v2313_v62 = vpop.permute.xlu1 %2312  ;;  %v10990_v57 = vadd.f32 %v10732_v19, %v1605_v5 }
 0x2de   : > { %v2458_v27 = vsel %vm2442_vm4, %v8415_v51, %v2313_v62  ;;  %v2618_v2 = vmax.f32 %v10515_v7, %v2313_v62  ;;  %v1601_v62 = vadd.f32 %v1600_v8, %v13878_v12 }
 0x2df   : > { %8517 = vrot.lane.b32.xlu0 %v8516_v49, %s8861_s28  ;;  %8522 = vrot.lane.b32.xlu1 %v8516_v49, %s8864_s13  ;;  %v2617_v15 = vmax.f32 %v13882_v24, %v2458_v27  ;;  %v3048_v58 = vmax.f32 %v2615_v16, %v2890_v46  ;;  %13883 = vst [vmem:[#allocation30_spill] sm:$0xff] %v10990_v57  ;;  %v8425_v16 = vunpack.i.h.bf16 %v10929_v50  ;;  %v13735_v17 = vmax.f32 %v10990_v57, 0.0  ;;  %v11012_v27 = vpop.f32.mrf.mxu1  ;;  %v13884_v24 = vld [vmem:[#allocation39_spill] sm:$0xff] }
 0x2e0   : > { %v3051_v51 = vmax.f32 %v2618_v2, %v2746_v56  ;;  %v1610_v56 = vpop.f32.mrf.mxu0  ;;  %v1954_v8 = vadd.f32 %v10713_v9, %v1601_v62 }
 0x2e1   : > { %v3183_v7 = vpop.permute.xlu0 %3182  ;;  %v3050_v14 = vmax.f32 %v2617_v15, %v2891_v41  ;;  %v2317_v29 = vpop.permute.xlu1 %2316  ;;  %v3481_v48 = vmax.f32 %v3048_v58, %v3323_v10  ;;  %v3324_v50 = vsel %vm3308_vm5, %v8425_v16, %v3179_v13  ;;  %v13885_v15 = vmax.f32 %v13884_v24, 0.0 }
 0x2e2   : > { %v2620_v19 = vmax.f32 %v10543_v28, %v2317_v29  ;;  %v3484_v5 = vmax.f32 %v3051_v51, %v3179_v13  ;;  %v1612_v46 = vpop.f32.mrf.mxu0  ;;  %v11018_v2 = vmax.f32 %v1954_v8, 0.0  ;;  %v1607_v51 = vadd.f32 %v1606_v31, %v13879_v20  ;;  %v11028_v62 = vpop.f32.mrf.mxu1 }
 0x2e3   : > { %2368 = vrot.lane.b32.xlu0 %v10985_v45, %s8861_s28  ;;  %8527 = vrot.lane.b32.xlu1 %v8516_v49, %s8862_s29  ;;  %v3483_v30 = vmax.f32 %v3050_v14, %v3324_v50 }
 0x2e4   : > { %3864 = vmatmul.mubr.f32.gmra.mxu1 %v3481_v48  ;;  %v3053_v25 = vmax.f32 %v2620_v19, %v2750_v39  ;;  %v13736_v48 = vmax.f32 %v10998_v23, 0.0  ;;  %v1616_v8 = vpop.f32.mrf.mxu0 }
 0x2e5   : > { %7594 = vmatprep.mubr.msk.f32.mxu1 %vm3308_vm5, %v3484_v5  ;;  %v8428_v28 = vpop.permute.xlu0 %8427  ;;  %v8433_v12 = vpop.permute.xlu1 %8432 }
 0x2e6   : > { %v8429_v49 = vunpack.i.l.bf16 %v8428_v28  ;;  %v8434_v44 = vunpack.i.l.bf16 %v8433_v12  ;;  %v3486_v9 = vmax.f32 %v3053_v25, %v3183_v7  ;;  %v8531_v10 = vpack.i.bf16 %v13735_v17, %v13736_v48 }
 0x2e7   : > { %1204 = vperm.xlu0 %8304, %v966_v60   ;;  %2801 = vrot.lane.b32.xlu1 %v10985_v45, %s8864_s13  ;;  %v8430_v16 = vunpack.i.h.bf16 %v8428_v28  ;;  %v1960_v60 = vadd.f32 %v10747_v54, %v1607_v51  ;;  %v8435_v50 = vunpack.i.h.bf16 %v8433_v12  ;;  %v13887_v54 = vld [vmem:[#allocation14_spill] sm:$0xff]  ;;  %v13894_v17 = vmax.f32 %v10601_v36, 0.0 }
 0x2e8   : > { %v2459_v13 = vsel %vm2442_vm4, %v8429_v49, %v2317_v29  ;;  %3869 = vmatmul.mubr.f32.gmra.mxu1 %v3483_v30  ;;  %v2892_v29 = vsel %vm2875_vm6, %v8434_v44, %v2750_v39  ;;  %v11039_v39 = vpop.f32.mrf.mxu1  ;;  %v13886_v30 = vld [vmem:[#allocation13_spill] sm:$0xff]  ;;  %v1611_v12 = vadd.f32 %v1610_v56, %v13887_v54  ;;  %v1618_v56 = vpop.f32.mrf.mxu0  ;;  %v13896_v36 = vmax.f32 %v10594_v59, 0.0 }
 0x2e9   : > { %v2619_v58 = vmax.f32 %v13885_v15, %v2459_v13  ;;  %7595 = vmatprep.mubr.msk.f32.mxu1 %vm3308_vm5, %v3486_v9  ;;  %v2321_v41 = vpop.permute.xlu0 %2320  ;;  %v8438_v14 = vpop.permute.xlu1 %8437  ;;  %v1617_v44 = vadd.f32 %v1616_v8, %v13886_v30 }
 0x2ea   : > { %v8439_v5 = vunpack.i.l.bf16 %v8438_v14  ;;  %v2460_v25 = vsel %vm2442_vm4, %v8430_v16, %v2321_v41  ;;  %v2622_v9 = vmax.f32 %v10576_v43, %v2321_v41  ;;  %v11057_v16 = vpop.f32.mrf.mxu1  ;;  %v11060_v8 = vadd.f32 %v10763_v18, %v1611_v12 }
 0x2eb   : > { %v3052_v19 = vmax.f32 %v2619_v58, %v2892_v29  ;;  %2372 = vrot.lane.b32.xlu0 %v11018_v2, %s8861_s28  ;;  %8532 = vrot.lane.b32.xlu1 %v8531_v10, %s8861_s28  ;;  %v11050_v58 = vmax.f32 %v1960_v60, 0.0  ;;  %v11053_v51 = vadd.f32 %v10787_v61, %v1617_v44  ;;  %v8440_v29 = vunpack.i.h.bf16 %v8438_v14  ;;  %v1622_v44 = vpop.f32.mrf.mxu0 }
 0x2ec   : > { %v3325_v20 = vsel %vm3308_vm5, %v8439_v5, %v3183_v7  ;;  %v13888_v7 = vld [vmem:[#allocation38_spill] sm:$0xff]  ;;  %13891 = vst [vmem:[#allocation31_spill] sm:$0xff] %v11060_v8 }
 0x2ed   : > { %v11037_v31 = vpop.permute.xlu0 %2324  ;;  %v2754_v28 = vpop.permute.xlu1 %2753  ;;  %v3485_v49 = vmax.f32 %v3052_v19, %v3325_v20  ;;  %v13889_v24 = vmax.f32 %v13888_v7, 0.0  ;;  %13890 = vst [vmem:[#allocation32_spill] sm:$0xff] %v11053_v51  ;;  %v13733_v14 = vmax.f32 %v11053_v51, 0.0 }
 0x2ee   : > { %v2893_v13 = vsel %vm2875_vm6, %v8435_v50, %v2754_v28  ;;  %v3055_v43 = vmax.f32 %v2622_v9, %v2754_v28  ;;  %v11071_v20 = vpop.f32.mrf.mxu1  ;;  %v1613_v28 = vadd.f32 %v1612_v46, %v13887_v54  ;;  %v2624_v9 = vmax.f32 %v10608_v1, %v11037_v31 }
 0x2ef   : > { %8537 = vrot.lane.b32.xlu0 %v8531_v10, %s8864_s13  ;;  %3234 = vrot.lane.b32.xlu1 %v10985_v45, %s8862_s29  ;;  %v2621_v15 = vmax.f32 %v13889_v24, %v2460_v25 }
 0x2f0   : > { %3874 = vmatmul.mubr.f32.gmra.mxu1 %v3485_v49  ;;  %v13734_v49 = vmax.f32 %v11060_v8, 0.0  ;;  %v11085_v54 = vpop.f32.mrf.mxu1 }
 0x2f1   : > { %v11055_v41 = vpop.permute.xlu0 %8447  ;;  %v3054_v19 = vmax.f32 %v2621_v15, %v2893_v13  ;;  %v3187_v5 = vpop.permute.xlu1 %3186  ;;  %v1966_v13 = vadd.f32 %v10774_v40, %v1613_v28 }
 0x2f2   : > { %v3326_v50 = vsel %vm3308_vm5, %v8440_v29, %v3187_v5  ;;  %v3488_v25 = vmax.f32 %v3055_v43, %v3187_v5  ;;  %v8546_v46 = vpack.i.bf16 %v13733_v14, %v13734_v49  ;;  %v1624_v15 = vpop.f32.mrf.mxu0  ;;  %v11094_v43 = vpop.f32.mrf.mxu1  ;;  %v8450_v49 = vunpack.i.h.bf16 %v11055_v41 }
 0x2f3   : > { %2376 = vrot.lane.b32.xlu0 %v11050_v58, %s8861_s28  ;;  %2805 = vrot.lane.b32.xlu1 %v11018_v2, %s8864_s13  ;;  %v3487_v61 = vmax.f32 %v3054_v19, %v3326_v50  ;;  %v11090_v1 = vmax.f32 %v1966_v13, 0.0 }
 0x2f4   : > { %7596 = vmatprep.mubr.msk.f32.mxu1 %vm3308_vm5, %v3488_v25  ;;  %v1628_v5 = vpop.f32.mrf.mxu0  ;;  %v11106_v14 = vpop.f32.mrf.mxu1 }
 0x2f5   : > { %v11069_v60 = vpop.permute.xlu0 %8452  ;;  %v2758_v18 = vpop.permute.xlu1 %2757  ;;  %3879 = vmatmul.mubr.f32.gmra.mxu1 %v3487_v61  ;;  %v8449_v61 = vunpack.i.l.bf16 %v11055_v41 }
 0x2f6   : > { %v3057_v12 = vmax.f32 %v2624_v9, %v2758_v18 }
 0x2f7   : > { %3238 = vrot.lane.b32.xlu0 %v11018_v2, %s8862_s29  ;;  %8542 = vrot.lane.b32.xlu1 %v8531_v10, %s8862_s29  ;;  %v1619_v10 = vadd.f32 %v1618_v56, %v13886_v30  ;;  %v13892_v56 = vld [vmem:[#allocation15_spill] sm:$0xff] }
 0x2f8   : > { %v1623_v13 = vadd.f32 %v1622_v44, %v13892_v56 }
 0x2f9   : > { %v2762_v7 = vpop.permute.xlu0 %2761  ;;  %v3191_v24 = vpop.permute.xlu1 %3190  ;;  %v1972_v25 = vadd.f32 %v10800_v55, %v1619_v10  ;;  %v8454_v10 = vunpack.i.l.bf16 %v11069_v60 }
 0x2fa   : > { %v3490_v29 = vmax.f32 %v3057_v12, %v3191_v24  ;;  %v13893_v12 = vld [vmem:[#allocation16_spill] sm:$0xff]  ;;  %v1630_v55 = vpop.f32.mrf.mxu0  ;;  %v11131_v59 = vadd.f32 %v10816_v53, %v1623_v13 }
 0x2fb   : > { %8547 = vrot.lane.b32.xlu0 %v8546_v46, %s8861_s28  ;;  %2809 = vrot.lane.b32.xlu1 %v11050_v58, %s8864_s13  ;;  %v11118_v44 = vmax.f32 %v1972_v25, 0.0 }
 0x2fc   : > { %7597 = vmatprep.mubr.msk.f32.mxu1 %vm3308_vm5, %v3490_v29  ;;  %v1629_v29 = vadd.f32 %v1628_v5, %v13893_v12  ;;  %13898 = vst [vmem:[#allocation8_spill] sm:$0xff] %v11131_v59 }
 0x2fd   : > { %v3195_v40 = vpop.permute.xlu0 %3194  ;;  %v8443_v19 = vpop.permute.xlu1 %8442  ;;  %13895 = vst [vmem:[#allocation7_spill] sm:$0xff] %v11118_v44 }
 0x2fe   : > { %v8444_v50 = vunpack.i.l.bf16 %v8443_v19  ;;  %v8445_v28 = vunpack.i.h.bf16 %v8443_v19  ;;  %v2894_v19 = vsel %vm2875_vm6, %v8449_v61, %v2758_v18  ;;  %v11123_v5 = vadd.f32 %v10845_v52, %v1629_v29 }
 0x2ff   : > { %3242 = vrot.lane.b32.xlu0 %v11050_v58, %s8862_s29  ;;  %2380 = vrot.lane.b32.xlu1 %v11090_v1, %s8861_s28  ;;  %v2895_v18 = vsel %vm2875_vm6, %v8450_v49, %v2762_v7  ;;  %v3327_v61 = vsel %vm3308_vm5, %v8454_v10, %v3191_v24  ;;  %v8455_v52 = vunpack.i.h.bf16 %v11069_v60  ;;  %v13743_v10 = vmax.f32 %v11131_v59, 0.0 }
 0x300   : > { %v2461_v9 = vsel %vm2442_vm4, %v8444_v50, %v11037_v31  ;;  %13897 = vst [vmem:[#allocation6_spill] sm:$0xff] %v11123_v5  ;;  %v13742_v24 = vmax.f32 %v11123_v5, 0.0 }
 0x301   : > { %v2766_v30 = vpop.permute.xlu0 %2765  ;;  %v2623_v48 = vmax.f32 %v13894_v17, %v2461_v9  ;;  %v2329_v51 = vpop.permute.xlu1 %2328 }
 0x302   : > { %v2462_v31 = vsel %vm2442_vm4, %v8445_v28, %v2329_v51  ;;  %v2626_v50 = vmax.f32 %v10651_v37, %v2329_v51  ;;  %v1625_v51 = vadd.f32 %v1624_v15, %v13892_v56  ;;  %v11128_v9 = vpop.f32.mrf.mxu1  ;;  %v3328_v15 = vsel %vm3308_vm5, %v8455_v52, %v3195_v40 }
 0x303   : > { %2813 = vrot.lane.b32.xlu0 %v11090_v1, %s8864_s13  ;;  %8552 = vrot.lane.b32.xlu1 %v8546_v46, %s8864_s13  ;;  %v2625_v17 = vmax.f32 %v13896_v36, %v2462_v31  ;;  %v3056_v41 = vmax.f32 %v2623_v48, %v2894_v19  ;;  %v1634_v48 = vpop.f32.mrf.mxu0 }
 0x304   : > { %v3059_v28 = vmax.f32 %v2626_v50, %v2762_v7  ;;  %v1978_v7 = vadd.f32 %v10827_v4, %v1625_v51  ;;  %v11142_v60 = vpop.f32.mrf.mxu1  ;;  %v13900_v50 = vmax.f32 %v10682_v6, 0.0 }
 0x305   : > { %v3199_v37 = vpop.permute.xlu0 %3198  ;;  %v3058_v8 = vmax.f32 %v2625_v17, %v2895_v18  ;;  %v2333_v25 = vpop.permute.xlu1 %2332  ;;  %v3489_v57 = vmax.f32 %v3056_v41, %v3327_v61  ;;  %v8561_v17 = vpack.i.bf16 %v13742_v24, %v13743_v10  ;;  %v1631_v41 = vadd.f32 %v1630_v55, %v13893_v12 }
 0x306   : > { %v2628_v29 = vmax.f32 %v10679_v47, %v2333_v25  ;;  %v3492_v49 = vmax.f32 %v3059_v28, %v3195_v40  ;;  %v1636_v19 = vpop.f32.mrf.mxu0  ;;  %v11150_v40 = vmax.f32 %v1978_v7, 0.0  ;;  %v11160_v18 = vpop.f32.mrf.mxu1 }
 0x307   : > { %8557 = vrot.lane.b32.xlu0 %v8546_v46, %s8862_s29  ;;  %2384 = vrot.lane.b32.xlu1 %v11118_v44, %s8861_s28  ;;  %v3491_v46 = vmax.f32 %v3058_v8, %v3328_v15 }
 0x308   : > { %3884 = vmatmul.mubr.f32.gmra.mxu1 %v3489_v57  ;;  %v3061_v53 = vmax.f32 %v2628_v29, %v2766_v30  ;;  %13899 = vst [vmem:[#allocation9_spill] sm:$0xff] %v11150_v40  ;;  %v1640_v51 = vpop.f32.mrf.mxu0  ;;  %v1984_v29 = vadd.f32 %v10864_v32, %v1631_v41  ;;  %v13902_v32 = vld [vmem:[#allocation21_spill] sm:$0xff] }
 0x309   : > { %7598 = vmatprep.mubr.msk.f32.mxu1 %vm3308_vm5, %v3492_v49  ;;  %v8458_v56 = vpop.permute.xlu0 %8457  ;;  %v8463_v13 = vpop.permute.xlu1 %8462 }
 0x30a   : > { %v8459_v47 = vunpack.i.l.bf16 %v8458_v56  ;;  %v8464_v31 = vunpack.i.l.bf16 %v8463_v13  ;;  %v3494_v4 = vmax.f32 %v3061_v53, %v3199_v37  ;;  %v8465_v49 = vunpack.i.h.bf16 %v8463_v13 }
 0x30b   : > { %2817 = vrot.lane.b32.xlu0 %v11118_v44, %s8864_s13  ;;  %3246 = vrot.lane.b32.xlu1 %v11090_v1, %s8862_s29  ;;  %v13903_v13 = vmax.f32 %v10677_v0, 0.0 }
 0x30c   : > { %v2463_v57 = vsel %vm2442_vm4, %v8459_v47, %v2333_v25  ;;  %3889 = vmatmul.mubr.f32.gmra.mxu1 %v3491_v46  ;;  %v2896_v61 = vsel %vm2875_vm6, %v8464_v31, %v2766_v30  ;;  %v8460_v25 = vunpack.i.h.bf16 %v8458_v56  ;;  %v11171_v30 = vpop.f32.mrf.mxu1  ;;  %v13901_v56 = vld [vmem:[#allocation20_spill] sm:$0xff]  ;;  %v1642_v46 = vpop.f32.mrf.mxu0 }
 0x30d   : > { %v2627_v36 = vmax.f32 %v13900_v50, %v2463_v57  ;;  %7599 = vmatprep.mubr.msk.f32.mxu1 %vm3308_vm5, %v3494_v4  ;;  %v2337_v8 = vpop.permute.xlu0 %2336  ;;  %v8468_v28 = vpop.permute.xlu1 %8467  ;;  %v1641_v47 = vadd.f32 %v1640_v51, %v13901_v56  ;;  %v11182_v50 = vmax.f32 %v1984_v29, 0.0 }
 0x30e   : > { %v8469_v6 = vunpack.i.l.bf16 %v8468_v28  ;;  %v2464_v7 = vsel %vm2442_vm4, %v8460_v25, %v2337_v8  ;;  %v2630_v31 = vmax.f32 %v10710_v34, %v2337_v8  ;;  %v8470_v41 = vunpack.i.h.bf16 %v8468_v28 }
 0x30f   : > { %v3060_v52 = vmax.f32 %v2627_v36, %v2896_v61  ;;  %2388 = vrot.lane.b32.xlu0 %v11150_v40, %s8861_s28  ;;  %8562 = vrot.lane.b32.xlu1 %v8561_v17, %s8861_s28  ;;  %v2629_v57 = vmax.f32 %v13903_v13, %v2464_v7  ;;  %13904 = vst [vmem:[#allocation36_spill] sm:$0xff] %v11182_v50  ;;  %v11187_v61 = vpop.f32.mrf.mxu1 }
 0x310   : > { %v3329_v12 = vsel %vm3308_vm5, %v8469_v6, %v3199_v37  ;;  %v1635_v37 = vadd.f32 %v1634_v48, %v13902_v32  ;;  %v11185_v36 = vadd.f32 %v10906_v22, %v1641_v47  ;;  %v1646_v48 = vpop.f32.mrf.mxu0  ;;  %v1637_v7 = vadd.f32 %v1636_v19, %v13902_v32 }
 0x311   : > { %v11169_v55 = vpop.permute.xlu0 %2340  ;;  %v2770_v15 = vpop.permute.xlu1 %2769  ;;  %v3493_v53 = vmax.f32 %v3060_v52, %v3329_v12 }
 0x312   : > { %v2897_v4 = vsel %vm2875_vm6, %v8465_v49, %v2770_v15  ;;  %13905 = vst [vmem:[#allocation39_spill] sm:$0xff] %v11185_v36  ;;  %v3063_v34 = vmax.f32 %v2630_v31, %v2770_v15  ;;  %v11190_v52 = vadd.f32 %v10879_v35, %v1635_v37  ;;  %v11197_v28 = vpop.f32.mrf.mxu1  ;;  %v13740_v29 = vmax.f32 %v11185_v36, 0.0  ;;  %v1648_v15 = vpop.f32.mrf.mxu0 }
 0x313   : > { %8567 = vrot.lane.b32.xlu0 %v8561_v17, %s8864_s13  ;;  %3250 = vrot.lane.b32.xlu1 %v11118_v44, %s8862_s29  ;;  %v3062_v51 = vmax.f32 %v2629_v57, %v2897_v4  ;;  %v1643_v31 = vadd.f32 %v1642_v46, %v13901_v56  ;;  %v1990_v37 = vadd.f32 %v10895_v42, %v1637_v7  ;;  %v13908_v46 = vld [vmem:[#allocation23_spill] sm:$0xff] }
 0x314   : > { %3894 = vmatmul.mubr.f32.gmra.mxu1 %v3493_v53  ;;  %13906 = vst [vmem:[#allocation13_spill] sm:$0xff] %v11190_v52  ;;  %v13741_v12 = vmax.f32 %v11190_v52, 0.0  ;;  %v13907_v53 = vld [vmem:[#allocation10_spill] sm:$0xff]  ;;  %v11211_v4 = vpop.f32.mrf.mxu1  ;;  %v13912_v52 = vld [vmem:[#allocation12_spill] sm:$0xff] }
 0x315   : > { %v8478_v8 = vpop.permute.xlu0 %8477  ;;  %v3203_v25 = vpop.permute.xlu1 %3202  ;;  %v2632_v47 = vmax.f32 %v13907_v53, %v11169_v55  ;;  %v1996_v32 = vadd.f32 %v10919_v63, %v1643_v31  ;;  %v11222_v56 = vmax.f32 %v1990_v37, 0.0 }
 0x316   : > { %v3330_v0 = vsel %vm3308_vm5, %v8470_v41, %v3203_v25  ;;  %v3496_v6 = vmax.f32 %v3063_v34, %v3203_v25  ;;  %v8576_v19 = vpack.i.bf16 %v13740_v29, %v13741_v12  ;;  %v1652_v34 = vpop.f32.mrf.mxu0  ;;  %v1647_v25 = vadd.f32 %v1646_v48, %v13908_v46 }
 0x317   : > { %2392 = vrot.lane.b32.xlu0 %v11182_v50, %s8861_s28  ;;  %2821 = vrot.lane.b32.xlu1 %v11150_v40, %s8864_s13  ;;  %v3495_v22 = vmax.f32 %v3062_v51, %v3330_v0  ;;  %v1649_v0 = vadd.f32 %v1648_v15, %v13908_v46  ;;  %v11229_v63 = vmax.f32 %v1996_v32, 0.0  ;;  %v8480_v48 = vunpack.i.h.bf16 %v8478_v8 }
 0x318   : > { %7600 = vmatprep.mubr.msk.f32.mxu1 %vm3308_vm5, %v3496_v6  ;;  %v13909_v6 = vld [vmem:[#allocation24_spill] sm:$0xff]  ;;  %v11239_v15 = vpop.f32.mrf.mxu0 }
 0x319   : > { %v11201_v49 = vpop.permute.xlu0 %8482  ;;  %v2774_v35 = vpop.permute.xlu1 %2773  ;;  %3899 = vmatmul.mubr.f32.gmra.mxu1 %v3495_v22  ;;  %v1653_v22 = vadd.f32 %v1652_v34, %v13909_v6 }
 0x31a   : > { %v3065_v13 = vmax.f32 %v2632_v47, %v2774_v35  ;;  %v8479_v47 = vunpack.i.l.bf16 %v8478_v8 }
 0x31b   : > { %3254 = vrot.lane.b32.xlu0 %v11150_v40, %s8862_s29  ;;  %8572 = vrot.lane.b32.xlu1 %v8561_v17, %s8862_s29  ;;  %v11237_v37 = vadd.f32 %v10958_v33, %v1653_v22  ;;  %v13910_v22 = vld [vmem:[#allocation37_spill] sm:$0xff] }
 0x31c   : > { %v2898_v32 = vsel %vm2875_vm6, %v8479_v47, %v2774_v35  ;;  %v13911_v8 = vmax.f32 %v13910_v22, 0.0 }
 0x31d   : > { %v2778_v57 = vpop.permute.xlu0 %2777  ;;  %v3207_v41 = vpop.permute.xlu1 %3206 }
 0x31e   : > { %v3498_v51 = vmax.f32 %v3065_v13, %v3207_v41  ;;  %v8484_v13 = vunpack.i.l.bf16 %v11201_v49 }
 0x31f   : > { %8577 = vrot.lane.b32.xlu0 %v8576_v19, %s8861_s28  ;;  %2825 = vrot.lane.b32.xlu1 %v11182_v50, %s8864_s13 }
 0x320   : > { %v3795_v17 = vpop.f32.mrf.mxu1  ;;  %7601 = vmatprep.mubr.msk.f32.mxu1 %vm3308_vm5, %v3498_v51 }
 0x321   : > { %v11225_v42 = vpop.permute.xlu0 %3210  ;;  %v8473_v7 = vpop.permute.xlu1 %8472  ;;  %v4083_v29 = vrot.slane %v3795_v17, 1  ;;  %v4275_v33 = vrot.slane %v3795_v17, 2  ;;  %v4466_v47 = vrot.slane %v3795_v17, 3 }
 0x322   : > { %v3797_v53 = vpop.f32.mrf.mxu1  ;;  %v8474_v31 = vunpack.i.l.bf16 %v8473_v7  ;;  %v8475_v34 = vunpack.i.h.bf16 %v8473_v7 }
 0x323   : > { %3258 = vrot.lane.b32.xlu0 %v11182_v50, %s8862_s29  ;;  %2396 = vrot.lane.b32.xlu1 %v11222_v56, %s8861_s28  ;;  %v2899_v53 = vsel %vm2875_vm6, %v8480_v48, %v2778_v57 }
 0x324   : > { %v2465_v51 = vsel %vm2442_vm4, %v8474_v31, %v11169_v55  ;;  %v13913_v31 = vld [vmem:[#allocation40_spill] sm:$0xff] }
 0x325   : > { %v11245_v46 = vpop.permute.xlu0 %2781  ;;  %v2631_v12 = vmax.f32 %v13911_v8, %v2465_v51  ;;  %v2345_v24 = vpop.permute.xlu1 %2344  ;;  %v13914_v48 = vmax.f32 %v13913_v31, 0.0 }
 0x326   : > { %v11250_v10 = vpop.f32.mrf.mxu1  ;;  %v2466_v36 = vsel %vm2442_vm4, %v8475_v34, %v2345_v24  ;;  %v2634_v35 = vmax.f32 %v13912_v52, %v2345_v24  ;;  %v1658_v34 = vpop.f32.mrf.mxu0  ;;  %v3331_v24 = vsel %vm3308_vm5, %v8484_v13, %v3207_v41  ;;  %v8485_v41 = vunpack.i.h.bf16 %v11201_v49 }
 0x327   : > { %v4084_v7 = vrot.slane %v11250_v10, 1  ;;  %2829 = vrot.lane.b32.xlu0 %v11222_v56, %s8864_s13  ;;  %8582 = vrot.lane.b32.xlu1 %v8576_v19, %s8864_s13  ;;  %v2633_v51 = vmax.f32 %v13914_v48, %v2466_v36  ;;  %v4467_v22 = vrot.slane %v11250_v10, 3  ;;  %v3064_v5 = vmax.f32 %v2631_v12, %v2898_v32 }
 0x328   : > { %v3802_v8 = vpop.f32.mrf.mxu1  ;;  %v3067_v52 = vmax.f32 %v2634_v35, %v2778_v57  ;;  %v13915_v50 = vrot.slane %v11250_v10, 2  ;;  %v11275_v57 = vadd.f32 %v10932_v26, %v1647_v25  ;;  %v13753_v32 = vmax.f32 %v11237_v37, 0.0  ;;  %v11287_v26 = vpop.f32.mrf.mxu0 }
 0x329   : > { %v4085_v55 = vsel %vm4082_vm7, %v4083_v29, %v4084_v7  ;;  %v3215_v40 = vpop.permute.xlu0 %3214  ;;  %v3066_v44 = vmax.f32 %v2633_v51, %v2899_v53  ;;  %v2349_v36 = vpop.permute.xlu1 %2348  ;;  %v3497_v48 = vmax.f32 %v3064_v5, %v3331_v24  ;;  %v11272_v12 = vsel %vm3725_vm3, %v4466_v47, %v4467_v22  ;;  %v13917_v29 = vld [vmem:[#allocation11_spill] sm:$0xff] }
 0x32a   : > { %v4277_v59 = vsel %vm4274_vm8, %v4275_v33, %v13915_v50  ;;  %v4226_v31 = vmax.f32 %v3795_v17, %v4085_v55  ;;  %13916 = vst [vmem:[#allocation14_spill] sm:$0xff] %v11272_v12  ;;  %v2636_v13 = vmax.f32 %v13917_v29, %v2349_v36  ;;  %v3500_v50 = vmax.f32 %v3067_v52, %v11225_v42  ;;  %v1664_v51 = vpop.f32.mrf.mxu0 }
 0x32b   : > { %8587 = vrot.lane.b32.xlu0 %v8576_v19, %s8862_s29  ;;  %2400 = vrot.lane.b32.xlu1 %v11229_v63, %s8861_s28  ;;  %v2002_v17 = vadd.f32 %v10948_v11, %v1649_v0  ;;  %v3332_v49 = vsel %vm3308_vm5, %v8485_v41, %v11225_v42  ;;  %v13754_v11 = vmax.f32 %v11275_v57, 0.0 }
 0x32c   : > { %3904 = vmatmul.mubr.f32.gmra.mxu1 %v3497_v48  ;;  %v11283_v5 = vmax.f32 %v4226_v31, %v4277_v59  ;;  %v3069_v25 = vmax.f32 %v2636_v13, %v11245_v46  ;;  %v3499_v35 = vmax.f32 %v3066_v44, %v3332_v49  ;;  %v13919_v44 = vld [vmem:[#allocation3_spill] sm:$0xff]  ;;  %v1655_v48 = vadd.f32 %v11239_v15, %v13909_v6  ;;  %v1666_v49 = vpop.f32.mrf.mxu0 }
 0x32d   : > { %7602 = vmatprep.mubr.msk.f32.mxu1 %vm3308_vm5, %v3500_v50  ;;  %v8488_v19 = vpop.permute.xlu0 %8487  ;;  %v8493_v33 = vpop.permute.xlu1 %8492  ;;  %v11301_v47 = vmax.f32 %v2002_v17, 0.0  ;;  %v13920_v8 = vmax.f32 %v13919_v44, 0.0  ;;  %v11310_v31 = vpack.i.bf16 %v13753_v32, %v13754_v11 }
 0x32e   : > { %13918 = vst [vmem:[#allocation38_spill] sm:$0xff] %v11283_v5  ;;  %v8489_v53 = vunpack.i.l.bf16 %v8488_v19  ;;  %v8494_v0 = vunpack.i.l.bf16 %v8493_v33  ;;  %v3502_v42 = vmax.f32 %v3069_v25, %v3215_v40  ;;  %v8490_v29 = vunpack.i.h.bf16 %v8488_v19 }
 0x32f   : > { %2833 = vrot.lane.b32.xlu0 %v11229_v63, %s8864_s13  ;;  %3262 = vrot.lane.b32.xlu1 %v11222_v56, %s8862_s29  ;;  %v2008_v17 = vadd.f32 %v10974_v38, %v1655_v48  ;;  %v8495_v25 = vunpack.i.h.bf16 %v8493_v33  ;;  %v13924_v33 = vld [vmem:[#allocation17_spill] sm:$0xff] }
 0x330   : > { %v2467_v55 = vsel %vm2442_vm4, %v8489_v53, %v2349_v36  ;;  %3909 = vmatmul.mubr.f32.gmra.mxu1 %v3499_v35  ;;  %v2900_v36 = vsel %vm2875_vm6, %v8494_v0, %v11245_v46  ;;  %v13921_v46 = vld [vmem:[#allocation25_spill] sm:$0xff] }
 0x331   : > { %v2635_v24 = vmax.f32 %v13920_v8, %v2467_v55  ;;  %7603 = vmatprep.mubr.msk.f32.mxu1 %vm3308_vm5, %v3502_v42  ;;  %v2353_v52 = vpop.permute.xlu0 %2352  ;;  %v8498_v41 = vpop.permute.xlu1 %8497  ;;  %v1665_v19 = vadd.f32 %v1664_v51, %v13921_v46  ;;  %v13922_v42 = vld [vmem:[#allocation26_spill] sm:$0xff]  ;;  %v11333_v38 = vmax.f32 %v2008_v17, 0.0  ;;  %v13925_v51 = vmax.f32 %v13924_v33, 0.0 }
 0x332   : > { %v8499_v50 = vunpack.i.l.bf16 %v8498_v41  ;;  %v2468_v53 = vsel %vm2442_vm4, %v8490_v29, %v2353_v52  ;;  %v1659_v55 = vadd.f32 %v1658_v34, %v13922_v42  ;;  %v2638_v44 = vmax.f32 %v10842_v21, %v2353_v52  ;;  %v1670_v21 = vpop.f32.mrf.mxu0 }
 0x333   : > { %v3068_v13 = vmax.f32 %v2635_v24, %v2900_v36  ;;  %2404 = vrot.lane.b32.xlu0 %v11301_v47, %s8861_s28  ;;  %8592 = vrot.lane.b32.xlu1 %v11310_v31, %s8861_s28  ;;  %v2637_v24 = vmax.f32 %v13925_v51, %v2468_v53  ;;  %v8500_v48 = vunpack.i.h.bf16 %v8498_v41  ;;  %v13926_v41 = vrot.slane %v11250_v10, 2 }
 0x334   : > { %v3333_v6 = vsel %vm3308_vm5, %v8499_v50, %v3215_v40  ;;  %v11336_v40 = vadd.f32 %v11028_v62, %v1665_v19  ;;  %v11365_v33 = vpop.f32.mrf.mxu0 }
 0x335   : > { %v11323_v15 = vpop.permute.xlu0 %2356  ;;  %v2786_v35 = vpop.permute.xlu1 %2785  ;;  %v3501_v0 = vmax.f32 %v3068_v13, %v3333_v6 }
 0x336   : > { %v2901_v8 = vsel %vm2875_vm6, %v8495_v25, %v2786_v35  ;;  %13923 = vst [vmem:[#allocation15_spill] sm:$0xff] %v11336_v40  ;;  %v3071_v52 = vmax.f32 %v2638_v44, %v2786_v35  ;;  %v11343_v25 = vadd.f32 %v10995_v3, %v1659_v55 }
 0x337   : > { %8597 = vrot.lane.b32.xlu0 %v11310_v31, %s8864_s13  ;;  %3266 = vrot.lane.b32.xlu1 %v11229_v63, %s8862_s29  ;;  %v3070_v17 = vmax.f32 %v2637_v24, %v2901_v8  ;;  %v13751_v8 = vmax.f32 %v11336_v40, 0.0 }
 0x338   : > { %v3805_v34 = vpop.f32.mrf.mxu1  ;;  %3914 = vmatmul.mubr.f32.gmra.mxu1 %v3501_v0 }
 0x339   : > { %v4086_v36 = vrot.slane %v3805_v34, 1  ;;  %v4278_v29 = vrot.slane %v3805_v34, 2  ;;  %v4469_v13 = vrot.slane %v3805_v34, 3  ;;  %v11340_v50 = vpop.permute.xlu0 %8507  ;;  %v3219_v6 = vpop.permute.xlu1 %3218 }
 0x33a   : > { %v3807_v62 = vpop.f32.mrf.mxu1  ;;  %v3334_v35 = vsel %vm3308_vm5, %v8500_v48, %v3219_v6  ;;  %v3504_v0 = vmax.f32 %v3071_v52, %v3219_v6 }
 0x33b   : > { %v4087_v53 = vsel %vm4082_vm7, %v4084_v7, %v4086_v36  ;;  %v4279_v19 = vsel %vm4274_vm8, %v13926_v41, %v4278_v29  ;;  %2408 = vrot.lane.b32.xlu0 %v11333_v38, %s8861_s28  ;;  %v3503_v55 = vmax.f32 %v3070_v17, %v3334_v35  ;;  %2837 = vrot.lane.b32.xlu1 %v11301_v47, %s8864_s13  ;;  %v13752_v62 = vmax.f32 %v11343_v25, 0.0 }
 0x33c   : > { %v4227_v3 = vmax.f32 %v11250_v10, %v4087_v53  ;;  %v11357_v44 = vpop.f32.mrf.mxu1  ;;  %v11362_v7 = vsel %vm3725_vm3, %v4467_v22, %v4469_v13  ;;  %7604 = vmatprep.mubr.msk.f32.mxu1 %vm3308_vm5, %v3504_v0  ;;  %v1661_v10 = vadd.f32 %v11287_v26, %v13922_v42  ;;  %v13929_v53 = vld [vmem:[#allocation4_spill] sm:$0xff]  ;;  %v1667_v0 = vadd.f32 %v1666_v49, %v13921_v46 }
 0x33d   : > { %13927 = vst [vmem:[#allocation16_spill] sm:$0xff] %v11362_v7  ;;  %v4088_v51 = vrot.slane %v11357_v44, 1  ;;  %v4280_v24 = vrot.slane %v11357_v44, 2  ;;  %v4471_v48 = vrot.slane %v11357_v44, 3  ;;  %v11371_v52 = vpop.permute.xlu0 %8512  ;;  %v2790_v17 = vpop.permute.xlu1 %2789  ;;  %3919 = vmatmul.mubr.f32.gmra.mxu1 %v3503_v55  ;;  %v2640_v41 = vmax.f32 %v13929_v53, %v11323_v15 }
 0x33e   : > { %v3812_v22 = vpop.f32.mrf.mxu1  ;;  %v11375_v6 = vmax.f32 %v4227_v3, %v4279_v19  ;;  %v2014_v49 = vadd.f32 %v11012_v27, %v1661_v10  ;;  %v2020_v46 = vadd.f32 %v11039_v39, %v1667_v0 }
 0x33f   : > { %v4089_v35 = vsel %vm4082_vm7, %v4086_v36, %v4088_v51  ;;  %v4281_v59 = vsel %vm4274_vm8, %v4278_v29, %v4280_v24  ;;  %3270 = vrot.lane.b32.xlu0 %v11301_v47, %s8862_s29  ;;  %8602 = vrot.lane.b32.xlu1 %v11310_v31, %s8862_s29  ;;  %v11388_v42 = vsel %vm3725_vm3, %v4469_v13, %v4471_v48 }
 0x340   : > { %13928 = vst [vmem:[#allocation20_spill] sm:$0xff] %v11375_v6  ;;  %v4228_v26 = vmax.f32 %v3805_v34, %v4089_v35  ;;  %13930 = vst [vmem:[#allocation21_spill] sm:$0xff] %v11388_v42  ;;  %v3073_v3 = vmax.f32 %v2640_v41, %v2790_v17  ;;  %v11396_v36 = vpack.i.bf16 %v13751_v8, %v13752_v62  ;;  %v1676_v34 = vpop.f32.mrf.mxu0  ;;  %v13932_v41 = vld [vmem:[#allocation29_spill] sm:$0xff]  ;;  %v11417_v0 = vmax.f32 %v2014_v49, 0.0 }
 0x341   : > { %v2794_v55 = vpop.permute.xlu0 %2793  ;;  %v3223_v31 = vpop.permute.xlu1 %3222  ;;  %v1677_v27 = vadd.f32 %v1676_v34, %v13932_v41  ;;  %v11420_v19 = vmax.f32 %v2020_v46, 0.0  ;;  %v8510_v49 = vunpack.i.h.bf16 %v11340_v50 }
 0x342   : > { %v11400_v29 = vmax.f32 %v4228_v26, %v4281_v59  ;;  %v3506_v13 = vmax.f32 %v3073_v3, %v3223_v31  ;;  %v13933_v26 = vld [vmem:[#allocation28_spill] sm:$0xff]  ;;  %v11437_v46 = vpop.f32.mrf.mxu0 }
 0x343   : > { %8607 = vrot.lane.b32.xlu0 %v11396_v36, %s8861_s28  ;;  %2841 = vrot.lane.b32.xlu1 %v11333_v38, %s8864_s13  ;;  %v1671_v3 = vadd.f32 %v1670_v21, %v13933_v26  ;;  %v11423_v34 = vadd.f32 %v11085_v54, %v1677_v27 }
 0x344   : > { %13931 = vst [vmem:[#allocation10_spill] sm:$0xff] %v11400_v29  ;;  %v11406_v22 = vpop.f32.mrf.mxu1  ;;  %7605 = vmatprep.mubr.msk.f32.mxu1 %vm3308_vm5, %v3506_v13  ;;  %v8509_v13 = vunpack.i.l.bf16 %v11340_v50  ;;  %v2903_v50 = vsel %vm2875_vm6, %v8510_v49, %v2794_v55  ;;  %v13938_v29 = vld [vmem:[#allocation5_spill] sm:$0xff] }
 0x345   : > { %v4090_v39 = vrot.slane %v11406_v22, 1  ;;  %v4282_v10 = vrot.slane %v11406_v22, 2  ;;  %v4473_v59 = vrot.slane %v11406_v22, 3  ;;  %v11415_v35 = vpop.permute.xlu0 %3226  ;;  %v8503_v8 = vpop.permute.xlu1 %8502 }
 0x346   : > { %v3817_v53 = vpop.f32.mrf.mxu1  ;;  %v8504_v11 = vunpack.i.l.bf16 %v8503_v8  ;;  %v2902_v12 = vsel %vm2875_vm6, %v8509_v13, %v2790_v17 }
 0x347   : > { %v4091_v62 = vsel %vm4082_vm7, %v4088_v51, %v4090_v39  ;;  %v4283_v32 = vsel %vm4274_vm8, %v4280_v24, %v4282_v10  ;;  %3274 = vrot.lane.b32.xlu0 %v11333_v38, %s8862_s29  ;;  %2412 = vrot.lane.b32.xlu1 %v11417_v0, %s8861_s28  ;;  %v11435_v54 = vsel %vm3725_vm3, %v4471_v48, %v4473_v59  ;;  %v8514_v51 = vunpack.i.l.bf16 %v11371_v52 }
 0x348   : > { %v4229_v21 = vmax.f32 %v11357_v44, %v4091_v62  ;;  %13934 = vst [vmem:[#allocation23_spill] sm:$0xff] %v11435_v54  ;;  %v8505_v24 = vunpack.i.h.bf16 %v8503_v8  ;;  %v2469_v53 = vsel %vm2442_vm4, %v8504_v11, %v11323_v15  ;;  %v13935_v44 = vld [vmem:[#allocation22_spill] sm:$0xff] }
 0x349   : > { %v2798_v27 = vpop.permute.xlu0 %2797  ;;  %v13936_v62 = vmax.f32 %v13935_v44, 0.0  ;;  %v2361_v7 = vpop.permute.xlu1 %2360  ;;  %v13939_v15 = vld [vmem:[#allocation2_spill] sm:$0xff] }
 0x34a   : > { %v11446_v6 = vpop.f32.mrf.mxu1  ;;  %v11448_v48 = vmax.f32 %v4229_v21, %v4283_v32  ;;  %v2470_v42 = vsel %vm2442_vm4, %v8505_v24, %v2361_v7  ;;  %v2642_v8 = vmax.f32 %v13938_v29, %v2361_v7  ;;  %v13940_v17 = vmax.f32 %v13939_v15, 0.0  ;;  %v1682_v29 = vpop.f32.mrf.mxu0 }
 0x34b   : > { %v2639_v5 = vmax.f32 %v13936_v62, %v2469_v53  ;;  %v4092_v40 = vrot.slane %v11446_v6, 1  ;;  %v4284_v11 = vrot.slane %v11446_v6, 2  ;;  %2845 = vrot.lane.b32.xlu0 %v11417_v0, %s8864_s13  ;;  %v4475_v13 = vrot.slane %v11446_v6, 3  ;;  %8612 = vrot.lane.b32.xlu1 %v11396_v36, %s8864_s13 }
 0x34c   : > { %13937 = vst [vmem:[#allocation24_spill] sm:$0xff] %v11448_v48  ;;  %v2641_v49 = vmax.f32 %v13940_v17, %v2470_v42  ;;  %v3822_v32 = vpop.f32.mrf.mxu1  ;;  %v3335_v24 = vsel %vm3308_vm5, %v8514_v51, %v3223_v31  ;;  %v3075_v53 = vmax.f32 %v2642_v8, %v2794_v55  ;;  %v1673_v55 = vadd.f32 %v11365_v33, %v13933_v26  ;;  %v11491_v26 = vpop.f32.mrf.mxu0 }
 0x34d   : > { %v3072_v21 = vmax.f32 %v2639_v5, %v2902_v12  ;;  %v4093_v44 = vsel %vm4082_vm7, %v4090_v39, %v4092_v40  ;;  %v4285_v42 = vsel %vm4274_vm8, %v4282_v10, %v4284_v11  ;;  %v3231_v62 = vpop.permute.xlu0 %3230  ;;  %v2365_v12 = vpop.permute.xlu1 %2364  ;;  %v11474_v32 = vsel %vm3725_vm3, %v4473_v59, %v4475_v13  ;;  %v13942_v39 = vld [vmem:[#allocation27_spill] sm:$0xff] }
 0x34e   : > { %v3074_v15 = vmax.f32 %v2641_v49, %v2903_v50  ;;  %v4230_v17 = vmax.f32 %v11406_v22, %v4093_v44  ;;  %13941 = vst [vmem:[#allocation37_spill] sm:$0xff] %v11474_v32  ;;  %v8515_v31 = vunpack.i.h.bf16 %v11371_v52  ;;  %v2644_v51 = vmax.f32 %v13942_v39, %v2365_v12 }
 0x34f   : > { %v3505_v5 = vmax.f32 %v3072_v21, %v3335_v24  ;;  %8617 = vrot.lane.b32.xlu0 %v11396_v36, %s8862_s29  ;;  %v3508_v10 = vmax.f32 %v3075_v53, %v11415_v35  ;;  %v11484_v22 = vadd.f32 %v11057_v16, %v1671_v3  ;;  %2416 = vrot.lane.b32.xlu1 %v11420_v19, %s8861_s28  ;;  %v13762_v16 = vmax.f32 %v11423_v34, 0.0 }
 0x350   : > { %v11488_v59 = vmax.f32 %v4230_v17, %v4285_v42  ;;  %v2026_v33 = vadd.f32 %v11071_v20, %v1673_v55  ;;  %v3336_v52 = vsel %vm3308_vm5, %v8515_v31, %v11415_v35  ;;  %v3077_v50 = vmax.f32 %v2644_v51, %v2798_v27  ;;  %v1688_v42 = vpop.f32.mrf.mxu0 }
 0x351   : > { %3924 = vmatmul.mubr.f32.gmra.mxu1 %v3505_v5  ;;  %v8518_v36 = vpop.permute.xlu0 %8517  ;;  %v8523_v8 = vpop.permute.xlu1 %8522  ;;  %v3507_v49 = vmax.f32 %v3074_v15, %v3336_v52  ;;  %v13765_v53 = vmax.f32 %v11484_v22, 0.0  ;;  %v13944_v15 = vld [vmem:[#allocation18_spill] sm:$0xff]  ;;  %v1679_v55 = vadd.f32 %v11437_v46, %v13932_v41  ;;  %v13946_v52 = vld [vmem:[#allocation33_spill] sm:$0xff] }
 0x352   : > { %13943 = vst [vmem:[#allocation12_spill] sm:$0xff] %v11488_v59  ;;  %7606 = vmatprep.mubr.msk.f32.mxu1 %vm3308_vm5, %v3508_v10  ;;  %v8519_v3 = vunpack.i.l.bf16 %v8518_v36  ;;  %v8524_v24 = vunpack.i.l.bf16 %v8523_v8  ;;  %v3510_v20 = vmax.f32 %v3077_v50, %v3231_v62  ;;  %v11505_v44 = vmax.f32 %v2026_v33, 0.0 }
 0x353   : > { %2849 = vrot.lane.b32.xlu0 %v11420_v19, %s8864_s13  ;;  %3278 = vrot.lane.b32.xlu1 %v11417_v0, %s8862_s29  ;;  %v13945_v17 = vmax.f32 %v13944_v15, 0.0  ;;  %v2032_v33 = vadd.f32 %v11094_v43, %v1679_v55  ;;  %v1689_v50 = vadd.f32 %v1688_v42, %v13946_v52  ;;  %v8525_v43 = vunpack.i.h.bf16 %v8523_v8 }
 0x354   : > { %v2471_v35 = vsel %vm2442_vm4, %v8519_v3, %v2365_v12  ;;  %v2904_v31 = vsel %vm2875_vm6, %v8524_v24, %v2798_v27  ;;  %v8621_v12 = vpack.i.bf16 %v13762_v16, %v13765_v53  ;;  %v8520_v24 = vunpack.i.h.bf16 %v8518_v36 }
 0x355   : > { %3929 = vmatmul.mubr.f32.gmra.mxu1 %v3507_v49  ;;  %v2643_v5 = vmax.f32 %v13945_v17, %v2471_v35  ;;  %v8528_v39 = vpop.permute.xlu1 %8527  ;;  %v11524_v46 = vadd.f32 %v11142_v60, %v1689_v50  ;;  %v2369_v27 = vpop.permute.xlu0 %2368  ;;  %v11528_v15 = vmax.f32 %v2032_v33, 0.0 }
 0x356   : > { %7607 = vmatprep.mubr.msk.f32.mxu1 %vm3308_vm5, %v3510_v20  ;;  %v8529_v10 = vunpack.i.l.bf16 %v8528_v39  ;;  %v13947_v20 = vld [vmem:[#allocation34_spill] sm:$0xff]  ;;  %v2646_v8 = vmax.f32 %v10985_v45, %v2369_v27 }
 0x357   : > { %v3076_v51 = vmax.f32 %v2643_v5, %v2904_v31  ;;  %2420 = vrot.lane.b32.xlu0 %v11505_v44, %s8861_s28  ;;  %8622 = vrot.lane.b32.xlu1 %v8621_v12, %s8861_s28  ;;  %v1683_v35 = vadd.f32 %v1682_v29, %v13947_v20  ;;  %v13763_v36 = vmax.f32 %v11524_v46, 0.0 }
 0x358   : > { %v3337_v41 = vsel %vm3308_vm5, %v8529_v10, %v3231_v62  ;;  %v2472_v62 = vsel %vm2442_vm4, %v8520_v24, %v2369_v27 }
 0x359   : > { %v2802_v3 = vpop.permute.xlu1 %2801  ;;  %v3509_v49 = vmax.f32 %v3076_v51, %v3337_v41  ;;  %v11534_v55 = vadd.f32 %v11106_v14, %v1683_v35  ;;  %v13948_v14 = vld [vmem:[#allocation19_spill] sm:$0xff] }
 0x35a   : > { %v2905_v51 = vsel %vm2875_vm6, %v8525_v43, %v2802_v3  ;;  %v13949_v50 = vmax.f32 %v13948_v14, 0.0  ;;  %v3079_v27 = vmax.f32 %v2646_v8, %v2802_v3  ;;  %v1685_v3 = vadd.f32 %v11491_v26, %v13947_v20 }
 0x35b   : > { %8627 = vrot.lane.b32.xlu0 %v8621_v12, %s8864_s13  ;;  %3282 = vrot.lane.b32.xlu1 %v11420_v19, %s8862_s29 }
 0x35c   : > { %v3825_v42 = vpop.f32.mrf.mxu1  ;;  %3934 = vmatmul.mubr.f32.gmra.mxu1 %v3509_v49  ;;  %v2645_v41 = vmax.f32 %v13949_v50, %v2472_v62  ;;  %v8530_v49 = vunpack.i.h.bf16 %v8528_v39  ;;  %v2038_v26 = vadd.f32 %v11128_v9, %v1685_v3 }
 0x35d   : > { %v4094_v60 = vrot.slane %v3825_v42, 1  ;;  %v4286_v17 = vrot.slane %v3825_v42, 2  ;;  %v4477_v5 = vrot.slane %v3825_v42, 3  ;;  %v11537_v31 = vpop.permute.xlu1 %8532 }
 0x35e   : > { %v3827_v29 = vpop.f32.mrf.mxu1  ;;  %v3078_v14 = vmax.f32 %v2645_v41, %v2905_v51 }
 0x35f   : > { %v4095_v10 = vsel %vm4082_vm7, %v4092_v40, %v4094_v60  ;;  %v4287_v33 = vsel %vm4274_vm8, %v4284_v11, %v4286_v17  ;;  %2424 = vrot.lane.b32.xlu0 %v11528_v15, %s8861_s28  ;;  %2853 = vrot.lane.b32.xlu1 %v11505_v44, %s8864_s13  ;;  %v11557_v40 = vsel %vm3725_vm3, %v4475_v13, %v4477_v5  ;;  %v13764_v29 = vmax.f32 %v11534_v55, 0.0 }
 0x360   : > { %v4231_v24 = vmax.f32 %v11446_v6, %v4095_v10  ;;  %v3830_v45 = vpop.f32.mrf.mxu1  ;;  %13950 = vst [vmem:[#allocation40_spill] sm:$0xff] %v11557_v40  ;;  %v1690_v10 = vpop.f32.mrf.mxu0 }
 0x361   : > { %v4096_v11 = vrot.slane %v3830_v45, 1  ;;  %v4288_v35 = vrot.slane %v3830_v45, 2  ;;  %v4479_v43 = vrot.slane %v3830_v45, 3  ;;  %v3235_v62 = vpop.permute.xlu1 %3234 }
 0x362   : > { %v3832_v39 = vpop.f32.mrf.mxu1  ;;  %v11560_v50 = vmax.f32 %v4231_v24, %v4287_v33  ;;  %v3338_v6 = vsel %vm3308_vm5, %v8530_v49, %v3235_v62  ;;  %v3512_v13 = vmax.f32 %v3079_v27, %v3235_v62  ;;  %v11565_v16 = vpop.permute.xlu0 %1204 }
 0x363   : > { %v4097_v7 = vsel %vm4082_vm7, %v4094_v60, %v4096_v11  ;;  %v4289_v21 = vsel %vm4274_vm8, %v4286_v17, %v4288_v35  ;;  %3286 = vrot.lane.b32.xlu0 %v11505_v44, %s8862_s29  ;;  %v3511_v51 = vmax.f32 %v3078_v14, %v3338_v6  ;;  %8632 = vrot.lane.b32.xlu1 %v8621_v12, %s8862_s29  ;;  %v1694_v12 = vpop.f32.mrf.mxu0  ;;  %v11592_v14 = vmax.f32 %v2038_v26, 0.0 }
 0x364   : > { %13951 = vst [vmem:[#allocation11_spill] sm:$0xff] %v11560_v50  ;;  %v4232_v8 = vmax.f32 %v3825_v42, %v4097_v7  ;;  %7608 = vmatprep.mubr.msk.f32.mxu1 %vm3308_vm5, %v3512_v13  ;;  %v11577_v60 = vpack.i.bf16 %v13763_v36, %v13764_v29  ;;  %v11580_v17 = vsel %vm3725_vm3, %v4477_v5, %v4479_v43 }
 0x365   : > { %13952 = vst [vmem:[#allocation3_spill] sm:$0xff] %v11580_v17  ;;  %v2806_v7 = vpop.permute.xlu1 %2805  ;;  %3939 = vmatmul.mubr.f32.gmra.mxu1 %v3511_v51  ;;  %v1691_v5 = vadd.f32 %v1690_v10, %v13946_v52  ;;  %v1696_v39 = vpop.f32.mrf.mxu0  ;;  %v8534_v52 = vunpack.i.l.bf16 %v11537_v31  ;;  %v13970_v17 = vld [vmem:[#allocation36_spill] sm:$0xff] }
 0x366   : > { %v11585_v20 = vmax.f32 %v4232_v8, %v4289_v21  ;;  %v2373_v42 = vpop.permute.xlu0 %2372 }
 0x367   : > { %8637 = vrot.lane.b32.xlu0 %v11577_v60, %s8861_s28  ;;  %2857 = vrot.lane.b32.xlu1 %v11528_v15, %s8864_s13  ;;  %v2044_v6 = vadd.f32 %v11160_v18, %v1691_v5  ;;  %v13955_v18 = vld [vmem:[#allocation35_spill] sm:$0xff]  ;;  %v1700_v5 = vpop.f32.mrf.mxu0  ;;  %v2648_v33 = vmax.f32 %v11018_v2, %v2373_v42 }
 0x368   : > { %13953 = vst [vmem:[#allocation25_spill] sm:$0xff] %v11585_v20  ;;  %v3835_v41 = vpop.f32.mrf.mxu1 }
 0x369   : > { %v4098_v49 = vrot.slane %v3835_v41, 1  ;;  %v4290_v24 = vrot.slane %v3835_v41, 2  ;;  %v4481_v27 = vrot.slane %v3835_v41, 3  ;;  %v11594_v9 = vpop.permute.xlu1 %8542 }
 0x36a   : > { %v3837_v21 = vpop.f32.mrf.mxu1  ;;  %v11601_v8 = vpop.permute.xlu0 %8537 }
 0x36b   : > { %v4099_v13 = vsel %vm4082_vm7, %v4096_v11, %v4098_v49  ;;  %v4291_v3 = vsel %vm4274_vm8, %v4288_v35, %v4290_v24  ;;  %3290 = vrot.lane.b32.xlu0 %v11528_v15, %s8862_s29  ;;  %v8539_v51 = vunpack.i.l.bf16 %v11601_v8  ;;  %2428 = vrot.lane.b32.xlu1 %v11592_v14, %s8861_s28  ;;  %v11610_v26 = vsel %vm3725_vm3, %v4479_v43, %v4481_v27 }
 0x36c   : > { %v4233_v10 = vmax.f32 %v3830_v45, %v4099_v13  ;;  %13954 = vst [vmem:[#allocation26_spill] sm:$0xff] %v11610_v26  ;;  %v1695_v11 = vadd.f32 %v1694_v12, %v13955_v18  ;;  %v1701_v35 = vadd.f32 %v1700_v5, %v11565_v16  ;;  %v2473_v21 = vsel %vm2442_vm4, %v8534_v52, %v2373_v42 }
 0x36d   : > { %v2810_v62 = vpop.permute.xlu1 %2809  ;;  %v11616_v36 = vpop.f32.mrf.mxu1  ;;  %v11620_v13 = vmax.f32 %v2044_v6, 0.0  ;;  %v8535_v52 = vunpack.i.h.bf16 %v11537_v31  ;;  %v2906_v42 = vsel %vm2875_vm6, %v8539_v51, %v2806_v7  ;;  %v8544_v6 = vunpack.i.l.bf16 %v11594_v9 }
 0x36e   : > { %v11618_v45 = vmax.f32 %v4233_v10, %v4291_v3  ;;  %v13767_v29 = vrot.slane %v11616_v36, 1  ;;  %v4292_v43 = vrot.slane %v11616_v36, 2  ;;  %v13769_v12 = vrot.slane %v11616_v36, 3  ;;  %v2377_v53 = vpop.permute.xlu0 %2376 }
 0x36f   : > { %2861 = vrot.lane.b32.xlu0 %v11592_v14, %s8864_s13  ;;  %8642 = vrot.lane.b32.xlu1 %v11577_v60, %s8864_s13  ;;  %v3842_v2 = vpop.f32.mrf.mxu1  ;;  %v13957_v3 = vmax.f32 %v10998_v23, 0.0  ;;  %v2054_v51 = vadd.f32 %v11197_v28, %v1701_v35 }
 0x370   : > { %13956 = vst [vmem:[#allocation17_spill] sm:$0xff] %v11618_v45  ;;  %v4101_v5 = vsel %vm4082_vm7, %v4098_v49, %v13767_v29  ;;  %v4293_v31 = vsel %vm4274_vm8, %v4290_v24, %v4292_v43  ;;  %v11644_v2 = vsel %vm3725_vm3, %v4481_v27, %v13769_v12  ;;  %v2048_v49 = vadd.f32 %v11171_v30, %v1695_v11  ;;  %v13958_v11 = vld [vmem:[#allocation30_spill] sm:$0xff] }
 0x371   : > { %v2647_v10 = vmax.f32 %v13957_v3, %v2473_v21  ;;  %v4234_v54 = vmax.f32 %v3835_v41, %v4101_v5  ;;  %v2381_v23 = vpop.permute.xlu1 %2380  ;;  %v3081_v21 = vmax.f32 %v2648_v33, %v2806_v7  ;;  %v1697_v3 = vadd.f32 %v1696_v39, %v13955_v18  ;;  %v1702_v41 = vpop.f32.mrf.mxu0 }
 0x372   : > { %v3239_v29 = vpop.permute.xlu0 %3238  ;;  %v2474_v24 = vsel %vm2442_vm4, %v8535_v52, %v2377_v53  ;;  %v11659_v30 = vmax.f32 %v2054_v51, 0.0  ;;  %v8540_v39 = vunpack.i.h.bf16 %v11601_v8 }
 0x373   : > { %v3080_v48 = vmax.f32 %v2647_v10, %v2906_v42  ;;  %8647 = vrot.lane.b32.xlu0 %v11577_v60, %s8862_s29  ;;  %v3339_v27 = vsel %vm3308_vm5, %v8544_v6, %v3239_v29  ;;  %v3514_v12 = vmax.f32 %v3081_v21, %v3239_v29  ;;  %2432 = vrot.lane.b32.xlu1 %v11620_v13, %s8861_s28 }
 0x374   : > { %v11656_v28 = vmax.f32 %v4234_v54, %v4293_v31  ;;  %v2050_v33 = vadd.f32 %v11187_v61, %v1697_v3  ;;  %v2650_v60 = vmax.f32 %v11050_v58, %v2377_v53  ;;  %v13959_v54 = vmax.f32 %v13958_v11, 0.0 }
 0x375   : > { %v3513_v7 = vmax.f32 %v3080_v48, %v3339_v27  ;;  %v11663_v18 = vpop.permute.xlu1 %8552  ;;  %7609 = vmatprep.mubr.msk.f32.mxu1 %vm3308_vm5, %v3514_v12  ;;  %v11672_v61 = vmax.f32 %v2048_v49, 0.0  ;;  %v1703_v48 = vadd.f32 %v1702_v41, %v11565_v16  ;;  %v8545_v53 = vunpack.i.h.bf16 %v11594_v9 }
 0x376   : > { %v2649_v35 = vmax.f32 %v13959_v54, %v2474_v24  ;;  %v8548_v52 = vpop.permute.xlu0 %8547  ;;  %v11676_v58 = vmax.f32 %v2050_v33, 0.0  ;;  %v2907_v8 = vsel %vm2875_vm6, %v8540_v39, %v2810_v62  ;;  %v3083_v42 = vmax.f32 %v2650_v60, %v2810_v62 }
 0x377   : > { %3944 = vmatmul.mubr.f32.gmra.mxu1 %v3513_v7  ;;  %2865 = vrot.lane.b32.xlu0 %v11620_v13, %s8864_s13  ;;  %v8651_v6 = vpack.i.bf16 %v11659_v30, %v11672_v61  ;;  %v8549_v31 = vunpack.i.l.bf16 %v8548_v52  ;;  %v2056_v16 = vadd.f32 %v11211_v4, %v1703_v48  ;;  %v2652_v3 = vmax.f32 %v11090_v1, %v2381_v23 }
 0x378   : > { %3294 = vrot.lane.b32.xlu1 %v11592_v14, %s8862_s29  ;;  %v3082_v5 = vmax.f32 %v2649_v35, %v2907_v8  ;;  %v8554_v24 = vunpack.i.l.bf16 %v11663_v18  ;;  %v8550_v27 = vunpack.i.h.bf16 %v8548_v52  ;;  %v8555_v52 = vunpack.i.h.bf16 %v11663_v18 }
 0x379   : > { %v11681_v12 = vpop.permute.xlu1 %2384  ;;  %v2475_v33 = vsel %vm2442_vm4, %v8549_v31, %v2381_v23  ;;  %v11697_v41 = vmax.f32 %v2056_v16, 0.0  ;;  %v13963_v16 = vrot.slane %v11616_v36, 3 }
 0x37a   : > { %v3243_v10 = vpop.permute.xlu0 %3242  ;;  %v2476_v31 = vsel %vm2442_vm4, %v8550_v27, %v11681_v12  ;;  %v13964_v27 = vld [vmem:[#allocation7_spill] sm:$0xff] }
 0x37b   : > { %2436 = vrot.lane.b32.xlu0 %v11676_v58, %s8861_s28  ;;  %v3340_v51 = vsel %vm3308_vm5, %v8545_v53, %v3243_v10  ;;  %v3516_v21 = vmax.f32 %v3083_v42, %v3243_v10  ;;  %v13960_v53 = vld [vmem:[#allocation31_spill] sm:$0xff]  ;;  %v13962_v42 = vrot.slane %v11616_v36, 1 }
 0x37c   : > { %8652 = vrot.lane.b32.xlu1 %v8651_v6, %s8861_s28  ;;  %v3515_v9 = vmax.f32 %v3082_v5, %v3340_v51  ;;  %v13961_v23 = vmax.f32 %v13960_v53, 0.0 }
 0x37d   : > { %v3247_v62 = vpop.permute.xlu1 %3246  ;;  %7610 = vmatprep.mubr.msk.f32.mxu1 %vm3308_vm5, %v3516_v21 }
 0x37e   : > { %v2814_v49 = vpop.permute.xlu0 %2813  ;;  %3949 = vmatmul.mubr.f32.gmra.mxu1 %v3515_v9  ;;  %v2651_v8 = vmax.f32 %v13961_v23, %v2475_v33  ;;  %v2654_v33 = vmax.f32 %v13964_v27, %v11681_v12 }
 0x37f   : > { %8657 = vrot.lane.b32.xlu0 %v8651_v6, %s8864_s13  ;;  %v3085_v7 = vmax.f32 %v2652_v3, %v2814_v49  ;;  %v2908_v11 = vsel %vm2875_vm6, %v8554_v24, %v2814_v49 }
 0x380   : > { %3298 = vrot.lane.b32.xlu1 %v11620_v13, %s8862_s29  ;;  %v3845_v4 = vpop.f32.mrf.mxu1  ;;  %v3084_v9 = vmax.f32 %v2651_v8, %v2908_v11 }
 0x381   : > { %v4102_v1 = vrot.slane %v3845_v4, 1  ;;  %v4294_v39 = vrot.slane %v3845_v4, 2  ;;  %v4485_v60 = vrot.slane %v3845_v4, 3  ;;  %v3518_v54 = vmax.f32 %v3085_v7, %v3247_v62  ;;  %v11700_v35 = vpop.permute.xlu1 %8562 }
 0x382   : > { %v3847_v48 = vpop.f32.mrf.mxu1  ;;  %v8558_v5 = vpop.permute.xlu0 %8557 }
 0x383   : > { %v4103_v6 = vsel %vm4082_vm7, %v13962_v42, %v4102_v1  ;;  %v4295_v10 = vsel %vm4274_vm8, %v4292_v43, %v4294_v39  ;;  %2440 = vrot.lane.b32.xlu0 %v11697_v41, %s8861_s28  ;;  %v8559_v51 = vunpack.i.l.bf16 %v8558_v5  ;;  %7611 = vmatprep.mubr.msk.f32.mxu1 %vm3308_vm5, %v3518_v54  ;;  %v11722_v43 = vsel %vm3725_vm3, %v13963_v16, %v4485_v60  ;;  %v13965_v54 = vld [vmem:[#allocation32_spill] sm:$0xff] }
 0x384   : > { %v4235_v18 = vmax.f32 %v11616_v36, %v4103_v6  ;;  %2869 = vrot.lane.b32.xlu1 %v11676_v58, %s8864_s13  ;;  %v3850_v21 = vpop.f32.mrf.mxu1  ;;  %v8560_v7 = vunpack.i.h.bf16 %v8558_v5  ;;  %v13966_v6 = vmax.f32 %v13965_v54, 0.0 }
 0x385   : > { %v4104_v3 = vrot.slane %v3850_v21, 1  ;;  %v4296_v49 = vrot.slane %v3850_v21, 2  ;;  %v4487_v24 = vrot.slane %v3850_v21, 3  ;;  %v3341_v48 = vsel %vm3308_vm5, %v8559_v51, %v3247_v62  ;;  %v3251_v53 = vpop.permute.xlu1 %3250 }
 0x386   : > { %v3852_v23 = vpop.f32.mrf.mxu1  ;;  %v11727_v42 = vmax.f32 %v4235_v18, %v4295_v10  ;;  %v2653_v36 = vmax.f32 %v13966_v6, %v2476_v31  ;;  %v2818_v8 = vpop.permute.xlu0 %2817  ;;  %v3517_v29 = vmax.f32 %v3084_v9, %v3341_v48 }
 0x387   : > { %v4105_v16 = vsel %vm4082_vm7, %v4102_v1, %v4104_v3  ;;  %v4297_v11 = vsel %vm4274_vm8, %v4294_v39, %v4296_v49  ;;  %3302 = vrot.lane.b32.xlu0 %v11676_v58, %s8862_s29  ;;  %v2909_v5 = vsel %vm2875_vm6, %v8555_v52, %v2818_v8  ;;  %v3087_v62 = vmax.f32 %v2654_v33, %v2818_v8 }
 0x388   : > { %v4236_v12 = vmax.f32 %v3845_v4, %v4105_v16  ;;  %3300 = vrot.lane.b32.xlu1 %v11672_v61, %s8862_s29  ;;  %v11739_v10 = vsel %vm3725_vm3, %v4485_v60, %v4487_v24  ;;  %v3086_v31 = vmax.f32 %v2653_v36, %v2909_v5  ;;  %3954 = vmatmul.mubr.f32.gmra.mxu1 %v3517_v29  ;;  %v8564_v36 = vunpack.i.l.bf16 %v11700_v35  ;;  %v13967_v5 = vld [vmem:[#allocation9_spill] sm:$0xff] }
 0x389   : > { %v3342_v39 = vsel %vm3308_vm5, %v8560_v7, %v3251_v53  ;;  %v3520_v18 = vmax.f32 %v3087_v62, %v3251_v53  ;;  %v2822_v51 = vpop.permute.xlu1 %2821  ;;  %v8565_v29 = vunpack.i.h.bf16 %v11700_v35  ;;  %v13976_v35 = vld [vmem:[#allocation39_spill] sm:$0xff] }
 0x38a   : > { %v11744_v9 = vmax.f32 %v4236_v12, %v4297_v11  ;;  %v3519_v4 = vmax.f32 %v3086_v31, %v3342_v39  ;;  %v2389_v52 = vpop.permute.xlu0 %2388 }
 0x38b   : > { %3304 = vrot.lane.b32.xlu0 %v11659_v30, %s8862_s29  ;;  %7612 = vmatprep.mubr.msk.f32.mxu1 %vm3308_vm5, %v3520_v18  ;;  %v2477_v12 = vsel %vm2442_vm4, %v8564_v36, %v2389_v52  ;;  %v2656_v62 = vmax.f32 %v13967_v5, %v2389_v52  ;;  %v13968_v36 = vld [vmem:[#allocation8_spill] sm:$0xff] }
 0x38c   : > { %2873 = vrot.lane.b32.xlu1 %v11697_v41, %s8864_s13  ;;  %v3855_v60 = vpop.f32.mrf.mxu1  ;;  %3959 = vmatmul.mubr.f32.gmra.mxu1 %v3519_v4  ;;  %v13969_v52 = vmax.f32 %v13968_v36, 0.0 }
 0x38d   : > { %v4106_v27 = vrot.slane %v3855_v60, 1  ;;  %v4298_v33 = vrot.slane %v3855_v60, 2  ;;  %v4489_v7 = vrot.slane %v3855_v60, 3  ;;  %v8573_v48 = vpop.permute.xlu1 %8572  ;;  %v3089_v59 = vmax.f32 %v2656_v62, %v2822_v51 }
 0x38e   : > { %v3857_v53 = vpop.f32.mrf.mxu1  ;;  %v8568_v6 = vpop.permute.xlu0 %8567  ;;  %v2655_v5 = vmax.f32 %v13969_v52, %v2477_v12 }
 0x38f   : > { %v4107_v23 = vsel %vm4082_vm7, %v4104_v3, %v4106_v27  ;;  %v4299_v54 = vsel %vm4274_vm8, %v4296_v49, %v4298_v33  ;;  %v8569_v11 = vunpack.i.l.bf16 %v8568_v6  ;;  %v11759_v8 = vsel %vm3725_vm3, %v4487_v24, %v4489_v7 }
 0x390   : > { %v4237_v16 = vmax.f32 %v3850_v21, %v4107_v23  ;;  %3306 = vrot.lane.b32.xlu1 %v11697_v41, %s8862_s29  ;;  %v8570_v50 = vunpack.i.h.bf16 %v8568_v6 }
 0x391   : > { %v2826_v31 = vpop.permute.xlu1 %2825  ;;  %v11763_v39 = vpop.f32.mrf.mxu1  ;;  %v2910_v24 = vsel %vm2875_vm6, %v8569_v11, %v2822_v51 }
 0x392   : > { %v11765_v3 = vmax.f32 %v4237_v16, %v4299_v54  ;;  %v4108_v49 = vrot.slane %v11763_v39, 1  ;;  %v4300_v21 = vrot.slane %v11763_v39, 2  ;;  %v13775_v18 = vrot.slane %v11763_v39, 3  ;;  %v2393_v4 = vpop.permute.xlu0 %2392 }
 0x393   : > { %v3862_v53 = vpop.f32.mrf.mxu1  ;;  %v3088_v23 = vmax.f32 %v2655_v5, %v2910_v24  ;;  %v2478_v36 = vsel %vm2442_vm4, %v8565_v29, %v2393_v4  ;;  %v8575_v29 = vunpack.i.h.bf16 %v8573_v48 }
 0x394   : > { %v4109_v1 = vsel %vm4082_vm7, %v4106_v27, %v4108_v49  ;;  %v4301_v54 = vsel %vm4274_vm8, %v4298_v33, %v4300_v21  ;;  %v11780_v16 = vsel %vm3725_vm3, %v4489_v7, %v13775_v18  ;;  %v8574_v53 = vunpack.i.l.bf16 %v8573_v48 }
 0x395   : > { %v4238_v32 = vmax.f32 %v3855_v60, %v4109_v1  ;;  %v2397_v11 = vpop.permute.xlu1 %2396  ;;  %v2658_v7 = vmax.f32 %v13970_v17, %v2393_v4  ;;  %v13971_v1 = vld [vmem:[#allocation6_spill] sm:$0xff] }
 0x396   : > { %v3255_v40 = vpop.permute.xlu0 %3254  ;;  %v13972_v51 = vmax.f32 %v13971_v1, 0.0 }
 0x397   : > { %v3343_v12 = vsel %vm3308_vm5, %v8574_v53, %v3255_v40  ;;  %v3522_v27 = vmax.f32 %v3089_v59, %v3255_v40  ;;  %v11785_v52 = vmax.f32 %v4238_v32, %v4301_v54  ;;  %v2911_v59 = vsel %vm2875_vm6, %v8570_v50, %v2826_v31 }
 0x398   : > { %v3521_v33 = vmax.f32 %v3088_v23, %v3343_v12  ;;  %v2657_v60 = vmax.f32 %v13972_v51, %v2478_v36  ;;  %v3091_v40 = vmax.f32 %v2658_v7, %v2826_v31  ;;  %v2660_v54 = vmax.f32 %v11222_v56, %v2397_v11 }
 0x399   : > { %v8583_v18 = vpop.permute.xlu1 %8582  ;;  %7613 = vmatprep.mubr.msk.f32.mxu1 %vm3308_vm5, %v3522_v27 }
 0x39a   : > { %v8578_v62 = vpop.permute.xlu0 %8577  ;;  %3964 = vmatmul.mubr.f32.gmra.mxu1 %v3521_v33  ;;  %v3090_v6 = vmax.f32 %v2657_v60, %v2911_v59  ;;  %v8584_v12 = vunpack.i.l.bf16 %v8583_v18  ;;  %v8585_v59 = vunpack.i.h.bf16 %v8583_v18 }
 0x39b   : > { %v8579_v23 = vunpack.i.l.bf16 %v8578_v62  ;;  %v8580_v48 = vunpack.i.h.bf16 %v8578_v62 }
 0x39d   : > { %v2401_v32 = vpop.permute.xlu1 %2400  ;;  %v2479_v50 = vsel %vm2442_vm4, %v8579_v23, %v2397_v11 }
 0x39e   : > { %v3259_v24 = vpop.permute.xlu0 %3258  ;;  %v2480_v23 = vsel %vm2442_vm4, %v8580_v48, %v2401_v32 }
 0x39f   : > { %v3344_v17 = vsel %vm3308_vm5, %v8575_v29, %v3259_v24  ;;  %v3524_v4 = vmax.f32 %v3091_v40, %v3259_v24  ;;  %v13973_v40 = vld [vmem:[#allocation13_spill] sm:$0xff] }
 0x3a0   : > { %v3523_v5 = vmax.f32 %v3090_v6, %v3344_v17  ;;  %v13974_v24 = vmax.f32 %v13973_v40, 0.0 }
 0x3a1   : > { %v3263_v53 = vpop.permute.xlu1 %3262  ;;  %7614 = vmatprep.mubr.msk.f32.mxu1 %vm3308_vm5, %v3524_v4 }
 0x3a2   : > { %v2830_v36 = vpop.permute.xlu0 %2829  ;;  %3969 = vmatmul.mubr.f32.gmra.mxu1 %v3523_v5  ;;  %v2659_v6 = vmax.f32 %v13974_v24, %v2479_v50 }
 0x3a3   : > { %v3093_v27 = vmax.f32 %v2660_v54, %v2830_v36  ;;  %v2912_v51 = vsel %vm2875_vm6, %v8584_v12, %v2830_v36  ;;  %v13975_v36 = vrot.slane %v11763_v39, 3 }
 0x3a4   : > { %v3865_v31 = vpop.f32.mrf.mxu1  ;;  %v3092_v12 = vmax.f32 %v2659_v6, %v2912_v51 }
 0x3a5   : > { %v4110_v33 = vrot.slane %v3865_v31, 1  ;;  %v4302_v7 = vrot.slane %v3865_v31, 2  ;;  %v4493_v1 = vrot.slane %v3865_v31, 3  ;;  %v3526_v60 = vmax.f32 %v3093_v27, %v3263_v53  ;;  %v11799_v29 = vpop.permute.xlu1 %8592 }
 0x3a6   : > { %v3867_v56 = vpop.f32.mrf.mxu1  ;;  %v8588_v11 = vpop.permute.xlu0 %8587 }
 0x3a7   : > { %v4111_v17 = vsel %vm4082_vm7, %v4108_v49, %v4110_v33  ;;  %v4303_v62 = vsel %vm4274_vm8, %v4300_v21, %v4302_v7  ;;  %v8589_v5 = vunpack.i.l.bf16 %v8588_v11  ;;  %7615 = vmatprep.mubr.msk.f32.mxu1 %vm3308_vm5, %v3526_v60  ;;  %v11811_v18 = vsel %vm3725_vm3, %v13975_v36, %v4493_v1 }
 0x3a8   : > { %v4239_v4 = vmax.f32 %v11763_v39, %v4111_v17  ;;  %v3870_v54 = vpop.f32.mrf.mxu1  ;;  %v2662_v21 = vmax.f32 %v11229_v63, %v2401_v32  ;;  %v8590_v56 = vunpack.i.h.bf16 %v8588_v11  ;;  %v13977_v60 = vmax.f32 %v13976_v35, 0.0 }
 0x3a9   : > { %v4112_v50 = vrot.slane %v3870_v54, 1  ;;  %v4304_v27 = vrot.slane %v3870_v54, 2  ;;  %v4495_v49 = vrot.slane %v3870_v54, 3  ;;  %v3345_v48 = vsel %vm3308_vm5, %v8589_v5, %v3263_v53  ;;  %v3267_v40 = vpop.permute.xlu1 %3266 }
 0x3aa   : > { %v3872_v24 = vpop.f32.mrf.mxu1  ;;  %v11815_v17 = vmax.f32 %v4239_v4, %v4303_v62  ;;  %v2661_v20 = vmax.f32 %v13977_v60, %v2480_v23  ;;  %v2834_v51 = vpop.permute.xlu0 %2833  ;;  %v3525_v6 = vmax.f32 %v3092_v12, %v3345_v48  ;;  %v3346_v35 = vsel %vm3308_vm5, %v8590_v56, %v3267_v40 }
 0x3ab   : > { %v4113_v39 = vsel %vm4082_vm7, %v4110_v33, %v4112_v50  ;;  %v4305_v36 = vsel %vm4274_vm8, %v4302_v7, %v4304_v27  ;;  %v2913_v45 = vsel %vm2875_vm6, %v8585_v59, %v2834_v51  ;;  %v3095_v63 = vmax.f32 %v2662_v21, %v2834_v51 }
 0x3ac   : > { %v4240_v26 = vmax.f32 %v3865_v31, %v4113_v39  ;;  %v11823_v32 = vsel %vm3725_vm3, %v4493_v1, %v4495_v49  ;;  %v3094_v53 = vmax.f32 %v2661_v20, %v2913_v45  ;;  %3974 = vmatmul.mubr.f32.gmra.mxu1 %v3525_v6  ;;  %v8594_v48 = vunpack.i.l.bf16 %v11799_v29 }
 0x3ad   : > { %v3528_v11 = vmax.f32 %v3095_v63, %v3267_v40  ;;  %v2838_v33 = vpop.permute.xlu1 %2837 }
 0x3ae   : > { %v11828_v23 = vmax.f32 %v4240_v26, %v4305_v36  ;;  %v3527_v7 = vmax.f32 %v3094_v53, %v3346_v35  ;;  %v2405_v4 = vpop.permute.xlu0 %2404 }
 0x3af   : > { %7616 = vmatprep.mubr.msk.f32.mxu1 %vm3308_vm5, %v3528_v11  ;;  %v2481_v39 = vsel %vm2442_vm4, %v8594_v48, %v2405_v4  ;;  %v2664_v36 = vmax.f32 %v11301_v47, %v2405_v4  ;;  %v13978_v47 = vmax.f32 %v11275_v57, 0.0 }
 0x3b0   : > { %v3875_v31 = vpop.f32.mrf.mxu1  ;;  %3979 = vmatmul.mubr.f32.gmra.mxu1 %v3527_v7 }
 0x3b1   : > { %v4114_v59 = vrot.slane %v3875_v31, 1  ;;  %v4306_v20 = vrot.slane %v3875_v31, 2  ;;  %v4497_v45 = vrot.slane %v3875_v31, 3  ;;  %v8603_v5 = vpop.permute.xlu1 %8602  ;;  %v2663_v7 = vmax.f32 %v13978_v47, %v2481_v39 }
 0x3b2   : > { %v3877_v12 = vpop.f32.mrf.mxu1  ;;  %v8598_v26 = vpop.permute.xlu0 %8597  ;;  %v8604_v48 = vunpack.i.l.bf16 %v8603_v5 }
 0x3b3   : > { %v4115_v21 = vsel %vm4082_vm7, %v4112_v50, %v4114_v59  ;;  %v4307_v56 = vsel %vm4274_vm8, %v4304_v27, %v4306_v20  ;;  %v8599_v24 = vunpack.i.l.bf16 %v8598_v26  ;;  %v11837_v60 = vsel %vm3725_vm3, %v4495_v49, %v4497_v45 }
 0x3b4   : > { %v4241_v40 = vmax.f32 %v3870_v54, %v4115_v21  ;;  %v8600_v11 = vunpack.i.h.bf16 %v8598_v26 }
 0x3b5   : > { %v2842_v51 = vpop.permute.xlu1 %2841  ;;  %v11841_v6 = vpop.f32.mrf.mxu1  ;;  %v2914_v49 = vsel %vm2875_vm6, %v8599_v24, %v2838_v33  ;;  %v3097_v24 = vmax.f32 %v2664_v36, %v2838_v33  ;;  %v13981_v33 = vmax.f32 %v11237_v37, 0.0 }
 0x3b6   : > { %v11843_v63 = vmax.f32 %v4241_v40, %v4307_v56  ;;  %v4116_v50 = vrot.slane %v11841_v6, 1  ;;  %v4308_v27 = vrot.slane %v11841_v6, 2  ;;  %v13779_v53 = vrot.slane %v11841_v6, 3  ;;  %v2409_v54 = vpop.permute.xlu0 %2408 }
 0x3b7   : > { %v3882_v35 = vpop.f32.mrf.mxu1  ;;  %v8595_v56 = vunpack.i.h.bf16 %v11799_v29  ;;  %v3096_v1 = vmax.f32 %v2663_v7, %v2914_v49  ;;  %v8605_v49 = vunpack.i.h.bf16 %v8603_v5 }
 0x3b8   : > { %v4117_v4 = vsel %vm4082_vm7, %v4114_v59, %v4116_v50  ;;  %v4309_v12 = vsel %vm4274_vm8, %v4306_v20, %v4308_v27  ;;  %v11858_v21 = vsel %vm3725_vm3, %v4497_v45, %v13779_v53  ;;  %v2666_v45 = vmax.f32 %v11333_v38, %v2409_v54 }
 0x3b9   : > { %13979 = vst [vmem:[#allocation4_spill] sm:$0xff] %v11858_v21  ;;  %v2413_v40 = vpop.permute.xlu1 %2412  ;;  %v4242_v35 = vmax.f32 %v3875_v31, %v4117_v4  ;;  %v2482_v57 = vsel %vm2442_vm4, %v8595_v56, %v2409_v54 }
 0x3ba   : > { %v3271_v62 = vpop.permute.xlu0 %3270  ;;  %v2665_v31 = vmax.f32 %v13981_v33, %v2482_v57  ;;  %v3099_v4 = vmax.f32 %v2666_v45, %v2842_v51 }
 0x3bb   : > { %v3347_v39 = vsel %vm3308_vm5, %v8604_v48, %v3271_v62  ;;  %v3530_v59 = vmax.f32 %v3097_v24, %v3271_v62  ;;  %v11863_v47 = vmax.f32 %v4242_v35, %v4309_v12  ;;  %v2915_v62 = vsel %vm2875_vm6, %v8600_v11, %v2842_v51 }
 0x3bc   : > { %v3529_v20 = vmax.f32 %v3096_v1, %v3347_v39  ;;  %v3098_v26 = vmax.f32 %v2665_v31, %v2915_v62  ;;  %v2668_v48 = vmax.f32 %v11417_v0, %v2413_v40  ;;  %v13982_v62 = vmax.f32 %v11343_v25, 0.0 }
 0x3bd   : > { %13980 = vst [vmem:[#allocation29_spill] sm:$0xff] %v11863_v47  ;;  %v8613_v53 = vpop.permute.xlu1 %8612  ;;  %7617 = vmatprep.mubr.msk.f32.mxu1 %vm3308_vm5, %v3530_v59 }
 0x3be   : > { %v8608_v36 = vpop.permute.xlu0 %8607  ;;  %3984 = vmatmul.mubr.f32.gmra.mxu1 %v3529_v20  ;;  %v8614_v35 = vunpack.i.l.bf16 %v8613_v53 }
 0x3bf   : > { %v8609_v12 = vunpack.i.l.bf16 %v8608_v36  ;;  %v8610_v5 = vunpack.i.h.bf16 %v8608_v36 }
 0x3c1   : > { %v2417_v7 = vpop.permute.xlu1 %2416  ;;  %v2483_v11 = vsel %vm2442_vm4, %v8609_v12, %v2413_v40 }
 0x3c2   : > { %v3275_v1 = vpop.permute.xlu0 %3274 }
 0x3c3   : > { %v3348_v38 = vsel %vm3308_vm5, %v8605_v49, %v3275_v1  ;;  %v3532_v54 = vmax.f32 %v3099_v4, %v3275_v1  ;;  %v8615_v49 = vunpack.i.h.bf16 %v8613_v53  ;;  %v2667_v4 = vmax.f32 %v13982_v62, %v2483_v11 }
 0x3c4   : > { %v3531_v56 = vmax.f32 %v3098_v26, %v3348_v38  ;;  %v2484_v26 = vsel %vm2442_vm4, %v8610_v5, %v2417_v7 }
 0x3c5   : > { %v3279_v24 = vpop.permute.xlu1 %3278  ;;  %7618 = vmatprep.mubr.msk.f32.mxu1 %vm3308_vm5, %v3532_v54 }
 0x3c6   : > { %v2846_v37 = vpop.permute.xlu0 %2845  ;;  %3989 = vmatmul.mubr.f32.gmra.mxu1 %v3531_v56  ;;  %v13983_v56 = vrot.slane %v11841_v6, 3 }
 0x3c7   : > { %v3101_v57 = vmax.f32 %v2668_v48, %v2846_v37  ;;  %v2916_v45 = vsel %vm2875_vm6, %v8614_v35, %v2846_v37 }
 0x3c8   : > { %v3885_v51 = vpop.f32.mrf.mxu1  ;;  %v3100_v25 = vmax.f32 %v2667_v4, %v2916_v45 }
 0x3c9   : > { %v4118_v39 = vrot.slane %v3885_v51, 1  ;;  %v4310_v59 = vrot.slane %v3885_v51, 2  ;;  %v4501_v20 = vrot.slane %v3885_v51, 3  ;;  %v3534_v33 = vmax.f32 %v3101_v57, %v3279_v24  ;;  %v11877_v31 = vpop.permute.xlu1 %8622 }
 0x3ca   : > { %v3887_v0 = vpop.f32.mrf.mxu1  ;;  %v8618_v1 = vpop.permute.xlu0 %8617 }
 0x3cb   : > { %v4119_v36 = vsel %vm4082_vm7, %v4116_v50, %v4118_v39  ;;  %v4311_v40 = vsel %vm4274_vm8, %v4308_v27, %v4310_v59  ;;  %v8619_v12 = vunpack.i.l.bf16 %v8618_v1  ;;  %7619 = vmatprep.mubr.msk.f32.mxu1 %vm3308_vm5, %v3534_v33  ;;  %v11889_v53 = vsel %vm3725_vm3, %v13983_v56, %v4501_v20  ;;  %v13986_v33 = vld [vmem:[#allocation15_spill] sm:$0xff] }
 0x3cc   : > { %v3890_v38 = vpop.f32.mrf.mxu1  ;;  %v4243_v54 = vmax.f32 %v11841_v6, %v4119_v36  ;;  %13984 = vst [vmem:[#allocation28_spill] sm:$0xff] %v11889_v53  ;;  %v2670_v50 = vmax.f32 %v11420_v19, %v2417_v7  ;;  %v8620_v27 = vunpack.i.h.bf16 %v8618_v1  ;;  %v13987_v62 = vmax.f32 %v13986_v33, 0.0 }
 0x3cd   : > { %v4120_v48 = vrot.slane %v3890_v38, 1  ;;  %v4312_v37 = vrot.slane %v3890_v38, 2  ;;  %v4503_v35 = vrot.slane %v3890_v38, 3  ;;  %v3349_v5 = vsel %vm3308_vm5, %v8619_v12, %v3279_v24  ;;  %v3283_v11 = vpop.permute.xlu1 %3282 }
 0x3ce   : > { %v3892_v57 = vpop.f32.mrf.mxu1  ;;  %v11893_v0 = vmax.f32 %v4243_v54, %v4311_v40  ;;  %v2669_v36 = vmax.f32 %v13987_v62, %v2484_v26  ;;  %v2850_v6 = vpop.permute.xlu0 %2849  ;;  %v3533_v29 = vmax.f32 %v3100_v25, %v3349_v5  ;;  %v3350_v40 = vsel %vm3308_vm5, %v8620_v27, %v3283_v11 }
 0x3cf   : > { %v4121_v56 = vsel %vm4082_vm7, %v4118_v39, %v4120_v48  ;;  %v4313_v45 = vsel %vm4274_vm8, %v4310_v59, %v4312_v37  ;;  %v2917_v4 = vsel %vm2875_vm6, %v8615_v49, %v2850_v6  ;;  %v3103_v21 = vmax.f32 %v2670_v50, %v2850_v6 }
 0x3d0   : > { %13985 = vst [vmem:[#allocation22_spill] sm:$0xff] %v11893_v0  ;;  %v4244_v19 = vmax.f32 %v3885_v51, %v4121_v56  ;;  %v11901_v7 = vsel %vm3725_vm3, %v4501_v20, %v4503_v35  ;;  %v3102_v24 = vmax.f32 %v2669_v36, %v2917_v4  ;;  %3994 = vmatmul.mubr.f32.gmra.mxu1 %v3533_v29 }
 0x3d1   : > { %13988 = vst [vmem:[#allocation5_spill] sm:$0xff] %v11901_v7  ;;  %v3536_v26 = vmax.f32 %v3103_v21, %v3283_v11  ;;  %v2854_v12 = vpop.permute.xlu1 %2853  ;;  %v8624_v11 = vunpack.i.l.bf16 %v11877_v31 }
 0x3d2   : > { %v11906_v54 = vmax.f32 %v4244_v19, %v4313_v45  ;;  %v3535_v39 = vmax.f32 %v3102_v24, %v3350_v40  ;;  %v2421_v59 = vpop.permute.xlu0 %2420 }
 0x3d3   : > { %7620 = vmatprep.mubr.msk.f32.mxu1 %vm3308_vm5, %v3536_v26  ;;  %v2485_v6 = vsel %vm2442_vm4, %v8624_v11, %v2421_v59  ;;  %v2672_v56 = vmax.f32 %v11505_v44, %v2421_v59  ;;  %v13992_v44 = vmax.f32 %v11484_v22, 0.0 }
 0x3d4   : > { %13989 = vst [vmem:[#allocation2_spill] sm:$0xff] %v11906_v54  ;;  %v3895_v25 = vpop.f32.mrf.mxu1  ;;  %3999 = vmatmul.mubr.f32.gmra.mxu1 %v3535_v39 }
 0x3d5   : > { %v4122_v20 = vrot.slane %v3895_v25, 1  ;;  %v4314_v49 = vrot.slane %v3895_v25, 2  ;;  %v4505_v29 = vrot.slane %v3895_v25, 3  ;;  %v8633_v50 = vpop.permute.xlu1 %8632  ;;  %v2671_v39 = vmax.f32 %v13992_v44, %v2485_v6 }
 0x3d6   : > { %v3897_v5 = vpop.f32.mrf.mxu1  ;;  %v8628_v57 = vpop.permute.xlu0 %8627  ;;  %v8634_v11 = vunpack.i.l.bf16 %v8633_v50 }
 0x3d7   : > { %v4123_v21 = vsel %vm4082_vm7, %v4120_v48, %v4122_v20  ;;  %v4315_v27 = vsel %vm4274_vm8, %v4312_v37, %v4314_v49  ;;  %v8629_v33 = vunpack.i.l.bf16 %v8628_v57  ;;  %v11915_v36 = vsel %vm3725_vm3, %v4503_v35, %v4505_v29 }
 0x3d8   : > { %v4245_v62 = vmax.f32 %v3890_v38, %v4123_v21  ;;  %13990 = vst [vmem:[#allocation27_spill] sm:$0xff] %v11915_v36  ;;  %v8630_v26 = vunpack.i.h.bf16 %v8628_v57 }
 0x3d9   : > { %v2858_v45 = vpop.permute.xlu1 %2857  ;;  %v11919_v4 = vpop.f32.mrf.mxu1  ;;  %v2918_v35 = vsel %vm2875_vm6, %v8629_v33, %v2854_v12  ;;  %v3105_v33 = vmax.f32 %v2672_v56, %v2854_v12  ;;  %v13995_v12 = vmax.f32 %v11423_v34, 0.0 }
 0x3da   : > { %v11921_v19 = vmax.f32 %v4245_v62, %v4315_v27  ;;  %v4124_v48 = vrot.slane %v11919_v4, 1  ;;  %v4316_v37 = vrot.slane %v11919_v4, 2  ;;  %v13781_v24 = vrot.slane %v11919_v4, 3  ;;  %v2425_v40 = vpop.permute.xlu0 %2424 }
 0x3db   : > { %v3902_v38 = vpop.f32.mrf.mxu1  ;;  %v8625_v27 = vunpack.i.h.bf16 %v11877_v31  ;;  %v3104_v51 = vmax.f32 %v2671_v39, %v2918_v35  ;;  %v8635_v35 = vunpack.i.h.bf16 %v8633_v50 }
 0x3dc   : > { %13991 = vst [vmem:[#allocation18_spill] sm:$0xff] %v11921_v19  ;;  %v4125_v59 = vsel %vm4082_vm7, %v4122_v20, %v4124_v48  ;;  %v4317_v5 = vsel %vm4274_vm8, %v4314_v49, %v4316_v37  ;;  %v11936_v21 = vsel %vm3725_vm3, %v4505_v29, %v13781_v24  ;;  %v2674_v29 = vmax.f32 %v11528_v15, %v2425_v40 }
 0x3dd   : > { %13993 = vst [vmem:[#allocation33_spill] sm:$0xff] %v11936_v21  ;;  %v2429_v62 = vpop.permute.xlu1 %2428  ;;  %v4246_v38 = vmax.f32 %v3895_v25, %v4125_v59  ;;  %v2486_v22 = vsel %vm2442_vm4, %v8625_v27, %v2425_v40 }
 0x3de   : > { %v3287_v1 = vpop.permute.xlu0 %3286  ;;  %v2673_v25 = vmax.f32 %v13995_v12, %v2486_v22  ;;  %v3107_v59 = vmax.f32 %v2674_v29, %v2858_v45 }
 0x3df   : > { %v3351_v6 = vsel %vm3308_vm5, %v8634_v11, %v3287_v1  ;;  %v3538_v20 = vmax.f32 %v3105_v33, %v3287_v1  ;;  %v11941_v44 = vmax.f32 %v4246_v38, %v4317_v5  ;;  %v2919_v1 = vsel %vm2875_vm6, %v8630_v26, %v2858_v45 }
 0x3e0   : > { %v3537_v49 = vmax.f32 %v3104_v51, %v3351_v6  ;;  %v3106_v57 = vmax.f32 %v2673_v25, %v2919_v1  ;;  %v2676_v11 = vmax.f32 %v11592_v14, %v2429_v62  ;;  %v13996_v1 = vmax.f32 %v11534_v55, 0.0 }
 0x3e1   : > { %13994 = vst [vmem:[#allocation34_spill] sm:$0xff] %v11941_v44  ;;  %v8643_v24 = vpop.permute.xlu1 %8642  ;;  %7621 = vmatprep.mubr.msk.f32.mxu1 %vm3308_vm5, %v3538_v20 }
 0x3e2   : > { %v8638_v56 = vpop.permute.xlu0 %8637  ;;  %4004 = vmatmul.mubr.f32.gmra.mxu1 %v3537_v49  ;;  %v8644_v38 = vunpack.i.l.bf16 %v8643_v24 }
 0x3e3   : > { %v8639_v5 = vunpack.i.l.bf16 %v8638_v56  ;;  %v8640_v50 = vunpack.i.h.bf16 %v8638_v56 }
 0x3e5   : > { %v2433_v39 = vpop.permute.xlu1 %2432  ;;  %v2487_v26 = vsel %vm2442_vm4, %v8639_v5, %v2429_v62 }
 0x3e6   : > { %v3291_v51 = vpop.permute.xlu0 %3290 }
 0x3e7   : > { %v3352_v15 = vsel %vm3308_vm5, %v8635_v35, %v3291_v51  ;;  %v3540_v40 = vmax.f32 %v3107_v59, %v3291_v51  ;;  %v8645_v35 = vunpack.i.h.bf16 %v8643_v24  ;;  %v2675_v59 = vmax.f32 %v13996_v1, %v2487_v26 }
 0x3e8   : > { %v3539_v27 = vmax.f32 %v3106_v57, %v3352_v15  ;;  %v2488_v57 = vsel %vm2442_vm4, %v8640_v50, %v2433_v39 }
 0x3e9   : > { %7622 = vmatprep.mubr.msk.f32.mxu1 %vm3308_vm5, %v3540_v40 }
 0x3ea   : > { %v3295_v33 = vpop.permute.xlu1 %3294  ;;  %v2862_v34 = vpop.permute.xlu0 %2861  ;;  %4009 = vmatmul.mubr.f32.gmra.mxu1 %v3539_v27  ;;  %v13997_v27 = vrot.slane %v11919_v4, 3 }
 0x3eb   : > { %v3109_v22 = vmax.f32 %v2676_v11, %v2862_v34  ;;  %v2920_v29 = vsel %vm2875_vm6, %v8644_v38, %v2862_v34 }
 0x3ec   : > { %v3905_v45 = vpop.f32.mrf.mxu1  ;;  %v3108_v55 = vmax.f32 %v2675_v59, %v2920_v29 }
 0x3ed   : > { %v4126_v6 = vrot.slane %v3905_v45, 1  ;;  %v4318_v20 = vrot.slane %v3905_v45, 2  ;;  %v4509_v49 = vrot.slane %v3905_v45, 3  ;;  %v3542_v12 = vmax.f32 %v3109_v22, %v3295_v33 }
 0x3ee   : > { %v11955_v25 = vpop.permute.xlu1 %8652  ;;  %v3907_v14 = vpop.f32.mrf.mxu1 }
 0x3ef   : > { %v8648_v51 = vpop.permute.xlu0 %8647  ;;  %v4127_v56 = vsel %vm4082_vm7, %v4124_v48, %v4126_v6  ;;  %v4319_v62 = vsel %vm4274_vm8, %v4316_v37, %v4318_v20  ;;  %7623 = vmatprep.mubr.msk.f32.mxu1 %vm3308_vm5, %v3542_v12  ;;  %v11967_v24 = vsel %vm3725_vm3, %v13997_v27, %v4509_v49  ;;  %v2678_v48 = vmax.f32 %v11620_v13, %v2433_v39 }
 0x3f0   : > { %v8649_v5 = vunpack.i.l.bf16 %v8648_v51  ;;  %v3910_v15 = vpop.f32.mrf.mxu1  ;;  %v4247_v40 = vmax.f32 %v11919_v4, %v4127_v56  ;;  %13998 = vst [vmem:[#allocation19_spill] sm:$0xff] %v11967_v24  ;;  %v8650_v37 = vunpack.i.h.bf16 %v8648_v51  ;;  %v13999_v12 = vmax.f32 %v11524_v46, 0.0 }
 0x3f1   : > { %v4128_v11 = vrot.slane %v3910_v15, 1  ;;  %v4320_v34 = vrot.slane %v3910_v15, 2  ;;  %v4511_v38 = vrot.slane %v3910_v15, 3 }
 0x3f2   : > { %v3353_v50 = vsel %vm3308_vm5, %v8649_v5, %v3295_v33  ;;  %v3299_v26 = vpop.permute.xlu1 %3298  ;;  %v3912_v22 = vpop.f32.mrf.mxu1  ;;  %v11971_v14 = vmax.f32 %v4247_v40, %v4319_v62  ;;  %v2677_v1 = vmax.f32 %v13999_v12, %v2488_v57  ;;  %v8654_v12 = vunpack.i.l.bf16 %v11955_v25 }
 0x3f3   : > { %v2866_v4 = vpop.permute.xlu0 %2865  ;;  %v3541_v56 = vmax.f32 %v3108_v55, %v3353_v50  ;;  %v4129_v27 = vsel %vm4082_vm7, %v4126_v6, %v4128_v11  ;;  %v4321_v29 = vsel %vm4274_vm8, %v4318_v20, %v4320_v34  ;;  %v11979_v39 = vsel %vm3725_vm3, %v4509_v49, %v4511_v38 }
 0x3f4   : > { %v2921_v59 = vsel %vm2875_vm6, %v8645_v35, %v2866_v4  ;;  %v3111_v31 = vmax.f32 %v2678_v48, %v2866_v4  ;;  %v4248_v13 = vmax.f32 %v3905_v45, %v4129_v27  ;;  %v3354_v46 = vsel %vm3308_vm5, %v8650_v37, %v3299_v26 }
 0x3f5   : > { %v3110_v33 = vmax.f32 %v2677_v1, %v2921_v59  ;;  %4014 = vmatmul.mubr.f32.gmra.mxu1 %v3541_v56  ;;  %v8655_v56 = vunpack.i.h.bf16 %v11955_v25 }
 0x3f6   : > { %v3544_v62 = vmax.f32 %v3111_v31, %v3299_v26  ;;  %v2870_v57 = vpop.permute.xlu1 %2869  ;;  %v11984_v5 = vmax.f32 %v4248_v13, %v4321_v29 }
 0x3f7   : > { %v3543_v6 = vmax.f32 %v3110_v33, %v3354_v46  ;;  %v2437_v20 = vpop.permute.xlu0 %2436 }
 0x3f8   : > { %v3915_v40 = vpop.f32.mrf.mxu1  ;;  %7624 = vmatprep.mubr.msk.f32.mxu1 %vm3308_vm5, %v3544_v62  ;;  %v2489_v27 = vsel %vm2442_vm4, %v8654_v12, %v2437_v20  ;;  %v2680_v29 = vmax.f32 %v11676_v58, %v2437_v20 }
 0x3f9   : > { %v4130_v49 = vrot.slane %v3915_v40, 1  ;;  %v4322_v35 = vrot.slane %v3915_v40, 2  ;;  %v4513_v55 = vrot.slane %v3915_v40, 3  ;;  %4019 = vmatmul.mubr.f32.gmra.mxu1 %v3543_v6  ;;  %v2679_v58 = vmax.f32 %v11672_v61, %v2489_v27 }
 0x3fa   : > { %v3301_v48 = vpop.permute.xlu1 %3300  ;;  %v3917_v50 = vpop.f32.mrf.mxu1 }
 0x3fb   : > { %v8658_v22 = vpop.permute.xlu0 %8657  ;;  %v4131_v31 = vsel %vm4082_vm7, %v4128_v11, %v4130_v49  ;;  %v4323_v37 = vsel %vm4274_vm8, %v4320_v34, %v4322_v35  ;;  %v11992_v26 = vsel %vm3725_vm3, %v4511_v38, %v4513_v55 }
 0x3fc   : > { %v8659_v1 = vunpack.i.l.bf16 %v8658_v22  ;;  %v4249_v4 = vmax.f32 %v3910_v15, %v4131_v31  ;;  %v8660_v12 = vunpack.i.h.bf16 %v8658_v22 }
 0x3fd   : > { %v3920_v13 = vpop.f32.mrf.mxu1 }
 0x3fe   : > { %v2874_v59 = vpop.permute.xlu1 %2873  ;;  %v11998_v33 = vmax.f32 %v4249_v4, %v4323_v37  ;;  %v4132_v11 = vrot.slane %v3920_v13, 1  ;;  %v4324_v46 = vrot.slane %v3920_v13, 2  ;;  %v4515_v34 = vrot.slane %v3920_v13, 3 }
 0x3ff   : > { %v2441_v62 = vpop.permute.xlu0 %2440  ;;  %v3922_v50 = vpop.f32.mrf.mxu1  ;;  %v2922_v15 = vsel %vm2875_vm6, %v8659_v1, %v2870_v57 }
 0x400   : > { %v2490_v38 = vsel %vm2442_vm4, %v8655_v56, %v2441_v62  ;;  %v2682_v6 = vmax.f32 %v11697_v41, %v2441_v62  ;;  %v4133_v20 = vsel %vm4082_vm7, %v4130_v49, %v4132_v11  ;;  %v4325_v31 = vsel %vm4274_vm8, %v4322_v35, %v4324_v46 }
 0x401   : > { %v12009_v37 = vsel %vm3725_vm3, %v4513_v55, %v4515_v34  ;;  %v3113_v56 = vmax.f32 %v2680_v29, %v2870_v57  ;;  %v4250_v51 = vmax.f32 %v3915_v40, %v4133_v20  ;;  %v2681_v41 = vmax.f32 %v11659_v30, %v2490_v38 }
 0x402   : > { %v3115_v4 = vmax.f32 %v2682_v6, %v2874_v59  ;;  %v3307_v62 = vpop.permute.xlu1 %3306  ;;  %v3112_v50 = vmax.f32 %v2679_v58, %v2922_v15  ;;  %v2923_v35 = vsel %vm2875_vm6, %v8660_v12, %v2874_v59 }
 0x403   : > { %v3303_v1 = vpop.permute.xlu0 %3302  ;;  %v12013_v61 = vmax.f32 %v4250_v51, %v4325_v31  ;;  %v3114_v55 = vmax.f32 %v2681_v41, %v2923_v35 }
 0x404   : > { %v3355_v45 = vsel %vm3308_vm5, %v3301_v48, %v3303_v1  ;;  %v3546_v25 = vmax.f32 %v3113_v56, %v3303_v1  ;;  %v3548_v27 = vmax.f32 %v3115_v4, %v3307_v62 }
 0x405   : > { %v3545_v49 = vmax.f32 %v3112_v50, %v3355_v45 }
 0x406   : > { %7625 = vmatprep.mubr.msk.f32.mxu1 %vm3308_vm5, %v3546_v25 }
 0x407   : > { %v3305_v40 = vpop.permute.xlu0 %3304  ;;  %4024 = vmatmul.mubr.f32.gmra.mxu1 %v3545_v49 }
 0x408   : > { %v3356_v30 = vsel %vm3308_vm5, %v3305_v40, %v3307_v62  ;;  %7626 = vmatprep.mubr.msk.f32.mxu1 %vm3308_vm5, %v3548_v27 }
 0x409   : > { %v3547_v48 = vmax.f32 %v3114_v55, %v3356_v30  ;;  %v4658_v30 = vld [vmem:[%s13639_s4 + $0x8] sm:$0xff] }
 0x40a   : > { %4796 = vmatprep.mubr.f32.mxu0 %v4658_v30 }
 0x40b   : > { %4029 = vmatmul.mubr.f32.gmra.mxu1 %v3547_v48 }
 0x411   : > { %v3925_v51 = vpop.f32.mrf.mxu1 }
 0x412   : > { %v4134_v22 = vrot.slane %v3925_v51, 1  ;;  %v4326_v45 = vrot.slane %v3925_v51, 2  ;;  %v4517_v29 = vrot.slane %v3925_v51, 3 }
 0x413   : > { %v3927_v59 = vpop.f32.mrf.mxu1 }
 0x414   : > { %v4135_v38 = vsel %vm4082_vm7, %v4132_v11, %v4134_v22  ;;  %v4327_v6 = vsel %vm4274_vm8, %v4324_v46, %v4326_v45  ;;  %v12024_v15 = vsel %vm3725_vm3, %v4515_v34, %v4517_v29 }
 0x415   : > { %v12026_v25 = vpop.f32.mrf.mxu1  ;;  %v4251_v58 = vmax.f32 %v3920_v13, %v4135_v38 }
 0x416   : > { %v4136_v20 = vrot.slane %v12026_v25, 1  ;;  %v13783_v31 = vrot.slane %v12026_v25, 2  ;;  %v13782_v12 = vrot.slane %v12026_v25, 3 }
 0x417   : > { %v3932_v4 = vpop.f32.mrf.mxu1  ;;  %v12031_v56 = vmax.f32 %v4251_v58, %v4327_v6 }
 0x418   : > { %v4137_v41 = vsel %vm4082_vm7, %v4134_v22, %v4136_v20  ;;  %v12037_v11 = vsel %vm3725_vm3, %v4517_v29, %v13782_v12  ;;  %v4329_v34 = vsel %vm4274_vm8, %v4326_v45, %v13783_v31 }
 0x419   : > { %v4252_v46 = vmax.f32 %v3925_v51, %v4137_v41 }
 0x41b   : > { %v12044_v62 = vmax.f32 %v4252_v46, %v4329_v34 }
 0x41c   : > { %v12046_v1 = vpop.f32.mrf.mxu1 }
 0x41d   : > { %v4138_v59 = vrot.slane %v12046_v1, 1 }
 0x41e   : > { %v3937_v49 = vpop.f32.mrf.mxu1 }
 0x41f   : > { %v4330_v49 = vrot.slane %v12046_v1, 2 }
 0x425   : > { %v12050_v35 = vpop.f32.mrf.mxu1 }
 0x426   : > { %v4140_v45 = vrot.slane %v12050_v35, 1  ;;  %v4332_v57 = vrot.slane %v12050_v35, 2 }
 0x427   : > { %v3942_v27 = vpop.f32.mrf.mxu1 }
 0x428   : > { %v4141_v4 = vsel %vm4082_vm7, %v4138_v59, %v4140_v45 }
 0x429   : > { %v4254_v12 = vmax.f32 %v12046_v1, %v4141_v4 }
 0x437   : > { %v3945_v40 = vpop.f32.mrf.mxu1 }
 0x438   : > { %v4142_v29 = vrot.slane %v3945_v40, 1  ;;  %v4334_v27 = vrot.slane %v3945_v40, 2 }
 0x439   : > { %v3947_v55 = vpop.f32.mrf.mxu1 }
 0x43a   : > { %v4143_v34 = vsel %vm4082_vm7, %v4140_v45, %v4142_v29 }
 0x43b   : > { %v4255_v45 = vmax.f32 %v12050_v35, %v4143_v34 }
 0x43e   : > { %v3950_v48 = vpop.f32.mrf.mxu1 }
 0x43f   : > { %v4144_v22 = vrot.slane %v3950_v48, 1  ;;  %v4336_v6 = vrot.slane %v3950_v48, 2  ;;  %v4527_v31 = vrot.slane %v3950_v48, 3 }
 0x440   : > { %v3952_v51 = vpop.f32.mrf.mxu1 }
 0x441   : > { %v4145_v38 = vsel %vm4082_vm7, %v4142_v29, %v4144_v22  ;;  %v4139_v51 = vsel %vm4082_vm7, %v4136_v20, %v4138_v59  ;;  %v4337_v0 = vsel %vm4274_vm8, %v4334_v27, %v4336_v6  ;;  %v4525_v20 = vrot.slane %v3945_v40, 3 }
 0x442   : > { %v4256_v30 = vmax.f32 %v3945_v40, %v4145_v38  ;;  %v4253_v44 = vmax.f32 %v12026_v25, %v4139_v51  ;;  %v4523_v40 = vrot.slane %v12050_v35, 3  ;;  %v14006_v51 = vmax.f32 %v11765_v3, %v11759_v8 }
 0x443   : > { %v14010_v3 = vmax.f32 %v11727_v42, %v11722_v43  ;;  %v14014_v42 = vld [vmem:[#allocation17_spill] sm:$0xff] }
 0x444   : > { %v4448_v36 = vmax.f32 %v4256_v30, %v4337_v0  ;;  %v4333_v0 = vsel %vm4274_vm8, %v4330_v49, %v4332_v57 }
 0x448   : > { %v3955_v58 = vpop.f32.mrf.mxu1 }
 0x449   : > { %v4146_v41 = vrot.slane %v3955_v58, 1  ;;  %v4338_v46 = vrot.slane %v3955_v58, 2  ;;  %v4529_v13 = vrot.slane %v3955_v58, 3 }
 0x44a   : > { %v3957_v55 = vpop.f32.mrf.mxu1 }
 0x44b   : > { %v4147_v50 = vsel %vm4082_vm7, %v4144_v22, %v4146_v41  ;;  %v4339_v38 = vsel %vm4274_vm8, %v4336_v6, %v4338_v46  ;;  %v4335_v22 = vsel %vm4274_vm8, %v4332_v57, %v4334_v27  ;;  %v4530_v4 = vsel %vm3725_vm3, %v4527_v31, %v4529_v13 }
 0x44c   : > { %v3960_v47 = vpop.f32.mrf.mxu1  ;;  %v4257_v53 = vmax.f32 %v3950_v48, %v4147_v50  ;;  %v4447_v21 = vmax.f32 %v4255_v45, %v4335_v22  ;;  %v4446_v27 = vmax.f32 %v4254_v12, %v4333_v0  ;;  %v14004_v12 = vrot.slane %v12026_v25, 3  ;;  %v14021_v22 = vld [vmem:[#allocation19_spill] sm:$0xff] }
 0x44d   : > { %v4148_v29 = vrot.slane %v3960_v47, 1  ;;  %v4340_v7 = vrot.slane %v3960_v47, 2  ;;  %v4531_v55 = vrot.slane %v3960_v47, 3 }
 0x44e   : > { %v3962_v59 = vpop.f32.mrf.mxu1  ;;  %v4449_v54 = vmax.f32 %v4257_v53, %v4339_v38  ;;  %v4528_v53 = vsel %vm3725_vm3, %v4525_v20, %v4527_v31  ;;  %v14009_v38 = vmax.f32 %v12031_v56, %v12024_v15 }
 0x44f   : > { %v4149_v19 = vsel %vm4082_vm7, %v4146_v41, %v4148_v29  ;;  %v4341_v50 = vsel %vm4274_vm8, %v4338_v46, %v4340_v7  ;;  %v4532_v48 = vsel %vm3725_vm3, %v4529_v13, %v4531_v55  ;;  %v4639_v6 = vmax.f32 %v4448_v36, %v4528_v53 }
 0x450   : > { %v4640_v34 = vmax.f32 %v4449_v54, %v4530_v4  ;;  %v4258_v24 = vmax.f32 %v3955_v58, %v4149_v19  ;;  %v4521_v41 = vrot.slane %v12046_v1, 3  ;;  %v14000_v13 = vmax.f32 %v11843_v63, %v11837_v60 }
 0x451   : > { %v4526_v54 = vsel %vm3725_vm3, %v4523_v40, %v4525_v20  ;;  %v14001_v19 = vrot.slane %v12026_v25, 2  ;;  %v14002_v36 = vmax.f32 %v11828_v23, %v11823_v32  ;;  %v14003_v63 = vmax.f32 %v11815_v17, %v11811_v18 }
 0x452   : > { %7836 = vmatprep.subr.mxu0 %v4640_v34  ;;  %v4450_v30 = vmax.f32 %v4258_v24, %v4341_v50  ;;  %v4638_v31 = vmax.f32 %v4447_v21, %v4526_v54  ;;  %v4524_v24 = vsel %vm3725_vm3, %v4521_v41, %v4523_v40  ;;  %v4522_v1 = vsel %vm3725_vm3, %v14004_v12, %v4521_v41  ;;  %v14024_v34 = vld [vmem:[#allocation40_spill] sm:$0xff]  ;;  %v14032_v41 = vld [vmem:[#allocation18_spill] sm:$0xff] }
 0x453   : > { %7837 = vmatpush3.msra.mxu0 %v14000_v13  ;;  %v4331_v35 = vsel %vm4274_vm8, %v14001_v19, %v4330_v49  ;;  %v4637_v60 = vmax.f32 %v4446_v27, %v4524_v24  ;;  %v14007_v17 = vmax.f32 %v12044_v62, %v12037_v11  ;;  %v14008_v25 = vmax.f32 %v11744_v9, %v11739_v10  ;;  %v14030_v27 = vld [vmem:[#allocation37_spill] sm:$0xff]  ;;  %v14033_v13 = vld [vmem:[#allocation27_spill] sm:$0xff]  ;;  %v14035_v19 = vld [vmem:[#allocation24_spill] sm:$0xff] }
 0x454   : > { %7838 = vmatprep.subr.mxu0 %v4639_v6  ;;  %v4445_v58 = vmax.f32 %v4253_v44, %v4331_v35  ;;  %v12085_v57 = vmax.f32 %v4450_v30, %v4532_v48  ;;  %v14005_v44 = vmax.f32 %v11785_v52, %v11780_v16  ;;  %v14011_v11 = vmax.f32 %v12013_v61, %v12009_v37  ;;  %v14023_v48 = vld [vmem:[#allocation11_spill] sm:$0xff]  ;;  %v14029_v6 = vld [vmem:[#allocation12_spill] sm:$0xff]  ;;  %v14039_v24 = vld [vmem:[#allocation5_spill] sm:$0xff] }
 0x455   : > { %7839 = vmatpush3.msra.mxu0 %v14002_v36  ;;  %v14012_v9 = vmax.f32 %v11656_v28, %v11644_v2  ;;  %v14013_v62 = vmax.f32 %v11998_v33, %v11992_v26  ;;  %v14017_v61 = vmax.f32 %v11984_v5, %v11979_v39  ;;  %v14018_v2 = vld [vmem:[#allocation25_spill] sm:$0xff]  ;;  %v14019_v28 = vld [vmem:[#allocation3_spill] sm:$0xff]  ;;  %v14022_v4 = vmax.f32 %v11971_v14, %v14021_v22  ;;  %v14026_v39 = vld [vmem:[#allocation34_spill] sm:$0xff] }
 0x456   : > { %7840 = vmatprep.subr.mxu0 %v4638_v31  ;;  %v4636_v21 = vmax.f32 %v4445_v58, %v4522_v1  ;;  %v14020_v20 = vmax.f32 %v14018_v2, %v14019_v28  ;;  %v14025_v40 = vmax.f32 %v14023_v48, %v14024_v34  ;;  %v14027_v5 = vld [vmem:[#allocation33_spill] sm:$0xff]  ;;  %v14031_v30 = vmax.f32 %v14029_v6, %v14030_v27  ;;  %v14036_v35 = vld [vmem:[#allocation23_spill] sm:$0xff]  ;;  %v14038_v36 = vld [vmem:[#allocation2_spill] sm:$0xff] }
 0x457   : > { %7841 = vmatpush3.msra.mxu0 %v14003_v63  ;;  %v14028_v53 = vmax.f32 %v14026_v39, %v14027_v5  ;;  %v14034_v54 = vmax.f32 %v14032_v41, %v14033_v13  ;;  %v14037_v31 = vmax.f32 %v14035_v19, %v14036_v35  ;;  %v4660_v2 = vld [vmem:[%s13639_s4 + $0x18] sm:$0xff]  ;;  %v4666_v34 = vld [vmem:[%s13639_s4 + $0x48] sm:$0xff]  ;;  %v4669_v6 = vld [vmem:[%s13639_s4 + $0x60] sm:$0xff] }
 0x458   : > { %7842 = vmatprep.subr.mxu0 %v4637_v60  ;;  %v14040_v60 = vmax.f32 %v14038_v36, %v14039_v24  ;;  %v4672_v35 = vld [vmem:[%s13639_s4 + $0x78] sm:$0xff] }
 0x459   : > { %7843 = vmatpush3.msra.mxu0 %v14005_v44  ;;  %v14042_v44 = vld [vmem:[#allocation21_spill] sm:$0xff] }
 0x45a   : > { %v3965_v32 = vpop.f32.mrf.mxu1  ;;  %7844 = vmatprep.subr.mxu0 %v4636_v21  ;;  %v14041_v21 = vld [vmem:[#allocation10_spill] sm:$0xff] }
 0x45b   : > { %v4150_v23 = vrot.slane %v3965_v32, 1  ;;  %v4342_v46 = vrot.slane %v3965_v32, 2  ;;  %v4533_v49 = vrot.slane %v3965_v32, 3  ;;  %7845 = vmatpush3.msra.mxu0 %v14006_v51 }
 0x45c   : > { %v3967_v18 = vpop.f32.mrf.mxu1  ;;  %7846 = vmatprep.subr.mxu0 %v14007_v17  ;;  %v14048_v17 = vld [vmem:[#allocation16_spill] sm:$0xff] }
 0x45d   : > { %7847 = vmatpush3.msra.mxu0 %v14008_v25  ;;  %v4151_v16 = vsel %vm4082_vm7, %v4148_v29, %v4150_v23  ;;  %v4343_v52 = vsel %vm4274_vm8, %v4340_v7, %v4342_v46  ;;  %v4534_v45 = vsel %vm3725_vm3, %v4531_v55, %v4533_v49  ;;  %v14015_v29 = vld [vmem:[#allocation26_spill] sm:$0xff]  ;;  %v14047_v18 = vld [vmem:[#allocation20_spill] sm:$0xff] }
 0x45e   : > { %7848 = vmatprep.subr.mxu0 %v14009_v38  ;;  %v4259_v8 = vmax.f32 %v3960_v47, %v4151_v16  ;;  %v14016_v55 = vmax.f32 %v14014_v42, %v14015_v29  ;;  %v14049_v25 = vmax.f32 %v14047_v18, %v14048_v17  ;;  %v4657_v16 = vld [vmem:[%s13639_s4] sm:$0xff]  ;;  %v4682_v18 = vld [vmem:[%s13639_s4 + $0xc8] sm:$0xff] }
 0x45f   : > { %7849 = vmatpush3.msra.mxu0 %v14010_v3  ;;  %v14050_v3 = vld [vmem:[#allocation29_spill] sm:$0xff] }
 0x460   : > { %7850 = vmatprep.subr.mxu0 %v14011_v11  ;;  %v4451_v10 = vmax.f32 %v4259_v8, %v4343_v52  ;;  %v14051_v11 = vld [vmem:[#allocation4_spill] sm:$0xff] }
 0x461   : > { %7851 = vmatpush3.msra.mxu0 %v14012_v9  ;;  %v4661_v9 = vld [vmem:[%s13639_s4 + $0x20] sm:$0xff] }
 0x462   : > { %v3970_v7 = vpop.f32.mrf.mxu1  ;;  %7852 = vmatprep.subr.mxu0 %v14013_v62  ;;  %v12127_v15 = vmax.f32 %v4451_v10, %v4534_v45  ;;  %v14052_v10 = vmax.f32 %v14050_v3, %v14051_v11 }
 0x463   : > { %v4152_v47 = vrot.slane %v3970_v7, 1  ;;  %v4344_v56 = vrot.slane %v3970_v7, 2  ;;  %v4535_v43 = vrot.slane %v3970_v7, 3  ;;  %7853 = vmatpush3.msra.mxu0 %v14016_v55 }
 0x464   : > { %v3972_v37 = vpop.f32.mrf.mxu1  ;;  %7854 = vmatprep.subr.mxu0 %v14017_v61  ;;  %v14054_v61 = vld [vmem:[#allocation14_spill] sm:$0xff] }
 0x465   : > { %7855 = vmatpush3.msra.mxu0 %v14020_v20  ;;  %v4153_v26 = vsel %vm4082_vm7, %v4150_v23, %v4152_v47  ;;  %v4345_v33 = vsel %vm4274_vm8, %v4342_v46, %v4344_v56  ;;  %v4536_v59 = vsel %vm3725_vm3, %v4533_v49, %v4535_v43  ;;  %v14044_v46 = vld [vmem:[#allocation22_spill] sm:$0xff]  ;;  %v14045_v49 = vld [vmem:[#allocation28_spill] sm:$0xff] }
 0x466   : > { %7856 = vmatprep.subr.mxu0 %v14022_v4  ;;  %v4260_v50 = vmax.f32 %v3965_v32, %v4153_v26  ;;  %v14043_v32 = vmax.f32 %v14041_v21, %v14042_v44  ;;  %v14046_v51 = vmax.f32 %v14044_v46, %v14045_v49  ;;  %v14053_v37 = vld [vmem:[#allocation38_spill] sm:$0xff]  ;;  %v4664_v26 = vld [vmem:[%s13639_s4 + $0x38] sm:$0xff]  ;;  %v4663_v4 = vld [vmem:[%s13639_s4 + $0x30] sm:$0xff] }
 0x467   : > { %7857 = vmatpush3.msra.mxu0 %v14025_v40  ;;  %v4670_v40 = vld [vmem:[%s13639_s4 + $0x68] sm:$0xff]  ;;  %v4679_v44 = vld [vmem:[%s13639_s4 + $0xb0] sm:$0xff] }
 0x468   : > { %7858 = vmatprep.subr.mxu0 %v14028_v53  ;;  %v4452_v0 = vmax.f32 %v4260_v50, %v4345_v33  ;;  %v4667_v50 = vld [vmem:[%s13639_s4 + $0x50] sm:$0xff] }
 0x469   : > { %7859 = vmatpush3.msra.mxu0 %v14031_v30  ;;  %v4673_v30 = vld [vmem:[%s13639_s4 + $0x80] sm:$0xff] }
 0x46a   : > { %7860 = vmatprep.subr.mxu0 %v14034_v54  ;;  %v12156_v14 = vmax.f32 %v4452_v0, %v4536_v59 }
 0x46b   : > { %7861 = vmatpush3.msra.mxu0 %v14037_v31  ;;  %v4676_v31 = vld [vmem:[%s13639_s4 + $0x98] sm:$0xff] }
 0x46c   : > { %v3975_v58 = vpop.f32.mrf.mxu1  ;;  %7862 = vmatprep.subr.mxu0 %v14040_v60 }
 0x46d   : > { %v4154_v63 = vrot.slane %v3975_v58, 1  ;;  %v4346_v12 = vrot.slane %v3975_v58, 2  ;;  %v4537_v1 = vrot.slane %v3975_v58, 3  ;;  %7863 = vmatpush3.msra.mxu0 %v14043_v32 }
 0x46e   : > { %v3977_v23 = vpop.f32.mrf.mxu1  ;;  %7864 = vmatprep.subr.mxu0 %v14046_v51  ;;  %v4678_v51 = vld [vmem:[%s13639_s4 + $0xa8] sm:$0xff] }
 0x46f   : > { %7865 = vmatpush3.msra.mxu0 %v14049_v25  ;;  %v4155_v52 = vsel %vm4082_vm7, %v4152_v47, %v4154_v63  ;;  %v4347_v45 = vsel %vm4274_vm8, %v4344_v56, %v4346_v12  ;;  %v4538_v38 = vsel %vm3725_vm3, %v4535_v43, %v4537_v1  ;;  %v14055_v47 = vmax.f32 %v14053_v37, %v14054_v61  ;;  %v4688_v37 = vld [vmem:[%s13639_s4 + $0xf8] sm:$0xff] }
 0x470   : > { %v3980_v8 = vpop.f32.mrf.mxu1  ;;  %7866 = vmatprep.subr.mxu0 %v14052_v10  ;;  %v4261_v62 = vmax.f32 %v3970_v7, %v4155_v52 }
 0x471   : > { %v4156_v42 = vrot.slane %v3980_v8, 1  ;;  %v4348_v29 = vrot.slane %v3980_v8, 2  ;;  %v4539_v55 = vrot.slane %v3980_v8, 3  ;;  %7867 = vmatpush3.msra.mxu0 %v14055_v47 }
 0x472   : > { %v3982_v56 = vpop.f32.mrf.mxu1  ;;  %4797 = vmatmul.mubr.f32.vlgmr.msra.gmra.mxu0 %v4657_v16  ;;  %v4453_v43 = vmax.f32 %v4261_v62, %v4347_v45  ;;  %v4681_v16 = vld [vmem:[%s13639_s4 + $0xc0] sm:$0xff] }
 0x473   : > { %4801 = vmatprep.mubr.f32.mxu0 %v4661_v9  ;;  %v4157_v28 = vsel %vm4082_vm7, %v4154_v63, %v4156_v42  ;;  %v4349_v20 = vsel %vm4274_vm8, %v4346_v12, %v4348_v29  ;;  %v4540_v7 = vsel %vm3725_vm3, %v4537_v1, %v4539_v55  ;;  %v4675_v1 = vld [vmem:[%s13639_s4 + $0x90] sm:$0xff]  ;;  %v4685_v45 = vld [vmem:[%s13639_s4 + $0xe0] sm:$0xff] }
 0x474   : > { %v4262_v33 = vmax.f32 %v3975_v58, %v4157_v28  ;;  %v12197_v59 = vmax.f32 %v4453_v43, %v4538_v38 }
 0x476   : > { %4802 = vmatmul.mubr.f32.gmra.mxu0 %v4660_v2  ;;  %v4454_v22 = vmax.f32 %v4262_v33, %v4349_v20 }
 0x477   : > { %4806 = vmatprep.mubr.f32.mxu0 %v4664_v26  ;;  %v4687_v26 = vld [vmem:[%s13639_s4 + $0xf0] sm:$0xff] }
 0x478   : > { %v12205_v48 = vmax.f32 %v4454_v22, %v4540_v7 }
 0x47a   : > { %4807 = vmatmul.mubr.f32.gmra.mxu0 %v4663_v4  ;;  %v4691_v4 = vld [vmem:[%s13639_s4 + $0x110] sm:$0xff] }
 0x47b   : > { %4811 = vmatprep.mubr.f32.mxu0 %v4667_v50 }
 0x47e   : > { %v3985_v39 = vpop.f32.mrf.mxu1  ;;  %4812 = vmatmul.mubr.f32.gmra.mxu0 %v4666_v34  ;;  %v4690_v34 = vld [vmem:[%s13639_s4 + $0x108] sm:$0xff] }
 0x47f   : > { %v4158_v5 = vrot.slane %v3985_v39, 1  ;;  %v4350_v53 = vrot.slane %v3985_v39, 2  ;;  %v4541_v0 = vrot.slane %v3985_v39, 3  ;;  %4816 = vmatprep.mubr.f32.mxu0 %v4670_v40 }
 0x480   : > { %v3987_v27 = vpop.f32.mrf.mxu1 }
 0x481   : > { %v4159_v41 = vsel %vm4082_vm7, %v4156_v42, %v4158_v5  ;;  %v4351_v13 = vsel %vm4274_vm8, %v4348_v29, %v4350_v53  ;;  %v4542_v54 = vsel %vm3725_vm3, %v4539_v55, %v4541_v0  ;;  %v4684_v42 = vld [vmem:[%s13639_s4 + $0xd8] sm:$0xff] }
 0x482   : > { %4817 = vmatmul.mubr.f32.gmra.mxu0 %v4669_v6  ;;  %v4263_v19 = vmax.f32 %v3980_v8, %v4159_v41 }
 0x483   : > { %4821 = vmatprep.mubr.f32.mxu0 %v4673_v30 }
 0x484   : > { %v4455_v58 = vmax.f32 %v4263_v19, %v4351_v13 }
 0x486   : > { %v3990_v36 = vpop.f32.mrf.mxu1  ;;  %4822 = vmatmul.mubr.f32.gmra.mxu0 %v4672_v35  ;;  %v12228_v24 = vmax.f32 %v4455_v58, %v4542_v54 }
 0x487   : > { %v4160_v60 = vrot.slane %v3990_v36, 1  ;;  %v4352_v63 = vrot.slane %v3990_v36, 2  ;;  %v4543_v12 = vrot.slane %v3990_v36, 3  ;;  %4826 = vmatprep.mubr.f32.mxu0 %v4676_v31 }
 0x488   : > { %v3992_v21 = vpop.f32.mrf.mxu1 }
 0x489   : > { %v4161_v32 = vsel %vm4082_vm7, %v4158_v5, %v4160_v60  ;;  %v4353_v23 = vsel %vm4274_vm8, %v4350_v53, %v4352_v63  ;;  %v4544_v46 = vsel %vm3725_vm3, %v4541_v0, %v4543_v12 }
 0x48a   : > { %4827 = vmatmul.mubr.f32.gmra.mxu0 %v4675_v1  ;;  %v4264_v49 = vmax.f32 %v3985_v39, %v4161_v32  ;;  %v4659_v39 = vld [vmem:[%s13639_s4 + $0x10] sm:$0xff] }
 0x48b   : > { %4831 = vmatprep.mubr.f32.mxu0 %v4679_v44 }
 0x48c   : > { %v4456_v17 = vmax.f32 %v4264_v49, %v4353_v23 }
 0x48e   : > { %4832 = vmatmul.mubr.f32.gmra.mxu0 %v4678_v51  ;;  %v12245_v25 = vmax.f32 %v4456_v17, %v4544_v46 }
 0x48f   : > { %4836 = vmatprep.mubr.f32.mxu0 %v4682_v18 }
 0x490   : > { %v3995_v52 = vpop.f32.mrf.mxu1 }
 0x491   : > { %v4162_v38 = vrot.slane %v3995_v52, 1  ;;  %v4354_v8 = vrot.slane %v3995_v52, 2  ;;  %v4545_v3 = vrot.slane %v3995_v52, 3 }
 0x492   : > { %v3997_v11 = vpop.f32.mrf.mxu1  ;;  %4837 = vmatmul.mubr.f32.gmra.mxu0 %v4681_v16 }
 0x493   : > { %v4163_v10 = vsel %vm4082_vm7, %v4160_v60, %v4162_v38  ;;  %v4355_v9 = vsel %vm4274_vm8, %v4352_v63, %v4354_v8  ;;  %v4546_v62 = vsel %vm3725_vm3, %v4543_v12, %v4545_v3  ;;  %4841 = vmatprep.mubr.f32.mxu0 %v4685_v45 }
 0x494   : > { %v12259_v29 = vpop.f32.mrf.mxu1  ;;  %v4265_v55 = vmax.f32 %v3990_v36, %v4163_v10 }
 0x495   : > { %v4164_v61 = vrot.slane %v12259_v29, 1  ;;  %v4356_v47 = vrot.slane %v12259_v29, 2  ;;  %v4547_v56 = vrot.slane %v12259_v29, 3 }
 0x496   : > { %v4002_v43 = vpop.f32.mrf.mxu1  ;;  %v4457_v2 = vmax.f32 %v4265_v55, %v4355_v9  ;;  %4842 = vmatmul.mubr.f32.gmra.mxu0 %v4684_v42 }
 0x497   : > { %v4165_v28 = vsel %vm4082_vm7, %v4162_v38, %v4164_v61  ;;  %v4357_v20 = vsel %vm4274_vm8, %v4354_v8, %v4356_v47  ;;  %v4548_v7 = vsel %vm3725_vm3, %v4545_v3, %v4547_v56  ;;  %4846 = vmatprep.mubr.f32.mxu0 %v4688_v37 }
 0x498   : > { %v4266_v33 = vmax.f32 %v3995_v52, %v4165_v28  ;;  %v12277_v22 = vmax.f32 %v4457_v2, %v4546_v62 }
 0x49a   : > { %v4458_v50 = vmax.f32 %v4266_v33, %v4357_v20  ;;  %4847 = vmatmul.mubr.f32.gmra.mxu0 %v4687_v26 }
 0x49b   : > { %4851 = vmatprep.mubr.f32.mxu0 %v4691_v4 }
 0x49c   : > { %v12285_v40 = vmax.f32 %v4458_v50, %v4548_v7 }
 0x49e   : > { %4852 = vmatmul.mubr.f32.gmra.mxu0 %v4690_v34 }
 0x49f   : > { %8110 = vmatprep.mubr.msk.f32.mxu0 %vm3308_vm5, %v4659_v39 }
 0x4a2   : > { %v12291_v5 = vpop.f32.mrf.mxu1 }
 0x4a3   : > { %v4166_v58 = vrot.slane %v12291_v5, 1  ;;  %v4358_v4 = vrot.slane %v12291_v5, 2 }
 0x4a4   : > { %v4007_v53 = vpop.f32.mrf.mxu1 }
 0x4a5   : > { %v4167_v45 = vsel %vm4082_vm7, %v4164_v61, %v4166_v58 }
 0x4aa   : > { %v12293_v0 = vpop.f32.mrf.mxu1 }
 0x4ab   : > { %v4168_v21 = vrot.slane %v12293_v0, 1  ;;  %v4360_v61 = vrot.slane %v12293_v0, 2 }
 0x4ac   : > { %v4012_v6 = vpop.f32.mrf.mxu1 }
 0x4ad   : > { %v4169_v42 = vsel %vm4082_vm7, %v4166_v58, %v4168_v21  ;;  %v4359_v58 = vsel %vm4274_vm8, %v4356_v47, %v4358_v4  ;;  %v4686_v47 = vld [vmem:[%s13639_s4 + $0xe8] sm:$0xff] }
 0x4ae   : > { %v4268_v33 = vmax.f32 %v12291_v5, %v4169_v42 }
 0x4b5   : > { %v12295_v27 = vpop.f32.mrf.mxu1 }
 0x4b6   : > { %v4170_v36 = vrot.slane %v12295_v27, 1  ;;  %v4362_v10 = vrot.slane %v12295_v27, 2  ;;  %v4553_v50 = vrot.slane %v12295_v27, 3 }
 0x4b7   : > { %v4017_v30 = vpop.f32.mrf.mxu1 }
 0x4b8   : > { %v4171_v52 = vsel %vm4082_vm7, %v4168_v21, %v4170_v36  ;;  %v4363_v39 = vsel %vm4274_vm8, %v4360_v61, %v4362_v10  ;;  %v4267_v30 = vmax.f32 %v12259_v29, %v4167_v45  ;;  %v4683_v29 = vld [vmem:[%s13639_s4 + $0xd0] sm:$0xff] }
 0x4b9   : > { %v4020_v41 = vpop.f32.mrf.mxu1  ;;  %v4269_v2 = vmax.f32 %v12293_v0, %v4171_v52 }
 0x4ba   : > { %v4172_v35 = vrot.slane %v4020_v41, 1  ;;  %v4364_v17 = vrot.slane %v4020_v41, 2  ;;  %v4555_v28 = vrot.slane %v4020_v41, 3 }
 0x4bb   : > { %v4022_v13 = vpop.f32.mrf.mxu1  ;;  %v4461_v6 = vmax.f32 %v4269_v2, %v4363_v39 }
 0x4bc   : > { %v4173_v23 = vsel %vm4082_vm7, %v4170_v36, %v4172_v35  ;;  %v4365_v7 = vsel %vm4274_vm8, %v4362_v10, %v4364_v17  ;;  %v4556_v13 = vsel %vm3725_vm3, %v4553_v50, %v4555_v28 }
 0x4bd   : > { %v4270_v11 = vmax.f32 %v12295_v27, %v4173_v23 }
 0x4bf   : > { %v4462_v26 = vmax.f32 %v4270_v11, %v4365_v7 }
 0x4c1   : > { %v4653_v27 = vmax.f32 %v4462_v26, %v4556_v13 }
 0x4c7   : > { %v4025_v54 = vpop.f32.mrf.mxu1 }
 0x4c8   : > { %v4174_v19 = vrot.slane %v4025_v54, 1  ;;  %v4366_v44 = vrot.slane %v4025_v54, 2  ;;  %v4557_v38 = vrot.slane %v4025_v54, 3 }
 0x4c9   : > { %v4027_v31 = vpop.f32.mrf.mxu1 }
 0x4ca   : > { %v4175_v63 = vsel %vm4082_vm7, %v4172_v35, %v4174_v19  ;;  %v4367_v62 = vsel %vm4274_vm8, %v4364_v17, %v4366_v44  ;;  %v4558_v34 = vsel %vm3725_vm3, %v4555_v28, %v4557_v38  ;;  %v4549_v35 = vrot.slane %v12291_v5, 3 }
 0x4cb   : > { %v4030_v60 = vpop.f32.mrf.mxu1  ;;  %v4271_v18 = vmax.f32 %v4020_v41, %v4175_v63  ;;  %v4551_v41 = vrot.slane %v12293_v0, 3  ;;  %v4459_v0 = vmax.f32 %v4267_v30, %v4359_v58 }
 0x4cc   : > { %v4176_v12 = vrot.slane %v4030_v60, 1  ;;  %v4368_v1 = vrot.slane %v4030_v60, 2  ;;  %v4559_v49 = vrot.slane %v4030_v60, 3  ;;  %v4550_v5 = vsel %vm3725_vm3, %v4547_v56, %v4549_v35  ;;  %v4689_v56 = vld [vmem:[%s13639_s4 + $0x100] sm:$0xff] }
 0x4cd   : > { %v4032_v32 = vpop.f32.mrf.mxu1  ;;  %v4463_v43 = vmax.f32 %v4271_v18, %v4367_v62  ;;  %v4554_v31 = vsel %vm3725_vm3, %v4551_v41, %v4553_v50 }
 0x4ce   : > { %v4273_v46 = vmax.f32 %v4030_v60, %v4176_v12  ;;  %v4177_v51 = vsel %vm4082_vm7, %v4174_v19, %v4176_v12  ;;  %v4369_v3 = vsel %vm4274_vm8, %v4366_v44, %v4368_v1  ;;  %v4560_v37 = vsel %vm3725_vm3, %v4557_v38, %v4559_v49 }
 0x4cf   : > { %v4272_v16 = vmax.f32 %v4025_v54, %v4177_v51  ;;  %v4654_v53 = vmax.f32 %v4463_v43, %v4558_v34  ;;  %v4361_v54 = vsel %vm4274_vm8, %v4358_v4, %v4360_v61  ;;  %v4652_v36 = vmax.f32 %v4461_v6, %v4554_v31 }
 0x4d0   : > { %v4465_v8 = vmax.f32 %v4273_v46, %v4368_v1  ;;  %v4460_v19 = vmax.f32 %v4268_v33, %v4361_v54  ;;  %v4552_v60 = vsel %vm3725_vm3, %v4549_v35, %v4551_v41  ;;  %v4650_v12 = vmax.f32 %v4459_v0, %v4550_v5 }
 0x4d1   : > { %v4464_v9 = vmax.f32 %v4272_v16, %v4369_v3 }
 0x4d2   : > { %v4656_v55 = vmax.f32 %v4465_v8, %v4559_v49  ;;  %v4651_v63 = vmax.f32 %v4460_v19, %v4552_v60 }
 0x4d3   : > { %v4655_v20 = vmax.f32 %v4464_v9, %v4560_v37 }
 0x4d4   : > { %8078 = vmatprep.subr.msk.mxu0 %vm3725_vm3, %v4656_v55 }
 0x4d5   : > { %8079 = vmatpush3.msk.msra.mxu0 %vm3725_vm3, %v4656_v55 }
 0x4d6   : > { %8080 = vmatprep.subr.mxu0 %v4655_v20 }
 0x4d7   : > { %8081 = vmatpush3.msra.mxu0 %v4655_v20 }
 0x4d8   : > { %8082 = vmatprep.subr.mxu0 %v4654_v53 }
 0x4d9   : > { %8083 = vmatpush3.msra.mxu0 %v4654_v53 }
 0x4da   : > { %8084 = vmatprep.subr.mxu0 %v4653_v27 }
 0x4db   : > { %8085 = vmatpush3.msra.mxu0 %v4653_v27 }
 0x4dc   : > { %8086 = vmatprep.subr.mxu0 %v4652_v36 }
 0x4dd   : > { %8087 = vmatpush3.msra.mxu0 %v4652_v36 }
 0x4de   : > { %8088 = vmatprep.subr.mxu0 %v4651_v63 }
 0x4df   : > { %8089 = vmatpush3.msra.mxu0 %v4651_v63 }
 0x4e0   : > { %8090 = vmatprep.subr.mxu0 %v4650_v12 }
 0x4e1   : > { %8091 = vmatpush3.msra.mxu0 %v4650_v12 }
 0x4e2   : > { %8092 = vmatprep.subr.mxu0 %v12285_v40 }
 0x4e3   : > { %8093 = vmatpush3.msra.mxu0 %v12285_v40 }
 0x4e4   : > { %8094 = vmatprep.subr.mxu0 %v12277_v22 }
 0x4e5   : > { %8095 = vmatpush3.msra.mxu0 %v12277_v22  ;;  %v4692_v22 = vld [vmem:[%s13639_s4 + $0x118] sm:$0xff] }
 0x4e6   : > { %8096 = vmatprep.subr.mxu0 %v12245_v25 }
 0x4e7   : > { %8097 = vmatpush3.msra.mxu0 %v12245_v25  ;;  %v4680_v25 = vld [vmem:[%s13639_s4 + $0xb8] sm:$0xff] }
 0x4e8   : > { %8098 = vmatprep.subr.mxu0 %v12228_v24 }
 0x4e9   : > { %8099 = vmatpush3.msra.mxu0 %v12228_v24  ;;  %v4662_v24 = vld [vmem:[%s13639_s4 + $0x28] sm:$0xff] }
 0x4ea   : > { %8100 = vmatprep.subr.mxu0 %v12205_v48 }
 0x4eb   : > { %8101 = vmatpush3.msra.mxu0 %v12205_v48  ;;  %v4665_v48 = vld [vmem:[%s13639_s4 + $0x40] sm:$0xff] }
 0x4ec   : > { %8102 = vmatprep.subr.mxu0 %v12197_v59 }
 0x4ed   : > { %8103 = vmatpush3.msra.mxu0 %v12197_v59  ;;  %v4677_v59 = vld [vmem:[%s13639_s4 + $0xa0] sm:$0xff] }
 0x4ee   : > { %8104 = vmatprep.subr.mxu0 %v12156_v14 }
 0x4ef   : > { %8105 = vmatpush3.msra.mxu0 %v12156_v14  ;;  %v4671_v14 = vld [vmem:[%s13639_s4 + $0x70] sm:$0xff] }
 0x4f0   : > { %8106 = vmatprep.subr.mxu0 %v12127_v15 }
 0x4f1   : > { %8107 = vmatpush3.msra.mxu0 %v12127_v15  ;;  %v4668_v15 = vld [vmem:[%s13639_s4 + $0x58] sm:$0xff] }
 0x4f2   : > { %8108 = vmatprep.subr.mxu0 %v12085_v57 }
 0x4f3   : > { %8109 = vmatpush3.msra.mxu0 %v12085_v57  ;;  %v4674_v57 = vld [vmem:[%s13639_s4 + $0x88] sm:$0xff] }
 0x4f4   : > { %8111 = vmatmul.mubr.msk.f32.vlgmr.msra.gmra.mxu0 %vm3308_vm5, %v4662_v24 }
 0x4f5   : > { %8113 = vmatprep.mubr.msk.f32.mxu0 %vm3308_vm5, %v4665_v48 }
 0x4f8   : > { %8114 = vmatmul.mubr.msk.f32.gmra.mxu0 %vm3308_vm5, %v4668_v15 }
 0x4f9   : > { %8116 = vmatprep.mubr.msk.f32.mxu0 %vm3308_vm5, %v4671_v14 }
 0x4fc   : > { %8117 = vmatmul.mubr.msk.f32.gmra.mxu0 %vm3308_vm5, %v4674_v57 }
 0x4fd   : > { %8119 = vmatprep.mubr.msk.f32.mxu0 %vm3308_vm5, %v4677_v59 }
 0x500   : > { %8120 = vmatmul.mubr.msk.f32.gmra.mxu0 %vm3308_vm5, %v4680_v25 }
 0x501   : > { %8122 = vmatprep.mubr.msk.f32.mxu0 %vm3308_vm5, %v4683_v29 }
 0x504   : > { %8123 = vmatmul.mubr.msk.f32.gmra.mxu0 %vm3308_vm5, %v4686_v47 }
 0x505   : > { %8125 = vmatprep.mubr.msk.f32.mxu0 %vm3308_vm5, %v4689_v56 }
 0x508   : > { %8126 = vmatmul.mubr.msk.f32.gmra.mxu0 %vm3308_vm5, %v4692_v22 }
 0x532   : > { %v7868_v40 = vpop.f32.mrf.mxu0 }
 0x534   : > { %v7869_v1 = vpop.f32.mrf.mxu0 }
 0x535   : > { %v7870_v61 = vadd.f32 %v7869_v1, %v7868_v40 }
 0x536   : > { %v7871_v21 = vpop.f32.mrf.mxu0 }
 0x538   : > { %v7872_v44 = vpop.f32.mrf.mxu0 }
 0x539   : > { %v7873_v43 = vadd.f32 %v7872_v44, %v7871_v21 }
 0x53a   : > { %v7874_v32 = vpop.f32.mrf.mxu0 }
 0x53c   : > { %v7875_v23 = vpop.f32.mrf.mxu0 }
 0x53d   : > { %v7876_v33 = vadd.f32 %v7875_v23, %v7874_v32 }
 0x53e   : > { %v7877_v46 = vpop.f32.mrf.mxu0 }
 0x540   : > { %v7878_v49 = vpop.f32.mrf.mxu0 }
 0x541   : > { %v7879_v7 = vadd.f32 %v7878_v49, %v7877_v46 }
 0x542   : > { %v7880_v51 = vpop.f32.mrf.mxu0 }
 0x544   : > { %v7881_v18 = vpop.f32.mrf.mxu0 }
 0x545   : > { %v7882_v27 = vadd.f32 %v7881_v18, %v7880_v51 }
 0x546   : > { %v7883_v17 = vpop.f32.mrf.mxu0 }
 0x548   : > { %v7884_v16 = vpop.f32.mrf.mxu0 }
 0x549   : > { %v7885_v30 = vadd.f32 %v7884_v16, %v7883_v17 }
 0x54a   : > { %v7886_v52 = vpop.f32.mrf.mxu0 }
 0x54c   : > { %v7887_v45 = vpop.f32.mrf.mxu0 }
 0x54d   : > { %v7888_v57 = vadd.f32 %v7887_v45, %v7886_v52 }
 0x54e   : > { %v7889_v38 = vpop.f32.mrf.mxu0 }
 0x550   : > { %v7890_v8 = vpop.f32.mrf.mxu0 }
 0x551   : > { %v7891_v63 = vadd.f32 %v7890_v8, %v7889_v38 }
 0x552   : > { %v7892_v3 = vpop.f32.mrf.mxu0 }
 0x554   : > { %v7893_v11 = vpop.f32.mrf.mxu0 }
 0x555   : > { %v7894_v32 = vadd.f32 %v7893_v11, %v7892_v3 }
 0x556   : > { %v7895_v10 = vpop.f32.mrf.mxu0 }
 0x558   : > { %v7896_v9 = vpop.f32.mrf.mxu0 }
 0x559   : > { %v7897_v47 = vadd.f32 %v7896_v9, %v7895_v10 }
 0x55a   : > { %v7898_v62 = vpop.f32.mrf.mxu0 }
 0x55c   : > { %v7899_v42 = vpop.f32.mrf.mxu0 }
 0x55d   : > { %v7900_v8 = vadd.f32 %v7899_v42, %v7898_v62 }
 0x55e   : > { %v7901_v55 = vpop.f32.mrf.mxu0 }
 0x560   : > { %v7902_v37 = vpop.f32.mrf.mxu0 }
 0x561   : > { %v7903_v51 = vadd.f32 %v7902_v37, %v7901_v55 }
 0x5b4   : > { %v8112_v2 = vpop.f32.mrf.mxu0 }
 0x5b5   : > { %v4929_v28 = vadd.f32 %v8112_v2, %v7873_v43 }
 0x5b6   : > { %v4923_v20 = vpop.f32.mrf.mxu0 }
 0x5b7   : > { %v4924_v26 = vadd.f32 %v7870_v61, %v4923_v20  ;;  %v4984_v50 = vsel %vm4982_vm9, %v4929_v28, 0.0 }
 0x5b8   : > { %v8115_v4 = vpop.f32.mrf.mxu0  ;;  %v12404_v54 = vsel %vm4995_vm10, %v4984_v50, %v4929_v28  ;;  %v5400_v50 = vld [vmem:[%s13641_s6 + $0x8] sm:$0xff] }
 0x5b9   : > { %v4939_v34 = vadd.f32 %v8115_v4, %v7879_v7  ;;  %v12397_v39 = vpack.i.bf16 %v4929_v28, %v4924_v26  ;;  %v4983_v6 = vsel %vm4982_vm9, %v4924_v26, 0.0  ;;  %v8783_v4 = vld [vmem:[%s13640_s5 + $0x4] ss:$16 sps:$4 sm:$0xff]  }
 0x5ba   : > { %v4933_v53 = vpop.f32.mrf.mxu0  ;;  %v12401_v13 = vsel %vm4995_vm10, %v4983_v6, %v4924_v26  ;;  %5840 = vmatprep.mubr.bf16.mxu0 %v8783_v4  ;;  %v5401_v6 = vld [vmem:[%s13641_s6 + $0x10] sm:$0xff] }
 0x5bb   : > { %v4934_v41 = vadd.f32 %v7876_v33, %v4933_v53  ;;  %v4986_v35 = vsel %vm4982_vm9, %v4939_v34, 0.0  ;;  %v7710_v31 = vpack.c.bf16 %v12404_v54, %v12401_v13  ;;  %v5402_v53 = vld [vmem:[%s13641_s6 + $0x18] sm:$0xff] }
 0x5bc   : > { %v8118_v19 = vpop.f32.mrf.mxu0  ;;  %v12416_v24 = vsel %vm4995_vm10, %v4986_v35, %v4939_v34  ;;  %v5408_v35 = vld [vmem:[%s13641_s6 + $0x48] sm:$0xff] }
 0x5bd   : > { %v4949_v58 = vadd.f32 %v8118_v19, %v7885_v30  ;;  %v12409_v36 = vpack.i.bf16 %v4939_v34, %v4934_v41  ;;  %v4985_v60 = vsel %vm4982_vm9, %v4934_v41, 0.0  ;;  %v5399_v34 = vld [vmem:[%s13641_s6] sm:$0xff]  ;;  %v5404_v30 = vld [vmem:[%s13641_s6 + $0x28] sm:$0xff]  ;;  %v5405_v19 = vld [vmem:[%s13641_s6 + $0x30] sm:$0xff] }
 0x5be   : > { %v4943_v0 = vpop.f32.mrf.mxu0  ;;  %v12413_v12 = vsel %vm4995_vm10, %v4985_v60, %v4934_v41  ;;  %v5403_v41 = vld [vmem:[%s13641_s6 + $0x20] sm:$0xff]  ;;  %v5412_v60 = vld [vmem:[%s13641_s6 + $0x68] sm:$0xff] }
 0x5bf   : > { %v4944_v5 = vadd.f32 %v7882_v27, %v4943_v0  ;;  %v4988_v15 = vsel %vm4982_vm9, %v4949_v58, 0.0  ;;  %v7707_v14 = vpack.c.bf16 %v12416_v24, %v12413_v12  ;;  %v5406_v27 = vld [vmem:[%s13641_s6 + $0x38] sm:$0xff]  ;;  %v5409_v0 = vld [vmem:[%s13641_s6 + $0x50] sm:$0xff] }
 0x5c0   : > { %v8121_v48 = vpop.f32.mrf.mxu0  ;;  %v12426_v40 = vsel %vm4995_vm10, %v4988_v15, %v4949_v58  ;;  %v5416_v15 = vld [vmem:[%s13641_s6 + $0x88] sm:$0xff]  ;;  %v8781_v12 = vld [vmem:[%s13640_s5] ss:$16 sps:$4 sm:$0xff]  }
 0x5c1   : > { %v4959_v59 = vadd.f32 %v8121_v48, %v7891_v63  ;;  %v4987_v29 = vsel %vm4982_vm9, %v4944_v5, 0.0  ;;  %v8676_v42 = vpack.i.bf16 %v4949_v58, %v4944_v5  ;;  %v5407_v58 = vld [vmem:[%s13641_s6 + $0x40] sm:$0xff]  ;;  %v5413_v48 = vld [vmem:[%s13641_s6 + $0x70] sm:$0xff] }
 0x5c2   : > { %v4953_v25 = vpop.f32.mrf.mxu0  ;;  %v12423_v22 = vsel %vm4995_vm10, %v4987_v29, %v4944_v5  ;;  %v5411_v63 = vld [vmem:[%s13641_s6 + $0x60] sm:$0xff]  ;;  %v5414_v5 = vld [vmem:[%s13641_s6 + $0x78] sm:$0xff]  ;;  %v5420_v29 = vld [vmem:[%s13641_s6 + $0xa8] sm:$0xff] }
 0x5c3   : > { %v4954_v56 = vadd.f32 %v7888_v57, %v4953_v25  ;;  %v4990_v21 = vsel %vm4982_vm9, %v4959_v59, 0.0  ;;  %v7704_v44 = vpack.c.bf16 %v12426_v40, %v12423_v22  ;;  %v5415_v57 = vld [vmem:[%s13641_s6 + $0x80] sm:$0xff]  ;;  %v5417_v25 = vld [vmem:[%s13641_s6 + $0x90] sm:$0xff] }
 0x5c4   : > { %v8124_v1 = vpop.f32.mrf.mxu0  ;;  %v12436_v16 = vsel %vm4995_vm10, %v4990_v21, %v4959_v59 }
 0x5c5   : > { %v4969_v23 = vadd.f32 %v8124_v1, %v7897_v47  ;;  %v4989_v49 = vsel %vm4982_vm9, %v4954_v56, 0.0  ;;  %v8671_v33 = vpack.i.bf16 %v4959_v59, %v4954_v56  ;;  %v5418_v59 = vld [vmem:[%s13641_s6 + $0x98] sm:$0xff]  ;;  %v5419_v47 = vld [vmem:[%s13641_s6 + $0xa0] sm:$0xff]  ;;  %v5421_v1 = vld [vmem:[%s13641_s6 + $0xb0] sm:$0xff] }
 0x5c6   : > { %v4963_v46 = vpop.f32.mrf.mxu0  ;;  %v12433_v17 = vsel %vm4995_vm10, %v4989_v49, %v4954_v56  ;;  %v5422_v56 = vld [vmem:[%s13641_s6 + $0xb8] sm:$0xff] }
 0x5c7   : > { %v4964_v18 = vadd.f32 %v7894_v32, %v4963_v46  ;;  %v4992_v45 = vsel %vm4982_vm9, %v4969_v23, 0.0  ;;  %v7701_v38 = vpack.c.bf16 %v12436_v16, %v12433_v17 }
 0x5c8   : > { %v8127_v52 = vpop.f32.mrf.mxu0  ;;  %v12447_v43 = vsel %vm4995_vm10, %v4992_v45, %v4969_v23 }
 0x5c9   : > { %v4979_v3 = vadd.f32 %v8127_v52, %v7903_v51  ;;  %v8666_v11 = vpack.i.bf16 %v4969_v23, %v4964_v18  ;;  %v4991_v9 = vsel %vm4982_vm9, %v4964_v18, 0.0 }
 0x5ca   : > { %v4973_v10 = vpop.f32.mrf.mxu0  ;;  %v12444_v37 = vsel %vm4995_vm10, %v4991_v9, %v4964_v18 }
 0x5cb   : > { %v4974_v55 = vadd.f32 %v7900_v8, %v4973_v10  ;;  %8667 = vrot.lane.b32.xlu1 %v8666_v11, %s8862_s29  ;;  %v4994_v2 = vsel %vm4982_vm9, %v4979_v3, 0.0  ;;  %v7698_v61 = vpack.c.bf16 %v12447_v43, %v12444_v37 }
 0x5cc   : > { %v12459_v7 = vsel %vm4995_vm10, %v4994_v2, %v4979_v3 }
 0x5cd   : > { %v8661_v62 = vpack.i.bf16 %v4979_v3, %v4974_v55  ;;  %v4993_v28 = vsel %vm4982_vm9, %v4974_v55, 0.0 }
 0x5ce   : > { %v12456_v20 = vsel %vm4995_vm10, %v4993_v28, %v4974_v55  ;;  %v8795_v28 = vld [vmem:[%s13640_s5 + $0x28] ss:$16 sps:$4 sm:$0xff]  }
 0x5cf   : > { %8662 = vrot.lane.b32.xlu0 %v8661_v62, %s8862_s29  ;;  %8677 = vrot.lane.b32.xlu1 %v8676_v42, %s8862_s29  ;;  %v7695_v26 = vpack.c.bf16 %v12459_v7, %v12456_v20 }
 0x5d3   : > { %8672 = vrot.lane.b32.xlu0 %v8671_v33, %s8862_s29  ;;  %8687 = vrot.lane.b32.xlu1 %v8671_v33, %s8864_s13 }
 0x5d7   : > { %8682 = vrot.lane.b32.xlu0 %v12409_v36, %s8862_s29  ;;  %8697 = vrot.lane.b32.xlu1 %v12397_v39, %s8862_s29 }
 0x5db   : > { %8692 = vrot.lane.b32.xlu0 %v12409_v36, %s8861_s28  ;;  %8707 = vrot.lane.b32.xlu1 %v12397_v39, %s8861_s28 }
 0x5df   : > { %8702 = vrot.lane.b32.xlu0 %v8676_v42, %s8864_s13  ;;  %8712 = vrot.lane.b32.xlu1 %v12409_v36, %s8864_s13 }
 0x5e3   : > { %8717 = vrot.lane.b32.xlu0 %v8661_v62, %s8864_s13  ;;  %8727 = vrot.lane.b32.xlu1 %v12397_v39, %s8864_s13 }
 0x5e7   : > { %8722 = vrot.lane.b32.xlu0 %v8666_v11, %s8864_s13  ;;  %8742 = vrot.lane.b32.xlu1 %v8661_v62, %s8861_s28 }
 0x5eb   : > { %8732 = vrot.lane.b32.xlu0 %v8661_v62, %s8863_s30  ;;  %8747 = vrot.lane.b32.xlu1 %v8666_v11, %s8861_s28 }
 0x5ef   : > { %8737 = vrot.lane.b32.xlu0 %v8666_v11, %s8863_s30  ;;  %8757 = vrot.lane.b32.xlu1 %v8671_v33, %s8861_s28 }
 0x5f3   : > { %8752 = vrot.lane.b32.xlu0 %v8671_v33, %s8863_s30  ;;  %8767 = vrot.lane.b32.xlu1 %v8676_v42, %s8861_s28 }
 0x5f7   : > { %8762 = vrot.lane.b32.xlu0 %v8676_v42, %s8863_s30  ;;  %8777 = vrot.lane.b32.xlu1 %v12397_v39, %s8863_s30  ;;  %v8789_v39 = vld [vmem:[%s13640_s5 + $0xc] ss:$16 sps:$4 sm:$0xff]  }
 0x5f8   : > { %7778 = vmatprep.mubr.msk.bf16.mxu1 %vm5771_vm11, %v8789_v39 }
 0x5fb   : > { %8772 = vrot.lane.b32.xlu0 %v12409_v36, %s8863_s30  ;;  %5430 = vperm.xlu1 %8305, %v5400_v50   ;;  %v5410_v36 = vld [vmem:[%s13641_s6 + $0x58] sm:$0xff] }
 0x5ff   : > { %5425 = vperm.xlu0 %8304, %v5399_v34   ;;  %5440 = vperm.xlu1 %8305, %v5402_v53  }
 0x603   : > { %5435 = vperm.xlu0 %8304, %v5401_v6   ;;  %5450 = vperm.xlu1 %8305, %v5404_v30  }
 0x607   : > { %5445 = vperm.xlu0 %8304, %v5403_v41   ;;  %5460 = vperm.xlu1 %8305, %v5406_v27  }
 0x60b   : > { %5455 = vperm.xlu0 %8304, %v5405_v19   ;;  %5470 = vperm.xlu1 %8305, %v5408_v35  }
 0x60f   : > { %5465 = vperm.xlu0 %8304, %v5407_v58   ;;  %5480 = vperm.xlu1 %8305, %v5410_v36  }
 0x613   : > { %5475 = vperm.xlu0 %8304, %v5409_v0   ;;  %5490 = vperm.xlu1 %8305, %v5412_v60   ;;  %v14058_v60 = vmov 0  }
 0x617   : > { %5485 = vperm.xlu0 %8304, %v5411_v63   ;;  %5500 = vperm.xlu1 %8305, %v5414_v5  }
 0x61b   : > { %5495 = vperm.xlu0 %8304, %v5413_v48   ;;  %5510 = vperm.xlu1 %8305, %v5416_v15  }
 0x61f   : > { %5505 = vperm.xlu0 %8304, %v5415_v57   ;;  %5520 = vperm.xlu1 %8305, %v5418_v59  }
 0x623   : > { %5515 = vperm.xlu0 %8304, %v5417_v25   ;;  %5530 = vperm.xlu1 %8305, %v5420_v29  }
 0x627   : > { %5525 = vperm.xlu0 %8304, %v5419_v47   ;;  %5540 = vperm.xlu1 %8305, %v5422_v56  }
 0x62b   : > { %5535 = vperm.xlu0 %8304, %v5421_v1  }
 0x63d   : > { %v8668_v21 = vpop.permute.xlu1 %8667 }
 0x63e   : > { %v8670_v32 = vunpack.i.h.bf16 %v8668_v21  ;;  %v8669_v23 = vunpack.i.l.bf16 %v8668_v21 }
 0x640   : > { %v5222_v46 = vsel %vm4982_vm9, %v8670_v32, 0.0  ;;  %v5221_v18 = vsel %vm4982_vm9, %v8669_v23, 0.0 }
 0x641   : > { %v8663_v49 = vpop.permute.xlu0 %8662  ;;  %v8678_v51 = vpop.permute.xlu1 %8677  ;;  %v5234_v8 = vsel %vm4995_vm10, %v5222_v46, %v8670_v32  ;;  %v5233_v10 = vsel %vm4995_vm10, %v5221_v18, %v8669_v23 }
 0x642   : > { %v8665_v52 = vunpack.i.h.bf16 %v8663_v49  ;;  %v8664_v45 = vunpack.i.l.bf16 %v8663_v49  ;;  %v8680_v2 = vunpack.i.h.bf16 %v8678_v51  ;;  %v7740_v39 = vpack.c.bf16 %v5234_v8, %v5233_v10 }
 0x643   : > { %v8679_v6 = vunpack.i.l.bf16 %v8678_v51 }
 0x644   : > { %v5224_v3 = vsel %vm4982_vm9, %v8665_v52, 0.0  ;;  %v5223_v11 = vsel %vm4982_vm9, %v8664_v45, 0.0  ;;  %v5218_v27 = vsel %vm4982_vm9, %v8680_v2, 0.0 }
 0x645   : > { %v5236_v9 = vsel %vm4995_vm10, %v5224_v3, %v8665_v52  ;;  %v5235_v55 = vsel %vm4995_vm10, %v5223_v11, %v8664_v45  ;;  %v8673_v62 = vpop.permute.xlu0 %8672  ;;  %v8688_v42 = vpop.permute.xlu1 %8687  ;;  %v5217_v47 = vsel %vm4982_vm9, %v8679_v6, 0.0  ;;  %v5230_v46 = vsel %vm4995_vm10, %v5218_v27, %v8680_v2 }
 0x646   : > { %v7737_v33 = vpack.c.bf16 %v5236_v9, %v5235_v55  ;;  %v8675_v4 = vunpack.i.h.bf16 %v8673_v62  ;;  %v8674_v50 = vunpack.i.l.bf16 %v8673_v62  ;;  %v8690_v34 = vunpack.i.h.bf16 %v8688_v42 }
 0x647   : > { %v8689_v53 = vunpack.i.l.bf16 %v8688_v42  ;;  %v5229_v52 = vsel %vm4995_vm10, %v5217_v47, %v8679_v6 }
 0x648   : > { %v5220_v30 = vsel %vm4982_vm9, %v8675_v4, 0.0  ;;  %v5219_v41 = vsel %vm4982_vm9, %v8674_v50, 0.0  ;;  %7738 = vmatpush1.bf16.msk.msra.mxu1 %vm12579_vm13, %v7737_v33  ;;  %v5148_v35 = vsel %vm4982_vm9, %v8690_v34, 0.0 }
 0x649   : > { %v5232_v19 = vsel %vm4995_vm10, %v5220_v30, %v8675_v4  ;;  %v5147_v58 = vsel %vm4982_vm9, %v8689_v53, 0.0  ;;  %v8683_v36 = vpop.permute.xlu0 %8682  ;;  %v8698_v0 = vpop.permute.xlu1 %8697  ;;  %5939 = vmatprep.subr.bf16.mxu1 %v14058_v60  ;;  %v5231_v63 = vsel %vm4995_vm10, %v5219_v41, %v8674_v50  ;;  %v5160_v5 = vsel %vm4995_vm10, %v5148_v35, %v8690_v34 }
 0x64a   : > { %v5159_v48 = vsel %vm4995_vm10, %v5147_v58, %v8689_v53  ;;  %v8685_v15 = vunpack.i.h.bf16 %v8683_v36  ;;  %v8684_v57 = vunpack.i.l.bf16 %v8683_v36  ;;  %v8700_v59 = vunpack.i.h.bf16 %v8698_v0 }
 0x64b   : > { %v8699_v25 = vunpack.i.l.bf16 %v8698_v0  ;;  %v7713_v29 = vpack.c.bf16 %v5160_v5, %v5159_v48  ;;  %v7743_v49 = vpack.c.bf16 %v5232_v19, %v5231_v63  ;;  %v7746_v34 = vpack.c.bf16 %v5230_v46, %v5229_v52 }
 0x64c   : > { %v5216_v56 = vsel %vm4982_vm9, %v8685_v15, 0.0  ;;  %7741 = vmatpush1.bf16.msk.msra.mxu1 %vm12579_vm13, %v7740_v39  ;;  %v5215_v1 = vsel %vm4982_vm9, %v8684_v57, 0.0  ;;  %v5214_v21 = vsel %vm4982_vm9, %v8700_v59, 0.0 }
 0x64d   : > { %7932 = vmatprep.subr.msk.bf16.mxu0 %vm12579_vm13, %v7713_v29  ;;  %v8693_v32 = vpop.permute.xlu0 %8692  ;;  %v8708_v23 = vpop.permute.xlu1 %8707  ;;  %5941 = vmatprep.subr.bf16.mxu1 %v14058_v60  ;;  %v5213_v51 = vsel %vm4982_vm9, %v8699_v25, 0.0  ;;  %v5228_v45 = vsel %vm4995_vm10, %v5216_v56, %v8685_v15  ;;  %v5227_v11 = vsel %vm4995_vm10, %v5215_v1, %v8684_v57  ;;  %v12610_v10 = vsel %vm4995_vm10, %v5214_v21, %v8700_v59 }
 0x64e   : > { %v8695_v18 = vunpack.i.h.bf16 %v8693_v32  ;;  %v8694_v8 = vunpack.i.l.bf16 %v8693_v32  ;;  %v8710_v3 = vunpack.i.h.bf16 %v8708_v23  ;;  %v8709_v55 = vunpack.i.l.bf16 %v8708_v23 }
 0x64f   : > { %v5225_v2 = vsel %vm4995_vm10, %v5213_v51, %v8699_v25  ;;  %v7749_v30 = vpack.c.bf16 %v5228_v45, %v5227_v11 }
 0x650   : > { %v5072_v9 = vsel %vm4982_vm9, %v8695_v18, 0.0  ;;  %7744 = vmatpush1.bf16.msk.msra.mxu1 %vm12579_vm13, %v7743_v49  ;;  %v5071_v42 = vsel %vm4982_vm9, %v8694_v8, 0.0  ;;  %v5070_v33 = vsel %vm4982_vm9, %v8710_v3, 0.0  ;;  %v5069_v39 = vsel %vm4982_vm9, %v8709_v55, 0.0 }
 0x651   : > { %v5084_v62 = vsel %vm4995_vm10, %v5072_v9, %v8695_v18  ;;  %v8703_v4 = vpop.permute.xlu0 %8702  ;;  %v8713_v50 = vpop.permute.xlu1 %8712  ;;  %5943 = vmatprep.subr.bf16.mxu1 %v14058_v60  ;;  %v5083_v53 = vsel %vm4995_vm10, %v5071_v42, %v8694_v8  ;;  %v7752_v35 = vpack.c.bf16 %v12610_v10, %v5225_v2  ;;  %v5082_v58 = vsel %vm4995_vm10, %v5070_v33, %v8710_v3 }
 0x652   : > { %v8705_v6 = vunpack.i.h.bf16 %v8703_v4  ;;  %v7689_v41 = vpack.c.bf16 %v5084_v62, %v5083_v53  ;;  %v8704_v27 = vunpack.i.l.bf16 %v8703_v4  ;;  %v8715_v19 = vunpack.i.h.bf16 %v8713_v50 }
 0x653   : > { %v8714_v0 = vunpack.i.l.bf16 %v8713_v50  ;;  %v5081_v63 = vsel %vm4995_vm10, %v5069_v39, %v8709_v55 }
 0x654   : > { %v5146_v36 = vsel %vm4982_vm9, %v8705_v6, 0.0  ;;  %7747 = vmatpush1.bf16.msk.msra.mxu1 %vm12579_vm13, %v7746_v34  ;;  %v5145_v48 = vsel %vm4982_vm9, %v8704_v27, 0.0  ;;  %v5144_v15 = vsel %vm4982_vm9, %v8715_v19, 0.0  ;;  %7933 = vmatpush3.bf16.msk.msra.mxu0 %vm12579_vm13, %v7689_v41  ;;  %v7692_v46 = vpack.c.bf16 %v5082_v58, %v5081_v63 }
 0x655   : > { %v5158_v5 = vsel %vm4995_vm10, %v5146_v36, %v8705_v6  ;;  %v8718_v57 = vpop.permute.xlu0 %8717  ;;  %v8728_v59 = vpop.permute.xlu1 %8727  ;;  %5945 = vmatprep.subr.bf16.mxu1 %v14058_v60  ;;  %v5157_v25 = vsel %vm4995_vm10, %v5145_v48, %v8704_v27  ;;  %v5156_v29 = vsel %vm4995_vm10, %v5144_v15, %v8715_v19  ;;  %v5143_v47 = vsel %vm4982_vm9, %v8714_v0, 0.0 }
 0x656   : > { %v8720_v56 = vunpack.i.h.bf16 %v8718_v57  ;;  %v5155_v1 = vsel %vm4995_vm10, %v5143_v47, %v8714_v0  ;;  %v8719_v21 = vunpack.i.l.bf16 %v8718_v57  ;;  %v8730_v32 = vunpack.i.h.bf16 %v8728_v59 }
 0x657   : > { %v8729_v23 = vunpack.i.l.bf16 %v8728_v59  ;;  %v7716_v51 = vpack.c.bf16 %v5158_v5, %v5157_v25  ;;  %v7719_v18 = vpack.c.bf16 %v5156_v29, %v5155_v1 }
 0x658   : > { %v5152_v49 = vsel %vm4982_vm9, %v8720_v56, 0.0  ;;  %7750 = vmatpush1.bf16.msk.msra.mxu1 %vm12579_vm13, %v7749_v30  ;;  %v5151_v45 = vsel %vm4982_vm9, %v8719_v21, 0.0  ;;  %v5142_v8 = vsel %vm4982_vm9, %v8730_v32, 0.0 }
 0x659   : > { %v5164_v52 = vsel %vm4995_vm10, %v5152_v49, %v8720_v56  ;;  %v5141_v3 = vsel %vm4982_vm9, %v8729_v23, 0.0  ;;  %v8723_v11 = vpop.permute.xlu0 %8722  ;;  %v8743_v10 = vpop.permute.xlu1 %8742  ;;  %5947 = vmatprep.subr.bf16.mxu1 %v14058_v60  ;;  %v5163_v9 = vsel %vm4995_vm10, %v5151_v45, %v8719_v21  ;;  %v5154_v55 = vsel %vm4995_vm10, %v5142_v8, %v8730_v32  ;;  %7934 = vmatprep.subr.msk.bf16.mxu0 %vm12579_vm13, %v7716_v51 }
 0x65a   : > { %v5153_v2 = vsel %vm4995_vm10, %v5141_v3, %v8729_v23  ;;  %v8725_v62 = vunpack.i.h.bf16 %v8723_v11  ;;  %v8724_v42 = vunpack.i.l.bf16 %v8723_v11  ;;  %v8745_v33 = vunpack.i.h.bf16 %v8743_v10  ;;  %7935 = vmatpush3.bf16.msk.msra.mxu0 %vm12579_vm13, %v7692_v46 }
 0x65b   : > { %v8744_v4 = vunpack.i.l.bf16 %v8743_v10  ;;  %v7755_v50 = vpack.c.bf16 %v5164_v52, %v5163_v9  ;;  %7936 = vmatprep.subr.msk.bf16.mxu0 %vm12579_vm13, %v7719_v18  ;;  %v7722_v53 = vpack.c.bf16 %v5154_v55, %v5153_v2 }
 0x65c   : > { %v5150_v34 = vsel %vm4982_vm9, %v8725_v62, 0.0  ;;  %7753 = vmatpush1.bf16.msk.msra.mxu1 %vm12579_vm13, %v7752_v35  ;;  %v5149_v6 = vsel %vm4982_vm9, %v8724_v42, 0.0  ;;  %v5080_v30 = vsel %vm4982_vm9, %v8745_v33, 0.0 }
 0x65d   : > { %v5162_v39 = vsel %vm4995_vm10, %v5150_v34, %v8725_v62  ;;  %v5079_v41 = vsel %vm4982_vm9, %v8744_v4, 0.0  ;;  %v8733_v27 = vpop.permute.xlu0 %8732  ;;  %v8748_v19 = vpop.permute.xlu1 %8747  ;;  %5949 = vmatprep.subr.bf16.mxu1 %v14058_v60  ;;  %v5161_v58 = vsel %vm4995_vm10, %v5149_v6, %v8724_v42  ;;  %v5092_v36 = vsel %vm4995_vm10, %v5080_v30, %v8745_v33 }
 0x65e   : > { %v5091_v0 = vsel %vm4995_vm10, %v5079_v41, %v8744_v4  ;;  %v8735_v35 = vunpack.i.h.bf16 %v8733_v27  ;;  %v8734_v63 = vunpack.i.l.bf16 %v8733_v27  ;;  %v8750_v5 = vunpack.i.h.bf16 %v8748_v19  ;;  %7937 = vmatpush3.bf16.msk.msra.mxu0 %vm12579_vm13, %v7695_v26 }
 0x65f   : > { %v8749_v48 = vunpack.i.l.bf16 %v8748_v19  ;;  %v7758_v15 = vpack.c.bf16 %v5162_v39, %v5161_v58  ;;  %7938 = vmatprep.subr.msk.bf16.mxu0 %vm12579_vm13, %v7722_v53  ;;  %v7725_v59 = vpack.c.bf16 %v5092_v36, %v5091_v0 }
 0x660   : > { %v5296_v57 = vsel %vm4982_vm9, %v8735_v35, 0.0  ;;  %7756 = vmatpush1.bf16.msk.msra.mxu1 %vm12579_vm13, %v7755_v50  ;;  %v5295_v29 = vsel %vm4982_vm9, %v8734_v63, 0.0  ;;  %v5078_v47 = vsel %vm4982_vm9, %v8750_v5, 0.0 }
 0x661   : > { %v5308_v25 = vsel %vm4995_vm10, %v5296_v57, %v8735_v35  ;;  %v5077_v20 = vsel %vm4982_vm9, %v8749_v48, 0.0  ;;  %v8738_v7 = vpop.permute.xlu0 %8737  ;;  %v8758_v26 = vpop.permute.xlu1 %8757  ;;  %5951 = vmatprep.subr.bf16.mxu1 %v14058_v60  ;;  %v5307_v56 = vsel %vm4995_vm10, %v5295_v29, %v8734_v63  ;;  %v5090_v1 = vsel %vm4995_vm10, %v5078_v47, %v8750_v5  ;;  %v8786_v29 = vld [vmem:[%s13640_s5 + $0x24] ss:$16 sps:$4 sm:$0xff]  }
 0x662   : > { %v5089_v21 = vsel %vm4995_vm10, %v5077_v20, %v8749_v48  ;;  %v8740_v32 = vunpack.i.h.bf16 %v8738_v7  ;;  %v8739_v23 = vunpack.i.l.bf16 %v8738_v7  ;;  %v8760_v46 = vunpack.i.h.bf16 %v8758_v26  ;;  %7939 = vmatpush3.bf16.msk.msra.mxu0 %vm12579_vm13, %v7698_v61 }
 0x663   : > { %v8759_v49 = vunpack.i.l.bf16 %v8758_v26  ;;  %v7761_v51 = vpack.c.bf16 %v5308_v25, %v5307_v56  ;;  %7940 = vmatprep.subr.msk.bf16.mxu0 %vm12579_vm13, %v7725_v59  ;;  %v7728_v43 = vpack.c.bf16 %v5090_v1, %v5089_v21  ;;  %v8784_v26 = vld [vmem:[%s13640_s5 + $0x20] ss:$16 sps:$4 sm:$0xff]   ;;  %v8787_v56 = vld [vmem:[%s13640_s5 + $0x8] ss:$16 sps:$4 sm:$0xff]   ;;  %v8792_v1 = vld [vmem:[%s13640_s5 + $0x44] ss:$16 sps:$4 sm:$0xff]  }
 0x664   : > { %v5294_v18 = vsel %vm4982_vm9, %v8740_v32, 0.0  ;;  %7759 = vmatpush1.bf16.msk.msra.mxu1 %vm12579_vm13, %v7758_v15  ;;  %v5293_v52 = vsel %vm4982_vm9, %v8739_v23, 0.0  ;;  %v5076_v45 = vsel %vm4982_vm9, %v8760_v46, 0.0  ;;  %v14059_v21 = vmov 0.0  }
 0x665   : > { %v5075_v8 = vsel %vm4982_vm9, %v8759_v49, 0.0  ;;  %v8753_v3 = vpop.permute.xlu0 %8752  ;;  %v8768_v37 = vpop.permute.xlu1 %8767  ;;  %5957 = vmatprep.subr.bf16.mxu1 %v14058_v60  ;;  %v5306_v61 = vsel %vm4995_vm10, %v5294_v18, %v8740_v32  ;;  %v5305_v11 = vsel %vm4995_vm10, %v5293_v52, %v8739_v23  ;;  %v5088_v10 = vsel %vm4995_vm10, %v5076_v45, %v8760_v46  ;;  %v8790_v32 = vld [vmem:[%s13640_s5 + $0x40] ss:$16 sps:$4 sm:$0xff]   ;;  %v8798_v23 = vld [vmem:[%s13640_s5 + $0x64] ss:$16 sps:$4 sm:$0xff]  }
 0x666   : > { %v8755_v9 = vunpack.i.h.bf16 %v8753_v3  ;;  %v5087_v55 = vsel %vm4995_vm10, %v5075_v8, %v8759_v49  ;;  %v8754_v2 = vunpack.i.l.bf16 %v8753_v3  ;;  %v8770_v62 = vunpack.i.h.bf16 %v8768_v37  ;;  %7941 = vmatpush3.bf16.msk.msra.mxu0 %vm12579_vm13, %v7701_v38  ;;  %v8799_v46 = vld [vmem:[%s13640_s5 + $0x4c] ss:$16 sps:$4 sm:$0xff]   ;;  %v8796_v49 = vld [vmem:[%s13640_s5 + $0x60] ss:$16 sps:$4 sm:$0xff]   ;;  %v8804_v18 = vld [vmem:[%s13640_s5 + $0x84] ss:$16 sps:$4 sm:$0xff]  }
 0x667   : > { %v8769_v42 = vunpack.i.l.bf16 %v8768_v37  ;;  %7942 = vmatprep.subr.msk.bf16.mxu0 %vm12579_vm13, %v7728_v43  ;;  %v7764_v17 = vpack.c.bf16 %v5306_v61, %v5305_v11  ;;  %v7731_v39 = vpack.c.bf16 %v5088_v10, %v5087_v55  ;;  %v8805_v52 = vld [vmem:[%s13640_s5 + $0x6c] ss:$16 sps:$4 sm:$0xff]   ;;  %v8802_v45 = vld [vmem:[%s13640_s5 + $0x80] ss:$16 sps:$4 sm:$0xff]   ;;  %v8807_v8 = vld [vmem:[%s13640_s5 + $0x68] ss:$16 sps:$4 sm:$0xff]  }
 0x668   : > { %v5292_v33 = vsel %vm4982_vm9, %v8755_v9, 0.0  ;;  %7762 = vmatpush2.bf16.msk.msra.mxu1 %vm12579_vm13, %v7761_v51  ;;  %v5291_v4 = vsel %vm4982_vm9, %v8754_v2, 0.0  ;;  %v5074_v50 = vsel %vm4982_vm9, %v8770_v62, 0.0  ;;  %v8801_v51 = vld [vmem:[%s13640_s5 + $0x48] ss:$16 sps:$4 sm:$0xff]  }
 0x669   : > { %v5073_v34 = vsel %vm4982_vm9, %v8769_v42, 0.0  ;;  %v8763_v53 = vpop.permute.xlu0 %8762  ;;  %5959 = vmatprep.subr.bf16.mxu1 %v14058_v60  ;;  %v5304_v16 = vsel %vm4995_vm10, %v5292_v33, %v8755_v9  ;;  %v5303_v6 = vsel %vm4995_vm10, %v5291_v4, %v8754_v2  ;;  %v5086_v30 = vsel %vm4995_vm10, %v5074_v50, %v8770_v62  ;;  %v8778_v36 = vpop.permute.xlu1 %8777  ;;  %v8810_v3 = vld [vmem:[%s13640_s5 + $0xa4] ss:$16 sps:$4 sm:$0xff]   ;;  %v8811_v37 = vld [vmem:[%s13640_s5 + $0x8c] ss:$16 sps:$4 sm:$0xff]  }
 0x66a   : > { %v8765_v38 = vunpack.i.h.bf16 %v8763_v53  ;;  %v5085_v41 = vsel %vm4995_vm10, %v5073_v34, %v8769_v42  ;;  %v8764_v27 = vunpack.i.l.bf16 %v8763_v53  ;;  %7943 = vmatpush3.bf16.msk.msra.mxu0 %vm12579_vm13, %v7704_v44  ;;  %v7767_v35 = vpack.c.bf16 %v5304_v16, %v5303_v6  ;;  %v8808_v43 = vld [vmem:[%s13640_s5 + $0xa0] ss:$16 sps:$4 sm:$0xff]   ;;  %v8813_v61 = vld [vmem:[%s13640_s5 + $0x88] ss:$16 sps:$4 sm:$0xff]   ;;  %v8816_v11 = vld [vmem:[%s13640_s5 + $0xc4] ss:$16 sps:$4 sm:$0xff]  }
 0x66b   : > { %7944 = vmatprep.subr.msk.bf16.mxu0 %vm12579_vm13, %v7731_v39  ;;  %v7734_v22 = vpack.c.bf16 %v5086_v30, %v5085_v41  ;;  %v8780_v48 = vunpack.i.h.bf16 %v8778_v36  ;;  %v8779_v15 = vunpack.i.l.bf16 %v8778_v36  ;;  %v8817_v10 = vld [vmem:[%s13640_s5 + $0xac] ss:$16 sps:$4 sm:$0xff]   ;;  %v8814_v9 = vld [vmem:[%s13640_s5 + $0xc0] ss:$16 sps:$4 sm:$0xff]   ;;  %v8819_v55 = vld [vmem:[%s13640_s5 + $0xa8] ss:$16 sps:$4 sm:$0xff]  }
 0x66c   : > { %v5290_v19 = vsel %vm4982_vm9, %v8765_v38, 0.0  ;;  %7765 = vmatpush2.bf16.msk.msra.mxu1 %vm12579_vm13, %v7764_v17  ;;  %v5289_v58 = vsel %vm4982_vm9, %v8764_v27, 0.0  ;;  %v8822_v2 = vld [vmem:[%s13640_s5 + $0xe4] ss:$16 sps:$4 sm:$0xff]   ;;  %v8823_v62 = vld [vmem:[%s13640_s5 + $0xcc] ss:$16 sps:$4 sm:$0xff]  }
 0x66d   : > { %v8773_v0 = vpop.permute.xlu0 %8772  ;;  %5961 = vmatprep.subr.bf16.mxu1 %v14058_v60  ;;  %v5302_v40 = vsel %vm4995_vm10, %v5290_v19, %v8765_v38  ;;  %v5301_v44 = vsel %vm4995_vm10, %v5289_v58, %v8764_v27  ;;  %v5286_v47 = vsel %vm4982_vm9, %v8780_v48, 0.0  ;;  %v5285_v20 = vsel %vm4982_vm9, %v8779_v15, 0.0  ;;  %v8820_v42 = vld [vmem:[%s13640_s5 + $0xe0] ss:$16 sps:$4 sm:$0xff]   ;;  %v8825_v33 = vld [vmem:[%s13640_s5 + $0xc8] ss:$16 sps:$4 sm:$0xff]  }
 0x66e   : > { %v8775_v63 = vunpack.i.h.bf16 %v8773_v0  ;;  %v8774_v5 = vunpack.i.l.bf16 %v8773_v0  ;;  %7945 = vmatpush3.bf16.msk.msra.mxu0 %vm12579_vm13, %v7707_v14  ;;  %v7770_v25 = vpack.c.bf16 %v5302_v40, %v5301_v44  ;;  %v5298_v13 = vsel %vm4995_vm10, %v5286_v47, %v8780_v48  ;;  %v8828_v4 = vld [vmem:[%s13640_s5 + $0x104] ss:$16 sps:$4 sm:$0xff]   ;;  %v8829_v50 = vld [vmem:[%s13640_s5 + $0xec] ss:$16 sps:$4 sm:$0xff]   ;;  %v8826_v34 = vld [vmem:[%s13640_s5 + $0x100] ss:$16 sps:$4 sm:$0xff]  }
 0x66f   : > { %7946 = vmatprep.subr.msk.bf16.mxu0 %vm12579_vm13, %v7734_v22  ;;  %v5297_v54 = vsel %vm4995_vm10, %v5285_v20, %v8779_v15  ;;  %v8831_v53 = vld [vmem:[%s13640_s5 + $0xe8] ss:$16 sps:$4 sm:$0xff]   ;;  %v8834_v17 = vld [vmem:[%s13640_s5 + $0x124] ss:$16 sps:$4 sm:$0xff]   ;;  %v8835_v16 = vld [vmem:[%s13640_s5 + $0x10c] ss:$16 sps:$4 sm:$0xff]  }
 0x670   : > { %v5288_v57 = vsel %vm4982_vm9, %v8775_v63, 0.0  ;;  %7768 = vmatpush2.bf16.msk.msra.mxu1 %vm12579_vm13, %v7767_v35  ;;  %v5287_v59 = vsel %vm4982_vm9, %v8774_v5, 0.0  ;;  %v8832_v38 = vld [vmem:[%s13640_s5 + $0x120] ss:$16 sps:$4 sm:$0xff]   ;;  %v8837_v39 = vld [vmem:[%s13640_s5 + $0x108] ss:$16 sps:$4 sm:$0xff]  }
 0x671   : > { %5963 = vmatprep.subr.bf16.mxu1 %v14058_v60  ;;  %v5300_v24 = vsel %vm4995_vm10, %v5288_v57, %v8775_v63  ;;  %v5299_v14 = vsel %vm4995_vm10, %v5287_v59, %v8774_v5  ;;  %v8840_v6 = vld [vmem:[%s13640_s5 + $0x144] ss:$16 sps:$4 sm:$0xff]   ;;  %v8841_v30 = vld [vmem:[%s13640_s5 + $0x12c] ss:$16 sps:$4 sm:$0xff]   ;;  %v8838_v41 = vld [vmem:[%s13640_s5 + $0x140] ss:$16 sps:$4 sm:$0xff]  }
 0x672   : > { %7947 = vmatpush3.bf16.msk.msra.mxu0 %vm12579_vm13, %v7710_v31  ;;  %v7773_v7 = vpack.c.bf16 %v5300_v24, %v5299_v14  ;;  %v7776_v31 = vpack.c.bf16 %v5298_v13, %v5297_v54  ;;  %v8843_v27 = vld [vmem:[%s13640_s5 + $0x128] ss:$16 sps:$4 sm:$0xff]   ;;  %v8846_v19 = vld [vmem:[%s13640_s5 + $0x164] ss:$16 sps:$4 sm:$0xff]   ;;  %v8847_v58 = vld [vmem:[%s13640_s5 + $0x14c] ss:$16 sps:$4 sm:$0xff]  }
 0x673   : > { %v8844_v36 = vld [vmem:[%s13640_s5 + $0x160] ss:$16 sps:$4 sm:$0xff]   ;;  %v8849_v0 = vld [vmem:[%s13640_s5 + $0x148] ss:$16 sps:$4 sm:$0xff]   ;;  %v8850_v35 = vld [vmem:[%s13640_s5 + $0x16c] ss:$16 sps:$4 sm:$0xff]  }
 0x674   : > { %7771 = vmatpush2.bf16.msk.msra.mxu1 %vm12579_vm13, %v7770_v25  ;;  %v8852_v63 = vld [vmem:[%s13640_s5 + $0x168] ss:$16 sps:$4 sm:$0xff]   ;;  %v6408_v44 = vld [vmem:[%s13642_s7 + $0x30] sm:$0xff] }
 0x675   : > { %5965 = vmatprep.subr.bf16.mxu1 %v14058_v60  ;;  %5841 = vmatmul.mubr.bf16.vlgmr.msra.gmra.mxu0 %v8781_v12  ;;  %v6409_v22 = vld [vmem:[%s13642_s7 + $0x38] sm:$0x1f]  ;;  %v6407_v48 = vld [vmem:[%s13642_s7 + $0x28] sm:$0xff]  ;;  %v6406_v12 = vld [vmem:[%s13642_s7 + $0x20] sm:$0xff] }
 0x676   : > { %5848 = vmatprep.mubr.bf16.mxu0 %v8786_v29  ;;  %8128 = vmatprep.subr.msk.mxu0 %vm3725_vm3, %v6409_v22  ;;  %v6405_v24 = vld [vmem:[%s13642_s7 + $0x18] sm:$0xff] }
 0x677   : > { %8129 = vmatpush3.msk.msra.mxu0 %vm3725_vm3, %v6409_v22 }
 0x678   : > { %7774 = vmatpush2.bf16.msk.msra.mxu1 %vm12579_vm13, %v7773_v7  ;;  %8130 = vmatprep.subr.mxu0 %v6408_v44  ;;  %v6404_v7 = vld [vmem:[%s13642_s7 + $0x10] sm:$0xff] }
 0x679   : > { %5967 = vmatprep.subr.bf16.mxu1 %v14058_v60  ;;  %v8793_v60 = vld [vmem:[%s13640_s5 + $0x2c] ss:$16 sps:$4 sm:$0xff]   ;;  %8131 = vmatpush3.msra.mxu0 %v6408_v44 }
 0x67a   : > { %8132 = vmatprep.subr.mxu0 %v6407_v48  ;;  %v5426_v25 = vpop.permute.xlu0 %5425 }
 0x67b   : > { %8133 = vmatpush3.msra.mxu0 %v6407_v48 }
 0x67c   : > { %7777 = vmatpush2.bf16.msk.msra.mxu1 %vm12579_vm13, %v7776_v31  ;;  %8134 = vmatprep.subr.mxu0 %v6406_v12  ;;  %v5431_v31 = vpop.permute.xlu1 %5430 }
 0x67d   : > { %8240 = vmatprep.subr.mxu1 %v14059_v21  ;;  %5849 = vmatmul.mubr.bf16.gmra.mxu0 %v8784_v26 }
 0x67e   : > { %5856 = vmatprep.mubr.bf16.mxu0 %v8792_v1  ;;  %8135 = vmatpush3.msra.mxu0 %v6406_v12 }
 0x67f   : > { %5970 = vmatmul.mubr.bf16.vlgmr.msra.gmra.mxu1 %v8787_v56  ;;  %8136 = vmatprep.subr.mxu0 %v6405_v24 }
 0x680   : > { %7779 = vmatprep.mubr.msk.bf16.mxu1 %vm5771_vm11, %v8793_v60  ;;  %8137 = vmatpush3.msra.mxu0 %v6405_v24 }
 0x681   : > { %8138 = vmatprep.subr.mxu0 %v6404_v7 }
 0x682   : > { %8139 = vmatpush3.msra.mxu0 %v6404_v7 }
 0x685   : > { %5857 = vmatmul.mubr.bf16.gmra.mxu0 %v8790_v32 }
 0x686   : > { %5864 = vmatprep.mubr.bf16.mxu0 %v8798_v23 }
 0x687   : > { %5978 = vmatmul.mubr.bf16.gmra.mxu1 %v8795_v28  ;;  %v6403_v28 = vld [vmem:[%s13642_s7 + $0x8] sm:$0xff] }
 0x688   : > { %7780 = vmatprep.mubr.msk.bf16.mxu1 %vm5771_vm11, %v8799_v46  ;;  %8140 = vmatprep.subr.mxu0 %v6403_v28 }
 0x689   : > { %8141 = vmatpush3.msra.mxu0 %v6403_v28 }
 0x68d   : > { %5865 = vmatmul.mubr.bf16.gmra.mxu0 %v8796_v49 }
 0x68e   : > { %5872 = vmatprep.mubr.bf16.mxu0 %v8804_v18  ;;  %v5436_v18 = vpop.permute.xlu0 %5435 }
 0x68f   : > { %5986 = vmatmul.mubr.bf16.gmra.mxu1 %v8801_v51  ;;  %v6402_v51 = vld [vmem:[%s13642_s7] sm:$0xff] }
 0x690   : > { %7781 = vmatprep.mubr.msk.bf16.mxu1 %vm5771_vm11, %v8805_v52  ;;  %8142 = vmatprep.subr.mxu0 %v6402_v51 }
 0x691   : > { %8143 = vmatpush3.msra.mxu0 %v6402_v51 }
 0x692   : > { %7013 = vmatprep.subr.mxu0 %v14059_v21 }
 0x695   : > { %5873 = vmatmul.mubr.bf16.gmra.mxu0 %v8802_v45 }
 0x696   : > { %5880 = vmatprep.mubr.bf16.mxu0 %v8810_v3 }
 0x697   : > { %5994 = vmatmul.mubr.bf16.gmra.mxu1 %v8807_v8 }
 0x698   : > { %7782 = vmatprep.mubr.msk.bf16.mxu1 %vm5771_vm11, %v8811_v37 }
 0x69d   : > { %5881 = vmatmul.mubr.bf16.gmra.mxu0 %v8808_v43 }
 0x69e   : > { %5888 = vmatprep.mubr.bf16.mxu0 %v8816_v11 }
 0x69f   : > { %6002 = vmatmul.mubr.bf16.gmra.mxu1 %v8813_v61 }
 0x6a0   : > { %7783 = vmatprep.mubr.msk.bf16.mxu1 %vm5771_vm11, %v8817_v10 }
 0x6a5   : > { %5889 = vmatmul.mubr.bf16.gmra.mxu0 %v8814_v9 }
 0x6a6   : > { %5896 = vmatprep.mubr.bf16.mxu0 %v8822_v2  ;;  %v5441_v2 = vpop.permute.xlu1 %5440 }
 0x6a7   : > { %6010 = vmatmul.mubr.bf16.gmra.mxu1 %v8819_v55 }
 0x6a8   : > { %7784 = vmatprep.mubr.msk.bf16.mxu1 %vm5771_vm11, %v8823_v62 }
 0x6aa   : > { %v5451_v22 = vpop.permute.xlu1 %5450 }
 0x6ad   : > { %5897 = vmatmul.mubr.bf16.gmra.mxu0 %v8820_v42 }
 0x6ae   : > { %5904 = vmatprep.mubr.bf16.mxu0 %v8828_v4 }
 0x6af   : > { %6018 = vmatmul.mubr.bf16.gmra.mxu1 %v8825_v33 }
 0x6b0   : > { %7785 = vmatprep.mubr.msk.bf16.mxu1 %vm5771_vm11, %v8829_v50 }
 0x6b5   : > { %5905 = vmatmul.mubr.bf16.gmra.mxu0 %v8826_v34 }
 0x6b6   : > { %5912 = vmatprep.mubr.bf16.mxu0 %v8834_v17  ;;  %v5446_v17 = vpop.permute.xlu0 %5445 }
 0x6b7   : > { %6026 = vmatmul.mubr.bf16.gmra.mxu1 %v8831_v53 }
 0x6b8   : > { %7786 = vmatprep.mubr.msk.bf16.mxu1 %vm5771_vm11, %v8835_v16 }
 0x6bd   : > { %5913 = vmatmul.mubr.bf16.gmra.mxu0 %v8832_v38 }
 0x6be   : > { %5920 = vmatprep.mubr.bf16.mxu0 %v8840_v6 }
 0x6bf   : > { %6034 = vmatmul.mubr.bf16.gmra.mxu1 %v8837_v39 }
 0x6c0   : > { %7787 = vmatprep.mubr.msk.bf16.mxu1 %vm5771_vm11, %v8841_v30 }
 0x6c5   : > { %5921 = vmatmul.mubr.bf16.gmra.mxu0 %v8838_v41 }
 0x6c6   : > { %5928 = vmatprep.mubr.bf16.mxu0 %v8846_v19 }
 0x6c7   : > { %6042 = vmatmul.mubr.bf16.gmra.mxu1 %v8843_v27 }
 0x6c8   : > { %7788 = vmatprep.mubr.msk.bf16.mxu1 %vm5771_vm11, %v8847_v58 }
 0x6cd   : > { %5929 = vmatmul.mubr.bf16.gmra.mxu0 %v8844_v36 }
 0x6cf   : > { %6050 = vmatmul.mubr.bf16.gmra.mxu1 %v8849_v0 }
 0x6d0   : > { %7789 = vmatprep.mubr.msk.bf16.mxu1 %vm5771_vm11, %v8850_v35 }
 0x6d7   : > { %6058 = vmatmul.mubr.bf16.gmra.mxu1 %v8852_v63 }
 0x735   : > { %v7948_v40 = vpop.f32.mrf.mxu0 }
 0x737   : > { %v7949_v5 = vpop.f32.mrf.mxu0 }
 0x738   : > { %v7950_v15 = vadd.f32 %v7949_v5, %v7948_v40 }
 0x739   : > { %v7951_v57 = vpop.f32.mrf.mxu0 }
 0x73a   : > { %v5843_v47 = vadd.f32 %v7950_v15, %v5426_v25  ;;  %v5456_v25 = vpop.permute.xlu0 %5455 }
 0x73b   : > { %v7952_v59 = vpop.f32.mrf.mxu0 }
 0x73c   : > { %v7953_v14 = vadd.f32 %v7952_v59, %v7951_v57 }
 0x73d   : > { %v7954_v29 = vpop.f32.mrf.mxu0 }
 0x73e   : > { %v5846_v32 = vadd.f32 %v7953_v14, %v5431_v31 }
 0x73f   : > { %v5971_v20 = vpop.f32.mrf.mxu1  ;;  %v7955_v13 = vpop.f32.mrf.mxu0 }
 0x740   : > { %v5972_v54 = vadd.f32 %v5971_v20, %v5843_v47  ;;  %v7956_v56 = vadd.f32 %v7955_v13, %v7954_v29 }
 0x741   : > { %v5973_v26 = vpop.f32.mrf.mxu1  ;;  %v7957_v60 = vpop.f32.mrf.mxu0 }
 0x742   : > { %v12935_v1 = vmax.f32 %v5972_v54, 0.0  ;;  %v5851_v3 = vadd.f32 %v7956_v56, %v5436_v18 }
 0x743   : > { %v5974_v23 = vpop.f32.mrf.mxu1  ;;  %v7958_v46 = vpop.f32.mrf.mxu0 }
 0x744   : > { %v5975_v49 = vadd.f32 %v5974_v23, %v5846_v32  ;;  %6306 = vrot.lane.b32.xlu1 %v12935_v1, %s8862_s29  ;;  %6114 = vrot.lane.b32.xlu0 %v12935_v1, %s8861_s28  ;;  %v7959_v43 = vadd.f32 %v7958_v46, %v7957_v60  ;;  %v5461_v32 = vpop.permute.xlu1 %5460 }
 0x745   : > { %v5976_v52 = vpop.f32.mrf.mxu1  ;;  %v7960_v8 = vpop.f32.mrf.mxu0 }
 0x746   : > { %v12947_v45 = vmax.f32 %v5975_v49, 0.0  ;;  %v5854_v4 = vadd.f32 %v7959_v43, %v5441_v2 }
 0x747   : > { %v5979_v37 = vpop.f32.mrf.mxu1  ;;  %v7961_v61 = vpop.f32.mrf.mxu0 }
 0x748   : > { %v5980_v11 = vadd.f32 %v5979_v37, %v5851_v3  ;;  %6116 = vrot.lane.b32.xlu1 %v12947_v45, %s8861_s28  ;;  %6210 = vrot.lane.b32.xlu0 %v12935_v1, %s8864_s13  ;;  %v7962_v42 = vadd.f32 %v7961_v61, %v7960_v8  ;;  %v5466_v8 = vpop.permute.xlu0 %5465 }
 0x749   : > { %v5981_v10 = vpop.f32.mrf.mxu1  ;;  %v7963_v55 = vpop.f32.mrf.mxu0 }
 0x74a   : > { %v12953_v9 = vmax.f32 %v5980_v11, 0.0  ;;  %v5859_v39 = vadd.f32 %v7962_v42, %v5446_v17 }
 0x74b   : > { %v5982_v62 = vpop.f32.mrf.mxu1  ;;  %v7964_v33 = vpop.f32.mrf.mxu0 }
 0x74c   : > { %6212 = vrot.lane.b32.xlu1 %v12947_v45, %s8864_s13  ;;  %6118 = vrot.lane.b32.xlu0 %v12953_v9, %s8861_s28  ;;  %v5983_v34 = vadd.f32 %v5982_v62, %v5854_v4  ;;  %v7965_v58 = vadd.f32 %v7964_v33, %v7963_v55 }
 0x74d   : > { %v5984_v50 = vpop.f32.mrf.mxu1  ;;  %v7966_v53 = vpop.f32.mrf.mxu0 }
 0x74e   : > { %v12964_v30 = vmax.f32 %v5983_v34, 0.0  ;;  %v5862_v5 = vadd.f32 %v7965_v58, %v5451_v22  ;;  %v5471_v50 = vpop.permute.xlu1 %5470 }
 0x74f   : > { %v5987_v16 = vpop.f32.mrf.mxu1  ;;  %v7967_v38 = vpop.f32.mrf.mxu0 }
 0x750   : > { %6308 = vrot.lane.b32.xlu1 %v12947_v45, %s8862_s29  ;;  %6214 = vrot.lane.b32.xlu0 %v12953_v9, %s8864_s13  ;;  %v5988_v41 = vadd.f32 %v5987_v16, %v5859_v39  ;;  %v7968_v44 = vadd.f32 %v7967_v38, %v7966_v53 }
 0x751   : > { %v5989_v6 = vpop.f32.mrf.mxu1  ;;  %v7969_v27 = vpop.f32.mrf.mxu0 }
 0x752   : > { %v12970_v35 = vmax.f32 %v5988_v41, 0.0  ;;  %v5867_v24 = vadd.f32 %v7968_v44, %v5456_v25  ;;  %v5476_v6 = vpop.permute.xlu0 %5475 }
 0x753   : > { %v5990_v19 = vpop.f32.mrf.mxu1  ;;  %v7970_v36 = vpop.f32.mrf.mxu0 }
 0x754   : > { %6310 = vrot.lane.b32.xlu1 %v12953_v9, %s8862_s29  ;;  %6120 = vrot.lane.b32.xlu0 %v12964_v30, %s8861_s28  ;;  %v5991_v57 = vadd.f32 %v5990_v19, %v5862_v5  ;;  %v7971_v54 = vadd.f32 %v7970_v36, %v7969_v27 }
 0x755   : > { %v5992_v0 = vpop.f32.mrf.mxu1  ;;  %v7972_v63 = vpop.f32.mrf.mxu0 }
 0x756   : > { %v12980_v47 = vmax.f32 %v5991_v57, 0.0  ;;  %v5870_v46 = vadd.f32 %v7971_v54, %v5461_v32 }
 0x757   : > { %v5995_v40 = vpop.f32.mrf.mxu1  ;;  %v7973_v48 = vpop.f32.mrf.mxu0 }
 0x758   : > { %6216 = vrot.lane.b32.xlu1 %v12964_v30, %s8864_s13  ;;  %6122 = vrot.lane.b32.xlu0 %v12970_v35, %s8861_s28  ;;  %v5996_v20 = vadd.f32 %v5995_v40, %v5867_v24  ;;  %v7974_v23 = vadd.f32 %v7973_v48, %v7972_v63  ;;  %v5481_v48 = vpop.permute.xlu1 %5480 }
 0x759   : > { %v5997_v15 = vpop.f32.mrf.mxu1  ;;  %v7975_v59 = vpop.f32.mrf.mxu0 }
 0x75a   : > { %v12986_v56 = vmax.f32 %v5996_v20, 0.0  ;;  %v5875_v37 = vadd.f32 %v7974_v23, %v5466_v8 }
 0x75b   : > { %v5998_v12 = vpop.f32.mrf.mxu1  ;;  %v7976_v14 = vpop.f32.mrf.mxu0 }
 0x75c   : > { %6312 = vrot.lane.b32.xlu1 %v12964_v30, %s8862_s29  ;;  %6218 = vrot.lane.b32.xlu0 %v12970_v35, %s8864_s13  ;;  %v5999_v18 = vadd.f32 %v5998_v12, %v5870_v46  ;;  %v7977_v62 = vadd.f32 %v7976_v14, %v7975_v59  ;;  %v5486_v14 = vpop.permute.xlu0 %5485  ;;  %v5491_v46 = vpop.permute.xlu1 %5490 }
 0x75d   : > { %v6000_v29 = vpop.f32.mrf.mxu1  ;;  %v7978_v7 = vpop.f32.mrf.mxu0 }
 0x75e   : > { %v12996_v11 = vmax.f32 %v5999_v18, 0.0  ;;  %v5878_v17 = vadd.f32 %v7977_v62, %v5471_v50 }
 0x75f   : > { %v6003_v13 = vpop.f32.mrf.mxu1  ;;  %v7979_v31 = vpop.f32.mrf.mxu0 }
 0x760   : > { %6314 = vrot.lane.b32.xlu1 %v12970_v35, %s8862_s29  ;;  %6124 = vrot.lane.b32.xlu0 %v12980_v47, %s8861_s28  ;;  %v6004_v10 = vadd.f32 %v6003_v13, %v5875_v37  ;;  %v7980_v53 = vadd.f32 %v7979_v31, %v7978_v7  ;;  %v5496_v37 = vpop.permute.xlu0 %5495 }
 0x761   : > { %v6005_v26 = vpop.f32.mrf.mxu1  ;;  %v7981_v60 = vpop.f32.mrf.mxu0 }
 0x762   : > { %v13002_v4 = vmax.f32 %v6004_v10, 0.0  ;;  %v5883_v27 = vadd.f32 %v7980_v53, %v5476_v6 }
 0x763   : > { %v6006_v28 = vpop.f32.mrf.mxu1  ;;  %v7982_v49 = vpop.f32.mrf.mxu0 }
 0x764   : > { %6220 = vrot.lane.b32.xlu1 %v12980_v47, %s8864_s13  ;;  %6126 = vrot.lane.b32.xlu0 %v12986_v56, %s8861_s28  ;;  %v6007_v39 = vadd.f32 %v6006_v28, %v5878_v17  ;;  %v7983_v22 = vadd.f32 %v7982_v49, %v7981_v60  ;;  %v5501_v17 = vpop.permute.xlu1 %5500 }
 0x765   : > { %v6008_v51 = vpop.f32.mrf.mxu1  ;;  %v7984_v52 = vpop.f32.mrf.mxu0 }
 0x766   : > { %v13012_v36 = vmax.f32 %v6007_v39, 0.0  ;;  %v5886_v59 = vadd.f32 %v7983_v22, %v5481_v48 }
 0x767   : > { %v6011_v3 = vpop.f32.mrf.mxu1  ;;  %v7985_v43 = vpop.f32.mrf.mxu0 }
 0x768   : > { %6316 = vrot.lane.b32.xlu1 %v12980_v47, %s8862_s29  ;;  %6222 = vrot.lane.b32.xlu0 %v12986_v56, %s8864_s13  ;;  %v6012_v0 = vadd.f32 %v6011_v3, %v5883_v27  ;;  %v7986_v57 = vadd.f32 %v7985_v43, %v7984_v52 }
 0x769   : > { %v6013_v61 = vpop.f32.mrf.mxu1  ;;  %v7987_v55 = vpop.f32.mrf.mxu0 }
 0x76a   : > { %v13018_v5 = vmax.f32 %v6012_v0, 0.0  ;;  %v5891_v20 = vadd.f32 %v7986_v57, %v5486_v14 }
 0x76b   : > { %v6014_v2 = vpop.f32.mrf.mxu1  ;;  %v7988_v42 = vpop.f32.mrf.mxu0 }
 0x76c   : > { %6318 = vrot.lane.b32.xlu1 %v12986_v56, %s8862_s29  ;;  %6128 = vrot.lane.b32.xlu0 %v12996_v11, %s8861_s28  ;;  %v6015_v24 = vadd.f32 %v6014_v2, %v5886_v59  ;;  %v7989_v60 = vadd.f32 %v7988_v42, %v7987_v55 }
 0x76d   : > { %v6016_v33 = vpop.f32.mrf.mxu1  ;;  %v7990_v16 = vpop.f32.mrf.mxu0 }
 0x76e   : > { %v13028_v54 = vmax.f32 %v6015_v24, 0.0  ;;  %v5894_v18 = vadd.f32 %v7989_v60, %v5491_v46 }
 0x76f   : > { %v6019_v34 = vpop.f32.mrf.mxu1  ;;  %v7991_v19 = vpop.f32.mrf.mxu0 }
 0x770   : > { %6224 = vrot.lane.b32.xlu1 %v12996_v11, %s8864_s13  ;;  %6130 = vrot.lane.b32.xlu0 %v13002_v4, %s8861_s28  ;;  %v6020_v31 = vadd.f32 %v6019_v34, %v5891_v20  ;;  %v7992_v51 = vadd.f32 %v7991_v19, %v7990_v16  ;;  %v5506_v19 = vpop.permute.xlu0 %5505 }
 0x771   : > { %v6021_v38 = vpop.f32.mrf.mxu1  ;;  %v7993_v40 = vpop.f32.mrf.mxu0 }
 0x772   : > { %v13034_v23 = vmax.f32 %v6020_v31, 0.0  ;;  %v5899_v61 = vadd.f32 %v7992_v51, %v5496_v37 }
 0x773   : > { %v6022_v41 = vpop.f32.mrf.mxu1  ;;  %v7994_v25 = vpop.f32.mrf.mxu0 }
 0x774   : > { %6320 = vrot.lane.b32.xlu1 %v12996_v11, %s8862_s29  ;;  %6226 = vrot.lane.b32.xlu0 %v13002_v4, %s8864_s13  ;;  %v6023_v3 = vadd.f32 %v6022_v41, %v5894_v18  ;;  %v7995_v33 = vadd.f32 %v7994_v25, %v7993_v40  ;;  %v5516_v31 = vpop.permute.xlu0 %5515 }
 0x775   : > { %v6024_v58 = vpop.f32.mrf.mxu1  ;;  %v7996_v7 = vpop.f32.mrf.mxu0 }
 0x776   : > { %v13048_v2 = vmax.f32 %v6023_v3, 0.0  ;;  %v5902_v39 = vadd.f32 %v7995_v33, %v5501_v17 }
 0x777   : > { %v6027_v63 = vpop.f32.mrf.mxu1  ;;  %v7997_v32 = vpop.f32.mrf.mxu0 }
 0x778   : > { %6322 = vrot.lane.b32.xlu1 %v13002_v4, %s8862_s29  ;;  %6132 = vrot.lane.b32.xlu0 %v13012_v36, %s8861_s28  ;;  %v6028_v62 = vadd.f32 %v6027_v63, %v5899_v61  ;;  %v7998_v38 = vadd.f32 %v7997_v32, %v7996_v7  ;;  %v5526_v18 = vpop.permute.xlu0 %5525 }
 0x779   : > { %v6029_v44 = vpop.f32.mrf.mxu1  ;;  %v7999_v52 = vpop.f32.mrf.mxu0 }
 0x77a   : > { %v13056_v53 = vmax.f32 %v6028_v62, 0.0  ;;  %v5907_v0 = vadd.f32 %v7998_v38, %v5506_v19 }
 0x77b   : > { %v6030_v15 = vpop.f32.mrf.mxu1  ;;  %v8000_v10 = vpop.f32.mrf.mxu0 }
 0x77c   : > { %6228 = vrot.lane.b32.xlu1 %v13012_v36, %s8864_s13  ;;  %6134 = vrot.lane.b32.xlu0 %v13018_v5, %s8861_s28  ;;  %v6031_v27 = vadd.f32 %v6030_v15, %v5902_v39  ;;  %v8001_v57 = vadd.f32 %v8000_v10, %v7999_v52  ;;  %v5536_v62 = vpop.permute.xlu0 %5535 }
 0x77d   : > { %v6032_v12 = vpop.f32.mrf.mxu1  ;;  %v8002_v50 = vpop.f32.mrf.mxu0 }
 0x77e   : > { %v13070_v40 = vmax.f32 %v6031_v27, 0.0  ;;  %v5511_v12 = vpop.permute.xlu1 %5510 }
 0x77f   : > { %v6035_v29 = vpop.f32.mrf.mxu1  ;;  %v8003_v6 = vpop.f32.mrf.mxu0  ;;  %v5910_v24 = vadd.f32 %v8001_v57, %v5511_v12 }
 0x780   : > { %6324 = vrot.lane.b32.xlu1 %v13012_v36, %s8862_s29  ;;  %6230 = vrot.lane.b32.xlu0 %v13018_v5, %s8864_s13  ;;  %v6036_v44 = vadd.f32 %v6035_v29, %v5907_v0  ;;  %v8004_v20 = vadd.f32 %v8003_v6, %v8002_v50 }
 0x781   : > { %v6037_v13 = vpop.f32.mrf.mxu1  ;;  %v8005_v63 = vpop.f32.mrf.mxu0 }
 0x782   : > { %v13078_v25 = vmax.f32 %v6036_v44, 0.0  ;;  %v5521_v13 = vpop.permute.xlu1 %5520 }
 0x783   : > { %v6038_v26 = vpop.f32.mrf.mxu1  ;;  %v8006_v15 = vpop.f32.mrf.mxu0 }
 0x784   : > { %6326 = vrot.lane.b32.xlu1 %v13018_v5, %s8862_s29  ;;  %6136 = vrot.lane.b32.xlu0 %v13028_v54, %s8861_s28  ;;  %v6039_v29 = vadd.f32 %v6038_v26, %v5910_v24  ;;  %v8007_v32 = vadd.f32 %v8006_v15, %v8005_v63 }
 0x785   : > { %v6040_v28 = vpop.f32.mrf.mxu1  ;;  %v8008_v14 = vpop.f32.mrf.mxu0 }
 0x786   : > { %v13088_v60 = vmax.f32 %v6039_v29, 0.0  ;;  %v5915_v28 = vadd.f32 %v8004_v20, %v5516_v31  ;;  %v5531_v51 = vpop.permute.xlu1 %5530 }
 0x787   : > { %v13036_v49 = vpop.f32.mrf.mxu1  ;;  %v8009_v7 = vpop.f32.mrf.mxu0 }
 0x788   : > { %6232 = vrot.lane.b32.xlu1 %v13028_v54, %s8864_s13  ;;  %6138 = vrot.lane.b32.xlu0 %v13034_v23, %s8861_s28  ;;  %v6044_v46 = vadd.f32 %v13036_v49, %v5915_v28  ;;  %v8010_v52 = vadd.f32 %v8009_v7, %v8008_v14 }
 0x789   : > { %v6045_v8 = vpop.f32.mrf.mxu1  ;;  %v8011_v26 = vpop.f32.mrf.mxu0 }
 0x78a   : > { %v5918_v8 = vadd.f32 %v8007_v32, %v5521_v13  ;;  %v13099_v37 = vmax.f32 %v6044_v46, 0.0  ;;  %v5923_v10 = vadd.f32 %v8010_v52, %v5526_v18 }
 0x78b   : > { %v13042_v43 = vpop.f32.mrf.mxu1  ;;  %v8012_v3 = vpop.f32.mrf.mxu0 }
 0x78c   : > { %6328 = vrot.lane.b32.xlu1 %v13028_v54, %s8862_s29  ;;  %6234 = vrot.lane.b32.xlu0 %v13034_v23, %s8864_s13  ;;  %v6047_v61 = vadd.f32 %v13042_v43, %v5918_v8 }
 0x78d   : > { %v6048_v55 = vpop.f32.mrf.mxu1  ;;  %v8014_v49 = vpop.f32.mrf.mxu0 }
 0x78e   : > { %v5541_v55 = vpop.permute.xlu1 %5540  ;;  %v13106_v33 = vmax.f32 %v6047_v61, 0.0 }
 0x78f   : > { %v13050_v42 = vpop.f32.mrf.mxu1  ;;  %v8015_v43 = vpop.f32.mrf.mxu0 }
 0x790   : > { %6330 = vrot.lane.b32.xlu1 %v13034_v23, %s8862_s29  ;;  %6140 = vrot.lane.b32.xlu0 %v13048_v2, %s8861_s28  ;;  %v6052_v50 = vadd.f32 %v13050_v42, %v5923_v10  ;;  %v8016_v6 = vadd.f32 %v8015_v43, %v8014_v49 }
 0x791   : > { %v6053_v34 = vpop.f32.mrf.mxu1  ;;  %v8017_v42 = vpop.f32.mrf.mxu0 }
 0x792   : > { %v8013_v34 = vadd.f32 %v8012_v3, %v8011_v26  ;;  %v13113_v17 = vmax.f32 %v6052_v50, 0.0  ;;  %v5931_v44 = vadd.f32 %v8016_v6, %v5536_v62 }
 0x793   : > { %v13058_v16 = vpop.f32.mrf.mxu1  ;;  %v8018_v57 = vpop.f32.mrf.mxu0 }
 0x794   : > { %6236 = vrot.lane.b32.xlu1 %v13048_v2, %s8864_s13  ;;  %6142 = vrot.lane.b32.xlu0 %v13056_v53, %s8861_s28  ;;  %v8019_v14 = vadd.f32 %v8018_v57, %v8017_v42 }
 0x795   : > { %v6056_v41 = vpop.f32.mrf.mxu1 }
 0x796   : > { %v5926_v41 = vadd.f32 %v8013_v34, %v5531_v51  ;;  %v5934_v32 = vadd.f32 %v8019_v14, %v5541_v55 }
 0x797   : > { %v13064_v58 = vpop.f32.mrf.mxu1 }
 0x798   : > { %6332 = vrot.lane.b32.xlu1 %v13048_v2, %s8862_s29  ;;  %6238 = vrot.lane.b32.xlu0 %v13056_v53, %s8864_s13  ;;  %v6055_v19 = vadd.f32 %v13058_v16, %v5926_v41  ;;  %v6060_v12 = vadd.f32 %v13064_v58, %v5931_v44 }
 0x799   : > { %v6061_v22 = vpop.f32.mrf.mxu1 }
 0x79a   : > { %v13134_v20 = vmax.f32 %v6060_v12, 0.0 }
 0x79b   : > { %v13072_v48 = vpop.f32.mrf.mxu1 }
 0x79c   : > { %6334 = vrot.lane.b32.xlu1 %v13056_v53, %s8862_s29  ;;  %6144 = vrot.lane.b32.xlu0 %v13070_v40, %s8861_s28  ;;  %v6063_v28 = vadd.f32 %v13072_v48, %v5934_v32 }
 0x79d   : > { %v6064_v59 = vpop.f32.mrf.mxu1 }
 0x79e   : > { %v13125_v59 = vmax.f32 %v6055_v19, 0.0 }
 0x7a0   : > { %6240 = vrot.lane.b32.xlu1 %v13070_v40, %s8864_s13  ;;  %6146 = vrot.lane.b32.xlu0 %v13078_v25, %s8861_s28 }
 0x7a4   : > { %6336 = vrot.lane.b32.xlu1 %v13070_v40, %s8862_s29  ;;  %6242 = vrot.lane.b32.xlu0 %v13078_v25, %s8864_s13 }
 0x7a8   : > { %6244 = vrot.lane.b32.xlu1 %v13088_v60, %s8864_s13  ;;  %6148 = vrot.lane.b32.xlu0 %v13088_v60, %s8861_s28 }
 0x7ac   : > { %6340 = vrot.lane.b32.xlu1 %v13088_v60, %s8862_s29  ;;  %6338 = vrot.lane.b32.xlu0 %v13078_v25, %s8862_s29 }
 0x7b0   : > { %6342 = vrot.lane.b32.xlu1 %v13099_v37, %s8862_s29  ;;  %6150 = vrot.lane.b32.xlu0 %v13099_v37, %s8861_s28 }
 0x7b4   : > { %6152 = vrot.lane.b32.xlu1 %v13106_v33, %s8861_s28  ;;  %6246 = vrot.lane.b32.xlu0 %v13099_v37, %s8864_s13 }
 0x7b6   : > { %v6307_v38 = vpop.permute.xlu1 %6306  ;;  %v6115_v39 = vpop.permute.xlu0 %6114 }
 0x7b7   : > { %v6186_v27 = vmax.f32 %v12935_v1, %v6115_v39 }
 0x7b8   : > { %6248 = vrot.lane.b32.xlu1 %v13106_v33, %s8864_s13  ;;  %6154 = vrot.lane.b32.xlu0 %v13113_v17, %s8861_s28 }
 0x7ba   : > { %v6117_v0 = vpop.permute.xlu1 %6116  ;;  %v6211_v63 = vpop.permute.xlu0 %6210 }
 0x7bb   : > { %v6282_v22 = vmax.f32 %v6186_v27, %v6211_v63  ;;  %v6187_v16 = vmax.f32 %v12947_v45, %v6117_v0 }
 0x7bc   : > { %6344 = vrot.lane.b32.xlu1 %v13106_v33, %s8862_s29  ;;  %6250 = vrot.lane.b32.xlu0 %v13113_v17, %s8864_s13 }
 0x7bd   : > { %v6378_v15 = vmax.f32 %v6282_v22, %v6307_v38 }
 0x7be   : > { %v6213_v1 = vpop.permute.xlu1 %6212  ;;  %v6119_v24 = vpop.permute.xlu0 %6118 }
 0x7bf   : > { %8144 = vmatprep.mubr.msk.f32.mxu0 %vm6410_vm14, %v6378_v15  ;;  %v6283_v29 = vmax.f32 %v6187_v16, %v6213_v1  ;;  %v6188_v58 = vmax.f32 %v12953_v9, %v6119_v24  ;;  %v13148_v9 = vmax.f32 %v6063_v28, 0.0 }
 0x7c0   : > { %6346 = vrot.lane.b32.xlu1 %v13113_v17, %s8862_s29  ;;  %6156 = vrot.lane.b32.xlu0 %v13125_v59, %s8861_s28 }
 0x7c2   : > { %v6309_v7 = vpop.permute.xlu1 %6308  ;;  %v6215_v13 = vpop.permute.xlu0 %6214 }
 0x7c3   : > { %v6379_v31 = vmax.f32 %v6283_v29, %v6309_v7  ;;  %v6284_v45 = vmax.f32 %v6188_v58, %v6215_v13 }
 0x7c4   : > { %6252 = vrot.lane.b32.xlu1 %v13125_v59, %s8864_s13  ;;  %6158 = vrot.lane.b32.xlu0 %v13134_v20, %s8861_s28 }
 0x7c5   : > { %8145 = vmatmul.mubr.msk.f32.vlgmr.msra.gmra.mxu0 %vm6410_vm14, %v6379_v31 }
 0x7c6   : > { %v6311_v26 = vpop.permute.xlu1 %6310  ;;  %v6121_v46 = vpop.permute.xlu0 %6120 }
 0x7c7   : > { %v6380_v51 = vmax.f32 %v6284_v45, %v6311_v26  ;;  %v6189_v8 = vmax.f32 %v12964_v30, %v6121_v46 }
 0x7c8   : > { %6348 = vrot.lane.b32.xlu1 %v13125_v59, %s8862_s29  ;;  %6254 = vrot.lane.b32.xlu0 %v13134_v20, %s8864_s13 }
 0x7c9   : > { %8147 = vmatprep.mubr.msk.f32.mxu0 %vm6410_vm14, %v6380_v51 }
 0x7ca   : > { %v6217_v18 = vpop.permute.xlu1 %6216  ;;  %v6123_v52 = vpop.permute.xlu0 %6122 }
 0x7cb   : > { %v6285_v48 = vmax.f32 %v6189_v8, %v6217_v18  ;;  %v6190_v10 = vmax.f32 %v12970_v35, %v6123_v52 }
 0x7cc   : > { %6256 = vrot.lane.b32.xlu1 %v13148_v9, %s8864_s13  ;;  %6160 = vrot.lane.b32.xlu0 %v13148_v9, %s8861_s28  ;;  %s7835_s28 = sshll.u32 %s14063_s22, 4 }
 0x7cd   : > { %s418_s24 = scalar_lea.vmem %s13647_s12, %s7835_s28 }
 0x7ce   : > { %v6313_v3 = vpop.permute.xlu1 %6312  ;;  %v6219_v61 = vpop.permute.xlu0 %6218 }
 0x7cf   : > { %v6381_v49 = vmax.f32 %v6285_v48, %v6313_v3  ;;  %v6286_v55 = vmax.f32 %v6190_v10, %v6219_v61 }
 0x7d0   : > { %6352 = vrot.lane.b32.xlu1 %v13148_v9, %s8862_s29  ;;  %6350 = vrot.lane.b32.xlu0 %v13134_v20, %s8862_s29 }
 0x7d1   : > { %8148 = vmatmul.mubr.msk.f32.gmra.mxu0 %vm6410_vm14, %v6381_v49 }
 0x7d2   : > { %v6315_v30 = vpop.permute.xlu1 %6314  ;;  %v6125_v62 = vpop.permute.xlu0 %6124 }
 0x7d3   : > { %v6382_v50 = vmax.f32 %v6286_v55, %v6315_v30  ;;  %v6191_v38 = vmax.f32 %v12980_v47, %v6125_v62 }
 0x7d5   : > { %8150 = vmatprep.mubr.msk.f32.mxu0 %vm6410_vm14, %v6382_v50 }
 0x7d6   : > { %v6221_v34 = vpop.permute.xlu1 %6220  ;;  %v6127_v43 = vpop.permute.xlu0 %6126 }
 0x7d7   : > { %v6287_v35 = vmax.f32 %v6191_v38, %v6221_v34  ;;  %v6192_v41 = vmax.f32 %v12986_v56, %v6127_v43 }
 0x7da   : > { %v6317_v39 = vpop.permute.xlu1 %6316  ;;  %v6223_v6 = vpop.permute.xlu0 %6222 }
 0x7db   : > { %v6383_v42 = vmax.f32 %v6287_v35, %v6317_v39  ;;  %v6288_v27 = vmax.f32 %v6192_v41, %v6223_v6 }
 0x7dd   : > { %8151 = vmatmul.mubr.msk.f32.gmra.mxu0 %vm6410_vm14, %v6383_v42 }
 0x7de   : > { %v6319_v19 = vpop.permute.xlu1 %6318  ;;  %v6129_v0 = vpop.permute.xlu0 %6128 }
 0x7df   : > { %v6384_v63 = vmax.f32 %v6288_v27, %v6319_v19  ;;  %v6193_v57 = vmax.f32 %v12996_v11, %v6129_v0 }
 0x7e1   : > { %8153 = vmatprep.mubr.msk.f32.mxu0 %vm6410_vm14, %v6384_v63 }
 0x7e2   : > { %v6225_v22 = vpop.permute.xlu1 %6224  ;;  %v6131_v44 = vpop.permute.xlu0 %6130 }
 0x7e3   : > { %v6289_v15 = vmax.f32 %v6193_v57, %v6225_v22  ;;  %v6194_v1 = vmax.f32 %v13002_v4, %v6131_v44 }
 0x7e6   : > { %v6321_v47 = vpop.permute.xlu1 %6320  ;;  %v6227_v12 = vpop.permute.xlu0 %6226 }
 0x7e7   : > { %v6385_v24 = vmax.f32 %v6289_v15, %v6321_v47  ;;  %v6290_v56 = vmax.f32 %v6194_v1, %v6227_v12 }
 0x7e9   : > { %8154 = vmatmul.mubr.msk.f32.gmra.mxu0 %vm6410_vm14, %v6385_v24 }
 0x7ea   : > { %v6323_v16 = vpop.permute.xlu1 %6322  ;;  %v6133_v14 = vpop.permute.xlu0 %6132 }
 0x7eb   : > { %v6386_v29 = vmax.f32 %v6290_v56, %v6323_v16  ;;  %v6195_v58 = vmax.f32 %v13012_v36, %v6133_v14 }
 0x7ed   : > { %8156 = vmatprep.mubr.msk.f32.mxu0 %vm6410_vm14, %v6386_v29 }
 0x7ee   : > { %v6229_v7 = vpop.permute.xlu1 %6228  ;;  %v6135_v13 = vpop.permute.xlu0 %6134 }
 0x7ef   : > { %v6291_v31 = vmax.f32 %v6195_v58, %v6229_v7  ;;  %v6196_v45 = vmax.f32 %v13018_v5, %v6135_v13 }
 0x7f2   : > { %v6325_v11 = vpop.permute.xlu1 %6324  ;;  %v6231_v32 = vpop.permute.xlu0 %6230 }
 0x7f3   : > { %v6387_v28 = vmax.f32 %v6291_v31, %v6325_v11  ;;  %v6292_v4 = vmax.f32 %v6196_v45, %v6231_v32 }
 0x7f5   : > { %8157 = vmatmul.mubr.msk.f32.gmra.mxu0 %vm6410_vm14, %v6387_v28 }
 0x7f6   : > { %v6327_v26 = vpop.permute.xlu1 %6326  ;;  %v6137_v46 = vpop.permute.xlu0 %6136 }
 0x7f7   : > { %v6388_v51 = vmax.f32 %v6292_v4, %v6327_v26  ;;  %v6197_v8 = vmax.f32 %v13028_v54, %v6137_v46 }
 0x7f9   : > { %8159 = vmatprep.mubr.msk.f32.mxu0 %vm6410_vm14, %v6388_v51 }
 0x7fa   : > { %v6233_v18 = vpop.permute.xlu1 %6232  ;;  %v6139_v52 = vpop.permute.xlu0 %6138 }
 0x7fb   : > { %v6293_v48 = vmax.f32 %v6197_v8, %v6233_v18  ;;  %v6198_v61 = vmax.f32 %v13034_v23, %v6139_v52 }
 0x7fe   : > { %v6329_v36 = vpop.permute.xlu1 %6328  ;;  %v6235_v3 = vpop.permute.xlu0 %6234 }
 0x7ff   : > { %v6389_v10 = vmax.f32 %v6293_v48, %v6329_v36  ;;  %v6294_v5 = vmax.f32 %v6198_v61, %v6235_v3 }
 0x801   : > { %8160 = vmatmul.mubr.msk.f32.gmra.mxu0 %vm6410_vm14, %v6389_v10 }
 0x802   : > { %v6331_v49 = vpop.permute.xlu1 %6330  ;;  %v6141_v55 = vpop.permute.xlu0 %6140 }
 0x803   : > { %v6390_v30 = vmax.f32 %v6294_v5, %v6331_v49  ;;  %v6199_v34 = vmax.f32 %v13048_v2, %v6141_v55 }
 0x805   : > { %8162 = vmatprep.mubr.msk.f32.mxu0 %vm6410_vm14, %v6390_v30 }
 0x806   : > { %v6237_v62 = vpop.permute.xlu1 %6236  ;;  %v6143_v50 = vpop.permute.xlu0 %6142 }
 0x807   : > { %v6295_v43 = vmax.f32 %v6199_v34, %v6237_v62  ;;  %v6200_v35 = vmax.f32 %v13056_v53, %v6143_v50 }
 0x80a   : > { %v6333_v54 = vpop.permute.xlu1 %6332  ;;  %v6239_v38 = vpop.permute.xlu0 %6238 }
 0x80b   : > { %v6391_v39 = vmax.f32 %v6295_v43, %v6333_v54  ;;  %v6296_v23 = vmax.f32 %v6200_v35, %v6239_v38 }
 0x80d   : > { %8163 = vmatmul.mubr.msk.f32.gmra.mxu0 %vm6410_vm14, %v6391_v39 }
 0x80e   : > { %v6335_v6 = vpop.permute.xlu1 %6334  ;;  %v6145_v41 = vpop.permute.xlu0 %6144 }
 0x80f   : > { %v6392_v42 = vmax.f32 %v6296_v23, %v6335_v6  ;;  %v6201_v0 = vmax.f32 %v13070_v40, %v6145_v41 }
 0x811   : > { %8165 = vmatprep.mubr.msk.f32.mxu0 %vm6410_vm14, %v6392_v42 }
 0x812   : > { %v6241_v27 = vpop.permute.xlu1 %6240  ;;  %v6147_v19 = vpop.permute.xlu0 %6146 }
 0x813   : > { %v6297_v63 = vmax.f32 %v6201_v0, %v6241_v27  ;;  %v6202_v15 = vmax.f32 %v13078_v25, %v6147_v19 }
 0x816   : > { %v6337_v2 = vpop.permute.xlu1 %6336  ;;  %v6243_v22 = vpop.permute.xlu0 %6242 }
 0x817   : > { %v6393_v44 = vmax.f32 %v6297_v63, %v6337_v2  ;;  %v6298_v12 = vmax.f32 %v6202_v15, %v6243_v22  ;;  %v6987_v2 = vld [vmem:[%s13643_s8 + $0x38] sm:$0xff]  ;;  %v6981_v22 = vld [vmem:[%s13643_s8 + $0x8] sm:$0xff] }
 0x818   : > { %7819 = vmatprep.mubr.msk.f32.mxu1 %vm6410_vm14, %v6987_v2 }
 0x819   : > { %8166 = vmatmul.mubr.msk.f32.gmra.mxu0 %vm6410_vm14, %v6393_v44 }
 0x81a   : > { %v6245_v53 = vpop.permute.xlu1 %6244  ;;  %v6149_v57 = vpop.permute.xlu0 %6148 }
 0x81b   : > { %v6203_v47 = vmax.f32 %v13088_v60, %v6149_v57 }
 0x81d   : > { %v6299_v1 = vmax.f32 %v6203_v47, %v6245_v53 }
 0x81e   : > { %v6341_v24 = vpop.permute.xlu1 %6340  ;;  %v6339_v56 = vpop.permute.xlu0 %6338 }
 0x81f   : > { %v6395_v16 = vmax.f32 %v6299_v1, %v6341_v24  ;;  %v6394_v14 = vmax.f32 %v6298_v12, %v6339_v56 }
 0x821   : > { %8168 = vmatprep.mubr.msk.f32.mxu0 %vm6410_vm14, %v6394_v14 }
 0x822   : > { %v6343_v40 = vpop.permute.xlu1 %6342  ;;  %8169 = vmatmul.mubr.msk.f32.gmra.mxu0 %vm6410_vm14, %v6395_v16  ;;  %v6151_v29 = vpop.permute.xlu0 %6150 }
 0x823   : > { %v6204_v7 = vmax.f32 %v13099_v37, %v6151_v29 }
 0x826   : > { %v6153_v13 = vpop.permute.xlu1 %6152  ;;  %v6247_v58 = vpop.permute.xlu0 %6246 }
 0x827   : > { %v6300_v31 = vmax.f32 %v6204_v7, %v6247_v58  ;;  %v6205_v32 = vmax.f32 %v13106_v33, %v6153_v13 }
 0x829   : > { %v6396_v25 = vmax.f32 %v6300_v31, %v6343_v40 }
 0x82a   : > { %v6249_v11 = vpop.permute.xlu1 %6248  ;;  %v6155_v60 = vpop.permute.xlu0 %6154 }
 0x82b   : > { %8171 = vmatprep.mubr.msk.f32.mxu0 %vm6410_vm14, %v6396_v25  ;;  %v6301_v45 = vmax.f32 %v6205_v32, %v6249_v11  ;;  %v6206_v26 = vmax.f32 %v13113_v17, %v6155_v60 }
 0x82e   : > { %v6345_v28 = vpop.permute.xlu1 %6344  ;;  %v6251_v4 = vpop.permute.xlu0 %6250 }
 0x82f   : > { %v6397_v46 = vmax.f32 %v6301_v45, %v6345_v28  ;;  %v6302_v51 = vmax.f32 %v6206_v26, %v6251_v4 }
 0x831   : > { %8172 = vmatmul.mubr.msk.f32.gmra.mxu0 %vm6410_vm14, %v6397_v46 }
 0x832   : > { %v6347_v37 = vpop.permute.xlu1 %6346  ;;  %v6157_v18 = vpop.permute.xlu0 %6156 }
 0x833   : > { %v6398_v52 = vmax.f32 %v6302_v51, %v6347_v37  ;;  %v6207_v33 = vmax.f32 %v13125_v59, %v6157_v18 }
 0x835   : > { %8174 = vmatprep.mubr.msk.f32.mxu0 %vm6410_vm14, %v6398_v52 }
 0x836   : > { %v6253_v8 = vpop.permute.xlu1 %6252  ;;  %v6159_v48 = vpop.permute.xlu0 %6158 }
 0x837   : > { %v6303_v36 = vmax.f32 %v6207_v33, %v6253_v8  ;;  %v6208_v49 = vmax.f32 %v13134_v20, %v6159_v48 }
 0x83a   : > { %v6349_v3 = vpop.permute.xlu1 %6348  ;;  %v6255_v61 = vpop.permute.xlu0 %6254 }
 0x83b   : > { %v6399_v10 = vmax.f32 %v6303_v36, %v6349_v3  ;;  %v6304_v30 = vmax.f32 %v6208_v49, %v6255_v61 }
 0x83d   : > { %8175 = vmatmul.mubr.msk.f32.gmra.mxu0 %vm6410_vm14, %v6399_v10 }
 0x83e   : > { %v6257_v17 = vpop.permute.xlu1 %6256  ;;  %v6161_v5 = vpop.permute.xlu0 %6160 }
 0x83f   : > { %v6209_v55 = vmax.f32 %v13148_v9, %v6161_v5 }
 0x841   : > { %v6305_v62 = vmax.f32 %v6209_v55, %v6257_v17 }
 0x842   : > { %v6353_v50 = vpop.permute.xlu1 %6352  ;;  %v6351_v34 = vpop.permute.xlu0 %6350 }
 0x843   : > { %v6401_v43 = vmax.f32 %v6305_v62, %v6353_v50  ;;  %v6400_v54 = vmax.f32 %v6304_v30, %v6351_v34 }
 0x845   : > { %8177 = vmatprep.mubr.msk.f32.mxu0 %vm6410_vm14, %v6400_v54 }
 0x846   : > { %8178 = vmatmul.mubr.msk.f32.gmra.mxu0 %vm6410_vm14, %v6401_v43 }
 0x847   : > { %7816 = vmatprep.mubr.msk.f32.mxu0 %vm6410_vm14, %v6981_v22 }
 0x885   : > { %v13200_v59 = vpop.f32.mrf.mxu0 }
 0x886   : > { %v6696_v38 = vrot.slane %v13200_v59, 1  ;;  %v6791_v35 = vrot.slane %v13200_v59, 2  ;;  %v6886_v20 = vrot.slane %v13200_v59, 3 }
 0x887   : > { %v6552_v39 = vpop.f32.mrf.mxu0 }
 0x888   : > { %v6695_v9 = vrot.slane %v6552_v39, 1  ;;  %v6790_v23 = vrot.slane %v6552_v39, 2  ;;  %v6885_v6 = vrot.slane %v6552_v39, 3 }
 0x88a   : > { %v6697_v41 = vsel %vm4082_vm7, %v6695_v9, %v6696_v38  ;;  %v6792_v42 = vsel %vm4274_vm8, %v6790_v23, %v6791_v35  ;;  %v6887_v27 = vsel %vm3725_vm3, %v6885_v6, %v6886_v20 }
 0x88b   : > { %v6766_v19 = vmax.f32 %v6552_v39, %v6697_v41 }
 0x88d   : > { %v6861_v0 = vmax.f32 %v6766_v19, %v6792_v42 }
 0x88f   : > { %v13214_v63 = vmax.f32 %v6861_v0, %v6887_v27 }
 0x891   : > { %v13224_v44 = vpop.f32.mrf.mxu0 }
 0x892   : > { %v6700_v28 = vrot.slane %v13224_v44, 1 }
 0x893   : > { %v13226_v53 = vpop.f32.mrf.mxu0 }
 0x89d   : > { %v13228_v57 = vpop.f32.mrf.mxu0 }
 0x89e   : > { %v6704_v4 = vrot.slane %v13228_v57, 1 }
 0x89f   : > { %v13230_v15 = vpop.f32.mrf.mxu0 }
 0x8a9   : > { %v13232_v47 = vpop.f32.mrf.mxu0 }
 0x8aa   : > { %v6708_v25 = vrot.slane %v13232_v47, 1 }
 0x8ab   : > { %v13234_v12 = vpop.f32.mrf.mxu0 }
 0x8b5   : > { %v13236_v1 = vpop.f32.mrf.mxu0 }
 0x8b6   : > { %v6712_v26 = vrot.slane %v13236_v1, 1 }
 0x8b7   : > { %v13238_v24 = vpop.f32.mrf.mxu0 }
 0x8b8   : > { %v6710_v58 = vrot.slane %v13238_v24, 1 }
 0x8ba   : > { %v13264_v46 = vsel %vm4082_vm7, %v6708_v25, %v6710_v58 }
 0x8c1   : > { %v13240_v56 = vpop.f32.mrf.mxu0 }
 0x8c2   : > { %v6716_v48 = vrot.slane %v13240_v56, 1  ;;  %v6811_v39 = vrot.slane %v13240_v56, 2 }
 0x8c3   : > { %v13242_v16 = vpop.f32.mrf.mxu0 }
 0x8c4   : > { %v6714_v33 = vrot.slane %v13242_v16, 1  ;;  %v6809_v42 = vrot.slane %v13242_v16, 2 }
 0x8c6   : > { %v6717_v41 = vsel %vm4082_vm7, %v6714_v33, %v6716_v48  ;;  %v6715_v0 = vsel %vm4082_vm7, %v6712_v26, %v6714_v33  ;;  %v6713_v33 = vsel %vm4082_vm7, %v6710_v58, %v6712_v26  ;;  %v6812_v58 = vsel %vm4274_vm8, %v6809_v42, %v6811_v39 }
 0x8c7   : > { %v6904_v26 = vrot.slane %v13242_v16, 3 }
 0x8cd   : > { %v13244_v14 = vpop.f32.mrf.mxu0 }
 0x8ce   : > { %v6720_v60 = vrot.slane %v13244_v14, 1  ;;  %v6815_v36 = vrot.slane %v13244_v14, 2 }
 0x8cf   : > { %v13246_v40 = vpop.f32.mrf.mxu0 }
 0x8d0   : > { %v6718_v32 = vrot.slane %v13246_v40, 1  ;;  %v6813_v55 = vrot.slane %v13246_v40, 2 }
 0x8d2   : > { %v6721_v61 = vsel %vm4082_vm7, %v6718_v32, %v6720_v60  ;;  %v6719_v49 = vsel %vm4082_vm7, %v6716_v48, %v6718_v32  ;;  %v6706_v32 = vrot.slane %v13234_v12, 1  ;;  %v6807_v48 = vrot.slane %v13236_v1, 2 }
 0x8d3   : > { %v6778_v9 = vmax.f32 %v13246_v40, %v6721_v61  ;;  %v6777_v2 = vmax.f32 %v13240_v56, %v6719_v49 }
 0x8d9   : > { %v8167_v29 = vpop.f32.mrf.mxu0 }
 0x8da   : > { %v6724_v31 = vrot.slane %v8167_v29, 1  ;;  %v6819_v10 = vrot.slane %v8167_v29, 2  ;;  %v6914_v50 = vrot.slane %v8167_v29, 3 }
 0x8db   : > { %v13248_v7 = vpop.f32.mrf.mxu0 }
 0x8dc   : > { %v6722_v13 = vrot.slane %v13248_v7, 1  ;;  %v6817_v18 = vrot.slane %v13248_v7, 2  ;;  %v6912_v43 = vrot.slane %v13248_v7, 3 }
 0x8de   : > { %v6725_v45 = vsel %vm4082_vm7, %v6722_v13, %v6724_v31  ;;  %v6723_v37 = vsel %vm4082_vm7, %v6720_v60, %v6722_v13  ;;  %v6820_v34 = vsel %vm4274_vm8, %v6817_v18, %v6819_v10  ;;  %v6818_v27 = vsel %vm4274_vm8, %v6815_v36, %v6817_v18 }
 0x8df   : > { %v6780_v3 = vmax.f32 %v13248_v7, %v6725_v45  ;;  %v6779_v30 = vmax.f32 %v13244_v14, %v6723_v37  ;;  %v6910_v7 = vrot.slane %v13244_v14, 3  ;;  %v6816_v13 = vsel %vm4274_vm8, %v6813_v55, %v6815_v36 }
 0x8e0   : > { %v6915_v60 = vsel %vm3725_vm3, %v6912_v43, %v6914_v50  ;;  %v6776_v45 = vmax.f32 %v13242_v16, %v6717_v41  ;;  %v6873_v37 = vmax.f32 %v6778_v9, %v6816_v13  ;;  %v6814_v14 = vsel %vm4274_vm8, %v6811_v39, %v6813_v55 }
 0x8e1   : > { %v6875_v23 = vmax.f32 %v6780_v3, %v6820_v34  ;;  %v6805_v36 = vrot.slane %v13238_v24, 2  ;;  %v6775_v3 = vmax.f32 %v13236_v1, %v6715_v0  ;;  %v6702_v55 = vrot.slane %v13230_v15, 1 }
 0x8e2   : > { %v13253_v11 = vpop.f32.mrf.mxu0  ;;  %v6709_v16 = vsel %vm4082_vm7, %v6706_v32, %v6708_v25  ;;  %v6810_v34 = vsel %vm4274_vm8, %v6807_v48, %v6809_v42  ;;  %v6773_v39 = vmax.f32 %v13232_v47, %v13264_v46  ;;  %v6900_v41 = vrot.slane %v13238_v24, 3 }
 0x8e3   : > { %v6970_v18 = vmax.f32 %v6875_v23, %v6915_v60  ;;  %v6870_v23 = vmax.f32 %v6775_v3, %v6810_v34  ;;  %v6808_v25 = vsel %vm4274_vm8, %v6805_v36, %v6807_v48  ;;  %v6707_v46 = vsel %vm4082_vm7, %v6704_v4, %v6706_v32 }
 0x8e4   : > { %v13266_v51 = vpop.f32.mrf.mxu0  ;;  %v6898_v13 = vrot.slane %v13232_v47, 3  ;;  %v6771_v32 = vmax.f32 %v13228_v57, %v6707_v46  ;;  %v6795_v3 = vrot.slane %v13224_v44, 2 }
 0x8e5   : > { %v6726_v52 = vrot.slane %v13266_v51, 1  ;;  %v6821_v8 = vrot.slane %v13266_v51, 2  ;;  %v6916_v5 = vrot.slane %v13266_v51, 3 }
 0x8e7   : > { %v6727_v17 = vsel %vm4082_vm7, %v6724_v31, %v6726_v52  ;;  %v6822_v54 = vsel %vm4274_vm8, %v6819_v10, %v6821_v8  ;;  %v6917_v19 = vsel %vm3725_vm3, %v6914_v50, %v6916_v5  ;;  %v6908_v31 = vrot.slane %v13246_v40, 3 }
 0x8e8   : > { %v6781_v62 = vmax.f32 %v8167_v29, %v6727_v17  ;;  %v6874_v29 = vmax.f32 %v6779_v30, %v6818_v27  ;;  %v6913_v40 = vsel %vm3725_vm3, %v6910_v7, %v6912_v43  ;;  %v6872_v10 = vmax.f32 %v6777_v2, %v6814_v14 }
 0x8e9   : > { %v6906_v17 = vrot.slane %v13240_v56, 3  ;;  %v6911_v49 = vsel %vm3725_vm3, %v6908_v31, %v6910_v7  ;;  %v6774_v30 = vmax.f32 %v13238_v24, %v6713_v33  ;;  %v6803_v56 = vrot.slane %v13232_v47, 2 }
 0x8ea   : > { %v6876_v6 = vmax.f32 %v6781_v62, %v6822_v54  ;;  %v6969_v61 = vmax.f32 %v6874_v29, %v6913_v40  ;;  %v6871_v62 = vmax.f32 %v6776_v45, %v6812_v58  ;;  %v6968_v50 = vmax.f32 %v6873_v37, %v6911_v49 }
 0x8eb   : > { %v6909_v43 = vsel %vm3725_vm3, %v6906_v17, %v6908_v31  ;;  %v6801_v54 = vrot.slane %v13234_v12, 2  ;;  %v6907_v42 = vsel %vm3725_vm3, %v6904_v26, %v6906_v17  ;;  %v6772_v27 = vmax.f32 %v13234_v12, %v6709_v16 }
 0x8ec   : > { %v6971_v22 = vmax.f32 %v6876_v6, %v6917_v19  ;;  %v6967_v9 = vmax.f32 %v6872_v10, %v6909_v43  ;;  %v6902_v6 = vrot.slane %v13236_v1, 3  ;;  %v6869_v19 = vmax.f32 %v6774_v30, %v6808_v25 }
 0x8ed   : > { %v6966_v0 = vmax.f32 %v6871_v62, %v6907_v42  ;;  %v6698_v1 = vrot.slane %v13226_v53, 1  ;;  %v6799_v2 = vrot.slane %v13228_v57, 2  ;;  %v6806_v24 = vsel %vm4274_vm8, %v6803_v56, %v6805_v36 }
 0x8ee   : > { %7014 = vmatpush1.msra.mxu0 %v6971_v22  ;;  %8264 = vmatpush1.msra.mxu1 %v6971_v22  ;;  %v6905_v29 = vsel %vm3725_vm3, %v6902_v6, %v6904_v26  ;;  %v6705_v7 = vsel %vm4082_vm7, %v6702_v55, %v6704_v4  ;;  %v6868_v60 = vmax.f32 %v6773_v39, %v6806_v24  ;;  %v6896_v37 = vrot.slane %v13234_v12, 3 }
 0x8ef   : > { %7015 = vmatprep.subr.mxu0 %v14059_v21  ;;  %8241 = vmatprep.subr.mxu1 %v14059_v21  ;;  %v6965_v31 = vmax.f32 %v6870_v23, %v6905_v29  ;;  %v6804_v45 = vsel %vm4274_vm8, %v6801_v54, %v6803_v56  ;;  %v6703_v47 = vsel %vm4082_vm7, %v6700_v28, %v6702_v55  ;;  %v6797_v4 = vrot.slane %v13230_v15, 2 }
 0x8f0   : > { %7016 = vmatpush1.msra.mxu0 %v6970_v18  ;;  %8265 = vmatpush1.msra.mxu1 %v6970_v18  ;;  %v6903_v18 = vsel %vm3725_vm3, %v6900_v41, %v6902_v6  ;;  %v6867_v48 = vmax.f32 %v6772_v27, %v6804_v45  ;;  %v6699_v12 = vsel %vm4082_vm7, %v6696_v38, %v6698_v1  ;;  %v6793_v17 = vrot.slane %v13226_v53, 2 }
 0x8f1   : > { %7017 = vmatprep.subr.mxu0 %v14059_v21  ;;  %8242 = vmatprep.subr.mxu1 %v14059_v21  ;;  %v13345_v22 = vpop.f32.mrf.mxu0  ;;  %v6964_v33 = vmax.f32 %v6869_v19, %v6903_v18  ;;  %v6770_v14 = vmax.f32 %v13230_v15, %v6705_v7  ;;  %v6901_v36 = vsel %vm3725_vm3, %v6898_v13, %v6900_v41  ;;  %v6892_v62 = vrot.slane %v13230_v15, 3 }
 0x8f2   : > { %7018 = vmatpush1.msra.mxu0 %v6969_v61  ;;  %8266 = vmatpush1.msra.mxu1 %v6969_v61  ;;  %v6701_v61 = vsel %vm4082_vm7, %v6698_v1, %v6700_v28  ;;  %v6802_v10 = vsel %vm4274_vm8, %v6799_v2, %v6801_v54  ;;  %v6963_v38 = vmax.f32 %v6868_v60, %v6901_v36  ;;  %v6894_v28 = vrot.slane %v13228_v57, 3 }
 0x8f3   : > { %7019 = vmatprep.subr.mxu0 %v14059_v21  ;;  %8243 = vmatprep.subr.mxu1 %v14059_v21  ;;  %v13368_v40 = vpop.f32.mrf.mxu0  ;;  %v6769_v58 = vmax.f32 %v13224_v44, %v6703_v47  ;;  %v6899_v49 = vsel %vm3725_vm3, %v6896_v37, %v6898_v13  ;;  %v6866_v55 = vmax.f32 %v6771_v32, %v6802_v10  ;;  %v6888_v15 = vrot.slane %v13226_v53, 3 }
 0x8f4   : > { %7020 = vmatpush1.msra.mxu0 %v6968_v50  ;;  %8267 = vmatpush1.msra.mxu1 %v6968_v50  ;;  %v6800_v30 = vsel %vm4274_vm8, %v6797_v4, %v6799_v2  ;;  %v6962_v50 = vmax.f32 %v6867_v48, %v6899_v49  ;;  %v6767_v56 = vmax.f32 %v13200_v59, %v6699_v12  ;;  %v6890_v23 = vrot.slane %v13224_v44, 3 }
 0x8f5   : > { %7021 = vmatprep.subr.mxu0 %v14059_v21  ;;  %8244 = vmatprep.subr.mxu1 %v14059_v21  ;;  %v6768_v16 = vmax.f32 %v13226_v53, %v6701_v61  ;;  %v6865_v34 = vmax.f32 %v6770_v14, %v6800_v30  ;;  %v6798_v43 = vsel %vm4274_vm8, %v6795_v3, %v6797_v4  ;;  %v6730_v27 = vrot.slane %v13368_v40, 1 }
 0x8f6   : > { %7022 = vmatpush1.msra.mxu0 %v6967_v9  ;;  %8268 = vmatpush1.msra.mxu1 %v6967_v9  ;;  %v6897_v57 = vsel %vm3725_vm3, %v6894_v28, %v6896_v37  ;;  %v6864_v9 = vmax.f32 %v6769_v58, %v6798_v43  ;;  %v6794_v6 = vsel %vm4274_vm8, %v6791_v35, %v6793_v17  ;;  %v6728_v1 = vrot.slane %v13253_v11, 1 }
 0x8f7   : > { %7023 = vmatprep.subr.mxu0 %v14059_v21  ;;  %8245 = vmatprep.subr.mxu1 %v14059_v21  ;;  %v6961_v39 = vmax.f32 %v6866_v55, %v6897_v57  ;;  %v6796_v25 = vsel %vm4274_vm8, %v6793_v17, %v6795_v3  ;;  %v6895_v41 = vsel %vm3725_vm3, %v6892_v62, %v6894_v28  ;;  %v6732_v2 = vrot.slane %v13345_v22, 1 }
 0x8f8   : > { %7024 = vmatpush1.msra.mxu0 %v6966_v0  ;;  %8269 = vmatpush1.msra.mxu1 %v6966_v0  ;;  %v6863_v53 = vmax.f32 %v6768_v16, %v6796_v25  ;;  %v6960_v42 = vmax.f32 %v6865_v34, %v6895_v41  ;;  %v6862_v46 = vmax.f32 %v6767_v56, %v6794_v6  ;;  %v6827_v49 = vrot.slane %v13345_v22, 2 }
 0x8f9   : > { %7025 = vmatprep.subr.mxu0 %v14059_v21  ;;  %8246 = vmatprep.subr.mxu1 %v14059_v21  ;;  %v6893_v35 = vsel %vm3725_vm3, %v6890_v23, %v6892_v62  ;;  %v6891_v0 = vsel %vm3725_vm3, %v6888_v15, %v6890_v23  ;;  %v6889_v7 = vsel %vm3725_vm3, %v6886_v20, %v6888_v15  ;;  %v6825_v62 = vrot.slane %v13368_v40, 2 }
 0x8fa   : > { %7026 = vmatpush1.msra.mxu0 %v6965_v31  ;;  %8270 = vmatpush1.msra.mxu1 %v6965_v31  ;;  %v6959_v44 = vmax.f32 %v6864_v9, %v6893_v35  ;;  %v6958_v31 = vmax.f32 %v6863_v53, %v6891_v0  ;;  %v6957_v60 = vmax.f32 %v6862_v46, %v6889_v7  ;;  %v6823_v6 = vrot.slane %v13253_v11, 2 }
 0x8fb   : > { %7027 = vmatprep.subr.mxu0 %v14059_v21  ;;  %8247 = vmatprep.subr.mxu1 %v14059_v21  ;;  %v13422_v32 = vsel %vm4082_vm7, %v6728_v1, %v6730_v27  ;;  %v13425_v45 = vsel %vm4082_vm7, %v6730_v27, %v6732_v2  ;;  %v6828_v46 = vsel %vm4274_vm8, %v6825_v62, %v6827_v49 }
 0x8fc   : > { %7028 = vmatpush1.msra.mxu0 %v6964_v33  ;;  %8271 = vmatpush1.msra.mxu1 %v6964_v33  ;;  %v6783_v25 = vmax.f32 %v13253_v11, %v13422_v32  ;;  %v6826_v0 = vsel %vm4274_vm8, %v6823_v6, %v6825_v62  ;;  %v6986_v32 = vld [vmem:[%s13643_s8 + $0x30] sm:$0xff] }
 0x8fd   : > { %v13380_v26 = vpop.f32.mrf.mxu0  ;;  %7029 = vmatprep.subr.mxu0 %v14059_v21  ;;  %8248 = vmatprep.subr.mxu1 %v14059_v21 }
 0x8fe   : > { %7030 = vmatpush1.msra.mxu0 %v6963_v38  ;;  %8272 = vmatpush1.msra.mxu1 %v6963_v38  ;;  %v6736_v24 = vrot.slane %v13380_v26, 1  ;;  %v6831_v48 = vrot.slane %v13380_v26, 2  ;;  %v6926_v34 = vrot.slane %v13380_v26, 3 }
 0x8ff   : > { %7031 = vmatprep.subr.mxu0 %v14059_v21  ;;  %8249 = vmatprep.subr.mxu1 %v14059_v21  ;;  %v13395_v54 = vpop.f32.mrf.mxu0 }
 0x900   : > { %7032 = vmatpush1.msra.mxu0 %v6962_v50  ;;  %8273 = vmatpush1.msra.mxu1 %v6962_v50  ;;  %v6734_v19 = vrot.slane %v13395_v54, 1  ;;  %v6829_v12 = vrot.slane %v13395_v54, 2  ;;  %v6924_v57 = vrot.slane %v13395_v54, 3 }
 0x901   : > { %7033 = vmatprep.subr.mxu0 %v14059_v21  ;;  %8250 = vmatprep.subr.mxu1 %v14059_v21 }
 0x902   : > { %7034 = vmatpush1.msra.mxu0 %v6961_v39  ;;  %8274 = vmatpush1.msra.mxu1 %v6961_v39  ;;  %v6737_v37 = vsel %vm4082_vm7, %v6734_v19, %v6736_v24  ;;  %v6735_v33 = vsel %vm4082_vm7, %v6732_v2, %v6734_v19  ;;  %v6832_v43 = vsel %vm4274_vm8, %v6829_v12, %v6831_v48  ;;  %v6918_v2 = vrot.slane %v13253_v11, 3 }
 0x903   : > { %7035 = vmatprep.subr.mxu0 %v14059_v21  ;;  %8251 = vmatprep.subr.mxu1 %v14059_v21  ;;  %v6786_v38 = vmax.f32 %v13395_v54, %v6737_v37  ;;  %v6785_v50 = vmax.f32 %v13345_v22, %v6735_v33  ;;  %v6784_v39 = vmax.f32 %v13368_v40, %v13425_v45  ;;  %v6980_v45 = vld [vmem:[%s13643_s8] sm:$0xff] }
 0x904   : > { %7036 = vmatpush1.msra.mxu0 %v6960_v42  ;;  %8275 = vmatpush1.msra.mxu1 %v6960_v42  ;;  %v6830_v54 = vsel %vm4274_vm8, %v6827_v49, %v6829_v12  ;;  %v6922_v42 = vrot.slane %v13345_v22, 3  ;;  %v6927_v27 = vsel %vm3725_vm3, %v6924_v57, %v6926_v34  ;;  %v6988_v37 = vld [vmem:[%s13643_s8 + $0x40] sm:$0xff] }
 0x905   : > { %7037 = vmatprep.subr.mxu0 %v14059_v21  ;;  %8252 = vmatprep.subr.mxu1 %v14059_v21  ;;  %v6881_v9 = vmax.f32 %v6786_v38, %v6832_v43  ;;  %v6880_v53 = vmax.f32 %v6785_v50, %v6830_v54  ;;  %v6879_v35 = vmax.f32 %v6784_v39, %v6828_v46  ;;  %v7116_v43 = vld [vmem:[%s13644_s9 + $0x10] sm:$0xff]  ;;  %v7119_v39 = vld [vmem:[%s13644_s9 + $0x28] sm:$0xff]  ;;  %v7279_v54 = vld [vmem:[%s13646_s11] sm:$0xff] }
 0x906   : > { %v8179_v29 = vpop.f32.mrf.mxu0  ;;  %7038 = vmatpush1.msra.mxu0 %v6959_v44  ;;  %8276 = vmatpush1.msra.mxu1 %v6959_v44  ;;  %v6925_v22 = vsel %vm3725_vm3, %v6922_v42, %v6924_v57  ;;  %v7117_v57 = vld [vmem:[%s13644_s9 + $0x18] sm:$0xff] }
 0x907   : > { %v6740_v13 = vrot.slane %v8179_v29, 1  ;;  %7039 = vmatprep.subr.mxu0 %v14059_v21  ;;  %8253 = vmatprep.subr.mxu1 %v14059_v21  ;;  %v6835_v18 = vrot.slane %v8179_v29, 2  ;;  %v6930_v14 = vrot.slane %v8179_v29, 3  ;;  %v6976_v44 = vmax.f32 %v6881_v9, %v6927_v27  ;;  %v7120_v9 = vld [vmem:[%s13644_s9 + $0x30] sm:$0xff] }
 0x908   : > { %v6662_v59 = vpop.f32.mrf.mxu0  ;;  %7040 = vmatpush1.msra.mxu0 %v6958_v31  ;;  %8277 = vmatpush1.msra.mxu1 %v6958_v31 }
 0x909   : > { %v6789_v20 = vmax.f32 %v8179_v29, %v6740_v13  ;;  %v6738_v47 = vrot.slane %v6662_v59, 1  ;;  %v6833_v4 = vrot.slane %v6662_v59, 2  ;;  %7041 = vmatprep.subr.mxu0 %v14059_v21  ;;  %8254 = vmatprep.subr.mxu1 %v14059_v21  ;;  %v6928_v10 = vrot.slane %v6662_v59, 3 }
 0x90a   : > { %7042 = vmatpush1.msra.mxu0 %v6957_v60  ;;  %8278 = vmatpush1.msra.mxu1 %v6957_v60 }
 0x90b   : > { %v6884_v36 = vmax.f32 %v6789_v20, %v6835_v18  ;;  %v6739_v3 = vsel %vm4082_vm7, %v6736_v24, %v6738_v47  ;;  %v6741_v61 = vsel %vm4082_vm7, %v6738_v47, %v6740_v13  ;;  %7043 = vmatprep.subr.mxu0 %v14059_v21  ;;  %v6834_v28 = vsel %vm4274_vm8, %v6831_v48, %v6833_v4  ;;  %v6991_v20 = vld [vmem:[%s13643_s8 + $0x58] sm:$0xff]  ;;  %v6990_v47 = vld [vmem:[%s13643_s8 + $0x50] sm:$0xff] }
 0x90c   : > { %v6787_v17 = vmax.f32 %v13380_v26, %v6739_v3  ;;  %v6788_v58 = vmax.f32 %v6662_v59, %v6741_v61  ;;  %v6836_v30 = vsel %vm4274_vm8, %v6833_v4, %v6835_v18  ;;  %8255 = vmatprep.subr.mxu1 %v14059_v21  ;;  %7044 = vmatpush1.msra.mxu0 %v13214_v63  ;;  %v6982_v59 = vld [vmem:[%s13643_s8 + $0x10] sm:$0xff]  ;;  %v6985_v18 = vld [vmem:[%s13643_s8 + $0x28] sm:$0xff]  ;;  %v6984_v4 = vld [vmem:[%s13643_s8 + $0x20] sm:$0xff] }
 0x90d   : > { %v6979_v55 = vmax.f32 %v6884_v36, %v6930_v14  ;;  %8279 = vmatpush1.msra.mxu1 %v13214_v63  ;;  %7061 = vmatprep.subr.mxu0 %v14059_v21  ;;  %v6931_v15 = vsel %vm3725_vm3, %v6928_v10, %v6930_v14  ;;  %v6729_v26 = vsel %vm4082_vm7, %v6726_v52, %v6728_v1  ;;  %v6920_v52 = vrot.slane %v13368_v40, 3 }
 0x90e   : > { %v6883_v56 = vmax.f32 %v6788_v58, %v6836_v30  ;;  %v6882_v16 = vmax.f32 %v6787_v17, %v6834_v28  ;;  %8256 = vmatprep.subr.mxu1 %v14059_v21  ;;  %v6929_v23 = vsel %vm3725_vm3, %v6926_v34, %v6928_v10  ;;  %v6782_v19 = vmax.f32 %v13266_v51, %v6729_v26  ;;  %v6989_v51 = vld [vmem:[%s13643_s8 + $0x48] sm:$0xff]  ;;  %v7122_v26 = vld [vmem:[%s13644_s9 + $0x40] sm:$0xff] }
 0x90f   : > { %7815 = vmatpush2.msk.msra.mxu0 %vm3725_vm3, %v6979_v55  ;;  %8280 = vmatpush2.msk.msra.mxu1 %vm3725_vm3, %v6979_v55  ;;  %v6975_v40 = vmax.f32 %v6880_v53, %v6925_v22  ;;  %v6878_v1 = vmax.f32 %v6783_v25, %v6826_v0  ;;  %v6824_v24 = vsel %vm4274_vm8, %v6821_v8, %v6823_v6  ;;  %v7115_v34 = vld [vmem:[%s13644_s9 + $0x8] sm:$0xff] }
 0x910   : > { %7063 = vmatprep.subr.mxu0 %v14059_v21  ;;  %v6978_v63 = vmax.f32 %v6883_v56, %v6931_v15  ;;  %8257 = vmatprep.subr.mxu1 %v14059_v21  ;;  %v6977_v41 = vmax.f32 %v6882_v16, %v6929_v23  ;;  %v6923_v29 = vsel %vm3725_vm3, %v6920_v52, %v6922_v42  ;;  %v7114_v16 = vld [vmem:[%s13644_s9] sm:$0xff] }
 0x911   : > { %v6877_v7 = vmax.f32 %v6782_v19, %v6824_v24  ;;  %v6974_v13 = vmax.f32 %v6879_v35, %v6923_v29  ;;  %v6921_v11 = vsel %vm3725_vm3, %v6918_v2, %v6920_v52  ;;  %v6919_v8 = vsel %vm3725_vm3, %v6916_v5, %v6918_v2  ;;  %v6983_v5 = vld [vmem:[%s13643_s8 + $0x18] sm:$0xff]  ;;  %v7118_v15 = vld [vmem:[%s13644_s9 + $0x20] sm:$0xff] }
 0x912   : > { %7064 = vmatpush2.msra.mxu0 %v6978_v63  ;;  %8281 = vmatpush2.msra.mxu1 %v6978_v63  ;;  %v6973_v31 = vmax.f32 %v6878_v1, %v6921_v11  ;;  %v7121_v63 = vld [vmem:[%s13644_s9 + $0x38] sm:$0xff]  ;;  %v7269_v1 = vld [vmem:[%s13645_s10 + $0x40] sm:$0xff]  ;;  %vm7363_vm3 = vcmask 130048  }
 0x913   : > { %7065 = vmatprep.subr.mxu0 %v14059_v21  ;;  %8258 = vmatprep.subr.mxu1 %v14059_v21  ;;  %v6972_v60 = vmax.f32 %v6877_v7, %v6919_v8  ;;  %v7268_v2 = vld [vmem:[%s13645_s10 + $0x38] sm:$0xff]  ;;  %v7267_v7 = vld [vmem:[%s13645_s10 + $0x30] sm:$0xff] }
 0x914   : > { %7066 = vmatpush2.msra.mxu0 %v6977_v41  ;;  %8282 = vmatpush2.msra.mxu1 %v6977_v41 }
 0x915   : > { %7067 = vmatprep.subr.mxu0 %v14059_v21  ;;  %8259 = vmatprep.subr.mxu1 %v14059_v21 }
 0x916   : > { %7068 = vmatpush2.msra.mxu0 %v6976_v44  ;;  %8283 = vmatpush2.msra.mxu1 %v6976_v44 }
 0x917   : > { %7069 = vmatprep.subr.mxu0 %v14059_v21  ;;  %8260 = vmatprep.subr.mxu1 %v14059_v21 }
 0x918   : > { %7070 = vmatpush2.msra.mxu0 %v6975_v40  ;;  %8284 = vmatpush2.msra.mxu1 %v6975_v40 }
 0x919   : > { %7071 = vmatprep.subr.mxu0 %v14059_v21  ;;  %8261 = vmatprep.subr.mxu1 %v14059_v21 }
 0x91a   : > { %7072 = vmatpush2.msra.mxu0 %v6974_v13  ;;  %8285 = vmatpush2.msra.mxu1 %v6974_v13 }
 0x91b   : > { %7073 = vmatprep.subr.mxu0 %v14059_v21  ;;  %8262 = vmatprep.subr.mxu1 %v14059_v21 }
 0x91c   : > { %7074 = vmatpush2.msra.mxu0 %v6973_v31  ;;  %8286 = vmatpush2.msra.mxu1 %v6973_v31  ;;  %v7266_v31 = vld [vmem:[%s13645_s10 + $0x28] sm:$0xff] }
 0x91d   : > { %7075 = vmatprep.subr.mxu0 %v14059_v21  ;;  %8263 = vmatprep.subr.mxu1 %v14059_v21 }
 0x91e   : > { %7076 = vmatpush2.msra.mxu0 %v6972_v60  ;;  %8287 = vmatpush2.msra.mxu1 %v6972_v60  ;;  %v7265_v60 = vld [vmem:[%s13645_s10 + $0x20] sm:$0xff] }
 0x91f   : > { %7093 = vmatmul.mubr.f32.vlgmr.msra.gmra.mxu1 %v6986_v32  ;;  %7078 = vmatmul.mubr.f32.vlgmr.msra.gmra.mxu0 %v6980_v45  ;;  %v7264_v45 = vld [vmem:[%s13645_s10 + $0x18] sm:$0xff] }
 0x920   : > { %7820 = vmatprep.mubr.msk.f32.mxu1 %vm6410_vm14, %v6989_v51  ;;  %7817 = vmatprep.mubr.msk.f32.mxu0 %vm6410_vm14, %v6983_v5  ;;  %v7263_v5 = vld [vmem:[%s13645_s10 + $0x10] sm:$0xff] }
 0x921   : > { %8180 = vmatprep.subr.mxu0 %v14059_v21 }
 0x923   : > { %7098 = vmatmul.mubr.f32.gmra.mxu1 %v6988_v37  ;;  %7083 = vmatmul.mubr.f32.gmra.mxu0 %v6982_v59  ;;  %v7262_v59 = vld [vmem:[%s13645_s10 + $0x8] sm:$0xff] }
 0x924   : > { %7821 = vmatprep.mubr.msk.f32.mxu1 %vm6410_vm14, %v6991_v20  ;;  %7818 = vmatprep.mubr.msk.f32.mxu0 %vm6410_vm14, %v6985_v18  ;;  %v7261_v18 = vld [vmem:[%s13645_s10] sm:$0xff] }
 0x927   : > { %7103 = vmatmul.mubr.f32.gmra.mxu1 %v6990_v47  ;;  %7088 = vmatmul.mubr.f32.gmra.mxu0 %v6984_v4 }
 0x928   : > { %8192 = vmatprep.mubr.msk.f32.mxu0 %vm8867_vm15, %v14059_v21  ;;  %8237 = vmatprep.mubr.msk.f32.mxu1 %vm7281_vm1, %v7279_v54 }
 0x9df   : > { %v7094_v48 = vpop.f32.mrf.mxu1  ;;  %v7079_v33 = vpop.f32.mrf.mxu0 }
 0x9e0   : > { %v7111_v30 = vmax.f32 %v7094_v48, 0.0  ;;  %v7108_v56 = vmax.f32 %v7079_v33, 0.0  ;;  %v7280_v48 = vld [vmem:[%s13646_s11 + $0x8] sm:$0xf] }
 0x9e1   : > { %v7096_v12 = vpop.f32.mrf.mxu1  ;;  %v7081_v14 = vpop.f32.mrf.mxu0 }
 0x9e3   : > { %v7099_v36 = vpop.f32.mrf.mxu1  ;;  %v7084_v3 = vpop.f32.mrf.mxu0 }
 0x9e4   : > { %v7112_v28 = vmax.f32 %v7099_v36, 0.0  ;;  %v7109_v50 = vmax.f32 %v7084_v3, 0.0 }
 0x9e5   : > { %v7101_v61 = vpop.f32.mrf.mxu1  ;;  %v7086_v10 = vpop.f32.mrf.mxu0 }
 0x9e7   : > { %v7104_v38 = vpop.f32.mrf.mxu1  ;;  %v7089_v17 = vpop.f32.mrf.mxu0 }
 0x9e8   : > { %v7113_v58 = vmax.f32 %v7104_v38, 0.0  ;;  %v7110_v62 = vmax.f32 %v7089_v17, 0.0 }
 0x9e9   : > { %v7106_v49 = vpop.f32.mrf.mxu1  ;;  %v7091_v55 = vpop.f32.mrf.mxu0 }
 0x9ea   : > { %8181 = vmatpush3.msra.mxu0 %v7113_v58 }
 0x9eb   : > { %8182 = vmatprep.subr.mxu0 %v14059_v21 }
 0x9ec   : > { %8183 = vmatpush3.msra.mxu0 %v7112_v28 }
 0x9ed   : > { %8184 = vmatprep.subr.mxu0 %v14059_v21 }
 0x9ee   : > { %8185 = vmatpush3.msra.mxu0 %v7111_v30 }
 0x9ef   : > { %8186 = vmatprep.subr.mxu0 %v14059_v21 }
 0x9f0   : > { %8187 = vmatpush3.msra.mxu0 %v7110_v62 }
 0x9f1   : > { %8188 = vmatprep.subr.mxu0 %v14059_v21 }
 0x9f2   : > { %8189 = vmatpush3.msra.mxu0 %v7109_v50 }
 0x9f3   : > { %8190 = vmatprep.subr.mxu0 %v14059_v21 }
 0x9f4   : > { %8191 = vmatpush3.msra.mxu0 %v7108_v56 }
 0x9f5   : > { %8193 = vmatmul.mubr.msk.f32.vlgmr.msra.gmra.mxu0 %vm7123_vm0, %v7114_v16 }
 0x9f6   : > { %8195 = vmatprep.mubr.msk.f32.mxu0 %vm8867_vm15, %v14059_v21 }
 0x9f9   : > { %8196 = vmatmul.mubr.msk.f32.gmra.mxu0 %vm7123_vm0, %v7115_v34 }
 0x9fa   : > { %8198 = vmatprep.mubr.msk.f32.mxu0 %vm8867_vm15, %v14059_v21 }
 0x9fd   : > { %8199 = vmatmul.mubr.msk.f32.gmra.mxu0 %vm7123_vm0, %v7116_v43 }
 0x9fe   : > { %8201 = vmatprep.mubr.msk.f32.mxu0 %vm8867_vm15, %v14059_v21 }
 0xa01   : > { %8202 = vmatmul.mubr.msk.f32.gmra.mxu0 %vm7123_vm0, %v7117_v57 }
 0xa02   : > { %8204 = vmatprep.mubr.msk.f32.mxu0 %vm8867_vm15, %v14059_v21 }
 0xa05   : > { %8205 = vmatmul.mubr.msk.f32.gmra.mxu0 %vm7123_vm0, %v7118_v15 }
 0xa06   : > { %8207 = vmatprep.mubr.msk.f32.mxu0 %vm8867_vm15, %v14059_v21 }
 0xa09   : > { %8208 = vmatmul.mubr.msk.f32.gmra.mxu0 %vm7123_vm0, %v7119_v39 }
 0xa0a   : > { %8210 = vmatprep.mubr.msk.f32.mxu0 %vm8867_vm15, %v14059_v21 }
 0xa0d   : > { %8211 = vmatmul.mubr.msk.f32.gmra.mxu0 %vm7123_vm0, %v7120_v9 }
 0xa0e   : > { %8213 = vmatprep.mubr.msk.f32.mxu0 %vm8867_vm15, %v14059_v21 }
 0xa11   : > { %8214 = vmatmul.mubr.msk.f32.gmra.mxu0 %vm7123_vm0, %v7121_v63 }
 0xa12   : > { %8216 = vmatprep.mubr.msk.f32.mxu0 %vm8867_vm15, %v14059_v21 }
 0xa15   : > { %8217 = vmatmul.mubr.msk.f32.gmra.mxu0 %vm7123_vm0, %v7122_v26 }
 0xab5   : > { %v7217_v23 = vpop.f32.mrf.mxu0 }
 0xab6   : > { %v7270_v4 = vmul.f32 %v7261_v18, %v7217_v23 }
 0xab7   : > { %v8194_v6 = vpop.f32.mrf.mxu0 }
 0xab9   : > { %v7222_v25 = vpop.f32.mrf.mxu0 }
 0xaba   : > { %v7271_v47 = vmul.f32 %v7262_v59, %v7222_v25 }
 0xabb   : > { %v8197_v41 = vpop.f32.mrf.mxu0 }
 0xabd   : > { %v7227_v53 = vpop.f32.mrf.mxu0 }
 0xabe   : > { %v7272_v20 = vmul.f32 %v7263_v5, %v7227_v53 }
 0xabf   : > { %v8200_v42 = vpop.f32.mrf.mxu0 }
 0xac1   : > { %v7232_v21 = vpop.f32.mrf.mxu0 }
 0xac2   : > { %v7273_v37 = vmul.f32 %v7264_v45, %v7232_v21 }
 0xac3   : > { %v8203_v46 = vpop.f32.mrf.mxu0 }
 0xac5   : > { %v7237_v52 = vpop.f32.mrf.mxu0 }
 0xac6   : > { %v7274_v51 = vmul.f32 %v7265_v60, %v7237_v52 }
 0xac7   : > { %v8206_v27 = vpop.f32.mrf.mxu0 }
 0xac9   : > { %v7242_v19 = vpop.f32.mrf.mxu0 }
 0xaca   : > { %v7275_v32 = vmul.f32 %v7266_v31, %v7242_v19 }
 0xacb   : > { %v8209_v35 = vpop.f32.mrf.mxu0 }
 0xacd   : > { %v7247_v44 = vpop.f32.mrf.mxu0 }
 0xace   : > { %v7276_v8 = vmul.f32 %v7267_v7, %v7247_v44 }
 0xacf   : > { %v8212_v0 = vpop.f32.mrf.mxu0 }
 0xad1   : > { %v7252_v22 = vpop.f32.mrf.mxu0 }
 0xad2   : > { %v7277_v11 = vmul.f32 %v7268_v2, %v7252_v22 }
 0xad3   : > { %v8215_v40 = vpop.f32.mrf.mxu0 }
 0xad5   : > { %v7257_v24 = vpop.f32.mrf.mxu0 }
 0xad6   : > { %v7278_v29 = vmul.f32 %v7269_v1, %v7257_v24 }
 0xad7   : > { %v8218_v13 = vpop.f32.mrf.mxu0 }
 0xad8   : > { %8219 = vmatprep.subr.mxu1 %v7278_v29 }
 0xad9   : > { %8220 = vmatpush3.msra.mxu1 %v7278_v29 }
 0xada   : > { %8221 = vmatprep.subr.mxu1 %v7277_v11 }
 0xadb   : > { %8222 = vmatpush3.msra.mxu1 %v7277_v11 }
 0xadc   : > { %8223 = vmatprep.subr.mxu1 %v7276_v8 }
 0xadd   : > { %8224 = vmatpush3.msra.mxu1 %v7276_v8 }
 0xade   : > { %8225 = vmatprep.subr.mxu1 %v7275_v32 }
 0xadf   : > { %8226 = vmatpush3.msra.mxu1 %v7275_v32 }
 0xae0   : > { %8227 = vmatprep.subr.mxu1 %v7274_v51 }
 0xae1   : > { %8228 = vmatpush3.msra.mxu1 %v7274_v51 }
 0xae2   : > { %8229 = vmatprep.subr.mxu1 %v7273_v37 }
 0xae3   : > { %8230 = vmatpush3.msra.mxu1 %v7273_v37 }
 0xae4   : > { %8231 = vmatprep.subr.mxu1 %v7272_v20 }
 0xae5   : > { %8232 = vmatpush3.msra.mxu1 %v7272_v20 }
 0xae6   : > { %8233 = vmatprep.subr.mxu1 %v7271_v47 }
 0xae7   : > { %8234 = vmatpush3.msra.mxu1 %v7271_v47 }
 0xae8   : > { %8235 = vmatprep.subr.mxu1 %v7270_v4 }
 0xae9   : > { %8236 = vmatpush3.msra.mxu1 %v7270_v4 }
 0xaea   : > { %8238 = vmatmul.mubr.msk.f32.vlgmr.msra.gmra.mxu1 %vm7281_vm1, %v7280_v48 }
 0xbaa   : > { %v8239_v33 = vpop.f32.mrf.mxu1 }
 0xbab   : > { %7366 = vst.msk [vmem:[%s418_s24 + $0x8] sm:$0xf] %vm7365_vm2, %v8239_v33 }
 0xbac   : > { %v7354_v12 = vpop.f32.mrf.mxu1 }
 0xbad   : > { %7364 = vst.msk [vmem:[%s418_s24] sm:$0xff] %vm7363_vm3, %v7354_v12 }
 0xbae PF: > { %s22_s21 = sadd.s32 1, %s8859_s21  }
 0xbaf   : > { %p19_p5 = scmp.ge.s32.totalorder %s22_s21, 4  }
 0xbb1   :  { %21 = sbr.rel (!%p19_p5) target bundleno = 1 (0x1), region = 99 }

</bundles_post_ra>
